<compile_context>
chip_gen: v5e
topology: v5e:2x2
jax: 0.10.0
libtpu: 0.0.40
codegen_flags: <defaults>
</compile_context>

<pallas_src>
import functools

import jax
import jax.numpy as jnp
from jax.experimental import pallas as pl
from jax.experimental.pallas import tpu as pltpu


def _mlp_kernel(x_ref, w1_ref, b1_ref, w2_ref, b2_ref, o_ref):
    # Two MXU matmuls (bf16 inputs, f32 accumulation) + VPU bias-add / ReLU.
    h = jnp.dot(x_ref[...], w1_ref[...], preferred_element_type=jnp.float32)
    h = jnp.maximum(h + b1_ref[...], 0.0)            # bias + ReLU in f32
    out = jnp.dot(h.astype(w2_ref.dtype), w2_ref[...],
                  preferred_element_type=jnp.float32)
    o_ref[...] = (out + b2_ref[...]).astype(o_ref.dtype)


@functools.partial(jax.jit, static_argnames=("block_b",))
def embedding_network_forward(x, w1, b1, w2, b2, *, block_b=256):
    """x: [B, D_in]; w1: [D_in, H]; b1: [1, H]; w2: [H, D_out]; b2: [1, D_out]."""
    B, D_in = x.shape
    H = w1.shape[1]
    D_out = w2.shape[1]
    out_dtype = x.dtype

    # Pad the batch up to a multiple of block_b (remainder handled by padding,
    # padded rows are sliced off at the end).
    n_blocks = pl.cdiv(B, block_b)
    B_pad = n_blocks * block_b
    if B_pad != B:
        x = jnp.pad(x, ((0, B_pad - B), (0, 0)))

    # bf16 MXU inputs; biases stay f32 (added to the f32 accumulator).
    x_bf = x.astype(jnp.bfloat16)
    w1_bf = w1.astype(jnp.bfloat16)
    w2_bf = w2.astype(jnp.bfloat16)
    b1_f32 = b1.astype(jnp.float32)
    b2_f32 = b2.astype(jnp.float32)

    flops = 2 * B_pad * (D_in * H + H * D_out)
    bytes_accessed = (x_bf.size * 2 + w1_bf.size * 2 + w2_bf.size * 2
                      + b1_f32.size * 4 + b2_f32.size * 4
                      + B_pad * D_out * jnp.dtype(out_dtype).itemsize)

    out = pl.pallas_call(
        _mlp_kernel,
        out_shape=jax.ShapeDtypeStruct((B_pad, D_out), out_dtype),
        grid_spec=pltpu.PrefetchScalarGridSpec(
            num_scalar_prefetch=0,
            grid=(n_blocks,),
            in_specs=[
                pl.BlockSpec((block_b, D_in), lambda i: (i, 0)),  # x tile
                pl.BlockSpec((D_in, H), lambda i: (0, 0)),        # W1 (resident)
                pl.BlockSpec((1, H), lambda i: (0, 0)),           # b1
                pl.BlockSpec((H, D_out), lambda i: (0, 0)),       # W2 (resident)
                pl.BlockSpec((1, D_out), lambda i: (0, 0)),       # b2
            ],
            out_specs=pl.BlockSpec((block_b, D_out), lambda i: (i, 0)),
        ),
        compiler_params=pltpu.CompilerParams(
            dimension_semantics=("parallel",)),
        cost_estimate=pl.CostEstimate(
            flops=flops, transcendentals=0, bytes_accessed=bytes_accessed),
    )(x_bf, w1_bf, b1_f32, w2_bf, b2_f32)

    return out[:B]


def init_params(key, embedding_dim=768, hidden_dim=512, output_dim=256,
                dtype=jnp.float32):
    """Deterministic init mimicking torch.nn.Linear default (uniform +-1/sqrt(fan_in))."""
    k1, k2, k3, k4 = jax.random.split(key, 4)
    bound1 = 1.0 / (embedding_dim ** 0.5)
    bound2 = 1.0 / (hidden_dim ** 0.5)
    # Stored as [in, out] (transposed relative to PyTorch's [out, in]).
    w1 = jax.random.uniform(k1, (embedding_dim, hidden_dim), dtype,
                            minval=-bound1, maxval=bound1)
    b1 = jax.random.uniform(k2, (1, hidden_dim), dtype,
                            minval=-bound1, maxval=bound1)
    w2 = jax.random.uniform(k3, (hidden_dim, output_dim), dtype,
                            minval=-bound2, maxval=bound2)
    b2 = jax.random.uniform(k4, (1, output_dim), dtype,
                            minval=-bound2, maxval=bound2)
    return w1, b1, w2, b2


def reference_forward_bf16(x, w1, b1, w2, b2):
    """Matches the kernel's numerics: bf16 matmul inputs, f32 accumulate."""
    xb = x.astype(jnp.bfloat16)
    w1b = w1.astype(jnp.bfloat16)
    w2b = w2.astype(jnp.bfloat16)
    h = jnp.dot(xb, w1b, preferred_element_type=jnp.float32) + b1
    h = jnp.maximum(h, 0.0)
    out = jnp.dot(h.astype(jnp.bfloat16), w2b,
                  preferred_element_type=jnp.float32) + b2
    return out.astype(x.dtype)


def reference_forward_f32(x, w1, b1, w2, b2):
    h = jnp.maximum(x @ w1 + b1, 0.0)
    return h @ w2 + b2


if __name__ == "__main__":
    key = jax.random.PRNGKey(0)
    k_params, k_x = jax.random.split(key)

    B, D_in, H, D_out = 8, 768, 512, 256
    w1, b1, w2, b2 = init_params(k_params, D_in, H, D_out)
    x = jax.random.normal(k_x, (B, D_in), jnp.float32)

    out = embedding_network_forward(x, w1, b1, w2, b2)
    out = jax.block_until_ready(out)
    assert out.shape == (B, D_out), out.shape

    # Tight check against a bf16-matched reference (same numerics as kernel).
    ref_bf16 = reference_forward_bf16(x, w1, b1, w2, b2)
    assert jnp.allclose(out, ref_bf16, atol=1e-2, rtol=1e-2), \
        "mismatch vs bf16 reference"

    # Loose sanity check against the pure-f32 PyTorch-equivalent forward
    # (bf16 MXU inputs change numerics slightly, per perf review).
    ref_f32 = reference_forward_f32(x, w1, b1, w2, b2)
    assert jnp.allclose(out, ref_f32, atol=1e-1, rtol=1e-1), \
        "mismatch vs f32 reference"

    print("KERNEL_OK")
</pallas_src>

<mosaic_0001>
module attributes {stable_mosaic.version = 11 : i64} {
  func.func @_mlp_kernel(%arg0: i32, %arg1: memref<256x768xbf16, #tpu.memory_space<vmem>>, %arg2: memref<768x512xbf16, #tpu.memory_space<vmem>>, %arg3: memref<1x512xf32, #tpu.memory_space<vmem>>, %arg4: memref<512x256xbf16, #tpu.memory_space<vmem>>, %arg5: memref<1x256xf32, #tpu.memory_space<vmem>>, %arg6: memref<256x256xf32, #tpu.memory_space<vmem>>) attributes {dimension_semantics = [#tpu.dimension_semantics<parallel>], iteration_bounds = array<i64: 1>, scalar_prefetch = 0 : i64, scratch_operands = 0 : i64, tpu.core_type = #tpu.core_type<tc>, window_params = [{transform_indices = @transform_0, window_bounds = array<i64: 256, 768>}, {pipeline_mode = #tpu.pipeline_mode<synchronous>, transform_indices = @transform_1, window_bounds = array<i64: 768, 512>}, {pipeline_mode = #tpu.pipeline_mode<synchronous>, transform_indices = @transform_2, window_bounds = array<i64: 1, 512>}, {pipeline_mode = #tpu.pipeline_mode<synchronous>, transform_indices = @transform_3, window_bounds = array<i64: 512, 256>}, {pipeline_mode = #tpu.pipeline_mode<synchronous>, transform_indices = @transform_4, window_bounds = array<i64: 1, 256>}, {transform_indices = @transform_5, window_bounds = array<i64: 256, 256>}]} {
    %c0 = arith.constant 0 : index
    %c0_0 = arith.constant 0 : index
    %0 = vector.load %arg1[%c0, %c0_0] : memref<256x768xbf16, #tpu.memory_space<vmem>>, vector<256x768xbf16>
    %c0_1 = arith.constant 0 : index
    %c0_2 = arith.constant 0 : index
    %1 = vector.load %arg2[%c0_1, %c0_2] : memref<768x512xbf16, #tpu.memory_space<vmem>>, vector<768x512xbf16>
    %cst = arith.constant dense<0.000000e+00> : vector<256x512xf32>
    %2 = tpu.matmul %0, %1, %cst {dimension_numbers = #tpu.dot_dimension_numbers<[1], [0], [0], [1], [0, 0, 1, 1], [], []>} : vector<256x768xbf16>, vector<768x512xbf16>, vector<256x512xf32> -> vector<256x512xf32>
    %c0_3 = arith.constant 0 : index
    %c0_4 = arith.constant 0 : index
    %3 = vector.load %arg3[%c0_3, %c0_4] : memref<1x512xf32, #tpu.memory_space<vmem>>, vector<1x512xf32>
    %4 = vector.broadcast %3 : vector<1x512xf32> to vector<256x512xf32>
    %5 = arith.addf %2, %4 : vector<256x512xf32>
    %cst_5 = arith.constant 0.000000e+00 : f32
    %6 = vector.broadcast %cst_5 : f32 to vector<256x512xf32>
    %7 = arith.maximumf %5, %6 : vector<256x512xf32>
    %8 = arith.truncf %7 : vector<256x512xf32> to vector<256x512xbf16>
    %c0_6 = arith.constant 0 : index
    %c0_7 = arith.constant 0 : index
    %9 = vector.load %arg4[%c0_6, %c0_7] : memref<512x256xbf16, #tpu.memory_space<vmem>>, vector<512x256xbf16>
    %cst_8 = arith.constant dense<0.000000e+00> : vector<256x256xf32>
    %10 = tpu.matmul %8, %9, %cst_8 {dimension_numbers = #tpu.dot_dimension_numbers<[1], [0], [0], [1], [0, 0, 1, 1], [], []>} : vector<256x512xbf16>, vector<512x256xbf16>, vector<256x256xf32> -> vector<256x256xf32>
    %c0_9 = arith.constant 0 : index
    %c0_10 = arith.constant 0 : index
    %11 = vector.load %arg5[%c0_9, %c0_10] : memref<1x256xf32, #tpu.memory_space<vmem>>, vector<1x256xf32>
    %12 = vector.broadcast %11 : vector<1x256xf32> to vector<256x256xf32>
    %13 = arith.addf %10, %12 : vector<256x256xf32>
    %c0_11 = arith.constant 0 : index
    %c0_12 = arith.constant 0 : index
    %14 = vector.load %arg6[%c0_11, %c0_12] : memref<256x256xf32, #tpu.memory_space<vmem>>, vector<256x256xf32>
    tpu.vector_store %arg6[%c0_11, %c0_12], %13 {strides = array<i32>} : memref<256x256xf32, #tpu.memory_space<vmem>>, vector<256x256xf32>,
    return
  }
  func.func @transform_0(%arg0: i32) -> (i32, i32) {
    %c0_i32 = arith.constant 0 : i32
    %c0_i32_0 = arith.constant 0 : i32
    return %arg0, %c0_i32 : i32, i32
  }
  func.func @transform_1(%arg0: i32) -> (i32, i32) {
    %c0_i32 = arith.constant 0 : i32
    %c0_i32_0 = arith.constant 0 : i32
    %c0_i32_1 = arith.constant 0 : i32
    return %c0_i32, %c0_i32_0 : i32, i32
  }
  func.func @transform_2(%arg0: i32) -> (i32, i32) {
    %c0_i32 = arith.constant 0 : i32
    %c0_i32_0 = arith.constant 0 : i32
    %c0_i32_1 = arith.constant 0 : i32
    return %c0_i32, %c0_i32_0 : i32, i32
  }
  func.func @transform_3(%arg0: i32) -> (i32, i32) {
    %c0_i32 = arith.constant 0 : i32
    %c0_i32_0 = arith.constant 0 : i32
    %c0_i32_1 = arith.constant 0 : i32
    return %c0_i32, %c0_i32_0 : i32, i32
  }
  func.func @transform_4(%arg0: i32) -> (i32, i32) {
    %c0_i32 = arith.constant 0 : i32
    %c0_i32_0 = arith.constant 0 : i32
    %c0_i32_1 = arith.constant 0 : i32
    return %c0_i32, %c0_i32_0 : i32, i32
  }
  func.func @transform_5(%arg0: i32) -> (i32, i32) {
    %c0_i32 = arith.constant 0 : i32
    %c0_i32_0 = arith.constant 0 : i32
    return %arg0, %c0_i32 : i32, i32
  }
}

</mosaic_0001>

<bundles_post_ra>
// kernel: embedding_network_forward.1
= control target key start
LH: loop header
LB: loop body
LE: loop exit
PB: predicated region body
PF: predicated region fallthrough
CT: control target
= control target key end

     0   :  { %s10792_s1 = inlined_call_operand.vmem [shape: bf16[768,512], index: 1, kind: input, shape index: {}]   ;;  %s10793_s0 = inlined_call_operand.vmem [shape: bf16[256,768], index: 0, kind: input, shape index: {}]   ;;  %s10794_s2 = inlined_call_operand.vmem [shape: f32[1,512], index: 2, kind: input, shape index: {}]   ;;  %s10795_s3 = inlined_call_operand.vmem [shape: bf16[512,256], index: 3, kind: input, shape index: {}]   ;;  %s10796_s4 = inlined_call_operand.vmem [shape: f32[1,256], index: 4, kind: input, shape index: {}]   ;;  %s10797_s5 = inlined_call_operand.vmem [shape: f32[256,256], index: 5, kind: output, shape index: {}]  }
   0x1   :  { %v5754_v0 = vld [vmem:[%s10792_s1 + $0xe0] sm:$0xf]  ;;  %v6790_v1 = vld [vmem:[%s10792_s1 + $0xec] sm:$0xf0] }
   0x2   :  { %v5882_v2 = vld [vmem:[%s10792_s1 + $0x1e0] sm:$0xf]  ;;  %v5755_v3 = vor.u32 %v6790_v1, %v5754_v0  ;;  %v6822_v4 = vld [vmem:[%s10792_s1 + $0x1ec] sm:$0xf0] }
   0x3   :  { %v6010_v5 = vld [vmem:[%s10792_s1 + $0x2e0] sm:$0xf]  ;;  %v6854_v6 = vld [vmem:[%s10792_s1 + $0x2ec] sm:$0xf0]  ;;  %v5883_v7 = vor.u32 %v6822_v4, %v5882_v2 }
   0x4   :  { %v6011_v8 = vor.u32 %v6854_v6, %v6010_v5  ;;  %v6138_v9 = vld [vmem:[%s10792_s1 + $0x3e0] sm:$0xf]  ;;  %v6886_v10 = vld [vmem:[%s10792_s1 + $0x3ec] sm:$0xf0]  ;;  %1758 = vmatpush.bf16.msra.mxu0 %v5755_v3 }
   0x5   :  { %v5738_v11 = vld [vmem:[%s10792_s1 + $0xc0] sm:$0xf]  ;;  %v6139_v12 = vor.u32 %v6886_v10, %v6138_v9  ;;  %v6786_v13 = vld [vmem:[%s10792_s1 + $0xcc] sm:$0xf0]  ;;  %1847 = vmatpush.bf16.msra.mxu1 %v5883_v7 }
   0x6   :  { %v5866_v14 = vld [vmem:[%s10792_s1 + $0x1c0] sm:$0xf]  ;;  %v6818_v15 = vld [vmem:[%s10792_s1 + $0x1cc] sm:$0xf0]  ;;  %1936 = vmatpush.bf16.msra.mxu2 %v6011_v8  ;;  %v5739_v16 = vor.u32 %v6786_v13, %v5738_v11 }
   0x7   :  { %v5867_v17 = vor.u32 %v6818_v15, %v5866_v14  ;;  %v5994_v18 = vld [vmem:[%s10792_s1 + $0x2c0] sm:$0xf]  ;;  %v6850_v19 = vld [vmem:[%s10792_s1 + $0x2cc] sm:$0xf0]  ;;  %2025 = vmatpush.bf16.msra.mxu3 %v6139_v12 }
   0x8   :  { %v6122_v20 = vld [vmem:[%s10792_s1 + $0x3c0] sm:$0xf]  ;;  %v5995_v21 = vor.u32 %v6850_v19, %v5994_v18  ;;  %v6882_v22 = vld [vmem:[%s10792_s1 + $0x3cc] sm:$0xf0]  ;;  %1759 = vmatpush.bf16.msra.mxu0 %v5739_v16 }
   0x9   :  { %v5722_v23 = vld [vmem:[%s10792_s1 + $0xa0] sm:$0xf]  ;;  %v6782_v24 = vld [vmem:[%s10792_s1 + $0xac] sm:$0xf0]  ;;  %v6123_v25 = vor.u32 %v6882_v22, %v6122_v20  ;;  %1848 = vmatpush.bf16.msra.mxu1 %v5867_v17 }
   0xa   :  { %v5850_v26 = vld [vmem:[%s10792_s1 + $0x1a0] sm:$0xf]  ;;  %v6814_v27 = vld [vmem:[%s10792_s1 + $0x1ac] sm:$0xf0]  ;;  %v5723_v29 = vor.u32 %v6782_v24, %v5722_v23  ;;  %1937 = vmatpush.bf16.msra.mxu2 %v5995_v21 }
   0xb   :  { %v5978_v28 = vld [vmem:[%s10792_s1 + $0x2a0] sm:$0xf]  ;;  %v6846_v30 = vld [vmem:[%s10792_s1 + $0x2ac] sm:$0xf0]  ;;  %v5851_v33 = vor.u32 %v6814_v27, %v5850_v26  ;;  %2026 = vmatpush.bf16.msra.mxu3 %v6123_v25 }
   0xc   :  { %v6106_v31 = vld [vmem:[%s10792_s1 + $0x3a0] sm:$0xf]  ;;  %v6878_v32 = vld [vmem:[%s10792_s1 + $0x3ac] sm:$0xf0]  ;;  %v5979_v34 = vor.u32 %v6846_v30, %v5978_v28  ;;  %1760 = vmatpush.bf16.msra.mxu0 %v5723_v29  ;;  %v6667_v29 = vld [vmem:[%s10793_s0 + $0x14] sm:$0xf0] }
   0xd   :  { %v5706_v35 = vld [vmem:[%s10792_s1 + $0x80] sm:$0xf]  ;;  %v6778_v36 = vld [vmem:[%s10792_s1 + $0x8c] sm:$0xf0]  ;;  %v6107_v38 = vor.u32 %v6878_v32, %v6106_v31  ;;  %1849 = vmatpush.bf16.msra.mxu1 %v5851_v33  ;;  %v6664_v30 = vld [vmem:[%s10793_s0 + $0x4] sm:$0xf] }
   0xe   :  { %v5834_v37 = vld [vmem:[%s10792_s1 + $0x180] sm:$0xf]  ;;  %v6810_v39 = vld [vmem:[%s10792_s1 + $0x18c] sm:$0xf0]  ;;  %v5707_v44 = vor.u32 %v6778_v36, %v5706_v35  ;;  %1938 = vmatpush.bf16.msra.mxu2 %v5979_v34  ;;  %v6788_v31 = vld [vmem:[%s10792_s1 + $0xe4] sm:$0xf] }
   0xf   :  { %v5962_v40 = vld [vmem:[%s10792_s1 + $0x280] sm:$0xf]  ;;  %v6842_v41 = vld [vmem:[%s10792_s1 + $0x28c] sm:$0xf0]  ;;  %v5835_v45 = vor.u32 %v6810_v39, %v5834_v37  ;;  %2027 = vmatpush.bf16.msra.mxu3 %v6107_v38  ;;  %v5756_v32 = vld [vmem:[%s10792_s1 + $0xf0] sm:$0xf0] }
  0x10   :  { %v6090_v42 = vld [vmem:[%s10792_s1 + $0x380] sm:$0xf]  ;;  %v6874_v43 = vld [vmem:[%s10792_s1 + $0x38c] sm:$0xf0]  ;;  %v5963_v46 = vor.u32 %v6842_v41, %v5962_v40  ;;  %1761 = vmatpush.bf16.msra.mxu0 %v5707_v44  ;;  %v5260_v34 = vld [vmem:[%s10793_s0 + $0x18] sm:$0xf0]  ;;  %v5759_v44 = vor.u32 %v6788_v31, %v5756_v32 }
  0x11   :  { %v5690_v47 = vld [vmem:[%s10792_s1 + $0x60] sm:$0xf]  ;;  %v6774_v48 = vld [vmem:[%s10792_s1 + $0x6c] sm:$0xf0]  ;;  %v6091_v50 = vor.u32 %v6874_v43, %v6090_v42  ;;  %1850 = vmatpush.bf16.msra.mxu1 %v5835_v45  ;;  %v6820_v35 = vld [vmem:[%s10792_s1 + $0x1e4] sm:$0xf] }
  0x12   :  { %v5818_v49 = vld [vmem:[%s10792_s1 + $0x160] sm:$0xf]  ;;  %v6806_v51 = vld [vmem:[%s10792_s1 + $0x16c] sm:$0xf0]  ;;  %v5691_v56 = vor.u32 %v6774_v48, %v5690_v47  ;;  %1939 = vmatpush.bf16.msra.mxu2 %v5963_v46  ;;  %v5884_v36 = vld [vmem:[%s10792_s1 + $0x1f0] sm:$0xf0] }
  0x13   :  { %v5946_v52 = vld [vmem:[%s10792_s1 + $0x260] sm:$0xf]  ;;  %v6838_v53 = vld [vmem:[%s10792_s1 + $0x26c] sm:$0xf0]  ;;  %v5819_v57 = vor.u32 %v6806_v51, %v5818_v49  ;;  %2028 = vmatpush.bf16.msra.mxu3 %v6091_v50  ;;  %v5266_v39 = vld [vmem:[%s10793_s0 + $0x8] sm:$0xf]  ;;  %v5887_v48 = vor.u32 %v6820_v35, %v5884_v36  ;;  %v7290_v51 = vor.u32 %v6664_v30, %v5260_v34 }
  0x14   :  { %v6074_v54 = vld [vmem:[%s10792_s1 + $0x360] sm:$0xf]  ;;  %v6870_v55 = vld [vmem:[%s10792_s1 + $0x36c] sm:$0xf0]  ;;  %v5947_v58 = vor.u32 %v6838_v53, %v5946_v52  ;;  %1762 = vmatpush.bf16.msra.mxu0 %v5691_v56  ;;  %v6665_v41 = vld [vmem:[%s10793_s0 + $0xc] sm:$0xf] }
  0x15   :  { %v5674_v59 = vld [vmem:[%s10792_s1 + $0x40] sm:$0xf]  ;;  %v6770_v60 = vld [vmem:[%s10792_s1 + $0x4c] sm:$0xf0]  ;;  %v6075_v62 = vor.u32 %v6870_v55, %v6074_v54  ;;  %1851 = vmatpush.bf16.msra.mxu1 %v5819_v57  ;;  %v5268_v43 = vld [vmem:[%s10793_s0 + $0x20] sm:$0xf0] }
  0x16   :  { %v5802_v61 = vld [vmem:[%s10792_s1 + $0x140] sm:$0xf]  ;;  %v6802_v63 = vld [vmem:[%s10792_s1 + $0x14c] sm:$0xf0]  ;;  %v5675_v4 = vor.u32 %v6770_v60, %v5674_v59  ;;  %1940 = vmatpush.bf16.msra.mxu2 %v5947_v58  ;;  %11052 = vst [vmem:[#allocation3_spill] sm:$0xff] %v7290_v51  ;;  %v7294_v53 = vor.u32 %v6665_v41, %v5268_v43 }
  0x17   :  { %v5930_v0 = vld [vmem:[%s10792_s1 + $0x240] sm:$0xf]  ;;  %v6834_v1 = vld [vmem:[%s10792_s1 + $0x24c] sm:$0xf0]  ;;  %v5803_v5 = vor.u32 %v6802_v63, %v5802_v61  ;;  %2029 = vmatpush.bf16.msra.mxu3 %v6075_v62  ;;  %v6784_v56 = vld [vmem:[%s10792_s1 + $0xc4] sm:$0xf] }
  0x18   :  { %v6058_v2 = vld [vmem:[%s10792_s1 + $0x340] sm:$0xf]  ;;  %v6866_v3 = vld [vmem:[%s10792_s1 + $0x34c] sm:$0xf0]  ;;  %v5931_v6 = vor.u32 %v6834_v1, %v5930_v0  ;;  %1763 = vmatpush.bf16.msra.mxu0 %v5675_v4  ;;  %11054 = vst [vmem:[#allocation5_spill] sm:$0xff] %v7294_v53 }
  0x19   :  { %v5658_v7 = vld [vmem:[%s10792_s1 + $0x20] sm:$0xf]  ;;  %v6766_v8 = vld [vmem:[%s10792_s1 + $0x2c] sm:$0xf0]  ;;  %v6059_v10 = vor.u32 %v6866_v3, %v6058_v2  ;;  %1852 = vmatpush.bf16.msra.mxu1 %v5803_v5  ;;  %v5740_v57 = vld [vmem:[%s10792_s1 + $0xd0] sm:$0xf0] }
  0x1a   :  { %v5786_v9 = vld [vmem:[%s10792_s1 + $0x120] sm:$0xf]  ;;  %v6798_v11 = vld [vmem:[%s10792_s1 + $0x12c] sm:$0xf0]  ;;  %v5659_v17 = vor.u32 %v6766_v8, %v5658_v7  ;;  %1941 = vmatpush.bf16.msra.mxu2 %v5931_v6  ;;  %v5743_v59 = vor.u32 %v6784_v56, %v5740_v57  ;;  %v6816_v61 = vld [vmem:[%s10792_s1 + $0x1c4] sm:$0xf] }
  0x1b   :  { %v5914_v12 = vld [vmem:[%s10792_s1 + $0x220] sm:$0xf]  ;;  %v6830_v13 = vld [vmem:[%s10792_s1 + $0x22c] sm:$0xf0]  ;;  %v5787_v21 = vor.u32 %v6798_v11, %v5786_v9  ;;  %2030 = vmatpush.bf16.msra.mxu3 %v6059_v10  ;;  %v5868_v62 = vld [vmem:[%s10792_s1 + $0x1d0] sm:$0xf0] }
  0x1c   :  { %v6042_v14 = vld [vmem:[%s10792_s1 + $0x320] sm:$0xf]  ;;  %v6862_v15 = vld [vmem:[%s10792_s1 + $0x32c] sm:$0xf0]  ;;  %v5915_v22 = vor.u32 %v6830_v13, %v5914_v12  ;;  %1764 = vmatpush.bf16.msra.mxu0 %v5659_v17  ;;  %v5871_v0 = vor.u32 %v6816_v61, %v5868_v62  ;;  %v6673_v5 = vld [vmem:[%s10793_s0 + $0x44] sm:$0xf0] }
  0x1d   :  { %v5642_v16 = vld [vmem:[%s10792_s1] sm:$0xf]  ;;  %v6762_v18 = vld [vmem:[%s10792_s1 + $0xc] sm:$0xf0]  ;;  %v6043_v26 = vor.u32 %v6862_v15, %v6042_v14  ;;  %1853 = vmatpush.bf16.msra.mxu1 %v5787_v21  ;;  %v6670_v6 = vld [vmem:[%s10793_s0 + $0x34] sm:$0xf] }
  0x1e   :  { %v5770_v19 = vld [vmem:[%s10792_s1 + $0x100] sm:$0xf]  ;;  %v6794_v20 = vld [vmem:[%s10792_s1 + $0x10c] sm:$0xf0]  ;;  %v5643_v33 = vor.u32 %v6762_v18, %v5642_v16  ;;  %1942 = vmatpush.bf16.msra.mxu2 %v5915_v22  ;;  %v5284_v7 = vld [vmem:[%s10793_s0 + $0x48] sm:$0xf0] }
  0x1f   :  { %v5898_v23 = vld [vmem:[%s10792_s1 + $0x200] sm:$0xf]  ;;  %v6826_v24 = vld [vmem:[%s10792_s1 + $0x20c] sm:$0xf0]  ;;  %v5771_v37 = vor.u32 %v6794_v20, %v5770_v19  ;;  %2031 = vmatpush.bf16.msra.mxu3 %v6043_v26  ;;  %v5290_v8 = vld [vmem:[%s10793_s0 + $0x38] sm:$0xf]  ;;  %v7350_v13 = vor.u32 %v6670_v6, %v5284_v7 }
  0x20   :  { %v6026_v25 = vld [vmem:[%s10792_s1 + $0x300] sm:$0xf]  ;;  %v6858_v27 = vld [vmem:[%s10792_s1 + $0x30c] sm:$0xf0]  ;;  %v5899_v38 = vor.u32 %v6826_v24, %v5898_v23  ;;  %1765 = vmatpush.bf16.msra.mxu0 %v5643_v33  ;;  %v6671_v10 = vld [vmem:[%s10793_s0 + $0x3c] sm:$0xf] }
  0x21   :  { %v5258_v28 = vld [vmem:[%s10793_s0] sm:$0xf]  ;;  %v6027_v42 = vor.u32 %v6858_v27, %v6026_v25  ;;  %v6918_v46 = vld [vmem:[%s10792_s1 + $0x4ec] sm:$0xf0]  ;;  %1854 = vmatpush.bf16.msra.mxu1 %v5771_v37  ;;  %v5292_v11 = vld [vmem:[%s10793_s0 + $0x50] sm:$0xf0] }
  0x22   :  { %v6668_v40 = vld [vmem:[%s10793_s0 + $0x1c] sm:$0xf0]  ;;  %v7282_v47 = vor.u32 %v6667_v29, %v5258_v28  ;;  %v6950_v50 = vld [vmem:[%s10792_s1 + $0x5ec] sm:$0xf0]  ;;  %1943 = vmatpush.bf16.msra.mxu2 %v5899_v38  ;;  %11056 = vst [vmem:[#allocation7_spill] sm:$0xff] %v7350_v13  ;;  %v7354_v15 = vor.u32 %v6671_v10, %v5292_v11 }
  0x23   :  { %v6266_v45 = vld [vmem:[%s10792_s1 + $0x4e0] sm:$0xf]  ;;  %v7292_v52 = vor.u32 %v6668_v40, %v5266_v39  ;;  %2032 = vmatpush.bf16.msra.mxu3 %v6027_v42  ;;  %v6914_v60 = vld [vmem:[%s10792_s1 + $0x4cc] sm:$0xf0]  ;;  %v6679_v17 = vld [vmem:[%s10793_s0 + $0x74] sm:$0xf0] }
  0x24   :  { %11051 = vst [vmem:[#allocation2_spill] sm:$0xff] %v7282_v47  ;;  %v6394_v49 = vld [vmem:[%s10792_s1 + $0x5e0] sm:$0xf]  ;;  %v6267_v54 = vor.u32 %v6918_v46, %v6266_v45  ;;  %1766 = vmatmul.bf16.vlgmr.msra.gmra.mxu0 %v7282_v47  ;;  %1855 = vmatmul.bf16.vlgmr.msra.gmra.mxu1 %v7290_v51  ;;  %v6946_v2 = vld [vmem:[%s10792_s1 + $0x5cc] sm:$0xf0] }
  0x25   :  { %11053 = vst [vmem:[#allocation4_spill] sm:$0xff] %v7292_v52  ;;  %v6395_v55 = vor.u32 %v6950_v50, %v6394_v49  ;;  %1944 = vmatmul.bf16.vlgmr.msra.gmra.mxu2 %v7292_v52  ;;  %v6250_v58 = vld [vmem:[%s10792_s1 + $0x4c0] sm:$0xf]  ;;  %v5282_v4 = vld [vmem:[%s10793_s0 + $0x30] sm:$0xf] }
  0x26   :  { %2292 = vmatpush.bf16.msrb.mxu2 %v5759_v44  ;;  %2033 = vmatmul.bf16.vlgmr.msra.gmra.mxu3 %v7294_v53  ;;  %v6251_v63 = vor.u32 %v6914_v60, %v6250_v58  ;;  %v6378_v1 = vld [vmem:[%s10792_s1 + $0x5c0] sm:$0xf]  ;;  %v6674_v9 = vld [vmem:[%s10793_s0 + $0x4c] sm:$0xf0]  ;;  %v7348_v12 = vor.u32 %v6673_v5, %v5282_v4  ;;  %11058 = vst [vmem:[#allocation9_spill] sm:$0xff] %v7354_v15 }
  0x27   :  { %2381 = vmatpush.bf16.msrb.mxu3 %v5887_v48  ;;  %2114 = vmatpush.bf16.msrb.mxu0 %v6267_v54  ;;  %v6379_v3 = vor.u32 %v6946_v2, %v6378_v1  ;;  %v7352_v14 = vor.u32 %v6674_v9, %v5290_v8  ;;  %v5306_v16 = vld [vmem:[%s10793_s0 + $0x60] sm:$0xf]  ;;  %v6676_v18 = vld [vmem:[%s10793_s0 + $0x64] sm:$0xf]  ;;  %v5308_v19 = vld [vmem:[%s10793_s0 + $0x78] sm:$0xf0] }
  0x28   :  { %2203 = vmatpush.bf16.msrb.mxu1 %v6395_v55  ;;  %11055 = vst [vmem:[#allocation6_spill] sm:$0xff] %v7348_v12  ;;  %v5314_v20 = vld [vmem:[%s10793_s0 + $0x68] sm:$0xf]  ;;  %v6680_v21 = vld [vmem:[%s10793_s0 + $0x7c] sm:$0xf0]  ;;  %v7384_v24 = vor.u32 %v6679_v17, %v5306_v16  ;;  %v7386_v25 = vor.u32 %v6676_v18, %v5308_v19 }
  0x29   :  { %11057 = vst [vmem:[#allocation8_spill] sm:$0xff] %v7352_v14  ;;  %v6677_v22 = vld [vmem:[%s10793_s0 + $0x6c] sm:$0xf]  ;;  %v5316_v23 = vld [vmem:[%s10793_s0 + $0x80] sm:$0xf0]  ;;  %v7388_v26 = vor.u32 %v6680_v21, %v5314_v20 }
  0x2a   :  { %2293 = vmatpush.bf16.msrb.mxu2 %v5743_v59  ;;  %11059 = vst [vmem:[#allocation10_spill] sm:$0xff] %v7384_v24  ;;  %v7390_v27 = vor.u32 %v6677_v22, %v5316_v23  ;;  %v6780_v28 = vld [vmem:[%s10792_s1 + $0xa4] sm:$0xf]  ;;  %v5724_v29 = vld [vmem:[%s10792_s1 + $0xb0] sm:$0xf0] }
  0x2b   :  { %2115 = vmatpush.bf16.msrb.mxu0 %v6251_v63  ;;  %2382 = vmatpush.bf16.msrb.mxu3 %v5871_v0  ;;  %11060 = vst [vmem:[#allocation11_spill] sm:$0xff] %v7386_v25  ;;  %v6234_v30 = vld [vmem:[%s10792_s1 + $0x4a0] sm:$0xf]  ;;  %v5727_v31 = vor.u32 %v6780_v28, %v5724_v29  ;;  %v6910_v32 = vld [vmem:[%s10792_s1 + $0x4ac] sm:$0xf0] }
  0x2c   :  { %2204 = vmatpush.bf16.msrb.mxu1 %v6379_v3  ;;  %11061 = vst [vmem:[#allocation12_spill] sm:$0xff] %v7388_v26  ;;  %v6812_v33 = vld [vmem:[%s10792_s1 + $0x1a4] sm:$0xf]  ;;  %v5852_v34 = vld [vmem:[%s10792_s1 + $0x1b0] sm:$0xf0]  ;;  %v6235_v35 = vor.u32 %v6910_v32, %v6234_v30 }
  0x2d   :  { %11062 = vst [vmem:[#allocation13_spill] sm:$0xff] %v7390_v27  ;;  %v5855_v36 = vor.u32 %v6812_v33, %v5852_v34  ;;  %v6362_v37 = vld [vmem:[%s10792_s1 + $0x5a0] sm:$0xf]  ;;  %v6942_v38 = vld [vmem:[%s10792_s1 + $0x5ac] sm:$0xf0] }
  0x2e   :  { %2294 = vmatpush.bf16.msrb.mxu2 %v5727_v31  ;;  %v6363_v39 = vor.u32 %v6942_v38, %v6362_v37  ;;  %v5330_v40 = vld [vmem:[%s10793_s0 + $0x90] sm:$0xf]  ;;  %v6685_v41 = vld [vmem:[%s10793_s0 + $0xa4] sm:$0xf0]  ;;  %v6682_v42 = vld [vmem:[%s10793_s0 + $0x94] sm:$0xf] }
  0x2f   :  { %2116 = vmatpush.bf16.msrb.mxu0 %v6235_v35  ;;  %2383 = vmatpush.bf16.msrb.mxu3 %v5855_v36  ;;  %v5332_v43 = vld [vmem:[%s10793_s0 + $0xa8] sm:$0xf0]  ;;  %v5338_v44 = vld [vmem:[%s10793_s0 + $0x98] sm:$0xf]  ;;  %v6686_v45 = vld [vmem:[%s10793_s0 + $0xac] sm:$0xf0]  ;;  %v7444_v49 = vor.u32 %v6685_v41, %v5330_v40 }
  0x30   :  { %2205 = vmatpush.bf16.msrb.mxu1 %v6363_v39  ;;  %v6683_v46 = vld [vmem:[%s10793_s0 + $0x9c] sm:$0xf]  ;;  %v5340_v48 = vld [vmem:[%s10793_s0 + $0xb0] sm:$0xf0]  ;;  %v7446_v50 = vor.u32 %v6682_v42, %v5332_v43  ;;  %v7448_v54 = vor.u32 %v6686_v45, %v5338_v44  ;;  %v5354_v56 = vld [vmem:[%s10793_s0 + $0xc0] sm:$0xf] }
  0x31   :  { %11063 = vst [vmem:[#allocation14_spill] sm:$0xff] %v7444_v49  ;;  %v7450_v55 = vor.u32 %v6683_v46, %v5340_v48  ;;  %v6691_v57 = vld [vmem:[%s10793_s0 + $0xd4] sm:$0xf0]  ;;  %v6688_v58 = vld [vmem:[%s10793_s0 + $0xc4] sm:$0xf] }
  0x32   :  { %11064 = vst [vmem:[#allocation15_spill] sm:$0xff] %v7446_v50  ;;  %v5356_v59 = vld [vmem:[%s10793_s0 + $0xd8] sm:$0xf0]  ;;  %v5362_v60 = vld [vmem:[%s10793_s0 + $0xc8] sm:$0xf]  ;;  %v7480_v0 = vor.u32 %v6691_v57, %v5354_v56 }
  0x33   :  { %11065 = vst [vmem:[#allocation16_spill] sm:$0xff] %v7448_v54  ;;  %v6692_v61 = vld [vmem:[%s10793_s0 + $0xdc] sm:$0xf0]  ;;  %v6689_v62 = vld [vmem:[%s10793_s0 + $0xcc] sm:$0xf]  ;;  %v7482_v1 = vor.u32 %v6688_v58, %v5356_v59 }
  0x34   :  { %1771 = vmatmul.bf16.gmra.mxu0 %v7348_v12  ;;  %1860 = vmatmul.bf16.gmra.mxu1 %v7350_v13  ;;  %11066 = vst [vmem:[#allocation17_spill] sm:$0xff] %v7450_v55  ;;  %v5364_v63 = vld [vmem:[%s10793_s0 + $0xe0] sm:$0xf0]  ;;  %v7484_v2 = vor.u32 %v6692_v61, %v5362_v60  ;;  %v5708_v5 = vld [vmem:[%s10792_s1 + $0x90] sm:$0xf0] }
  0x35   :  { %1949 = vmatmul.bf16.gmra.mxu2 %v7352_v14  ;;  %11067 = vst [vmem:[#allocation18_spill] sm:$0xff] %v7480_v0  ;;  %v7486_v3 = vor.u32 %v6689_v62, %v5364_v63  ;;  %v6776_v4 = vld [vmem:[%s10792_s1 + $0x84] sm:$0xf]  ;;  %v6218_v6 = vld [vmem:[%s10792_s1 + $0x480] sm:$0xf] }
  0x36   :  { %2038 = vmatmul.bf16.gmra.mxu3 %v7354_v15  ;;  %11068 = vst [vmem:[#allocation19_spill] sm:$0xff] %v7482_v1  ;;  %v5711_v7 = vor.u32 %v6776_v4, %v5708_v5  ;;  %v6906_v8 = vld [vmem:[%s10792_s1 + $0x48c] sm:$0xf0]  ;;  %v6808_v9 = vld [vmem:[%s10792_s1 + $0x184] sm:$0xf] }
  0x37   :  { %11069 = vst [vmem:[#allocation20_spill] sm:$0xff] %v7484_v2  ;;  %v5836_v10 = vld [vmem:[%s10792_s1 + $0x190] sm:$0xf0]  ;;  %v6219_v11 = vor.u32 %v6906_v8, %v6218_v6  ;;  %v6346_v17 = vld [vmem:[%s10792_s1 + $0x580] sm:$0xf] }
  0x38   :  { %11070 = vst [vmem:[#allocation21_spill] sm:$0xff] %v7486_v3  ;;  %v5839_v16 = vor.u32 %v6808_v9, %v5836_v10  ;;  %v6938_v18 = vld [vmem:[%s10792_s1 + $0x58c] sm:$0xf0]  ;;  %2295 = vmatpush.bf16.msrb.mxu2 %v5711_v7  ;;  %v6697_v21 = vld [vmem:[%s10793_s0 + $0x104] sm:$0xf0] }
  0x39   :  { %v6347_v19 = vor.u32 %v6938_v18, %v6346_v17  ;;  %2117 = vmatpush.bf16.msrb.mxu0 %v6219_v11  ;;  %v5378_v20 = vld [vmem:[%s10793_s0 + $0xf0] sm:$0xf]  ;;  %v6694_v22 = vld [vmem:[%s10793_s0 + $0xf4] sm:$0xf]  ;;  %v5380_v23 = vld [vmem:[%s10793_s0 + $0x108] sm:$0xf0] }
  0x3a   :  { %2384 = vmatpush.bf16.msrb.mxu3 %v5839_v16  ;;  %v5386_v28 = vld [vmem:[%s10793_s0 + $0xf8] sm:$0xf]  ;;  %v6698_v29 = vld [vmem:[%s10793_s0 + $0x10c] sm:$0xf0]  ;;  %v6695_v30 = vld [vmem:[%s10793_s0 + $0xfc] sm:$0xf]  ;;  %v7540_v32 = vor.u32 %v6697_v21, %v5378_v20  ;;  %v7542_v33 = vor.u32 %v6694_v22, %v5380_v23 }
  0x3b   :  { %2206 = vmatpush.bf16.msrb.mxu1 %v6347_v19  ;;  %v5388_v31 = vld [vmem:[%s10793_s0 + $0x110] sm:$0xf0]  ;;  %v7544_v34 = vor.u32 %v6698_v29, %v5386_v28  ;;  %v5402_v36 = vld [vmem:[%s10793_s0 + $0x120] sm:$0xf]  ;;  %v6703_v37 = vld [vmem:[%s10793_s0 + $0x134] sm:$0xf0] }
  0x3c   :  { %11071 = vst [vmem:[#allocation22_spill] sm:$0xff] %v7540_v32  ;;  %v7546_v35 = vor.u32 %v6695_v30, %v5388_v31  ;;  %v6700_v38 = vld [vmem:[%s10793_s0 + $0x124] sm:$0xf]  ;;  %v5404_v39 = vld [vmem:[%s10793_s0 + $0x138] sm:$0xf0]  ;;  %v7576_v44 = vor.u32 %v6703_v37, %v5402_v36 }
  0x3d   :  { %11072 = vst [vmem:[#allocation23_spill] sm:$0xff] %v7542_v33  ;;  %v5410_v40 = vld [vmem:[%s10793_s0 + $0x128] sm:$0xf]  ;;  %v6704_v41 = vld [vmem:[%s10793_s0 + $0x13c] sm:$0xf0]  ;;  %v7578_v45 = vor.u32 %v6700_v38, %v5404_v39 }
  0x3e   :  { %11073 = vst [vmem:[#allocation24_spill] sm:$0xff] %v7544_v34  ;;  %v6701_v42 = vld [vmem:[%s10793_s0 + $0x12c] sm:$0xf]  ;;  %v5412_v43 = vld [vmem:[%s10793_s0 + $0x140] sm:$0xf0]  ;;  %v7580_v46 = vor.u32 %v6704_v41, %v5410_v40 }
  0x3f   :  { %11074 = vst [vmem:[#allocation25_spill] sm:$0xff] %v7546_v35  ;;  %v7582_v48 = vor.u32 %v6701_v42, %v5412_v43  ;;  %v6772_v56 = vld [vmem:[%s10792_s1 + $0x64] sm:$0xf]  ;;  %v5692_v57 = vld [vmem:[%s10792_s1 + $0x70] sm:$0xf0] }
  0x40   :  { %11075 = vst [vmem:[#allocation26_spill] sm:$0xff] %v7576_v44  ;;  %v6202_v58 = vld [vmem:[%s10792_s1 + $0x460] sm:$0xf]  ;;  %v5695_v59 = vor.u32 %v6772_v56, %v5692_v57  ;;  %v6902_v60 = vld [vmem:[%s10792_s1 + $0x46c] sm:$0xf0] }
  0x41   :  { %11076 = vst [vmem:[#allocation27_spill] sm:$0xff] %v7578_v45  ;;  %v6804_v61 = vld [vmem:[%s10792_s1 + $0x164] sm:$0xf]  ;;  %v5820_v62 = vld [vmem:[%s10792_s1 + $0x170] sm:$0xf0]  ;;  %v6203_v63 = vor.u32 %v6902_v60, %v6202_v58 }
  0x42   :  { %11077 = vst [vmem:[#allocation28_spill] sm:$0xff] %v7580_v46  ;;  %v5823_v4 = vor.u32 %v6804_v61, %v5820_v62  ;;  %2296 = vmatpush.bf16.msrb.mxu2 %v5695_v59  ;;  %v6330_v5 = vld [vmem:[%s10792_s1 + $0x560] sm:$0xf]  ;;  %v6934_v6 = vld [vmem:[%s10792_s1 + $0x56c] sm:$0xf0] }
  0x43   :  { %11078 = vst [vmem:[#allocation29_spill] sm:$0xff] %v7582_v48  ;;  %2118 = vmatpush.bf16.msrb.mxu0 %v6203_v63  ;;  %v6331_v7 = vor.u32 %v6934_v6, %v6330_v5  ;;  %v5426_v8 = vld [vmem:[%s10793_s0 + $0x150] sm:$0xf]  ;;  %v6709_v9 = vld [vmem:[%s10793_s0 + $0x164] sm:$0xf0] }
  0x44   :  { %1776 = vmatmul.bf16.gmra.mxu0 %v7384_v24  ;;  %1865 = vmatmul.bf16.gmra.mxu1 %v7386_v25  ;;  %v6706_v10 = vld [vmem:[%s10793_s0 + $0x154] sm:$0xf]  ;;  %v5428_v11 = vld [vmem:[%s10793_s0 + $0x168] sm:$0xf0]  ;;  %v5434_v16 = vld [vmem:[%s10793_s0 + $0x158] sm:$0xf]  ;;  %v7636_v20 = vor.u32 %v6709_v9, %v5426_v8 }
  0x45   :  { %1954 = vmatmul.bf16.gmra.mxu2 %v7388_v26  ;;  %2385 = vmatpush.bf16.msrb.mxu3 %v5823_v4  ;;  %v6710_v17 = vld [vmem:[%s10793_s0 + $0x16c] sm:$0xf0]  ;;  %v6707_v18 = vld [vmem:[%s10793_s0 + $0x15c] sm:$0xf]  ;;  %v5436_v19 = vld [vmem:[%s10793_s0 + $0x170] sm:$0xf0]  ;;  %v7638_v21 = vor.u32 %v6706_v10, %v5428_v11 }
  0x46   :  { %2043 = vmatmul.bf16.gmra.mxu3 %v7390_v27  ;;  %2207 = vmatpush.bf16.msrb.mxu1 %v6331_v7  ;;  %11079 = vst [vmem:[#allocation30_spill] sm:$0xff] %v7636_v20  ;;  %v7640_v22 = vor.u32 %v6710_v17, %v5434_v16  ;;  %v7642_v23 = vor.u32 %v6707_v18, %v5436_v19  ;;  %v308_v28 = vld [vmem:[%s10794_s2] sm:$0xf]  ;;  %v6715_v31 = vld [vmem:[%s10793_s0 + $0x194] sm:$0xf0] }
  0x47   :  { %11080 = vst [vmem:[#allocation31_spill] sm:$0xff] %v7638_v21  ;;  %v7651_v29 = vperm.slane %v308_v28, 0  ;;  %v5450_v30 = vld [vmem:[%s10793_s0 + $0x180] sm:$0xf]  ;;  %v6712_v36 = vld [vmem:[%s10793_s0 + $0x184] sm:$0xf] }
  0x48   :  { %11081 = vst [vmem:[#allocation32_spill] sm:$0xff] %v7640_v22  ;;  %v5452_v37 = vld [vmem:[%s10793_s0 + $0x198] sm:$0xf0]  ;;  %v5458_v38 = vld [vmem:[%s10793_s0 + $0x188] sm:$0xf]  ;;  %v7677_v42 = vor.u32 %v6715_v31, %v5450_v30 }
  0x49   :  { %11082 = vst [vmem:[#allocation33_spill] sm:$0xff] %v7642_v23  ;;  %v6716_v39 = vld [vmem:[%s10793_s0 + $0x19c] sm:$0xf0]  ;;  %v6713_v40 = vld [vmem:[%s10793_s0 + $0x18c] sm:$0xf]  ;;  %v7679_v56 = vor.u32 %v6712_v36, %v5452_v37 }
  0x4a   :  { %v5460_v41 = vld [vmem:[%s10793_s0 + $0x1a0] sm:$0xf0]  ;;  %11083 = vst [vmem:[#allocation34_spill] sm:$0xff] %v7677_v42  ;;  %v7681_v57 = vor.u32 %v6716_v39, %v5458_v38  ;;  %v5676_v63 = vld [vmem:[%s10792_s1 + $0x50] sm:$0xf0] }
  0x4b   :  { %11084 = vst [vmem:[#allocation35_spill] sm:$0xff] %v7679_v56  ;;  %v7684_v60 = vor.u32 %v6713_v40, %v5460_v41  ;;  %v6768_v62 = vld [vmem:[%s10792_s1 + $0x44] sm:$0xf]  ;;  %v6186_v4 = vld [vmem:[%s10792_s1 + $0x440] sm:$0xf] }
  0x4c   :  { %11085 = vst [vmem:[#allocation36_spill] sm:$0xff] %v7681_v57  ;;  %v5679_v5 = vor.u32 %v6768_v62, %v5676_v63  ;;  %v6898_v6 = vld [vmem:[%s10792_s1 + $0x44c] sm:$0xf0]  ;;  %v6800_v7 = vld [vmem:[%s10792_s1 + $0x144] sm:$0xf] }
  0x4d   :  { %11086 = vst [vmem:[#allocation37_spill] sm:$0xff] %v7684_v60  ;;  %v5804_v8 = vld [vmem:[%s10792_s1 + $0x150] sm:$0xf0]  ;;  %v6187_v10 = vor.u32 %v6898_v6, %v6186_v4  ;;  %v6314_v31 = vld [vmem:[%s10792_s1 + $0x540] sm:$0xf] }
  0x4e   :  { %v5807_v11 = vor.u32 %v6800_v7, %v5804_v8  ;;  %2297 = vmatpush.bf16.msrb.mxu2 %v5679_v5  ;;  %v6930_v36 = vld [vmem:[%s10792_s1 + $0x54c] sm:$0xf0]  ;;  %v6721_v40 = vld [vmem:[%s10793_s0 + $0x1c4] sm:$0xf0]  ;;  %v6718_v41 = vld [vmem:[%s10793_s0 + $0x1b4] sm:$0xf] }
  0x4f   :  { %2119 = vmatpush.bf16.msrb.mxu0 %v6187_v10  ;;  %v6315_v38 = vor.u32 %v6930_v36, %v6314_v31  ;;  %v5474_v39 = vld [vmem:[%s10793_s0 + $0x1b0] sm:$0xf]  ;;  %v5484_v62 = vld [vmem:[%s10793_s0 + $0x1d0] sm:$0xf0] }
  0x50   :  { %2386 = vmatpush.bf16.msrb.mxu3 %v5807_v11  ;;  %v7741_v4 = vor.u32 %v6721_v40, %v5474_v39 }
  0x51   :  { %2208 = vmatpush.bf16.msrb.mxu1 %v6315_v38 }
  0x52   :  { %11087 = vst [vmem:[#allocation38_spill] sm:$0xff] %v7741_v4 }
  0x54   :  { %1781 = vmatmul.bf16.gmra.mxu0 %v7444_v49  ;;  %1870 = vmatmul.bf16.gmra.mxu1 %v7446_v50 }
  0x55   :  { %1959 = vmatmul.bf16.gmra.mxu2 %v7448_v54 }
  0x56   :  { %2048 = vmatmul.bf16.gmra.mxu3 %v7450_v55 }
  0x64   :  { %1786 = vmatmul.bf16.gmra.mxu0 %v7480_v0  ;;  %1875 = vmatmul.bf16.gmra.mxu1 %v7482_v1 }
  0x65   :  { %1964 = vmatmul.bf16.gmra.mxu2 %v7484_v2 }
  0x66   :  { %2053 = vmatmul.bf16.gmra.mxu3 %v7486_v3 }
  0x74   :  { %1791 = vmatmul.bf16.gmra.mxu0 %v7540_v32  ;;  %1880 = vmatmul.bf16.gmra.mxu1 %v7542_v33 }
  0x75   :  { %1969 = vmatmul.bf16.gmra.mxu2 %v7544_v34 }
  0x76   :  { %2058 = vmatmul.bf16.gmra.mxu3 %v7546_v35 }
  0x84   :  { %1796 = vmatmul.bf16.gmra.mxu0 %v7576_v44  ;;  %1885 = vmatmul.bf16.gmra.mxu1 %v7578_v45 }
  0x85   :  { %1974 = vmatmul.bf16.gmra.mxu2 %v7580_v46 }
  0x86   :  { %2063 = vmatmul.bf16.gmra.mxu3 %v7582_v48 }
  0x94   :  { %1801 = vmatmul.bf16.gmra.mxu0 %v7636_v20  ;;  %1890 = vmatmul.bf16.gmra.mxu1 %v7638_v21 }
  0x95   :  { %1979 = vmatmul.bf16.gmra.mxu2 %v7640_v22 }
  0x96   :  { %2068 = vmatmul.bf16.gmra.mxu3 %v7642_v23 }
  0xa1   :  { %v1767_v43 = vpop.f32.mrf.mxu0  ;;  %v1856_v59 = vpop.f32.mrf.mxu1 }
  0xa2   :  { %v1768_v58 = vadd.f32 %v1767_v43, %v7651_v29  ;;  %v5476_v43 = vld [vmem:[%s10793_s0 + $0x1c8] sm:$0xf0] }
  0xa3   :  { %v7743_v8 = vor.u32 %v6718_v41, %v5476_v43  ;;  %v5498_v41 = vld [vmem:[%s10793_s0 + $0x1e0] sm:$0xf]  ;;  %v6727_v43 = vld [vmem:[%s10793_s0 + $0x1f4] sm:$0xf0] }
  0xa4   :  { %v1857_v61 = vadd.f32 %v1856_v59, %v1768_v58  ;;  %1806 = vmatmul.bf16.gmra.mxu0 %v7677_v42  ;;  %1895 = vmatmul.bf16.gmra.mxu1 %v7679_v56  ;;  %v5482_v58 = vld [vmem:[%s10793_s0 + $0x1b8] sm:$0xf]  ;;  %v6722_v59 = vld [vmem:[%s10793_s0 + $0x1cc] sm:$0xf0] }
  0xa5   :  { %1984 = vmatmul.bf16.gmra.mxu2 %v7681_v57  ;;  %11088 = vst [vmem:[#allocation39_spill] sm:$0xff] %v7743_v8 }
  0xa6   :  { %2073 = vmatmul.bf16.gmra.mxu3 %v7684_v60 }
  0xa8   :  { %v1945_v9 = vpop.f32.mrf.mxu2 }
  0xa9   :  { %v1946_v16 = vadd.f32 %v1945_v9, %v1857_v61  ;;  %v2034_v17 = vpop.f32.mrf.mxu3  ;;  %v1769_v18 = vpop.f32.mrf.mxu0  ;;  %v6719_v61 = vld [vmem:[%s10793_s0 + $0x1bc] sm:$0xf]  ;;  %v7745_v9 = vor.u32 %v6722_v59, %v5482_v58  ;;  %v6724_v58 = vld [vmem:[%s10793_s0 + $0x1e4] sm:$0xf] }
  0xaa   :  { %v1770_v19 = vadd.f32 %v1769_v18, %v7651_v29  ;;  %v1858_v28 = vpop.f32.mrf.mxu1  ;;  %v5500_v59 = vld [vmem:[%s10793_s0 + $0x1f8] sm:$0xf0] }
  0xab   :  { %v7709_v30 = vadd.f32 %v2034_v17, %v1946_v16  ;;  %11089 = vst [vmem:[#allocation40_spill] sm:$0xff] %v7745_v9  ;;  %v7748_v16 = vor.u32 %v6719_v61, %v5484_v62  ;;  %v5506_v61 = vld [vmem:[%s10793_s0 + $0x1e8] sm:$0xf]  ;;  %v6728_v62 = vld [vmem:[%s10793_s0 + $0x1fc] sm:$0xf0] }
  0xac   :  { %v1859_v37 = vadd.f32 %v1858_v28, %v1770_v19 }
  0xad   :  { %11090 = vst [vmem:[#allocation41_spill] sm:$0xff] %v7748_v16 }
  0xb0   :  { %v1947_v63 = vpop.f32.mrf.mxu2 }
  0xb1   :  { %v1948_v5 = vadd.f32 %v1947_v63, %v1859_v37  ;;  %v2036_v6 = vpop.f32.mrf.mxu3  ;;  %v1772_v7 = vpop.f32.mrf.mxu0  ;;  %v6725_v63 = vld [vmem:[%s10793_s0 + $0x1ec] sm:$0xf] }
  0xb2   :  { %v1773_v10 = vadd.f32 %v1772_v7, %v7651_v29  ;;  %v1861_v11 = vpop.f32.mrf.mxu1  ;;  %v7783_v7 = vor.u32 %v6727_v43, %v5498_v41  ;;  %v5660_v41 = vld [vmem:[%s10792_s1 + $0x30] sm:$0xf0]  ;;  %v6170_v43 = vld [vmem:[%s10792_s1 + $0x420] sm:$0xf] }
  0xb3   :  { %v7750_v17 = vadd.f32 %v2036_v6, %v1948_v5  ;;  %v5508_v5 = vld [vmem:[%s10793_s0 + $0x200] sm:$0xf0] }
  0xb4   :  { %v1862_v18 = vadd.f32 %v1861_v11, %v1773_v10  ;;  %1811 = vmatmul.bf16.gmra.mxu0 %v7741_v4  ;;  %1900 = vmatmul.bf16.gmra.mxu1 %v7743_v8  ;;  %11091 = vst [vmem:[#allocation42_spill] sm:$0xff] %v7783_v7 }
  0xb5   :  { %1989 = vmatmul.bf16.gmra.mxu2 %v7745_v9 }
  0xb6   :  { %2078 = vmatmul.bf16.gmra.mxu3 %v7748_v16 }
  0xb8   :  { %v1950_v19 = vpop.f32.mrf.mxu2 }
  0xb9   :  { %v1951_v28 = vadd.f32 %v1950_v19, %v1862_v18  ;;  %v2039_v31 = vpop.f32.mrf.mxu3  ;;  %v1774_v36 = vpop.f32.mrf.mxu0  ;;  %v7785_v19 = vor.u32 %v6724_v58, %v5500_v59  ;;  %v6894_v59 = vld [vmem:[%s10792_s1 + $0x42c] sm:$0xf0] }
  0xba   :  { %v1775_v37 = vadd.f32 %v1774_v36, %v7651_v29  ;;  %v1863_v38 = vpop.f32.mrf.mxu1 }
  0xbb   :  { %v7757_v39 = vadd.f32 %v2039_v31, %v1951_v28  ;;  %11092 = vst [vmem:[#allocation43_spill] sm:$0xff] %v7785_v19  ;;  %v7787_v28 = vor.u32 %v6728_v62, %v5506_v61  ;;  %v6796_v61 = vld [vmem:[%s10792_s1 + $0x124] sm:$0xf]  ;;  %v5788_v62 = vld [vmem:[%s10792_s1 + $0x130] sm:$0xf0] }
  0xbc   :  { %v1864_v40 = vadd.f32 %v1863_v38, %v1775_v37  ;;  %v7790_v37 = vor.u32 %v6725_v63, %v5508_v5  ;;  %v6171_v5 = vor.u32 %v6894_v59, %v6170_v43  ;;  %v6926_v43 = vld [vmem:[%s10792_s1 + $0x52c] sm:$0xf0] }
  0xbd   :  { %11093 = vst [vmem:[#allocation44_spill] sm:$0xff] %v7787_v28 }
  0xbe   :  { %11094 = vst [vmem:[#allocation45_spill] sm:$0xff] %v7790_v37  ;;  %2120 = vmatpush.bf16.msrb.mxu0 %v6171_v5  ;;  %v5530_v5 = vld [vmem:[%s10793_s0 + $0x218] sm:$0xf] }
  0xc0   :  { %v1952_v6 = vpop.f32.mrf.mxu2 }
  0xc1   :  { %v1953_v10 = vadd.f32 %v1952_v6, %v1864_v40  ;;  %v2041_v11 = vpop.f32.mrf.mxu3  ;;  %v1777_v18 = vpop.f32.mrf.mxu0  ;;  %v6764_v40 = vld [vmem:[%s10792_s1 + $0x24] sm:$0xf]  ;;  %v5791_v6 = vor.u32 %v6796_v61, %v5788_v62  ;;  %v6733_v61 = vld [vmem:[%s10793_s0 + $0x224] sm:$0xf0]  ;;  %v6730_v62 = vld [vmem:[%s10793_s0 + $0x214] sm:$0xf] }
  0xc2   :  { %v1778_v31 = vadd.f32 %v1777_v18, %v7651_v29  ;;  %v1866_v36 = vpop.f32.mrf.mxu1  ;;  %v5663_v58 = vor.u32 %v6764_v40, %v5660_v41  ;;  %v6298_v41 = vld [vmem:[%s10792_s1 + $0x520] sm:$0xf] }
  0xc3   :  { %v7792_v38 = vadd.f32 %v2041_v11, %v1953_v10  ;;  %2387 = vmatpush.bf16.msrb.mxu3 %v5791_v6  ;;  %v6734_v6 = vld [vmem:[%s10793_s0 + $0x22c] sm:$0xf0] }
  0xc4   :  { %v1867_v16 = vadd.f32 %v1866_v36, %v1778_v31  ;;  %1816 = vmatmul.bf16.gmra.mxu0 %v7783_v7  ;;  %1905 = vmatmul.bf16.gmra.mxu1 %v7785_v19 }
  0xc5   :  { %1994 = vmatmul.bf16.gmra.mxu2 %v7787_v28  ;;  %v7853_v28 = vor.u32 %v6734_v6, %v5530_v5 }
  0xc6   :  { %2083 = vmatmul.bf16.gmra.mxu3 %v7790_v37  ;;  %2298 = vmatpush.bf16.msrb.mxu2 %v5663_v58  ;;  %v5522_v58 = vld [vmem:[%s10793_s0 + $0x210] sm:$0xf] }
  0xc7   :  { %11097 = vst [vmem:[#allocation48_spill] sm:$0xff] %v7853_v28 }
  0xc8   :  { %v1955_v63 = vpop.f32.mrf.mxu2 }
  0xc9   :  { %v1956_v10 = vadd.f32 %v1955_v63, %v1867_v16  ;;  %v2044_v11 = vpop.f32.mrf.mxu3  ;;  %v1779_v18 = vpop.f32.mrf.mxu0  ;;  %v6299_v16 = vor.u32 %v6926_v43, %v6298_v41  ;;  %v5524_v63 = vld [vmem:[%s10793_s0 + $0x228] sm:$0xf0] }
  0xca   :  { %v1780_v31 = vadd.f32 %v1779_v18, %v7651_v29  ;;  %v1868_v36 = vpop.f32.mrf.mxu1  ;;  %v7851_v37 = vor.u32 %v6730_v62, %v5524_v63 }
  0xcb   :  { %v7817_v40 = vadd.f32 %v2044_v11, %v1956_v10  ;;  %2209 = vmatpush.bf16.msrb.mxu1 %v6299_v16  ;;  %v6731_v10 = vld [vmem:[%s10793_s0 + $0x21c] sm:$0xf]  ;;  %v5532_v11 = vld [vmem:[%s10793_s0 + $0x230] sm:$0xf0] }
  0xcc   :  { %v1869_v59 = vadd.f32 %v1868_v36, %v1780_v31  ;;  %v7849_v31 = vor.u32 %v6733_v61, %v5522_v58  ;;  %11096 = vst [vmem:[#allocation47_spill] sm:$0xff] %v7851_v37  ;;  %v7856_v60 = vor.u32 %v6731_v10, %v5532_v11  ;;  %v6739_v11 = vld [vmem:[%s10793_s0 + $0x254] sm:$0xf0] }
  0xce   :  { %11095 = vst [vmem:[#allocation46_spill] sm:$0xff] %v7849_v31 }
  0xcf   :  { %11098 = vst [vmem:[#allocation49_spill] sm:$0xff] %v7856_v60 }
  0xd0   :  { %v1957_v18 = vpop.f32.mrf.mxu2 }
  0xd1   :  { %v1958_v36 = vadd.f32 %v1957_v18, %v1869_v59  ;;  %v2046_v41 = vpop.f32.mrf.mxu3  ;;  %v1782_v43 = vpop.f32.mrf.mxu0  ;;  %v5548_v18 = vld [vmem:[%s10793_s0 + $0x258] sm:$0xf0] }
  0xd2   :  { %v1783_v16 = vadd.f32 %v1782_v43, %v7651_v29  ;;  %v1871_v9 = vpop.f32.mrf.mxu1  ;;  %v6737_v43 = vld [vmem:[%s10793_s0 + $0x24c] sm:$0xf] }
  0xd3   :  { %v7858_v57 = vadd.f32 %v2046_v41, %v1958_v36  ;;  %v5554_v36 = vld [vmem:[%s10793_s0 + $0x248] sm:$0xf]  ;;  %v6740_v41 = vld [vmem:[%s10793_s0 + $0x25c] sm:$0xf0] }
  0xd4   :  { %v1872_v23 = vadd.f32 %v1871_v9, %v1783_v16  ;;  %1821 = vmatmul.bf16.gmra.mxu0 %v7849_v31  ;;  %1910 = vmatmul.bf16.gmra.mxu1 %v7851_v37  ;;  %v5546_v9 = vld [vmem:[%s10793_s0 + $0x240] sm:$0xf]  ;;  %v5556_v16 = vld [vmem:[%s10793_s0 + $0x260] sm:$0xf0] }
  0xd5   :  { %1999 = vmatmul.bf16.gmra.mxu2 %v7853_v28  ;;  %v7898_v48 = vor.u32 %v6737_v43, %v5556_v16 }
  0xd6   :  { %2088 = vmatmul.bf16.gmra.mxu3 %v7856_v60  ;;  %v7895_v60 = vor.u32 %v6740_v41, %v5554_v36 }
  0xd7   :  { %11102 = vst [vmem:[#allocation53_spill] sm:$0xff] %v7898_v48 }
  0xd8   :  { %v1960_v59 = vpop.f32.mrf.mxu2  ;;  %11101 = vst [vmem:[#allocation52_spill] sm:$0xff] %v7895_v60 }
  0xd9   :  { %v1961_v58 = vadd.f32 %v1960_v59, %v1872_v23  ;;  %v2049_v61 = vpop.f32.mrf.mxu3  ;;  %v1784_v62 = vpop.f32.mrf.mxu0  ;;  %v6736_v23 = vld [vmem:[%s10793_s0 + $0x244] sm:$0xf] }
  0xda   :  { %v1785_v63 = vadd.f32 %v1784_v62, %v7651_v29  ;;  %v1873_v5 = vpop.f32.mrf.mxu1 }
  0xdb   :  { %v7865_v6 = vadd.f32 %v2049_v61, %v1961_v58  ;;  %v7891_v58 = vor.u32 %v6739_v11, %v5546_v9  ;;  %v5644_v9 = vld [vmem:[%s10792_s1 + $0x10] sm:$0xf0]  ;;  %v6890_v11 = vld [vmem:[%s10792_s1 + $0x40c] sm:$0xf0] }
  0xdc   :  { %v1874_v10 = vadd.f32 %v1873_v5, %v1785_v63  ;;  %v7893_v5 = vor.u32 %v6736_v23, %v5548_v18  ;;  %v6792_v23 = vld [vmem:[%s10792_s1 + $0x104] sm:$0xf]  ;;  %v5772_v18 = vld [vmem:[%s10792_s1 + $0x110] sm:$0xf0] }
  0xdd   :  { %11099 = vst [vmem:[#allocation50_spill] sm:$0xff] %v7891_v58  ;;  %v5775_v43 = vor.u32 %v6792_v23, %v5772_v18  ;;  %v6745_v23 = vld [vmem:[%s10793_s0 + $0x284] sm:$0xf0]  ;;  %v6742_v18 = vld [vmem:[%s10793_s0 + $0x274] sm:$0xf] }
  0xde   :  { %11100 = vst [vmem:[#allocation51_spill] sm:$0xff] %v7893_v5 }
  0xdf   :  { %2388 = vmatpush.bf16.msrb.mxu3 %v5775_v43  ;;  %v6746_v43 = vld [vmem:[%s10793_s0 + $0x28c] sm:$0xf0] }
  0xe0   :  { %v1962_v59 = vpop.f32.mrf.mxu2 }
  0xe1   :  { %v1963_v61 = vadd.f32 %v1962_v59, %v1874_v10  ;;  %v2051_v62 = vpop.f32.mrf.mxu3  ;;  %v1787_v63 = vpop.f32.mrf.mxu0  ;;  %v6760_v10 = vld [vmem:[%s10792_s1 + $0x4] sm:$0xf] }
  0xe2   :  { %v1788_v28 = vadd.f32 %v1787_v63, %v7651_v29  ;;  %v1876_v22 = vpop.f32.mrf.mxu1 }
  0xe3   :  { %v7900_v46 = vadd.f32 %v2051_v62, %v1963_v61 }
  0xe4   :  { %v1877_v35 = vadd.f32 %v1876_v22, %v1788_v28  ;;  %1826 = vmatmul.bf16.gmra.mxu0 %v7891_v58  ;;  %1915 = vmatmul.bf16.gmra.mxu1 %v7893_v5  ;;  %v6154_v22 = vld [vmem:[%s10792_s1 + $0x400] sm:$0xf]  ;;  %v5647_v28 = vor.u32 %v6760_v10, %v5644_v9 }
  0xe5   :  { %2004 = vmatmul.bf16.gmra.mxu2 %v7895_v60  ;;  %v6155_v41 = vor.u32 %v6890_v11, %v6154_v22  ;;  %v6282_v9 = vld [vmem:[%s10792_s1 + $0x500] sm:$0xf]  ;;  %v6922_v22 = vld [vmem:[%s10792_s1 + $0x50c] sm:$0xf0] }
  0xe6   :  { %2093 = vmatmul.bf16.gmra.mxu3 %v7898_v48  ;;  %2299 = vmatpush.bf16.msrb.mxu2 %v5647_v28  ;;  %v5570_v28 = vld [vmem:[%s10793_s0 + $0x270] sm:$0xf] }
  0xe7   :  { %2121 = vmatpush.bf16.msrb.mxu0 %v6155_v41  ;;  %v5578_v41 = vld [vmem:[%s10793_s0 + $0x278] sm:$0xf] }
  0xe8   :  { %v1965_v36 = vpop.f32.mrf.mxu2  ;;  %v7961_v60 = vor.u32 %v6746_v43, %v5578_v41 }
  0xe9   :  { %v1966_v16 = vadd.f32 %v1965_v36, %v1877_v35  ;;  %v2054_v59 = vpop.f32.mrf.mxu3  ;;  %v1789_v61 = vpop.f32.mrf.mxu0  ;;  %v6283_v35 = vor.u32 %v6922_v22, %v6282_v9  ;;  %v5572_v36 = vld [vmem:[%s10793_s0 + $0x288] sm:$0xf0] }
  0xea   :  { %v1790_v62 = vadd.f32 %v1789_v61, %v7651_v29  ;;  %v1878_v63 = vpop.f32.mrf.mxu1  ;;  %v7959_v48 = vor.u32 %v6742_v18, %v5572_v36  ;;  %11105 = vst [vmem:[#allocation56_spill] sm:$0xff] %v7961_v60 }
  0xeb   :  { %v7925_v10 = vadd.f32 %v2054_v59, %v1966_v16  ;;  %2210 = vmatpush.bf16.msrb.mxu1 %v6283_v35  ;;  %v6743_v16 = vld [vmem:[%s10793_s0 + $0x27c] sm:$0xf]  ;;  %v5580_v59 = vld [vmem:[%s10793_s0 + $0x290] sm:$0xf0] }
  0xec   :  { %v1879_v11 = vadd.f32 %v1878_v63, %v1790_v62  ;;  %v7957_v62 = vor.u32 %v6745_v23, %v5570_v28  ;;  %11104 = vst [vmem:[#allocation55_spill] sm:$0xff] %v7959_v48  ;;  %v7964_v3 = vor.u32 %v6743_v16, %v5580_v59  ;;  %v6751_v59 = vld [vmem:[%s10793_s0 + $0x2b4] sm:$0xf0] }
  0xee   :  { %11103 = vst [vmem:[#allocation54_spill] sm:$0xff] %v7957_v62 }
  0xef   :  { %11106 = vst [vmem:[#allocation57_spill] sm:$0xff] %v7964_v3 }
  0xf0   :  { %v1967_v61 = vpop.f32.mrf.mxu2 }
  0xf1   :  { %v1968_v63 = vadd.f32 %v1967_v61, %v1879_v11  ;;  %v2056_v9 = vpop.f32.mrf.mxu3  ;;  %v1792_v22 = vpop.f32.mrf.mxu0  ;;  %v5596_v61 = vld [vmem:[%s10793_s0 + $0x2b8] sm:$0xf0] }
  0xf2   :  { %v1793_v35 = vadd.f32 %v1792_v22, %v7651_v29  ;;  %v1881_v34 = vpop.f32.mrf.mxu1  ;;  %v6749_v22 = vld [vmem:[%s10793_s0 + $0x2ac] sm:$0xf] }
  0xf3   :  { %v7966_v2 = vadd.f32 %v2056_v9, %v1968_v63  ;;  %v5602_v63 = vld [vmem:[%s10793_s0 + $0x2a8] sm:$0xf]  ;;  %v6752_v9 = vld [vmem:[%s10793_s0 + $0x2bc] sm:$0xf0] }
  0xf4   :  { %v1882_v55 = vadd.f32 %v1881_v34, %v1793_v35  ;;  %1831 = vmatmul.bf16.gmra.mxu0 %v7957_v62  ;;  %1920 = vmatmul.bf16.gmra.mxu1 %v7959_v48  ;;  %v5594_v34 = vld [vmem:[%s10793_s0 + $0x2a0] sm:$0xf]  ;;  %v5604_v35 = vld [vmem:[%s10793_s0 + $0x2c0] sm:$0xf0] }
  0xf5   :  { %2009 = vmatmul.bf16.gmra.mxu2 %v7961_v60  ;;  %v8006_v27 = vor.u32 %v6749_v22, %v5604_v35 }
  0xf6   :  { %2098 = vmatmul.bf16.gmra.mxu3 %v7964_v3  ;;  %v8003_v3 = vor.u32 %v6752_v9, %v5602_v63 }
  0xf7   :  { %11110 = vst [vmem:[#allocation61_spill] sm:$0xff] %v8006_v27 }
  0xf8   :  { %v1970_v11 = vpop.f32.mrf.mxu2  ;;  %11109 = vst [vmem:[#allocation60_spill] sm:$0xff] %v8003_v3 }
  0xf9   :  { %v1971_v28 = vadd.f32 %v1970_v11, %v1882_v55  ;;  %v2059_v23 = vpop.f32.mrf.mxu3  ;;  %v1794_v18 = vpop.f32.mrf.mxu0  ;;  %v6748_v55 = vld [vmem:[%s10793_s0 + $0x2a4] sm:$0xf] }
  0xfa   :  { %v1795_v36 = vadd.f32 %v1794_v18, %v7651_v29  ;;  %v1883_v41 = vpop.f32.mrf.mxu1 }
  0xfb   :  { %v7973_v43 = vadd.f32 %v2059_v23, %v1971_v28  ;;  %v7999_v28 = vor.u32 %v6751_v59, %v5594_v34  ;;  %v6268_v34 = vld [vmem:[%s10792_s1 + $0x4f0] sm:$0xf0] }
  0xfc   :  { %v1884_v16 = vadd.f32 %v1883_v41, %v1795_v36  ;;  %v8001_v41 = vor.u32 %v6748_v55, %v5596_v61  ;;  %v6012_v59 = vld [vmem:[%s10792_s1 + $0x2f0] sm:$0xf0]  ;;  %v6948_v55 = vld [vmem:[%s10792_s1 + $0x5e4] sm:$0xf] }
  0xfd   :  { %11107 = vst [vmem:[#allocation58_spill] sm:$0xff] %v7999_v28  ;;  %v6396_v61 = vld [vmem:[%s10792_s1 + $0x5f0] sm:$0xf0] }
  0xfe   :  { %11108 = vst [vmem:[#allocation59_spill] sm:$0xff] %v8001_v41  ;;  %v6399_v22 = vor.u32 %v6948_v55, %v6396_v61  ;;  %v6757_v55 = vld [vmem:[%s10793_s0 + $0x2e4] sm:$0xf0]  ;;  %v6754_v61 = vld [vmem:[%s10793_s0 + $0x2d4] sm:$0xf] }
 0x100   :  { %v1972_v11 = vpop.f32.mrf.mxu2  ;;  %2737 = vmatpush.bf16.msra.mxu3 %v6399_v22  ;;  %v6758_v22 = vld [vmem:[%s10793_s0 + $0x2ec] sm:$0xf0] }
 0x101   :  { %v1973_v23 = vadd.f32 %v1972_v11, %v1884_v16  ;;  %v2061_v18 = vpop.f32.mrf.mxu3  ;;  %v1797_v36 = vpop.f32.mrf.mxu0  ;;  %v6916_v16 = vld [vmem:[%s10792_s1 + $0x4e4] sm:$0xf] }
 0x102   :  { %v1798_v60 = vadd.f32 %v1797_v36, %v7651_v29  ;;  %v1886_v54 = vpop.f32.mrf.mxu1 }
 0x103   :  { %v8008_v26 = vadd.f32 %v2061_v18, %v1973_v23 }
 0x104   :  { %v1887_v15 = vadd.f32 %v1886_v54, %v1798_v60  ;;  %1836 = vmatmul.bf16.gmra.mxu0 %v7999_v28  ;;  %1925 = vmatmul.bf16.gmra.mxu1 %v8001_v41  ;;  %v6852_v54 = vld [vmem:[%s10792_s1 + $0x2e4] sm:$0xf]  ;;  %v6271_v60 = vor.u32 %v6916_v16, %v6268_v34 }
 0x105   :  { %2014 = vmatmul.bf16.gmra.mxu2 %v8003_v3  ;;  %v6015_v9 = vor.u32 %v6852_v54, %v6012_v59  ;;  %v6884_v34 = vld [vmem:[%s10792_s1 + $0x3e4] sm:$0xf]  ;;  %v6140_v54 = vld [vmem:[%s10792_s1 + $0x3f0] sm:$0xf0] }
 0x106   :  { %2103 = vmatmul.bf16.gmra.mxu3 %v8006_v27  ;;  %2648 = vmatpush.bf16.msra.mxu2 %v6271_v60  ;;  %v5618_v60 = vld [vmem:[%s10793_s0 + $0x2d0] sm:$0xf] }
 0x107   :  { %2470 = vmatpush.bf16.msra.mxu0 %v6015_v9  ;;  %v5626_v9 = vld [vmem:[%s10793_s0 + $0x2d8] sm:$0xf] }
 0x108   :  { %v1975_v63 = vpop.f32.mrf.mxu2  ;;  %v8069_v3 = vor.u32 %v6758_v22, %v5626_v9 }
 0x109   :  { %v1976_v35 = vadd.f32 %v1975_v63, %v1887_v15  ;;  %v2064_v11 = vpop.f32.mrf.mxu3  ;;  %v1799_v23 = vpop.f32.mrf.mxu0  ;;  %v6143_v15 = vor.u32 %v6884_v34, %v6140_v54  ;;  %v5620_v63 = vld [vmem:[%s10793_s0 + $0x2e8] sm:$0xf0] }
 0x10a   :  { %v1800_v18 = vadd.f32 %v1799_v23, %v7651_v29  ;;  %v1888_v36 = vpop.f32.mrf.mxu1  ;;  %v8067_v27 = vor.u32 %v6754_v61, %v5620_v63  ;;  %11113 = vst [vmem:[#allocation64_spill] sm:$0xff] %v8069_v3 }
 0x10b   :  { %v8033_v16 = vadd.f32 %v2064_v11, %v1976_v35  ;;  %2559 = vmatpush.bf16.msra.mxu1 %v6143_v15  ;;  %v6755_v35 = vld [vmem:[%s10793_s0 + $0x2dc] sm:$0xf]  ;;  %v5628_v11 = vld [vmem:[%s10793_s0 + $0x2f0] sm:$0xf0] }
 0x10c   :  { %v1889_v59 = vadd.f32 %v1888_v36, %v1800_v18  ;;  %v8065_v18 = vor.u32 %v6757_v55, %v5618_v60  ;;  %11112 = vst [vmem:[#allocation63_spill] sm:$0xff] %v8067_v27  ;;  %v8072_v53 = vor.u32 %v6755_v35, %v5628_v11  ;;  %v6669_v11 = vld [vmem:[%s10793_s0 + $0x24] sm:$0xf0] }
 0x10e   :  { %11111 = vst [vmem:[#allocation62_spill] sm:$0xff] %v8065_v18 }
 0x10f   :  { %11114 = vst [vmem:[#allocation65_spill] sm:$0xff] %v8072_v53 }
 0x110   :  { %v1977_v23 = vpop.f32.mrf.mxu2 }
 0x111   :  { %v1978_v36 = vadd.f32 %v1977_v23, %v1889_v59  ;;  %v2066_v34 = vpop.f32.mrf.mxu3  ;;  %v1802_v54 = vpop.f32.mrf.mxu0  ;;  %v5276_v23 = vld [vmem:[%s10793_s0 + $0x28] sm:$0xf0] }
 0x112   :  { %v1803_v15 = vadd.f32 %v1802_v54, %v7651_v29  ;;  %v1891_v14 = vpop.f32.mrf.mxu1 }
 0x113   :  { %v8074_v52 = vadd.f32 %v2066_v34, %v1978_v36 }
 0x114   :  { %v1892_v41 = vadd.f32 %v1891_v14, %v1803_v15  ;;  %1841 = vmatmul.bf16.gmra.mxu0 %v8065_v18  ;;  %1930 = vmatmul.bf16.gmra.mxu1 %v8067_v27  ;;  %v5274_v14 = vld [vmem:[%s10793_s0 + $0x10] sm:$0xf] }
 0x115   :  { %2019 = vmatmul.bf16.gmra.mxu2 %v8069_v3  ;;  %v8095_v34 = vor.u32 %v6669_v11, %v5274_v14  ;;  %v6252_v14 = vld [vmem:[%s10792_s1 + $0x4d0] sm:$0xf0]  ;;  %v6848_v11 = vld [vmem:[%s10792_s1 + $0x2c4] sm:$0xf] }
 0x116   :  { %2108 = vmatmul.bf16.gmra.mxu3 %v8072_v53  ;;  %v6880_v3 = vld [vmem:[%s10792_s1 + $0x3c4] sm:$0xf] }
 0x117   :  { %11115 = vst [vmem:[#allocation66_spill] sm:$0xff] %v8095_v34 }
 0x118   :  { %v1980_v59 = vpop.f32.mrf.mxu2 }
 0x119   :  { %v1981_v60 = vadd.f32 %v1980_v59, %v1892_v41  ;;  %v2069_v55 = vpop.f32.mrf.mxu3  ;;  %v1804_v61 = vpop.f32.mrf.mxu0  ;;  %v6666_v41 = vld [vmem:[%s10793_s0 + $0x14] sm:$0xf] }
 0x11a   :  { %v1805_v63 = vadd.f32 %v1804_v61, %v7651_v29  ;;  %v1893_v9 = vpop.f32.mrf.mxu1 }
 0x11b   :  { %v8081_v22 = vadd.f32 %v2069_v55, %v1981_v60  ;;  %v8097_v60 = vor.u32 %v6666_v41, %v5276_v23  ;;  %v5996_v23 = vld [vmem:[%s10792_s1 + $0x2d0] sm:$0xf0] }
 0x11c   :  { %v1894_v35 = vadd.f32 %v1893_v9, %v1805_v63 }
 0x11d   :  { %11116 = vst [vmem:[#allocation67_spill] sm:$0xff] %v8097_v60 }
 0x120   :  { %v1982_v36 = vpop.f32.mrf.mxu2 }
 0x121   :  { %v1983_v54 = vadd.f32 %v1982_v36, %v1894_v35  ;;  %v2071_v15 = vpop.f32.mrf.mxu3  ;;  %v1807_v59 = vpop.f32.mrf.mxu0  ;;  %v6912_v35 = vld [vmem:[%s10792_s1 + $0x4c4] sm:$0xf] }
 0x122   :  { %v1808_v55 = vadd.f32 %v1807_v59, %v7651_v29  ;;  %v1896_v61 = vpop.f32.mrf.mxu1  ;;  %v6255_v41 = vor.u32 %v6912_v35, %v6252_v14  ;;  %v6944_v36 = vld [vmem:[%s10792_s1 + $0x5c4] sm:$0xf]  ;;  %v5999_v59 = vor.u32 %v6848_v11, %v5996_v23  ;;  %v6124_v11 = vld [vmem:[%s10792_s1 + $0x3d0] sm:$0xf0] }
 0x123   :  { %v8100_v63 = vadd.f32 %v2071_v15, %v1983_v54  ;;  %v6380_v54 = vld [vmem:[%s10792_s1 + $0x5d0] sm:$0xf0] }
 0x124   :  { %v1897_v9 = vadd.f32 %v1896_v61, %v1808_v55  ;;  %2122 = vmatmul.bf16.vlgmr.msrb.gmra.mxu0 %v8095_v34  ;;  %2211 = vmatmul.bf16.vlgmr.msrb.gmra.mxu1 %v8097_v60  ;;  %v6383_v55 = vor.u32 %v6944_v36, %v6380_v54  ;;  %v5300_v36 = vld [vmem:[%s10793_s0 + $0x58] sm:$0xf0] }
 0x125   :  { %2300 = vmatmul.bf16.vlgmr.msrb.gmra.mxu2 %v7282_v47  ;;  %2471 = vmatpush.bf16.msra.mxu0 %v5999_v59 }
 0x126   :  { %2389 = vmatmul.bf16.vlgmr.msrb.gmra.mxu3 %v7290_v51  ;;  %2649 = vmatpush.bf16.msra.mxu2 %v6255_v41  ;;  %v5298_v41 = vld [vmem:[%s10793_s0 + $0x40] sm:$0xf] }
 0x127   :  { %2738 = vmatpush.bf16.msra.mxu3 %v6383_v55 }
 0x128   :  { %v1985_v15 = vpop.f32.mrf.mxu2 }
 0x129   :  { %v1986_v61 = vadd.f32 %v1985_v15, %v1897_v9  ;;  %v2074_v51 = vpop.f32.mrf.mxu3  ;;  %v1809_v47 = vpop.f32.mrf.mxu0  ;;  %v6127_v9 = vor.u32 %v6880_v3, %v6124_v11 }
 0x12a   :  { %v1810_v35 = vadd.f32 %v1809_v47, %v7651_v29  ;;  %v1898_v14 = vpop.f32.mrf.mxu1  ;;  %v6675_v47 = vld [vmem:[%s10793_s0 + $0x54] sm:$0xf0] }
 0x12b   :  { %v8125_v53 = vadd.f32 %v2074_v51, %v1986_v61  ;;  %v6672_v51 = vld [vmem:[%s10793_s0 + $0x44] sm:$0xf]  ;;  %2560 = vmatpush.bf16.msra.mxu1 %v6127_v9  ;;  %v8145_v15 = vor.u32 %v6675_v47, %v5298_v41 }
 0x12c   :  { %v1899_v23 = vadd.f32 %v1898_v14, %v1810_v35  ;;  %v8147_v61 = vor.u32 %v6672_v51, %v5300_v36 }
 0x12d   :  { %11117 = vst [vmem:[#allocation68_spill] sm:$0xff] %v8145_v15 }
 0x12e   :  { %11118 = vst [vmem:[#allocation69_spill] sm:$0xff] %v8147_v61 }
 0x130   :  { %v1987_v54 = vpop.f32.mrf.mxu2 }
 0x131   :  { %v1988_v3 = vadd.f32 %v1987_v54, %v1899_v23  ;;  %v2076_v59 = vpop.f32.mrf.mxu3  ;;  %v1812_v55 = vpop.f32.mrf.mxu0 }
 0x132   :  { %v1813_v35 = vadd.f32 %v1812_v55, %v7651_v29  ;;  %v1901_v14 = vpop.f32.mrf.mxu1  ;;  %v6681_v55 = vld [vmem:[%s10793_s0 + $0x84] sm:$0xf0] }
 0x133   :  { %v8150_v11 = vadd.f32 %v2076_v59, %v1988_v3  ;;  %v5322_v59 = vld [vmem:[%s10793_s0 + $0x70] sm:$0xf] }
 0x134   :  { %v1902_v60 = vadd.f32 %v1901_v14, %v1813_v35  ;;  %2127 = vmatmul.bf16.gmra.mxu0 %v8145_v15  ;;  %2216 = vmatmul.bf16.gmra.mxu1 %v8147_v61  ;;  %v5324_v35 = vld [vmem:[%s10793_s0 + $0x88] sm:$0xf0] }
 0x135   :  { %2305 = vmatmul.bf16.gmra.mxu2 %v7348_v12 }
 0x136   :  { %2394 = vmatmul.bf16.gmra.mxu3 %v7350_v13 }
 0x138   :  { %v1990_v9 = vpop.f32.mrf.mxu2 }
 0x139   :  { %v1991_v23 = vadd.f32 %v1990_v9, %v1902_v60  ;;  %v2079_v41 = vpop.f32.mrf.mxu3  ;;  %v1814_v47 = vpop.f32.mrf.mxu0  ;;  %v6678_v60 = vld [vmem:[%s10793_s0 + $0x74] sm:$0xf]  ;;  %v8171_v9 = vor.u32 %v6681_v55, %v5322_v59 }
 0x13a   :  { %v1815_v51 = vadd.f32 %v1814_v47, %v7651_v29  ;;  %v1903_v36 = vpop.f32.mrf.mxu1  ;;  %v6236_v59 = vld [vmem:[%s10792_s1 + $0x4b0] sm:$0xf0] }
 0x13b   :  { %v8157_v54 = vadd.f32 %v2079_v41, %v1991_v23  ;;  %11119 = vst [vmem:[#allocation70_spill] sm:$0xff] %v8171_v9 }
 0x13c   :  { %v1904_v3 = vadd.f32 %v1903_v36, %v1815_v51  ;;  %v8173_v51 = vor.u32 %v6678_v60, %v5324_v35  ;;  %v5980_v60 = vld [vmem:[%s10792_s1 + $0x2b0] sm:$0xf0]  ;;  %v6940_v35 = vld [vmem:[%s10792_s1 + $0x5a4] sm:$0xf] }
 0x13e   :  { %11120 = vst [vmem:[#allocation71_spill] sm:$0xff] %v8173_v51 }
 0x140   :  { %v1992_v14 = vpop.f32.mrf.mxu2 }
 0x141   :  { %v1993_v23 = vadd.f32 %v1992_v14, %v1904_v3  ;;  %v2081_v41 = vpop.f32.mrf.mxu3  ;;  %v1817_v47 = vpop.f32.mrf.mxu0  ;;  %v6908_v3 = vld [vmem:[%s10792_s1 + $0x4a4] sm:$0xf]  ;;  %v6364_v14 = vld [vmem:[%s10792_s1 + $0x5b0] sm:$0xf0] }
 0x142   :  { %v1818_v36 = vadd.f32 %v1817_v47, %v7651_v29  ;;  %v1906_v13 = vpop.f32.mrf.mxu1  ;;  %v6239_v55 = vor.u32 %v6908_v3, %v6236_v59  ;;  %v6367_v47 = vor.u32 %v6940_v35, %v6364_v14  ;;  %v5348_v35 = vld [vmem:[%s10793_s0 + $0xb8] sm:$0xf0] }
 0x143   :  { %v8176_v12 = vadd.f32 %v2081_v41, %v1993_v23 }
 0x144   :  { %v1907_v61 = vadd.f32 %v1906_v13, %v1818_v36  ;;  %2132 = vmatmul.bf16.gmra.mxu0 %v8171_v9  ;;  %2221 = vmatmul.bf16.gmra.mxu1 %v8173_v51  ;;  %v6844_v13 = vld [vmem:[%s10792_s1 + $0x2a4] sm:$0xf] }
 0x145   :  { %2310 = vmatmul.bf16.gmra.mxu2 %v7384_v24  ;;  %v5983_v41 = vor.u32 %v6844_v13, %v5980_v60  ;;  %2739 = vmatpush.bf16.msra.mxu3 %v6367_v47  ;;  %v6876_v9 = vld [vmem:[%s10792_s1 + $0x3a4] sm:$0xf]  ;;  %v6108_v13 = vld [vmem:[%s10792_s1 + $0x3b0] sm:$0xf0] }
 0x146   :  { %2399 = vmatmul.bf16.gmra.mxu3 %v7386_v25  ;;  %2650 = vmatpush.bf16.msra.mxu2 %v6239_v55  ;;  %v5346_v55 = vld [vmem:[%s10793_s0 + $0xa0] sm:$0xf] }
 0x147   :  { %2472 = vmatpush.bf16.msra.mxu0 %v5983_v41 }
 0x148   :  { %v1995_v23 = vpop.f32.mrf.mxu2 }
 0x149   :  { %v1996_v36 = vadd.f32 %v1995_v23, %v1907_v61  ;;  %v2084_v25 = vpop.f32.mrf.mxu3  ;;  %v1819_v24 = vpop.f32.mrf.mxu0  ;;  %v6111_v61 = vor.u32 %v6876_v9, %v6108_v13 }
 0x14a   :  { %v1820_v3 = vadd.f32 %v1819_v24, %v7651_v29  ;;  %v1908_v59 = vpop.f32.mrf.mxu1  ;;  %v6687_v24 = vld [vmem:[%s10793_s0 + $0xb4] sm:$0xf0] }
 0x14b   :  { %v8201_v51 = vadd.f32 %v2084_v25, %v1996_v36  ;;  %v6684_v25 = vld [vmem:[%s10793_s0 + $0xa4] sm:$0xf]  ;;  %2561 = vmatpush.bf16.msra.mxu1 %v6111_v61  ;;  %v8221_v23 = vor.u32 %v6687_v24, %v5346_v55 }
 0x14c   :  { %v1909_v60 = vadd.f32 %v1908_v59, %v1820_v3  ;;  %v8223_v36 = vor.u32 %v6684_v25, %v5348_v35 }
 0x14d   :  { %11121 = vst [vmem:[#allocation72_spill] sm:$0xff] %v8201_v51 }
 0x14e   :  { %11122 = vst [vmem:[#allocation73_spill] sm:$0xff] %v8221_v23 }
 0x14f   :  { %11123 = vst [vmem:[#allocation74_spill] sm:$0xff] %v8223_v36 }
 0x150   :  { %v1997_v14 = vpop.f32.mrf.mxu2 }
 0x151   :  { %v1998_v9 = vadd.f32 %v1997_v14, %v1909_v60  ;;  %v2086_v41 = vpop.f32.mrf.mxu3  ;;  %v1822_v47 = vpop.f32.mrf.mxu0 }
 0x152   :  { %v1823_v3 = vadd.f32 %v1822_v47, %v7651_v29  ;;  %v1911_v59 = vpop.f32.mrf.mxu1  ;;  %v6693_v47 = vld [vmem:[%s10793_s0 + $0xe4] sm:$0xf0] }
 0x153   :  { %v8226_v13 = vadd.f32 %v2086_v41, %v1998_v9  ;;  %v5370_v41 = vld [vmem:[%s10793_s0 + $0xd0] sm:$0xf] }
 0x154   :  { %v1912_v51 = vadd.f32 %v1911_v59, %v1823_v3  ;;  %2137 = vmatmul.bf16.gmra.mxu0 %v8221_v23  ;;  %2226 = vmatmul.bf16.gmra.mxu1 %v8223_v36  ;;  %v5372_v3 = vld [vmem:[%s10793_s0 + $0xe8] sm:$0xf0] }
 0x155   :  { %2315 = vmatmul.bf16.gmra.mxu2 %v7444_v49 }
 0x156   :  { %2404 = vmatmul.bf16.gmra.mxu3 %v7446_v50 }
 0x158   :  { %v2000_v61 = vpop.f32.mrf.mxu2 }
 0x159   :  { %v2001_v60 = vadd.f32 %v2000_v61, %v1912_v51  ;;  %v2089_v55 = vpop.f32.mrf.mxu3  ;;  %v1824_v24 = vpop.f32.mrf.mxu0  ;;  %v6690_v51 = vld [vmem:[%s10793_s0 + $0xd4] sm:$0xf]  ;;  %v8247_v61 = vor.u32 %v6693_v47, %v5370_v41 }
 0x15a   :  { %v1825_v25 = vadd.f32 %v1824_v24, %v7651_v29  ;;  %v1913_v35 = vpop.f32.mrf.mxu1  ;;  %v6220_v41 = vld [vmem:[%s10792_s1 + $0x490] sm:$0xf0] }
 0x15b   :  { %v8233_v14 = vadd.f32 %v2089_v55, %v2001_v60  ;;  %11124 = vst [vmem:[#allocation75_spill] sm:$0xff] %v8247_v61 }
 0x15c   :  { %v1914_v9 = vadd.f32 %v1913_v35, %v1825_v25  ;;  %v8249_v25 = vor.u32 %v6690_v51, %v5372_v3  ;;  %v5964_v51 = vld [vmem:[%s10792_s1 + $0x290] sm:$0xf0]  ;;  %v6936_v3 = vld [vmem:[%s10792_s1 + $0x584] sm:$0xf] }
 0x15e   :  { %11125 = vst [vmem:[#allocation76_spill] sm:$0xff] %v8249_v25 }
 0x160   :  { %v2002_v59 = vpop.f32.mrf.mxu2 }
 0x161   :  { %v2003_v60 = vadd.f32 %v2002_v59, %v1914_v9  ;;  %v2091_v55 = vpop.f32.mrf.mxu3  ;;  %v1827_v24 = vpop.f32.mrf.mxu0  ;;  %v6904_v9 = vld [vmem:[%s10792_s1 + $0x484] sm:$0xf]  ;;  %v6348_v59 = vld [vmem:[%s10792_s1 + $0x590] sm:$0xf0] }
 0x162   :  { %v1828_v35 = vadd.f32 %v1827_v24, %v7651_v29  ;;  %v1916_v50 = vpop.f32.mrf.mxu1  ;;  %v6223_v47 = vor.u32 %v6904_v9, %v6220_v41  ;;  %v6351_v24 = vor.u32 %v6936_v3, %v6348_v59  ;;  %v5396_v3 = vld [vmem:[%s10793_s0 + $0x118] sm:$0xf0] }
 0x163   :  { %v8252_v49 = vadd.f32 %v2091_v55, %v2003_v60 }
 0x164   :  { %v1917_v36 = vadd.f32 %v1916_v50, %v1828_v35  ;;  %2142 = vmatmul.bf16.gmra.mxu0 %v8247_v61  ;;  %2231 = vmatmul.bf16.gmra.mxu1 %v8249_v25  ;;  %v6840_v50 = vld [vmem:[%s10792_s1 + $0x284] sm:$0xf] }
 0x165   :  { %2320 = vmatmul.bf16.gmra.mxu2 %v7480_v0  ;;  %v5967_v55 = vor.u32 %v6840_v50, %v5964_v51  ;;  %2740 = vmatpush.bf16.msra.mxu3 %v6351_v24  ;;  %v6872_v61 = vld [vmem:[%s10792_s1 + $0x384] sm:$0xf]  ;;  %v6092_v50 = vld [vmem:[%s10792_s1 + $0x390] sm:$0xf0] }
 0x166   :  { %2409 = vmatmul.bf16.gmra.mxu3 %v7482_v1  ;;  %2651 = vmatpush.bf16.msra.mxu2 %v6223_v47  ;;  %v5394_v47 = vld [vmem:[%s10793_s0 + $0x100] sm:$0xf] }
 0x167   :  { %2473 = vmatpush.bf16.msra.mxu0 %v5967_v55 }
 0x168   :  { %v2005_v60 = vpop.f32.mrf.mxu2 }
 0x169   :  { %v2006_v35 = vadd.f32 %v2005_v60, %v1917_v36  ;;  %v2094_v1 = vpop.f32.mrf.mxu3  ;;  %v1829_v0 = vpop.f32.mrf.mxu0  ;;  %v6095_v36 = vor.u32 %v6872_v61, %v6092_v50 }
 0x16a   :  { %v1830_v9 = vadd.f32 %v1829_v0, %v7651_v29  ;;  %v1918_v41 = vpop.f32.mrf.mxu1  ;;  %v6699_v0 = vld [vmem:[%s10793_s0 + $0x114] sm:$0xf0] }
 0x16b   :  { %v8277_v25 = vadd.f32 %v2094_v1, %v2006_v35  ;;  %v6696_v1 = vld [vmem:[%s10793_s0 + $0x104] sm:$0xf]  ;;  %2562 = vmatpush.bf16.msra.mxu1 %v6095_v36  ;;  %v8297_v60 = vor.u32 %v6699_v0, %v5394_v47 }
 0x16c   :  { %v1919_v51 = vadd.f32 %v1918_v41, %v1830_v9  ;;  %v8299_v35 = vor.u32 %v6696_v1, %v5396_v3 }
 0x16d   :  { %11126 = vst [vmem:[#allocation77_spill] sm:$0xff] %v8277_v25 }
 0x16e   :  { %11127 = vst [vmem:[#allocation78_spill] sm:$0xff] %v8297_v60 }
 0x16f   :  { %11128 = vst [vmem:[#allocation79_spill] sm:$0xff] %v8299_v35 }
 0x170   :  { %v2007_v59 = vpop.f32.mrf.mxu2 }
 0x171   :  { %v2008_v61 = vadd.f32 %v2007_v59, %v1919_v51  ;;  %v2096_v55 = vpop.f32.mrf.mxu3  ;;  %v1832_v24 = vpop.f32.mrf.mxu0 }
 0x172   :  { %v1833_v9 = vadd.f32 %v1832_v24, %v7651_v29  ;;  %v1921_v41 = vpop.f32.mrf.mxu1  ;;  %v6705_v24 = vld [vmem:[%s10793_s0 + $0x144] sm:$0xf0] }
 0x173   :  { %v8302_v50 = vadd.f32 %v2096_v55, %v2008_v61  ;;  %v5418_v55 = vld [vmem:[%s10793_s0 + $0x130] sm:$0xf] }
 0x174   :  { %v1922_v25 = vadd.f32 %v1921_v41, %v1833_v9  ;;  %2147 = vmatmul.bf16.gmra.mxu0 %v8297_v60  ;;  %2236 = vmatmul.bf16.gmra.mxu1 %v8299_v35  ;;  %v5420_v9 = vld [vmem:[%s10793_s0 + $0x148] sm:$0xf0] }
 0x175   :  { %2325 = vmatmul.bf16.gmra.mxu2 %v7540_v32 }
 0x176   :  { %2414 = vmatmul.bf16.gmra.mxu3 %v7542_v33 }
 0x178   :  { %v2010_v36 = vpop.f32.mrf.mxu2 }
 0x179   :  { %v2011_v51 = vadd.f32 %v2010_v36, %v1922_v25  ;;  %v2099_v47 = vpop.f32.mrf.mxu3  ;;  %v1834_v0 = vpop.f32.mrf.mxu0  ;;  %v6702_v25 = vld [vmem:[%s10793_s0 + $0x134] sm:$0xf]  ;;  %v8323_v36 = vor.u32 %v6705_v24, %v5418_v55 }
 0x17a   :  { %v1835_v1 = vadd.f32 %v1834_v0, %v7651_v29  ;;  %v1923_v3 = vpop.f32.mrf.mxu1  ;;  %v6204_v55 = vld [vmem:[%s10792_s1 + $0x470] sm:$0xf0] }
 0x17b   :  { %v8309_v59 = vadd.f32 %v2099_v47, %v2011_v51  ;;  %11129 = vst [vmem:[#allocation80_spill] sm:$0xff] %v8323_v36 }
 0x17c   :  { %v1924_v61 = vadd.f32 %v1923_v3, %v1835_v1  ;;  %v8325_v1 = vor.u32 %v6702_v25, %v5420_v9  ;;  %v5948_v25 = vld [vmem:[%s10792_s1 + $0x270] sm:$0xf0]  ;;  %v6932_v9 = vld [vmem:[%s10792_s1 + $0x564] sm:$0xf] }
 0x17e   :  { %11130 = vst [vmem:[#allocation81_spill] sm:$0xff] %v8325_v1 }
 0x180   :  { %v2012_v41 = vpop.f32.mrf.mxu2 }
 0x181   :  { %v2013_v51 = vadd.f32 %v2012_v41, %v1924_v61  ;;  %v2101_v47 = vpop.f32.mrf.mxu3  ;;  %v1837_v0 = vpop.f32.mrf.mxu0  ;;  %v6900_v61 = vld [vmem:[%s10792_s1 + $0x464] sm:$0xf]  ;;  %v6332_v41 = vld [vmem:[%s10792_s1 + $0x570] sm:$0xf0] }
 0x182   :  { %v1838_v3 = vadd.f32 %v1837_v0, %v7651_v29  ;;  %v1926_v33 = vpop.f32.mrf.mxu1  ;;  %v6207_v24 = vor.u32 %v6900_v61, %v6204_v55  ;;  %v6335_v0 = vor.u32 %v6932_v9, %v6332_v41  ;;  %v5444_v9 = vld [vmem:[%s10793_s0 + $0x178] sm:$0xf0] }
 0x183   :  { %v8328_v32 = vadd.f32 %v2101_v47, %v2013_v51 }
 0x184   :  { %v1927_v35 = vadd.f32 %v1926_v33, %v1838_v3  ;;  %2152 = vmatmul.bf16.gmra.mxu0 %v8323_v36  ;;  %2241 = vmatmul.bf16.gmra.mxu1 %v8325_v1  ;;  %v6836_v33 = vld [vmem:[%s10792_s1 + $0x264] sm:$0xf] }
 0x185   :  { %2330 = vmatmul.bf16.gmra.mxu2 %v7576_v44  ;;  %v5951_v47 = vor.u32 %v6836_v33, %v5948_v25  ;;  %2741 = vmatpush.bf16.msra.mxu3 %v6335_v0  ;;  %v6868_v36 = vld [vmem:[%s10792_s1 + $0x364] sm:$0xf]  ;;  %v6076_v33 = vld [vmem:[%s10792_s1 + $0x370] sm:$0xf0] }
 0x186   :  { %2419 = vmatmul.bf16.gmra.mxu3 %v7578_v45  ;;  %2652 = vmatpush.bf16.msra.mxu2 %v6207_v24  ;;  %v5442_v24 = vld [vmem:[%s10793_s0 + $0x160] sm:$0xf] }
 0x187   :  { %2474 = vmatpush.bf16.msra.mxu0 %v5951_v47 }
 0x188   :  { %v2015_v51 = vpop.f32.mrf.mxu2 }
 0x189   :  { %v2016_v3 = vadd.f32 %v2015_v51, %v1927_v35  ;;  %v2104_v45 = vpop.f32.mrf.mxu3  ;;  %v1839_v44 = vpop.f32.mrf.mxu0  ;;  %v6079_v35 = vor.u32 %v6868_v36, %v6076_v33 }
 0x18a   :  { %v1840_v61 = vadd.f32 %v1839_v44, %v7651_v29  ;;  %v1928_v55 = vpop.f32.mrf.mxu1  ;;  %v6711_v44 = vld [vmem:[%s10793_s0 + $0x174] sm:$0xf0] }
 0x18b   :  { %v8353_v1 = vadd.f32 %v2104_v45, %v2016_v3  ;;  %v6708_v45 = vld [vmem:[%s10793_s0 + $0x164] sm:$0xf]  ;;  %2563 = vmatpush.bf16.msra.mxu1 %v6079_v35  ;;  %v8373_v51 = vor.u32 %v6711_v44, %v5442_v24 }
 0x18c   :  { %v1929_v25 = vadd.f32 %v1928_v55, %v1840_v61  ;;  %v8375_v3 = vor.u32 %v6708_v45, %v5444_v9 }
 0x18d   :  { %11131 = vst [vmem:[#allocation82_spill] sm:$0xff] %v8353_v1 }
 0x18e   :  { %11132 = vst [vmem:[#allocation83_spill] sm:$0xff] %v8373_v51 }
 0x18f   :  { %11133 = vst [vmem:[#allocation84_spill] sm:$0xff] %v8375_v3 }
 0x190   :  { %v2017_v41 = vpop.f32.mrf.mxu2 }
 0x191   :  { %v2018_v36 = vadd.f32 %v2017_v41, %v1929_v25  ;;  %v2106_v47 = vpop.f32.mrf.mxu3  ;;  %v1842_v0 = vpop.f32.mrf.mxu0 }
 0x192   :  { %v1843_v61 = vadd.f32 %v1842_v0, %v7651_v29  ;;  %v1931_v55 = vpop.f32.mrf.mxu1  ;;  %v6717_v0 = vld [vmem:[%s10793_s0 + $0x1a4] sm:$0xf0] }
 0x193   :  { %v8378_v33 = vadd.f32 %v2106_v47, %v2018_v36  ;;  %v5466_v47 = vld [vmem:[%s10793_s0 + $0x190] sm:$0xf] }
 0x194   :  { %v1932_v1 = vadd.f32 %v1931_v55, %v1843_v61  ;;  %2157 = vmatmul.bf16.gmra.mxu0 %v8373_v51  ;;  %2246 = vmatmul.bf16.gmra.mxu1 %v8375_v3  ;;  %v8399_v55 = vor.u32 %v6717_v0, %v5466_v47  ;;  %v6188_v0 = vld [vmem:[%s10792_s1 + $0x450] sm:$0xf0] }
 0x195   :  { %2335 = vmatmul.bf16.gmra.mxu2 %v7636_v20 }
 0x196   :  { %2424 = vmatmul.bf16.gmra.mxu3 %v7638_v21  ;;  %11134 = vst [vmem:[#allocation85_spill] sm:$0xff] %v8399_v55 }
 0x198   :  { %v2020_v35 = vpop.f32.mrf.mxu2 }
 0x199   :  { %v2021_v25 = vadd.f32 %v2020_v35, %v1932_v1  ;;  %v2109_v24 = vpop.f32.mrf.mxu3  ;;  %v1844_v44 = vpop.f32.mrf.mxu0  ;;  %v6714_v1 = vld [vmem:[%s10793_s0 + $0x194] sm:$0xf] }
 0x19a   :  { %v1845_v45 = vadd.f32 %v1844_v44, %v7651_v29  ;;  %v1933_v9 = vpop.f32.mrf.mxu1  ;;  %v5468_v29 = vld [vmem:[%s10793_s0 + $0x1a8] sm:$0xf0] }
 0x19b   :  { %v8385_v41 = vadd.f32 %v2109_v24, %v2021_v25  ;;  %v8401_v44 = vor.u32 %v6714_v1, %v5468_v29  ;;  %v6832_v29 = vld [vmem:[%s10792_s1 + $0x244] sm:$0xf] }
 0x19c   :  { %v1934_v36 = vadd.f32 %v1933_v9, %v1845_v45 }
 0x19d   :  { %11135 = vst [vmem:[#allocation86_spill] sm:$0xff] %v8401_v44 }
 0x1a0   :  { %v2022_v61 = vpop.f32.mrf.mxu2 }
 0x1a1   :  { %v2023_v35 = vadd.f32 %v2022_v61, %v1934_v36  ;;  %v2111_v25 = vpop.f32.mrf.mxu3  ;;  %v2123_v24 = vpop.f32.mrf.mxu0  ;;  %v7016_v36 = vld [vmem:[%s10794_s2] sm:$0xf]  ;;  %v5932_v61 = vld [vmem:[%s10792_s1 + $0x250] sm:$0xf0] }
 0x1a2   :  { %v2124_v45 = vadd.f32 %v2123_v24, %v7709_v30  ;;  %v2212_v9 = vpop.f32.mrf.mxu1  ;;  %v8412_v47 = vperm.slane %v7016_v36, 1  ;;  %v6896_v30 = vld [vmem:[%s10792_s1 + $0x444] sm:$0xf]  ;;  %v5935_v24 = vor.u32 %v6832_v29, %v5932_v61  ;;  %v6060_v61 = vld [vmem:[%s10792_s1 + $0x350] sm:$0xf0] }
 0x1a3   :  { %v8404_v21 = vadd.f32 %v2111_v25, %v2023_v35  ;;  %v6191_v1 = vor.u32 %v6896_v30, %v6188_v0  ;;  %v6928_v35 = vld [vmem:[%s10792_s1 + $0x544] sm:$0xf] }
 0x1a4   :  { %v2213_v20 = vadd.f32 %v2212_v9, %v2124_v45  ;;  %2162 = vmatmul.bf16.gmra.mxu0 %v8399_v55  ;;  %2251 = vmatmul.bf16.gmra.mxu1 %v8401_v44  ;;  %v6316_v45 = vld [vmem:[%s10792_s1 + $0x550] sm:$0xf0]  ;;  %v6864_v29 = vld [vmem:[%s10792_s1 + $0x344] sm:$0xf] }
 0x1a5   :  { %11136 = vst [vmem:[#allocation87_spill] sm:$0xff] %v8404_v21  ;;  %2340 = vmatmul.bf16.gmra.mxu2 %v7677_v42  ;;  %v6319_v0 = vor.u32 %v6928_v35, %v6316_v45  ;;  %2475 = vmatpush.bf16.msra.mxu0 %v5935_v24  ;;  %v6063_v55 = vor.u32 %v6864_v29, %v6060_v61  ;;  %v6720_v45 = vld [vmem:[%s10793_s0 + $0x1c4] sm:$0xf] }
 0x1a6   :  { %2429 = vmatmul.bf16.gmra.mxu3 %v7679_v56  ;;  %2653 = vmatpush.bf16.msra.mxu2 %v6191_v1  ;;  %v5490_v1 = vld [vmem:[%s10793_s0 + $0x1c0] sm:$0xf]  ;;  %v3894_v35 = vmax.f32 %v2213_v20, 0.0 }
 0x1a7   :  { %2742 = vmatpush.bf16.msra.mxu3 %v6319_v0  ;;  %2564 = vmatpush.bf16.msra.mxu1 %v6063_v55 }
 0x1a8   :  { %v2301_v25 = vpop.f32.mrf.mxu2 }
 0x1a9   :  { %v2302_v9 = vadd.f32 %v2301_v25, %v8412_v47  ;;  %v2390_v36 = vpop.f32.mrf.mxu3  ;;  %v2125_v30 = vpop.f32.mrf.mxu0 }
 0x1aa   :  { %v2126_v56 = vadd.f32 %v2125_v30, %v7750_v17  ;;  %v2214_v42 = vpop.f32.mrf.mxu1  ;;  %v6723_v17 = vld [vmem:[%s10793_s0 + $0x1d4] sm:$0xf0] }
 0x1ab   :  { %v8435_v44 = vadd.f32 %v2390_v36, %v2302_v9  ;;  %v5492_v9 = vld [vmem:[%s10793_s0 + $0x1d8] sm:$0xf0]  ;;  %v8457_v36 = vor.u32 %v6723_v17, %v5490_v1 }
 0x1ac   :  { %v2215_v25 = vadd.f32 %v2214_v42, %v2126_v56  ;;  %v8460_v20 = vor.u32 %v6720_v45, %v5492_v9 }
 0x1ad   :  { %11137 = vst [vmem:[#allocation88_spill] sm:$0xff] %v8435_v44 }
 0x1ae   :  { %v3898_v24 = vmax.f32 %v2215_v25, 0.0  ;;  %11139 = vst [vmem:[#allocation90_spill] sm:$0xff] %v8457_v36 }
 0x1af   :  { %11140 = vst [vmem:[#allocation91_spill] sm:$0xff] %v8460_v20 }
 0x1b0   :  { %v8455_v42 = vpack.c.bf16 %v3898_v24, %v3894_v35  ;;  %v2303_v56 = vpop.f32.mrf.mxu2 }
 0x1b1   :  { %v2304_v30 = vadd.f32 %v2303_v56, %v8412_v47  ;;  %v2392_v0 = vpop.f32.mrf.mxu3  ;;  %v2128_v29 = vpop.f32.mrf.mxu0  ;;  %v5514_v56 = vld [vmem:[%s10793_s0 + $0x1f0] sm:$0xf] }
 0x1b2   :  { %11138 = vst [vmem:[#allocation89_spill] sm:$0xff] %v8455_v42  ;;  %v2129_v61 = vadd.f32 %v2128_v29, %v7757_v39  ;;  %v2217_v25 = vpop.f32.mrf.mxu1 }
 0x1b3   :  { %v8463_v44 = vadd.f32 %v2392_v0, %v2304_v30  ;;  %v6729_v30 = vld [vmem:[%s10793_s0 + $0x204] sm:$0xf0] }
 0x1b4   :  { %v2218_v21 = vadd.f32 %v2217_v25, %v2129_v61  ;;  %2167 = vmatmul.bf16.gmra.mxu0 %v8457_v36  ;;  %2256 = vmatmul.bf16.gmra.mxu1 %v8460_v20  ;;  %v6726_v61 = vld [vmem:[%s10793_s0 + $0x1f4] sm:$0xf] }
 0x1b5   :  { %2345 = vmatmul.bf16.gmra.mxu2 %v7741_v4 }
 0x1b6   :  { %2434 = vmatmul.bf16.gmra.mxu3 %v7743_v8  ;;  %v3902_v0 = vmax.f32 %v2218_v21, 0.0 }
 0x1b8   :  { %v2306_v55 = vpop.f32.mrf.mxu2 }
 0x1b9   :  { %v2307_v1 = vadd.f32 %v2306_v55, %v8412_v47  ;;  %v2395_v17 = vpop.f32.mrf.mxu3  ;;  %v2130_v35 = vpop.f32.mrf.mxu0  ;;  %v8485_v55 = vor.u32 %v6729_v30, %v5514_v56  ;;  %v6892_v56 = vld [vmem:[%s10792_s1 + $0x424] sm:$0xf] }
 0x1ba   :  { %v2131_v24 = vadd.f32 %v2130_v35, %v7792_v38  ;;  %v2219_v39 = vpop.f32.mrf.mxu1  ;;  %v5516_v38 = vld [vmem:[%s10793_s0 + $0x208] sm:$0xf0] }
 0x1bb   :  { %v8471_v45 = vadd.f32 %v2395_v17, %v2307_v1 }
 0x1bc   :  { %v2220_v9 = vadd.f32 %v2219_v39, %v2131_v24  ;;  %v8490_v39 = vor.u32 %v6726_v61, %v5516_v38  ;;  %v6924_v61 = vld [vmem:[%s10792_s1 + $0x524] sm:$0xf] }
 0x1be   :  { %v3906_v29 = vmax.f32 %v2220_v9, 0.0 }
 0x1c0   :  { %v2308_v25 = vpop.f32.mrf.mxu2  ;;  %v8487_v1 = vpack.c.bf16 %v3906_v29, %v3902_v0  ;;  %v6828_v0 = vld [vmem:[%s10792_s1 + $0x224] sm:$0xf]  ;;  %v5916_v29 = vld [vmem:[%s10792_s1 + $0x230] sm:$0xf0] }
 0x1c1   :  { %v2309_v17 = vadd.f32 %v2308_v25, %v8412_v47  ;;  %v2397_v35 = vpop.f32.mrf.mxu3  ;;  %v2133_v24 = vpop.f32.mrf.mxu0  ;;  %v5919_v25 = vor.u32 %v6828_v0, %v5916_v29  ;;  %v6860_v0 = vld [vmem:[%s10792_s1 + $0x324] sm:$0xf]  ;;  %v6044_v29 = vld [vmem:[%s10792_s1 + $0x330] sm:$0xf0] }
 0x1c2   :  { %11141 = vst [vmem:[#allocation92_spill] sm:$0xff] %v8487_v1  ;;  %v2134_v21 = vadd.f32 %v2133_v24, %v7817_v40  ;;  %v2222_v9 = vpop.f32.mrf.mxu1  ;;  %v6172_v40 = vld [vmem:[%s10792_s1 + $0x430] sm:$0xf0] }
 0x1c3   :  { %v8493_v42 = vadd.f32 %v2397_v35, %v2309_v17  ;;  %v6175_v30 = vor.u32 %v6892_v56, %v6172_v40  ;;  %v6300_v17 = vld [vmem:[%s10792_s1 + $0x530] sm:$0xf0]  ;;  %2476 = vmatpush.bf16.msra.mxu0 %v5919_v25 }
 0x1c4   :  { %v2223_v8 = vadd.f32 %v2222_v9, %v2134_v21  ;;  %2172 = vmatmul.bf16.gmra.mxu0 %v8485_v55  ;;  %2261 = vmatmul.bf16.gmra.mxu1 %v8490_v39  ;;  %v6303_v9 = vor.u32 %v6924_v61, %v6300_v17  ;;  %v6732_v17 = vld [vmem:[%s10793_s0 + $0x224] sm:$0xf] }
 0x1c5   :  { %2350 = vmatmul.bf16.gmra.mxu2 %v7783_v7 }
 0x1c6   :  { %2439 = vmatmul.bf16.gmra.mxu3 %v7785_v19  ;;  %2654 = vmatpush.bf16.msra.mxu2 %v6175_v30  ;;  %v6047_v19 = vor.u32 %v6860_v0, %v6044_v29  ;;  %v5538_v30 = vld [vmem:[%s10793_s0 + $0x220] sm:$0xf]  ;;  %v3910_v61 = vmax.f32 %v2223_v8, 0.0 }
 0x1c7   :  { %2743 = vmatpush.bf16.msra.mxu3 %v6303_v9 }
 0x1c8   :  { %v2311_v38 = vpop.f32.mrf.mxu2  ;;  %2565 = vmatpush.bf16.msra.mxu1 %v6047_v19 }
 0x1c9   :  { %v2312_v35 = vadd.f32 %v2311_v38, %v8412_v47  ;;  %v2400_v24 = vpop.f32.mrf.mxu3  ;;  %v2135_v21 = vpop.f32.mrf.mxu0 }
 0x1ca   :  { %v2136_v56 = vadd.f32 %v2135_v21, %v7858_v57  ;;  %v2224_v40 = vpop.f32.mrf.mxu1  ;;  %v6735_v57 = vld [vmem:[%s10793_s0 + $0x234] sm:$0xf0] }
 0x1cb   :  { %v8519_v1 = vadd.f32 %v2400_v24, %v2312_v35  ;;  %v5540_v35 = vld [vmem:[%s10793_s0 + $0x238] sm:$0xf0]  ;;  %v8539_v21 = vor.u32 %v6735_v57, %v5538_v30 }
 0x1cc   :  { %v2225_v38 = vadd.f32 %v2224_v40, %v2136_v56  ;;  %v8544_v8 = vor.u32 %v6732_v17, %v5540_v35 }
 0x1ce   :  { %v3914_v25 = vmax.f32 %v2225_v38, 0.0 }
 0x1d0   :  { %v2313_v24 = vpop.f32.mrf.mxu2  ;;  %v8541_v9 = vpack.c.bf16 %v3914_v25, %v3910_v61 }
 0x1d1   :  { %v2314_v56 = vadd.f32 %v2313_v24, %v8412_v47  ;;  %v2402_v40 = vpop.f32.mrf.mxu3  ;;  %v2138_v0 = vpop.f32.mrf.mxu0  ;;  %v5562_v24 = vld [vmem:[%s10793_s0 + $0x250] sm:$0xf] }
 0x1d2   :  { %11142 = vst [vmem:[#allocation93_spill] sm:$0xff] %v8541_v9  ;;  %v2139_v29 = vadd.f32 %v2138_v0, %v7865_v6  ;;  %v2227_v38 = vpop.f32.mrf.mxu1 }
 0x1d3   :  { %v8547_v7 = vadd.f32 %v2402_v40, %v2314_v56  ;;  %v6741_v56 = vld [vmem:[%s10793_s0 + $0x264] sm:$0xf0] }
 0x1d4   :  { %v2228_v4 = vadd.f32 %v2227_v38, %v2139_v29  ;;  %2177 = vmatmul.bf16.gmra.mxu0 %v8539_v21  ;;  %2266 = vmatmul.bf16.gmra.mxu1 %v8544_v8  ;;  %v6738_v29 = vld [vmem:[%s10793_s0 + $0x254] sm:$0xf] }
 0x1d5   :  { %2355 = vmatmul.bf16.gmra.mxu2 %v7849_v31 }
 0x1d6   :  { %2444 = vmatmul.bf16.gmra.mxu3 %v7851_v37  ;;  %v3918_v40 = vmax.f32 %v2228_v4, 0.0 }
 0x1d8   :  { %v2316_v19 = vpop.f32.mrf.mxu2 }
 0x1d9   :  { %v2317_v30 = vadd.f32 %v2316_v19, %v8412_v47  ;;  %v2405_v57 = vpop.f32.mrf.mxu3  ;;  %v2140_v61 = vpop.f32.mrf.mxu0  ;;  %v8569_v19 = vor.u32 %v6741_v56, %v5562_v24  ;;  %v6888_v24 = vld [vmem:[%s10792_s1 + $0x404] sm:$0xf] }
 0x1da   :  { %v2141_v25 = vadd.f32 %v2140_v61, %v7900_v46  ;;  %v2229_v6 = vpop.f32.mrf.mxu1  ;;  %v5564_v46 = vld [vmem:[%s10793_s0 + $0x268] sm:$0xf0] }
 0x1db   :  { %v8555_v17 = vadd.f32 %v2405_v57, %v2317_v30 }
 0x1dc   :  { %v2230_v35 = vadd.f32 %v2229_v6, %v2141_v25  ;;  %v8574_v6 = vor.u32 %v6738_v29, %v5564_v46  ;;  %v6920_v29 = vld [vmem:[%s10792_s1 + $0x504] sm:$0xf] }
 0x1de   :  { %v3922_v0 = vmax.f32 %v2230_v35, 0.0 }
 0x1e0   :  { %v2318_v38 = vpop.f32.mrf.mxu2  ;;  %v8571_v30 = vpack.c.bf16 %v3922_v0, %v3918_v40  ;;  %v6824_v40 = vld [vmem:[%s10792_s1 + $0x204] sm:$0xf]  ;;  %v5900_v0 = vld [vmem:[%s10792_s1 + $0x210] sm:$0xf0] }
 0x1e1   :  { %v2319_v57 = vadd.f32 %v2318_v38, %v8412_v47  ;;  %v2407_v61 = vpop.f32.mrf.mxu3  ;;  %v2143_v25 = vpop.f32.mrf.mxu0  ;;  %v5903_v38 = vor.u32 %v6824_v40, %v5900_v0  ;;  %v6856_v40 = vld [vmem:[%s10792_s1 + $0x304] sm:$0xf]  ;;  %v6028_v0 = vld [vmem:[%s10792_s1 + $0x310] sm:$0xf0] }
 0x1e2   :  { %11143 = vst [vmem:[#allocation94_spill] sm:$0xff] %v8571_v30  ;;  %v2144_v4 = vadd.f32 %v2143_v25, %v7925_v10  ;;  %v2232_v35 = vpop.f32.mrf.mxu1  ;;  %v6156_v10 = vld [vmem:[%s10792_s1 + $0x410] sm:$0xf0] }
 0x1e3   :  { %v8577_v9 = vadd.f32 %v2407_v61, %v2319_v57  ;;  %v6159_v56 = vor.u32 %v6888_v24, %v6156_v10  ;;  %v6284_v57 = vld [vmem:[%s10792_s1 + $0x510] sm:$0xf0]  ;;  %2477 = vmatpush.bf16.msra.mxu0 %v5903_v38 }
 0x1e4   :  { %v2233_v37 = vadd.f32 %v2232_v35, %v2144_v4  ;;  %2182 = vmatmul.bf16.gmra.mxu0 %v8569_v19  ;;  %2271 = vmatmul.bf16.gmra.mxu1 %v8574_v6  ;;  %v6287_v35 = vor.u32 %v6920_v29, %v6284_v57  ;;  %v6744_v57 = vld [vmem:[%s10793_s0 + $0x284] sm:$0xf] }
 0x1e5   :  { %2360 = vmatmul.bf16.gmra.mxu2 %v7891_v58 }
 0x1e6   :  { %2449 = vmatmul.bf16.gmra.mxu3 %v7893_v5  ;;  %2655 = vmatpush.bf16.msra.mxu2 %v6159_v56  ;;  %v6031_v5 = vor.u32 %v6856_v40, %v6028_v0  ;;  %v5586_v56 = vld [vmem:[%s10793_s0 + $0x280] sm:$0xf]  ;;  %v3926_v29 = vmax.f32 %v2233_v37, 0.0 }
 0x1e7   :  { %2744 = vmatpush.bf16.msra.mxu3 %v6287_v35 }
 0x1e8   :  { %v2321_v46 = vpop.f32.mrf.mxu2  ;;  %2566 = vmatpush.bf16.msra.mxu1 %v6031_v5 }
 0x1e9   :  { %v2322_v61 = vadd.f32 %v2321_v46, %v8412_v47  ;;  %v2410_v25 = vpop.f32.mrf.mxu3  ;;  %v2145_v4 = vpop.f32.mrf.mxu0 }
 0x1ea   :  { %v2146_v24 = vadd.f32 %v2145_v4, %v7966_v2  ;;  %v2234_v10 = vpop.f32.mrf.mxu1  ;;  %v6747_v2 = vld [vmem:[%s10793_s0 + $0x294] sm:$0xf0] }
 0x1eb   :  { %v8603_v30 = vadd.f32 %v2410_v25, %v2322_v61  ;;  %v5588_v61 = vld [vmem:[%s10793_s0 + $0x298] sm:$0xf0]  ;;  %v8623_v4 = vor.u32 %v6747_v2, %v5586_v56 }
 0x1ec   :  { %v2235_v46 = vadd.f32 %v2234_v10, %v2146_v24  ;;  %v8628_v37 = vor.u32 %v6744_v57, %v5588_v61 }
 0x1ed   :  { %11144 = vst [vmem:[#allocation95_spill] sm:$0xff] %v8623_v4 }
 0x1ee   :  { %v3930_v38 = vmax.f32 %v2235_v46, 0.0  ;;  %11146 = vst [vmem:[#allocation97_spill] sm:$0xff] %v8628_v37 }
 0x1f0   :  { %v2323_v25 = vpop.f32.mrf.mxu2  ;;  %v8625_v35 = vpack.c.bf16 %v3930_v38, %v3926_v29 }
 0x1f1   :  { %v2324_v24 = vadd.f32 %v2323_v25, %v8412_v47  ;;  %v2412_v10 = vpop.f32.mrf.mxu3  ;;  %v2148_v40 = vpop.f32.mrf.mxu0  ;;  %v5610_v25 = vld [vmem:[%s10793_s0 + $0x2b0] sm:$0xf] }
 0x1f2   :  { %11145 = vst [vmem:[#allocation96_spill] sm:$0xff] %v8625_v35  ;;  %v2149_v0 = vadd.f32 %v2148_v40, %v7973_v43  ;;  %v2237_v46 = vpop.f32.mrf.mxu1 }
 0x1f3   :  { %v8631_v58 = vadd.f32 %v2412_v10, %v2324_v24  ;;  %v6753_v24 = vld [vmem:[%s10793_s0 + $0x2c4] sm:$0xf0] }
 0x1f4   :  { %v2238_v31 = vadd.f32 %v2237_v46, %v2149_v0  ;;  %2187 = vmatmul.bf16.gmra.mxu0 %v8623_v4  ;;  %2276 = vmatmul.bf16.gmra.mxu1 %v8628_v37  ;;  %v6750_v0 = vld [vmem:[%s10793_s0 + $0x2b4] sm:$0xf] }
 0x1f5   :  { %2365 = vmatmul.bf16.gmra.mxu2 %v7957_v62 }
 0x1f6   :  { %2454 = vmatmul.bf16.gmra.mxu3 %v7959_v48  ;;  %v3934_v10 = vmax.f32 %v2238_v31, 0.0 }
 0x1f8   :  { %v2326_v5 = vpop.f32.mrf.mxu2 }
 0x1f9   :  { %v2327_v56 = vadd.f32 %v2326_v5, %v8412_v47  ;;  %v2415_v2 = vpop.f32.mrf.mxu3  ;;  %v2150_v29 = vpop.f32.mrf.mxu0  ;;  %v8653_v5 = vor.u32 %v6753_v24, %v5610_v25  ;;  %v11150_v25 = vld [vmem:[#allocation59_spill] sm:$0xff] }
 0x1fa   :  { %v2151_v38 = vadd.f32 %v2150_v29, %v8008_v26  ;;  %v2239_v43 = vpop.f32.mrf.mxu1  ;;  %v5612_v26 = vld [vmem:[%s10793_s0 + $0x2c8] sm:$0xf0]  ;;  %v6018_v24 = vld [vmem:[%s10792_s1 + $0x2e8] sm:$0xf] }
 0x1fb   :  { %v8639_v57 = vadd.f32 %v2415_v2, %v2327_v56  ;;  %11147 = vst [vmem:[#allocation98_spill] sm:$0xff] %v8653_v5 }
 0x1fc   :  { %v2240_v61 = vadd.f32 %v2239_v43, %v2151_v38  ;;  %v8658_v43 = vor.u32 %v6750_v0, %v5612_v26  ;;  %v6791_v0 = vld [vmem:[%s10792_s1 + $0xf4] sm:$0xf0]  ;;  %v6146_v26 = vld [vmem:[%s10792_s1 + $0x3e8] sm:$0xf] }
 0x1fe   :  { %v3938_v40 = vmax.f32 %v2240_v61, 0.0  ;;  %11149 = vst [vmem:[#allocation100_spill] sm:$0xff] %v8658_v43 }
 0x200   :  { %v2328_v46 = vpop.f32.mrf.mxu2  ;;  %v8655_v56 = vpack.c.bf16 %v3938_v40, %v3934_v10  ;;  %v5762_v40 = vld [vmem:[%s10792_s1 + $0xe8] sm:$0xf] }
 0x201   :  { %v2329_v2 = vadd.f32 %v2328_v46, %v8412_v47  ;;  %v2417_v29 = vpop.f32.mrf.mxu3  ;;  %v2153_v38 = vpop.f32.mrf.mxu0 }
 0x202   :  { %11148 = vst [vmem:[#allocation99_spill] sm:$0xff] %v8655_v56  ;;  %v2154_v31 = vadd.f32 %v2153_v38, %v8033_v16  ;;  %v2242_v61 = vpop.f32.mrf.mxu1  ;;  %v6855_v16 = vld [vmem:[%s10792_s1 + $0x2f4] sm:$0xf0] }
 0x203   :  { %v8661_v35 = vadd.f32 %v2417_v29, %v2329_v2  ;;  %v6019_v10 = vor.u32 %v6855_v16, %v6018_v24  ;;  %v5763_v2 = vor.u32 %v6791_v0, %v5762_v40  ;;  %v6887_v29 = vld [vmem:[%s10792_s1 + $0x3f4] sm:$0xf0]  ;;  %v5890_v40 = vld [vmem:[%s10792_s1 + $0x1e8] sm:$0xf] }
 0x204   :  { %v2243_v48 = vadd.f32 %v2242_v61, %v2154_v31  ;;  %2192 = vmatmul.bf16.gmra.mxu0 %v8653_v5  ;;  %2281 = vmatmul.bf16.gmra.mxu1 %v8658_v43  ;;  %v6147_v24 = vor.u32 %v6887_v29, %v6146_v26  ;;  %v6823_v0 = vld [vmem:[%s10792_s1 + $0x1f4] sm:$0xf0]  ;;  %v6756_v29 = vld [vmem:[%s10793_s0 + $0x2e4] sm:$0xf] }
 0x205   :  { %2370 = vmatmul.bf16.gmra.mxu2 %v7999_v28  ;;  %2826 = vmatpush.bf16.msrb.mxu0 %v5763_v2  ;;  %v5891_v28 = vor.u32 %v6823_v0, %v5890_v40 }
 0x206   :  { %2459 = vmatmul.bf16.gmra.mxu3 %v11150_v25  ;;  %3004 = vmatpush.bf16.msrb.mxu2 %v6019_v10  ;;  %v5634_v10 = vld [vmem:[%s10793_s0 + $0x2e0] sm:$0xf]  ;;  %v3942_v26 = vmax.f32 %v2243_v48, 0.0 }
 0x207   :  { %3093 = vmatpush.bf16.msrb.mxu3 %v6147_v24  ;;  %2915 = vmatpush.bf16.msrb.mxu1 %v5891_v28 }
 0x208   :  { %v2331_v46 = vpop.f32.mrf.mxu2 }
 0x209   :  { %v2332_v38 = vadd.f32 %v2331_v46, %v8412_v47  ;;  %v2420_v31 = vpop.f32.mrf.mxu3  ;;  %v2155_v61 = vpop.f32.mrf.mxu0 }
 0x20a   :  { %v2156_v16 = vadd.f32 %v2155_v61, %v8074_v52  ;;  %v2244_v56 = vpop.f32.mrf.mxu1  ;;  %v6759_v52 = vld [vmem:[%s10793_s0 + $0x2f4] sm:$0xf0] }
 0x20b   :  { %v8687_v25 = vadd.f32 %v2420_v31, %v2332_v38  ;;  %v5636_v38 = vld [vmem:[%s10793_s0 + $0x2f8] sm:$0xf0]  ;;  %v8707_v31 = vor.u32 %v6759_v52, %v5634_v10 }
 0x20c   :  { %v2245_v46 = vadd.f32 %v2244_v56, %v2156_v16  ;;  %v8712_v48 = vor.u32 %v6756_v29, %v5636_v38 }
 0x20d   :  { %11151 = vst [vmem:[#allocation101_spill] sm:$0xff] %v8707_v31 }
 0x20e   :  { %v3946_v2 = vmax.f32 %v2245_v46, 0.0  ;;  %11153 = vst [vmem:[#allocation103_spill] sm:$0xff] %v8712_v48 }
 0x210   :  { %v2333_v56 = vpop.f32.mrf.mxu2  ;;  %v8709_v61 = vpack.c.bf16 %v3946_v2, %v3942_v26 }
 0x211   :  { %v2334_v24 = vadd.f32 %v2333_v56, %v8412_v47  ;;  %v2422_v16 = vpop.f32.mrf.mxu3  ;;  %v2158_v40 = vpop.f32.mrf.mxu0 }
 0x212   :  { %11152 = vst [vmem:[#allocation102_spill] sm:$0xff] %v8709_v61  ;;  %v2159_v0 = vadd.f32 %v2158_v40, %v8081_v22  ;;  %v2247_v46 = vpop.f32.mrf.mxu1 }
 0x213   :  { %v8715_v62 = vadd.f32 %v2422_v16, %v2334_v24 }
 0x214   :  { %v2248_v43 = vadd.f32 %v2247_v46, %v2159_v0  ;;  %2197 = vmatmul.bf16.gmra.mxu0 %v8707_v31  ;;  %2286 = vmatmul.bf16.gmra.mxu1 %v8712_v48 }
 0x215   :  { %2375 = vmatmul.bf16.gmra.mxu2 %v8065_v18 }
 0x216   :  { %2464 = vmatmul.bf16.gmra.mxu3 %v8067_v27  ;;  %v3950_v56 = vmax.f32 %v2248_v43, 0.0  ;;  %v11157_v43 = vld [vmem:[#allocation67_spill] sm:$0xff] }
 0x218   :  { %v2336_v28 = vpop.f32.mrf.mxu2 }
 0x219   :  { %v2337_v10 = vadd.f32 %v2336_v28, %v8412_v47  ;;  %v2425_v52 = vpop.f32.mrf.mxu3  ;;  %v2160_v26 = vpop.f32.mrf.mxu0 }
 0x21a   :  { %v2161_v2 = vadd.f32 %v2160_v26, %v8100_v63  ;;  %v2249_v22 = vpop.f32.mrf.mxu1  ;;  %v11155_v63 = vld [vmem:[#allocation4_spill] sm:$0xff]  ;;  %v6787_v26 = vld [vmem:[%s10792_s1 + $0xd4] sm:$0xf0] }
 0x21b   :  { %v8723_v29 = vadd.f32 %v2425_v52, %v2337_v10  ;;  %v11156_v10 = vld [vmem:[#allocation5_spill] sm:$0xff]  ;;  %v6002_v52 = vld [vmem:[%s10792_s1 + $0x2c8] sm:$0xf] }
 0x21c   :  { %v2250_v38 = vadd.f32 %v2249_v22, %v2161_v2  ;;  %v6130_v2 = vld [vmem:[%s10792_s1 + $0x3c8] sm:$0xf] }
 0x21e   :  { %v3954_v24 = vmax.f32 %v2250_v38, 0.0 }
 0x220   :  { %v2338_v16 = vpop.f32.mrf.mxu2  ;;  %v8725_v40 = vpack.c.bf16 %v3954_v24, %v3950_v56  ;;  %v6883_v56 = vld [vmem:[%s10792_s1 + $0x3d4] sm:$0xf0] }
 0x221   :  { %v2339_v0 = vadd.f32 %v2338_v16, %v8412_v47  ;;  %v2427_v46 = vpop.f32.mrf.mxu3  ;;  %v2163_v61 = vpop.f32.mrf.mxu0 }
 0x222   :  { %11154 = vst [vmem:[#allocation104_spill] sm:$0xff] %v8725_v40  ;;  %v2164_v27 = vadd.f32 %v2163_v61, %v8125_v53  ;;  %v2252_v28 = vpop.f32.mrf.mxu1  ;;  %v6851_v53 = vld [vmem:[%s10792_s1 + $0x2d4] sm:$0xf0] }
 0x223   :  { %v8729_v18 = vadd.f32 %v2427_v46, %v2339_v0  ;;  %v6003_v61 = vor.u32 %v6851_v53, %v6002_v52  ;;  %v6131_v46 = vor.u32 %v6883_v56, %v6130_v2 }
 0x224   :  { %v2253_v48 = vadd.f32 %v2252_v28, %v2164_v27  ;;  %2478 = vmatmul.bf16.vlgmr.msra.gmra.mxu0 %v11155_v63  ;;  %2567 = vmatmul.bf16.vlgmr.msra.gmra.mxu1 %v11156_v10  ;;  %v5746_v27 = vld [vmem:[%s10792_s1 + $0xc8] sm:$0xf]  ;;  %v11159_v10 = vld [vmem:[#allocation8_spill] sm:$0xff] }
 0x225   :  { %2656 = vmatmul.bf16.vlgmr.msra.gmra.mxu2 %v8095_v34  ;;  %v5747_v38 = vor.u32 %v6787_v26, %v5746_v27  ;;  %3094 = vmatpush.bf16.msrb.mxu3 %v6131_v46  ;;  %v5874_v27 = vld [vmem:[%s10792_s1 + $0x1c8] sm:$0xf]  ;;  %v6819_v26 = vld [vmem:[%s10792_s1 + $0x1d4] sm:$0xf0] }
 0x226   :  { %2745 = vmatmul.bf16.vlgmr.msra.gmra.mxu3 %v11157_v43  ;;  %3005 = vmatpush.bf16.msrb.mxu2 %v6003_v61  ;;  %v5875_v40 = vor.u32 %v6819_v26, %v5874_v27  ;;  %v3958_v43 = vmax.f32 %v2253_v48, 0.0  ;;  %v11161_v48 = vld [vmem:[#allocation69_spill] sm:$0xff] }
 0x227   :  { %2827 = vmatpush.bf16.msrb.mxu0 %v5747_v38 }
 0x228   :  { %v2341_v22 = vpop.f32.mrf.mxu2  ;;  %2916 = vmatpush.bf16.msrb.mxu1 %v5875_v40 }
 0x229   :  { %v2342_v24 = vadd.f32 %v2341_v22, %v8412_v47  ;;  %v2430_v16 = vpop.f32.mrf.mxu3  ;;  %v2165_v0 = vpop.f32.mrf.mxu0 }
 0x22a   :  { %v2166_v28 = vadd.f32 %v2165_v0, %v8150_v11  ;;  %v2254_v52 = vpop.f32.mrf.mxu1 }
 0x22b   :  { %v8755_v53 = vadd.f32 %v2430_v16, %v2342_v24 }
 0x22c   :  { %v2255_v22 = vadd.f32 %v2254_v52, %v2166_v28  ;;  %v11160_v28 = vld [vmem:[#allocation9_spill] sm:$0xff] }
 0x22e   :  { %v3962_v61 = vmax.f32 %v2255_v22, 0.0 }
 0x230   :  { %v2343_v2 = vpop.f32.mrf.mxu2  ;;  %v8763_v11 = vpack.c.bf16 %v3962_v61, %v3958_v43 }
 0x231   :  { %v2344_v38 = vadd.f32 %v2343_v2, %v8412_v47  ;;  %v2432_v56 = vpop.f32.mrf.mxu3  ;;  %v2168_v24 = vpop.f32.mrf.mxu0 }
 0x232   :  { %11158 = vst [vmem:[#allocation105_spill] sm:$0xff] %v8763_v11  ;;  %v2169_v16 = vadd.f32 %v2168_v24, %v8157_v54  ;;  %v2257_v0 = vpop.f32.mrf.mxu1 }
 0x233   :  { %v8767_v46 = vadd.f32 %v2432_v56, %v2344_v38 }
 0x234   :  { %v2258_v34 = vadd.f32 %v2257_v0, %v2169_v16  ;;  %2483 = vmatmul.bf16.gmra.mxu0 %v11159_v10  ;;  %2572 = vmatmul.bf16.gmra.mxu1 %v11160_v28 }
 0x235   :  { %2661 = vmatmul.bf16.gmra.mxu2 %v8145_v15 }
 0x236   :  { %2750 = vmatmul.bf16.gmra.mxu3 %v11161_v48  ;;  %v3966_v2 = vmax.f32 %v2258_v34, 0.0  ;;  %v11163_v48 = vld [vmem:[#allocation72_spill] sm:$0xff]  ;;  %v11167_v34 = vld [vmem:[#allocation71_spill] sm:$0xff] }
 0x238   :  { %v2346_v40 = vpop.f32.mrf.mxu2 }
 0x239   :  { %v2347_v43 = vadd.f32 %v2346_v40, %v8412_v47  ;;  %v2435_v52 = vpop.f32.mrf.mxu3  ;;  %v2170_v27 = vpop.f32.mrf.mxu0 }
 0x23a   :  { %v2171_v26 = vadd.f32 %v2170_v27, %v8176_v12  ;;  %v2259_v54 = vpop.f32.mrf.mxu1  ;;  %v11164_v12 = vld [vmem:[#allocation12_spill] sm:$0xff]  ;;  %v5986_v27 = vld [vmem:[%s10792_s1 + $0x2a8] sm:$0xf] }
 0x23b   :  { %v8775_v22 = vadd.f32 %v2435_v52, %v2347_v43  ;;  %v11165_v43 = vld [vmem:[#allocation13_spill] sm:$0xff]  ;;  %v11166_v52 = vld [vmem:[#allocation70_spill] sm:$0xff] }
 0x23c   :  { %v2260_v61 = vadd.f32 %v2259_v54, %v2171_v26  ;;  %v6783_v26 = vld [vmem:[%s10792_s1 + $0xb4] sm:$0xf0]  ;;  %v6114_v54 = vld [vmem:[%s10792_s1 + $0x3a8] sm:$0xf] }
 0x23e   :  { %v3970_v38 = vmax.f32 %v2260_v61, 0.0 }
 0x240   :  { %v2348_v56 = vpop.f32.mrf.mxu2  ;;  %v8777_v24 = vpack.c.bf16 %v3970_v38, %v3966_v2  ;;  %v6879_v38 = vld [vmem:[%s10792_s1 + $0x3b4] sm:$0xf0] }
 0x241   :  { %v2349_v16 = vadd.f32 %v2348_v56, %v8412_v47  ;;  %v2437_v0 = vpop.f32.mrf.mxu3  ;;  %v2173_v11 = vpop.f32.mrf.mxu0 }
 0x242   :  { %11162 = vst [vmem:[#allocation106_spill] sm:$0xff] %v8777_v24  ;;  %v2174_v15 = vadd.f32 %v2173_v11, %v11163_v48  ;;  %v2262_v40 = vpop.f32.mrf.mxu1  ;;  %v6847_v11 = vld [vmem:[%s10792_s1 + $0x2b4] sm:$0xf0] }
 0x243   :  { %v8781_v28 = vadd.f32 %v2437_v0, %v2349_v16  ;;  %v5987_v48 = vor.u32 %v6847_v11, %v5986_v27 }
 0x244   :  { %v2263_v10 = vadd.f32 %v2262_v40, %v2174_v15  ;;  %2488 = vmatmul.bf16.gmra.mxu0 %v11164_v12  ;;  %2577 = vmatmul.bf16.gmra.mxu1 %v11165_v43  ;;  %v5730_v15 = vld [vmem:[%s10792_s1 + $0xa8] sm:$0xf]  ;;  %v6115_v40 = vor.u32 %v6879_v38, %v6114_v54  ;;  %v11169_v12 = vld [vmem:[#allocation16_spill] sm:$0xff] }
 0x245   :  { %2666 = vmatmul.bf16.gmra.mxu2 %v11166_v52  ;;  %v5731_v2 = vor.u32 %v6783_v26, %v5730_v15  ;;  %v5858_v15 = vld [vmem:[%s10792_s1 + $0x1a8] sm:$0xf]  ;;  %v6815_v26 = vld [vmem:[%s10792_s1 + $0x1b4] sm:$0xf0] }
 0x246   :  { %2755 = vmatmul.bf16.gmra.mxu3 %v11167_v34  ;;  %3006 = vmatpush.bf16.msrb.mxu2 %v5987_v48  ;;  %v5859_v34 = vor.u32 %v6815_v26, %v5858_v15  ;;  %v3974_v52 = vmax.f32 %v2263_v10, 0.0  ;;  %v11171_v10 = vld [vmem:[#allocation74_spill] sm:$0xff] }
 0x247   :  { %2828 = vmatpush.bf16.msrb.mxu0 %v5731_v2  ;;  %3095 = vmatpush.bf16.msrb.mxu3 %v6115_v40 }
 0x248   :  { %v2351_v61 = vpop.f32.mrf.mxu2  ;;  %2917 = vmatpush.bf16.msrb.mxu1 %v5859_v34 }
 0x249   :  { %v2352_v56 = vadd.f32 %v2351_v61, %v8412_v47  ;;  %v2440_v16 = vpop.f32.mrf.mxu3  ;;  %v2175_v0 = vpop.f32.mrf.mxu0 }
 0x24a   :  { %v2176_v27 = vadd.f32 %v2175_v0, %v8226_v13  ;;  %v2264_v11 = vpop.f32.mrf.mxu1 }
 0x24b   :  { %v8807_v24 = vadd.f32 %v2440_v16, %v2352_v56 }
 0x24c   :  { %v2265_v61 = vadd.f32 %v2264_v11, %v2176_v27  ;;  %v11170_v27 = vld [vmem:[#allocation17_spill] sm:$0xff] }
 0x24e   :  { %v3978_v48 = vmax.f32 %v2265_v61, 0.0 }
 0x250   :  { %v2353_v54 = vpop.f32.mrf.mxu2  ;;  %v8815_v13 = vpack.c.bf16 %v3978_v48, %v3974_v52 }
 0x251   :  { %v2354_v2 = vadd.f32 %v2353_v54, %v8412_v47  ;;  %v2442_v38 = vpop.f32.mrf.mxu3  ;;  %v2178_v56 = vpop.f32.mrf.mxu0 }
 0x252   :  { %11168 = vst [vmem:[#allocation72_spill] sm:$0xff] %v8815_v13  ;;  %v2179_v16 = vadd.f32 %v2178_v56, %v8233_v14  ;;  %v2267_v0 = vpop.f32.mrf.mxu1 }
 0x253   :  { %v8819_v40 = vadd.f32 %v2442_v38, %v2354_v2 }
 0x254   :  { %v2268_v43 = vadd.f32 %v2267_v0, %v2179_v16  ;;  %2493 = vmatmul.bf16.gmra.mxu0 %v11169_v12  ;;  %2582 = vmatmul.bf16.gmra.mxu1 %v11170_v27 }
 0x255   :  { %2671 = vmatmul.bf16.gmra.mxu2 %v8221_v23 }
 0x256   :  { %2760 = vmatmul.bf16.gmra.mxu3 %v11171_v10  ;;  %v3982_v54 = vmax.f32 %v2268_v43, 0.0  ;;  %v11173_v10 = vld [vmem:[#allocation77_spill] sm:$0xff]  ;;  %v11177_v43 = vld [vmem:[#allocation76_spill] sm:$0xff] }
 0x258   :  { %v2356_v52 = vpop.f32.mrf.mxu2 }
 0x259   :  { %v2357_v34 = vadd.f32 %v2356_v52, %v8412_v47  ;;  %v2445_v11 = vpop.f32.mrf.mxu3  ;;  %v2180_v15 = vpop.f32.mrf.mxu0 }
 0x25a   :  { %v2181_v26 = vadd.f32 %v2180_v15, %v8252_v49  ;;  %v2269_v14 = vpop.f32.mrf.mxu1  ;;  %v11174_v49 = vld [vmem:[#allocation20_spill] sm:$0xff]  ;;  %v5970_v15 = vld [vmem:[%s10792_s1 + $0x288] sm:$0xf] }
 0x25b   :  { %v8827_v61 = vadd.f32 %v2445_v11, %v2357_v34  ;;  %v11175_v34 = vld [vmem:[#allocation21_spill] sm:$0xff]  ;;  %v11176_v11 = vld [vmem:[#allocation75_spill] sm:$0xff] }
 0x25c   :  { %v2270_v48 = vadd.f32 %v2269_v14, %v2181_v26  ;;  %v6779_v26 = vld [vmem:[%s10792_s1 + $0x94] sm:$0xf0]  ;;  %v6098_v14 = vld [vmem:[%s10792_s1 + $0x388] sm:$0xf] }
 0x25e   :  { %v3986_v2 = vmax.f32 %v2270_v48, 0.0 }
 0x260   :  { %v2358_v38 = vpop.f32.mrf.mxu2  ;;  %v8829_v56 = vpack.c.bf16 %v3986_v2, %v3982_v54  ;;  %v6875_v2 = vld [vmem:[%s10792_s1 + $0x394] sm:$0xf0] }
 0x261   :  { %v2359_v16 = vadd.f32 %v2358_v38, %v8412_v47  ;;  %v2447_v0 = vpop.f32.mrf.mxu3  ;;  %v2183_v13 = vpop.f32.mrf.mxu0 }
 0x262   :  { %11172 = vst [vmem:[#allocation107_spill] sm:$0xff] %v8829_v56  ;;  %v2184_v23 = vadd.f32 %v2183_v13, %v11173_v10  ;;  %v2272_v52 = vpop.f32.mrf.mxu1  ;;  %v6843_v13 = vld [vmem:[%s10792_s1 + $0x294] sm:$0xf0] }
 0x263   :  { %v8833_v27 = vadd.f32 %v2447_v0, %v2359_v16  ;;  %v5971_v10 = vor.u32 %v6843_v13, %v5970_v15 }
 0x264   :  { %v2273_v12 = vadd.f32 %v2272_v52, %v2184_v23  ;;  %2498 = vmatmul.bf16.gmra.mxu0 %v11174_v49  ;;  %2587 = vmatmul.bf16.gmra.mxu1 %v11175_v34  ;;  %v5714_v23 = vld [vmem:[%s10792_s1 + $0x88] sm:$0xf]  ;;  %v6099_v52 = vor.u32 %v6875_v2, %v6098_v14  ;;  %v11179_v49 = vld [vmem:[#allocation24_spill] sm:$0xff] }
 0x265   :  { %2676 = vmatmul.bf16.gmra.mxu2 %v11176_v11  ;;  %v5715_v54 = vor.u32 %v6779_v26, %v5714_v23  ;;  %v5842_v23 = vld [vmem:[%s10792_s1 + $0x188] sm:$0xf]  ;;  %v6811_v26 = vld [vmem:[%s10792_s1 + $0x194] sm:$0xf0] }
 0x266   :  { %2765 = vmatmul.bf16.gmra.mxu3 %v11177_v43  ;;  %3007 = vmatpush.bf16.msrb.mxu2 %v5971_v10  ;;  %v5843_v43 = vor.u32 %v6811_v26, %v5842_v23  ;;  %v3990_v11 = vmax.f32 %v2273_v12, 0.0  ;;  %v11181_v12 = vld [vmem:[#allocation79_spill] sm:$0xff] }
 0x267   :  { %2829 = vmatpush.bf16.msrb.mxu0 %v5715_v54  ;;  %3096 = vmatpush.bf16.msrb.mxu3 %v6099_v52 }
 0x268   :  { %v2361_v48 = vpop.f32.mrf.mxu2  ;;  %2918 = vmatpush.bf16.msrb.mxu1 %v5843_v43 }
 0x269   :  { %v2362_v38 = vadd.f32 %v2361_v48, %v8412_v47  ;;  %v2450_v16 = vpop.f32.mrf.mxu3  ;;  %v2185_v0 = vpop.f32.mrf.mxu0 }
 0x26a   :  { %v2186_v15 = vadd.f32 %v2185_v0, %v8302_v50  ;;  %v2274_v13 = vpop.f32.mrf.mxu1 }
 0x26b   :  { %v8859_v56 = vadd.f32 %v2450_v16, %v2362_v38 }
 0x26c   :  { %v2275_v48 = vadd.f32 %v2274_v13, %v2186_v15  ;;  %v11180_v15 = vld [vmem:[#allocation25_spill] sm:$0xff] }
 0x26e   :  { %v3994_v10 = vmax.f32 %v2275_v48, 0.0 }
 0x270   :  { %v2363_v14 = vpop.f32.mrf.mxu2  ;;  %v8867_v50 = vpack.c.bf16 %v3994_v10, %v3990_v11 }
 0x271   :  { %v2364_v54 = vadd.f32 %v2363_v14, %v8412_v47  ;;  %v2452_v2 = vpop.f32.mrf.mxu3  ;;  %v2188_v38 = vpop.f32.mrf.mxu0 }
 0x272   :  { %11178 = vst [vmem:[#allocation77_spill] sm:$0xff] %v8867_v50  ;;  %v2189_v16 = vadd.f32 %v2188_v38, %v8309_v59  ;;  %v2277_v0 = vpop.f32.mrf.mxu1 }
 0x273   :  { %v8871_v52 = vadd.f32 %v2452_v2, %v2364_v54 }
 0x274   :  { %v2278_v34 = vadd.f32 %v2277_v0, %v2189_v16  ;;  %2503 = vmatmul.bf16.gmra.mxu0 %v11179_v49  ;;  %2592 = vmatmul.bf16.gmra.mxu1 %v11180_v15 }
 0x275   :  { %2681 = vmatmul.bf16.gmra.mxu2 %v8297_v60 }
 0x276   :  { %2770 = vmatmul.bf16.gmra.mxu3 %v11181_v12  ;;  %v3998_v14 = vmax.f32 %v2278_v34, 0.0  ;;  %v11183_v12 = vld [vmem:[#allocation82_spill] sm:$0xff]  ;;  %v11187_v34 = vld [vmem:[#allocation81_spill] sm:$0xff] }
 0x278   :  { %v2366_v11 = vpop.f32.mrf.mxu2 }
 0x279   :  { %v2367_v43 = vadd.f32 %v2366_v11, %v8412_v47  ;;  %v2455_v13 = vpop.f32.mrf.mxu3  ;;  %v2190_v23 = vpop.f32.mrf.mxu0 }
 0x27a   :  { %v2191_v26 = vadd.f32 %v2190_v23, %v8328_v32  ;;  %v2279_v59 = vpop.f32.mrf.mxu1  ;;  %v11184_v32 = vld [vmem:[#allocation28_spill] sm:$0xff]  ;;  %v5954_v23 = vld [vmem:[%s10792_s1 + $0x268] sm:$0xf] }
 0x27b   :  { %v8879_v48 = vadd.f32 %v2455_v13, %v2367_v43  ;;  %v11185_v43 = vld [vmem:[#allocation29_spill] sm:$0xff]  ;;  %v11186_v13 = vld [vmem:[#allocation80_spill] sm:$0xff] }
 0x27c   :  { %v2280_v10 = vadd.f32 %v2279_v59, %v2191_v26  ;;  %v6775_v26 = vld [vmem:[%s10792_s1 + $0x74] sm:$0xf0]  ;;  %v6082_v59 = vld [vmem:[%s10792_s1 + $0x368] sm:$0xf] }
 0x27e   :  { %v4002_v54 = vmax.f32 %v2280_v10, 0.0 }
 0x280   :  { %v2368_v2 = vpop.f32.mrf.mxu2  ;;  %v8881_v38 = vpack.c.bf16 %v4002_v54, %v3998_v14  ;;  %v6871_v54 = vld [vmem:[%s10792_s1 + $0x374] sm:$0xf0] }
 0x281   :  { %v2369_v16 = vadd.f32 %v2368_v2, %v8412_v47  ;;  %v2457_v0 = vpop.f32.mrf.mxu3  ;;  %v2193_v50 = vpop.f32.mrf.mxu0 }
 0x282   :  { %11182 = vst [vmem:[#allocation108_spill] sm:$0xff] %v8881_v38  ;;  %v2194_v60 = vadd.f32 %v2193_v50, %v11183_v12  ;;  %v2282_v11 = vpop.f32.mrf.mxu1  ;;  %v6839_v50 = vld [vmem:[%s10792_s1 + $0x274] sm:$0xf0] }
 0x283   :  { %v8885_v15 = vadd.f32 %v2457_v0, %v2369_v16  ;;  %v5955_v12 = vor.u32 %v6839_v50, %v5954_v23 }
 0x284   :  { %v2283_v49 = vadd.f32 %v2282_v11, %v2194_v60  ;;  %2508 = vmatmul.bf16.gmra.mxu0 %v11184_v32  ;;  %2597 = vmatmul.bf16.gmra.mxu1 %v11185_v43  ;;  %v5698_v60 = vld [vmem:[%s10792_s1 + $0x68] sm:$0xf]  ;;  %v6083_v11 = vor.u32 %v6871_v54, %v6082_v59  ;;  %v11191_v43 = vld [vmem:[#allocation33_spill] sm:$0xff] }
 0x285   :  { %2686 = vmatmul.bf16.gmra.mxu2 %v11186_v13  ;;  %v5699_v14 = vor.u32 %v6775_v26, %v5698_v60  ;;  %v5826_v60 = vld [vmem:[%s10792_s1 + $0x168] sm:$0xf]  ;;  %v6807_v26 = vld [vmem:[%s10792_s1 + $0x174] sm:$0xf0] }
 0x286   :  { %2775 = vmatmul.bf16.gmra.mxu3 %v11187_v34  ;;  %3008 = vmatpush.bf16.msrb.mxu2 %v5955_v12  ;;  %v5827_v12 = vor.u32 %v6807_v26, %v5826_v60  ;;  %v11192_v26 = vld [vmem:[#allocation87_spill] sm:$0xff] }
 0x287   :  { %2830 = vmatpush.bf16.msrb.mxu0 %v5699_v14  ;;  %3097 = vmatpush.bf16.msrb.mxu3 %v6083_v11 }
 0x288   :  { %v2371_v10 = vpop.f32.mrf.mxu2  ;;  %2919 = vmatpush.bf16.msrb.mxu1 %v5827_v12 }
 0x289   :  { %v2372_v2 = vadd.f32 %v2371_v10, %v8412_v47  ;;  %v2460_v16 = vpop.f32.mrf.mxu3  ;;  %v2195_v0 = vpop.f32.mrf.mxu0  ;;  %v4006_v10 = vmax.f32 %v2283_v49, 0.0 }
 0x28a   :  { %v2196_v23 = vadd.f32 %v2195_v0, %v8378_v33  ;;  %v2284_v50 = vpop.f32.mrf.mxu1 }
 0x28b   :  { %v8911_v38 = vadd.f32 %v2460_v16, %v2372_v2 }
 0x28c   :  { %v2285_v34 = vadd.f32 %v2284_v50, %v2196_v23  ;;  %v11190_v50 = vld [vmem:[#allocation32_spill] sm:$0xff] }
 0x28e   :  { %v4010_v13 = vmax.f32 %v2285_v34, 0.0 }
 0x290   :  { %v2373_v59 = vpop.f32.mrf.mxu2  ;;  %v8919_v33 = vpack.c.bf16 %v4010_v13, %v4006_v10 }
 0x291   :  { %v2374_v14 = vadd.f32 %v2373_v59, %v8412_v47  ;;  %v2462_v54 = vpop.f32.mrf.mxu3  ;;  %v2198_v2 = vpop.f32.mrf.mxu0 }
 0x292   :  { %11188 = vst [vmem:[#allocation82_spill] sm:$0xff] %v8919_v33  ;;  %v2199_v16 = vadd.f32 %v2198_v2, %v8385_v41  ;;  %v2287_v0 = vpop.f32.mrf.mxu1 }
 0x293   :  { %v8923_v11 = vadd.f32 %v2462_v54, %v2374_v14 }
 0x294   :  { %v2288_v23 = vadd.f32 %v2287_v0, %v2199_v16  ;;  %2513 = vmatmul.bf16.gmra.mxu0 %v11190_v50  ;;  %2602 = vmatmul.bf16.gmra.mxu1 %v11191_v43 }
 0x295   :  { %11189 = vst [vmem:[#allocation109_spill] sm:$0xff] %v8923_v11  ;;  %2691 = vmatmul.bf16.gmra.mxu2 %v8373_v51  ;;  %v11194_v51 = vld [vmem:[#allocation88_spill] sm:$0xff] }
 0x296   :  { %2780 = vmatmul.bf16.gmra.mxu3 %v8375_v3  ;;  %v4014_v14 = vmax.f32 %v2288_v23, 0.0  ;;  %v11198_v23 = vld [vmem:[#allocation86_spill] sm:$0xff] }
 0x298   :  { %v2376_v49 = vpop.f32.mrf.mxu2 }
 0x299   :  { %v2377_v13 = vadd.f32 %v2376_v49, %v8412_v47  ;;  %v2465_v34 = vpop.f32.mrf.mxu3  ;;  %v2200_v60 = vpop.f32.mrf.mxu0 }
 0x29a   :  { %v2201_v10 = vadd.f32 %v2200_v60, %v11192_v26  ;;  %v2289_v41 = vpop.f32.mrf.mxu1  ;;  %v11195_v60 = vld [vmem:[#allocation36_spill] sm:$0xff]  ;;  %v6066_v26 = vld [vmem:[%s10792_s1 + $0x348] sm:$0xf] }
 0x29b   :  { %v8931_v12 = vadd.f32 %v2465_v34, %v2377_v13  ;;  %v11196_v13 = vld [vmem:[#allocation37_spill] sm:$0xff] }
 0x29c   :  { %v2290_v59 = vadd.f32 %v2289_v41, %v2201_v10  ;;  %v11197_v34 = vld [vmem:[#allocation85_spill] sm:$0xff] }
 0x29d   :  { %v6867_v10 = vld [vmem:[%s10792_s1 + $0x354] sm:$0xf0] }
 0x29e   :  { %v4018_v54 = vmax.f32 %v2290_v59, 0.0 }
 0x2a0   :  { %v2378_v2 = vpop.f32.mrf.mxu2  ;;  %v8933_v16 = vpack.c.bf16 %v4018_v54, %v4014_v14  ;;  %v6067_v14 = vor.u32 %v6867_v10, %v6066_v26 }
 0x2a1   :  { %v2379_v0 = vadd.f32 %v2378_v2, %v8412_v47  ;;  %v2467_v33 = vpop.f32.mrf.mxu3  ;;  %v2479_v3 = vpop.f32.mrf.mxu0  ;;  %v5938_v47 = vld [vmem:[%s10792_s1 + $0x248] sm:$0xf] }
 0x2a2   :  { %11193 = vst [vmem:[#allocation87_spill] sm:$0xff] %v8933_v16  ;;  %v2480_v43 = vadd.f32 %v2479_v3, %v11194_v51  ;;  %v2568_v49 = vpop.f32.mrf.mxu1  ;;  %v6835_v51 = vld [vmem:[%s10792_s1 + $0x254] sm:$0xf0]  ;;  %v5682_v3 = vld [vmem:[%s10792_s1 + $0x48] sm:$0xf]  ;;  %3098 = vmatpush.bf16.msrb.mxu3 %v6067_v14 }
 0x2a3   :  { %v8937_v50 = vadd.f32 %v2467_v33, %v2379_v0  ;;  %v6771_v33 = vld [vmem:[%s10792_s1 + $0x54] sm:$0xf0] }
 0x2a4   :  { %v2569_v11 = vadd.f32 %v2568_v49, %v2480_v43  ;;  %2518 = vmatmul.bf16.gmra.mxu0 %v11195_v60  ;;  %2607 = vmatmul.bf16.gmra.mxu1 %v11196_v13  ;;  %v5939_v43 = vor.u32 %v6835_v51, %v5938_v47  ;;  %v5683_v59 = vor.u32 %v6771_v33, %v5682_v3  ;;  %v6803_v3 = vld [vmem:[%s10792_s1 + $0x154] sm:$0xf0] }
 0x2a5   :  { %2696 = vmatmul.bf16.gmra.mxu2 %v11197_v34 }
 0x2a6   :  { %2785 = vmatmul.bf16.gmra.mxu3 %v11198_v23  ;;  %3009 = vmatpush.bf16.msrb.mxu2 %v5939_v43  ;;  %v5810_v23 = vld [vmem:[%s10792_s1 + $0x148] sm:$0xf] }
 0x2a7   :  { %2831 = vmatpush.bf16.msrb.mxu0 %v5683_v59  ;;  %v5811_v33 = vor.u32 %v6803_v3, %v5810_v23 }
 0x2a8   :  { %v2657_v41 = vpop.f32.mrf.mxu2 }
 0x2a9   :  { %v2658_v54 = vadd.f32 %v2657_v41, %v2569_v11  ;;  %v2746_v2 = vpop.f32.mrf.mxu3  ;;  %v2481_v0 = vpop.f32.mrf.mxu0  ;;  %2920 = vmatpush.bf16.msrb.mxu1 %v5811_v33 }
 0x2aa   :  { %v2482_v49 = vadd.f32 %v2481_v0, %v8463_v44  ;;  %v2570_v47 = vpop.f32.mrf.mxu1 }
 0x2ab   :  { %v2747_v51 = vadd.f32 %v2746_v2, %v2658_v54  ;;  %v11199_v54 = vld [vmem:[#allocation40_spill] sm:$0xff] }
 0x2ac   :  { %v2571_v16 = vadd.f32 %v2570_v47, %v2482_v49  ;;  %v11200_v49 = vld [vmem:[#allocation41_spill] sm:$0xff] }
 0x2ad   :  { %v3895_v2 = vmax.f32 %v2747_v51, 0.0 }
 0x2b0   :  { %v2659_v11 = vpop.f32.mrf.mxu2 }
 0x2b1   :  { %v2660_v26 = vadd.f32 %v2659_v11, %v2571_v16  ;;  %v2748_v43 = vpop.f32.mrf.mxu3  ;;  %v2484_v10 = vpop.f32.mrf.mxu0 }
 0x2b2   :  { %v2485_v44 = vadd.f32 %v2484_v10, %v8471_v45  ;;  %v2573_v41 = vpop.f32.mrf.mxu1 }
 0x2b3   :  { %v2749_v59 = vadd.f32 %v2748_v43, %v2660_v26 }
 0x2b4   :  { %v2574_v14 = vadd.f32 %v2573_v41, %v2485_v44  ;;  %2523 = vmatmul.bf16.gmra.mxu0 %v11199_v54  ;;  %2612 = vmatmul.bf16.gmra.mxu1 %v11200_v49 }
 0x2b5   :  { %v3899_v0 = vmax.f32 %v2749_v59, 0.0  ;;  %2701 = vmatmul.bf16.gmra.mxu2 %v8457_v36 }
 0x2b6   :  { %2790 = vmatmul.bf16.gmra.mxu3 %v8460_v20 }
 0x2b7   :  { %v8973_v23 = vpack.c.bf16 %v3899_v0, %v3895_v2  ;;  %v11202_v2 = vld [vmem:[#allocation44_spill] sm:$0xff] }
 0x2b8   :  { %v2662_v16 = vpop.f32.mrf.mxu2 }
 0x2b9   :  { %11201 = vst [vmem:[#allocation88_spill] sm:$0xff] %v8973_v23  ;;  %v2663_v47 = vadd.f32 %v2662_v16, %v2574_v14  ;;  %v2751_v3 = vpop.f32.mrf.mxu3  ;;  %v2486_v33 = vpop.f32.mrf.mxu0  ;;  %v11203_v16 = vld [vmem:[#allocation45_spill] sm:$0xff]  ;;  %v5794_v23 = vld [vmem:[%s10792_s1 + $0x128] sm:$0xf] }
 0x2ba   :  { %v2487_v45 = vadd.f32 %v2486_v33, %v8493_v42  ;;  %v2575_v11 = vpop.f32.mrf.mxu1  ;;  %v5922_v42 = vld [vmem:[%s10792_s1 + $0x228] sm:$0xf]  ;;  %v6863_v33 = vld [vmem:[%s10792_s1 + $0x334] sm:$0xf0] }
 0x2bb   :  { %v2752_v26 = vadd.f32 %v2751_v3, %v2663_v47  ;;  %v6050_v3 = vld [vmem:[%s10792_s1 + $0x328] sm:$0xf] }
 0x2bc   :  { %v2576_v43 = vadd.f32 %v2575_v11, %v2487_v45 }
 0x2bd   :  { %v3903_v0 = vmax.f32 %v2752_v26, 0.0 }
 0x2c0   :  { %v2664_v10 = vpop.f32.mrf.mxu2 }
 0x2c1   :  { %v2665_v51 = vadd.f32 %v2664_v10, %v2576_v43  ;;  %v2753_v44 = vpop.f32.mrf.mxu3  ;;  %v2489_v41 = vpop.f32.mrf.mxu0  ;;  %v6051_v43 = vor.u32 %v6863_v33, %v6050_v3 }
 0x2c2   :  { %v2490_v59 = vadd.f32 %v2489_v41, %v8519_v1  ;;  %v2578_v36 = vpop.f32.mrf.mxu1  ;;  %v6831_v1 = vld [vmem:[%s10792_s1 + $0x234] sm:$0xf0] }
 0x2c3   :  { %v2754_v34 = vadd.f32 %v2753_v44, %v2665_v51  ;;  %v5923_v47 = vor.u32 %v6831_v1, %v5922_v42  ;;  %3099 = vmatpush.bf16.msrb.mxu3 %v6051_v43 }
 0x2c4   :  { %v2579_v20 = vadd.f32 %v2578_v36, %v2490_v59  ;;  %2528 = vmatmul.bf16.gmra.mxu0 %v11202_v2  ;;  %2617 = vmatmul.bf16.gmra.mxu1 %v11203_v16  ;;  %v5666_v36 = vld [vmem:[%s10792_s1 + $0x28] sm:$0xf] }
 0x2c5   :  { %v3907_v14 = vmax.f32 %v2754_v34, 0.0  ;;  %2706 = vmatmul.bf16.gmra.mxu2 %v8485_v55  ;;  %v6767_v34 = vld [vmem:[%s10792_s1 + $0x34] sm:$0xf0] }
 0x2c6   :  { %2795 = vmatmul.bf16.gmra.mxu3 %v8490_v39  ;;  %v5667_v26 = vor.u32 %v6767_v34, %v5666_v36  ;;  %3010 = vmatpush.bf16.msrb.mxu2 %v5923_v47 }
 0x2c7   :  { %v8999_v45 = vpack.c.bf16 %v3907_v14, %v3903_v0  ;;  %v6799_v0 = vld [vmem:[%s10792_s1 + $0x134] sm:$0xf0] }
 0x2c8   :  { %v2667_v11 = vpop.f32.mrf.mxu2  ;;  %2832 = vmatpush.bf16.msrb.mxu0 %v5667_v26  ;;  %v5795_v14 = vor.u32 %v6799_v0, %v5794_v23  ;;  %v11205_v26 = vld [vmem:[#allocation48_spill] sm:$0xff] }
 0x2c9   :  { %11204 = vst [vmem:[#allocation110_spill] sm:$0xff] %v8999_v45  ;;  %v2668_v10 = vadd.f32 %v2667_v11, %v2579_v20  ;;  %v2756_v51 = vpop.f32.mrf.mxu3  ;;  %v2491_v44 = vpop.f32.mrf.mxu0 }
 0x2ca   :  { %v2492_v41 = vadd.f32 %v2491_v44, %v8547_v7  ;;  %v2580_v59 = vpop.f32.mrf.mxu1  ;;  %2921 = vmatpush.bf16.msrb.mxu1 %v5795_v14 }
 0x2cb   :  { %v2757_v42 = vadd.f32 %v2756_v51, %v2668_v10  ;;  %v11206_v51 = vld [vmem:[#allocation49_spill] sm:$0xff] }
 0x2cc   :  { %v2581_v1 = vadd.f32 %v2580_v59, %v2492_v41 }
 0x2cd   :  { %v3911_v43 = vmax.f32 %v2757_v42, 0.0 }
 0x2d0   :  { %v2669_v20 = vpop.f32.mrf.mxu2 }
 0x2d1   :  { %v2670_v36 = vadd.f32 %v2669_v20, %v2581_v1  ;;  %v2758_v47 = vpop.f32.mrf.mxu3  ;;  %v2494_v34 = vpop.f32.mrf.mxu0 }
 0x2d2   :  { %v2495_v7 = vadd.f32 %v2494_v34, %v8555_v17  ;;  %v2583_v3 = vpop.f32.mrf.mxu1 }
 0x2d3   :  { %v2759_v33 = vadd.f32 %v2758_v47, %v2670_v36 }
 0x2d4   :  { %v2584_v11 = vadd.f32 %v2583_v3, %v2495_v7  ;;  %2533 = vmatmul.bf16.gmra.mxu0 %v11205_v26  ;;  %2622 = vmatmul.bf16.gmra.mxu1 %v11206_v51 }
 0x2d5   :  { %v3915_v10 = vmax.f32 %v2759_v33, 0.0  ;;  %2711 = vmatmul.bf16.gmra.mxu2 %v8539_v21 }
 0x2d6   :  { %2800 = vmatmul.bf16.gmra.mxu3 %v8544_v8 }
 0x2d7   :  { %v9013_v23 = vpack.c.bf16 %v3915_v10, %v3911_v43  ;;  %v11208_v43 = vld [vmem:[#allocation52_spill] sm:$0xff] }
 0x2d8   :  { %v2672_v44 = vpop.f32.mrf.mxu2 }
 0x2d9   :  { %11207 = vst [vmem:[#allocation111_spill] sm:$0xff] %v9013_v23  ;;  %v2673_v41 = vadd.f32 %v2672_v44, %v2584_v11  ;;  %v2761_v59 = vpop.f32.mrf.mxu3  ;;  %v2496_v1 = vpop.f32.mrf.mxu0  ;;  %v11209_v44 = vld [vmem:[#allocation53_spill] sm:$0xff]  ;;  %v5778_v23 = vld [vmem:[%s10792_s1 + $0x108] sm:$0xf] }
 0x2da   :  { %v2497_v17 = vadd.f32 %v2496_v1, %v8577_v9  ;;  %v2585_v0 = vpop.f32.mrf.mxu1  ;;  %v5906_v9 = vld [vmem:[%s10792_s1 + $0x208] sm:$0xf]  ;;  %v6763_v1 = vld [vmem:[%s10792_s1 + $0x14] sm:$0xf0] }
 0x2db   :  { %v2762_v14 = vadd.f32 %v2761_v59, %v2673_v41  ;;  %v5650_v41 = vld [vmem:[%s10792_s1 + $0x8] sm:$0xf] }
 0x2dc   :  { %v2586_v20 = vadd.f32 %v2585_v0, %v2497_v17  ;;  %v6034_v17 = vld [vmem:[%s10792_s1 + $0x308] sm:$0xf]  ;;  %v6859_v0 = vld [vmem:[%s10792_s1 + $0x314] sm:$0xf0] }
 0x2dd   :  { %v3919_v10 = vmax.f32 %v2762_v14, 0.0 }
 0x2e0   :  { %v2674_v36 = vpop.f32.mrf.mxu2 }
 0x2e1   :  { %v2675_v42 = vadd.f32 %v2674_v36, %v2586_v20  ;;  %v2763_v47 = vpop.f32.mrf.mxu3  ;;  %v2499_v34 = vpop.f32.mrf.mxu0  ;;  %v5651_v36 = vor.u32 %v6763_v1, %v5650_v41 }
 0x2e2   :  { %v2500_v7 = vadd.f32 %v2499_v34, %v8603_v30  ;;  %v2588_v3 = vpop.f32.mrf.mxu1  ;;  %v6827_v30 = vld [vmem:[%s10792_s1 + $0x214] sm:$0xf0] }
 0x2e3   :  { %v2764_v33 = vadd.f32 %v2763_v47, %v2675_v42  ;;  %v5907_v59 = vor.u32 %v6827_v30, %v5906_v9  ;;  %v6035_v42 = vor.u32 %v6859_v0, %v6034_v17  ;;  %2833 = vmatpush.bf16.msrb.mxu0 %v5651_v36  ;;  %v11211_v36 = vld [vmem:[#allocation56_spill] sm:$0xff] }
 0x2e4   :  { %v2589_v45 = vadd.f32 %v2588_v3, %v2500_v7  ;;  %2538 = vmatmul.bf16.gmra.mxu0 %v11208_v43  ;;  %2627 = vmatmul.bf16.gmra.mxu1 %v11209_v44 }
 0x2e5   :  { %v3923_v11 = vmax.f32 %v2764_v33, 0.0  ;;  %2716 = vmatmul.bf16.gmra.mxu2 %v8569_v19  ;;  %3100 = vmatpush.bf16.msrb.mxu3 %v6035_v42 }
 0x2e6   :  { %2805 = vmatmul.bf16.gmra.mxu3 %v8574_v6  ;;  %3011 = vmatpush.bf16.msrb.mxu2 %v5907_v59 }
 0x2e7   :  { %v9039_v14 = vpack.c.bf16 %v3923_v11, %v3919_v10  ;;  %v6795_v10 = vld [vmem:[%s10792_s1 + $0x114] sm:$0xf0] }
 0x2e8   :  { %v2677_v20 = vpop.f32.mrf.mxu2  ;;  %v5779_v11 = vor.u32 %v6795_v10, %v5778_v23 }
 0x2e9   :  { %11210 = vst [vmem:[#allocation112_spill] sm:$0xff] %v9039_v14  ;;  %v2678_v47 = vadd.f32 %v2677_v20, %v2589_v45  ;;  %v2766_v34 = vpop.f32.mrf.mxu3  ;;  %v2501_v7 = vpop.f32.mrf.mxu0 }
 0x2ea   :  { %v2502_v3 = vadd.f32 %v2501_v7, %v8631_v58  ;;  %v2590_v33 = vpop.f32.mrf.mxu1  ;;  %2922 = vmatpush.bf16.msrb.mxu1 %v5779_v11 }
 0x2eb   :  { %v2767_v9 = vadd.f32 %v2766_v34, %v2678_v47  ;;  %v11212_v34 = vld [vmem:[#allocation57_spill] sm:$0xff] }
 0x2ec   :  { %v2591_v30 = vadd.f32 %v2590_v33, %v2502_v3 }
 0x2ed   :  { %v3927_v42 = vmax.f32 %v2767_v9, 0.0 }
 0x2f0   :  { %v2679_v45 = vpop.f32.mrf.mxu2 }
 0x2f1   :  { %v2680_v41 = vadd.f32 %v2679_v45, %v2591_v30  ;;  %v2768_v59 = vpop.f32.mrf.mxu3  ;;  %v2504_v1 = vpop.f32.mrf.mxu0 }
 0x2f2   :  { %v2505_v58 = vadd.f32 %v2504_v1, %v8639_v57  ;;  %v2593_v17 = vpop.f32.mrf.mxu1 }
 0x2f3   :  { %v2769_v0 = vadd.f32 %v2768_v59, %v2680_v41 }
 0x2f4   :  { %v2594_v20 = vadd.f32 %v2593_v17, %v2505_v58  ;;  %2543 = vmatmul.bf16.gmra.mxu0 %v11211_v36  ;;  %2632 = vmatmul.bf16.gmra.mxu1 %v11212_v34 }
 0x2f5   :  { %v3931_v47 = vmax.f32 %v2769_v0, 0.0  ;;  %2721 = vmatmul.bf16.gmra.mxu2 %v8623_v4  ;;  %v11270_v4 = vld [vmem:[#allocation50_spill] sm:$0xff] }
 0x2f6   :  { %2810 = vmatmul.bf16.gmra.mxu3 %v8628_v37 }
 0x2f7   :  { %v9053_v23 = vpack.c.bf16 %v3931_v47, %v3927_v42  ;;  %v11214_v42 = vld [vmem:[#allocation60_spill] sm:$0xff] }
 0x2f8   :  { %v2682_v7 = vpop.f32.mrf.mxu2 }
 0x2f9   :  { %11213 = vst [vmem:[#allocation113_spill] sm:$0xff] %v9053_v23  ;;  %v2683_v3 = vadd.f32 %v2682_v7, %v2594_v20  ;;  %v2771_v33 = vpop.f32.mrf.mxu3  ;;  %v2506_v30 = vpop.f32.mrf.mxu0  ;;  %v11215_v7 = vld [vmem:[#allocation61_spill] sm:$0xff] }
 0x2fa   :  { %v2507_v57 = vadd.f32 %v2506_v30, %v8661_v35  ;;  %v2595_v10 = vpop.f32.mrf.mxu1  ;;  %v11216_v35 = vld [vmem:[#allocation100_spill] sm:$0xff] }
 0x2fb   :  { %v2772_v11 = vadd.f32 %v2771_v33, %v2683_v3  ;;  %v6789_v3 = vld [vmem:[%s10792_s1 + $0xec] sm:$0xf]  ;;  %v6274_v33 = vld [vmem:[%s10792_s1 + $0x4e8] sm:$0xf] }
 0x2fc   :  { %v2596_v45 = vadd.f32 %v2595_v10, %v2507_v57  ;;  %v6919_v57 = vld [vmem:[%s10792_s1 + $0x4f4] sm:$0xf0]  ;;  %v6821_v10 = vld [vmem:[%s10792_s1 + $0x1ec] sm:$0xf] }
 0x2fd   :  { %v3935_v47 = vmax.f32 %v2772_v11, 0.0  ;;  %v5892_v11 = vld [vmem:[%s10792_s1 + $0x1f8] sm:$0xf0] }
 0x300   :  { %v2684_v41 = vpop.f32.mrf.mxu2 }
 0x301   :  { %v2685_v9 = vadd.f32 %v2684_v41, %v2596_v45  ;;  %v2773_v59 = vpop.f32.mrf.mxu3  ;;  %v2509_v1 = vpop.f32.mrf.mxu0 }
 0x302   :  { %v2510_v58 = vadd.f32 %v2509_v1, %v8687_v25  ;;  %v2598_v17 = vpop.f32.mrf.mxu1  ;;  %v5764_v25 = vld [vmem:[%s10792_s1 + $0xf8] sm:$0xf0] }
 0x303   :  { %v2774_v0 = vadd.f32 %v2773_v59, %v2685_v9  ;;  %v5767_v30 = vor.u32 %v6789_v3, %v5764_v25  ;;  %v6275_v9 = vor.u32 %v6919_v57, %v6274_v33  ;;  %v5895_v59 = vor.u32 %v6821_v10, %v5892_v11 }
 0x304   :  { %v2599_v14 = vadd.f32 %v2598_v17, %v2510_v58  ;;  %2548 = vmatmul.bf16.gmra.mxu0 %v11214_v42  ;;  %2637 = vmatmul.bf16.gmra.mxu1 %v11215_v7 }
 0x305   :  { %v3939_v20 = vmax.f32 %v2774_v0, 0.0  ;;  %2726 = vmatmul.bf16.gmra.mxu2 %v8653_v5  ;;  %3182 = vmatpush.bf16.msra.mxu0 %v6275_v9  ;;  %v11218_v9 = vld [vmem:[#allocation64_spill] sm:$0xff] }
 0x306   :  { %2815 = vmatmul.bf16.gmra.mxu3 %v11216_v35  ;;  %3360 = vmatpush.bf16.msra.mxu2 %v5767_v30  ;;  %v6402_v35 = vld [vmem:[%s10792_s1 + $0x5e8] sm:$0xf] }
 0x307   :  { %v9079_v45 = vpack.c.bf16 %v3939_v20, %v3935_v47  ;;  %3449 = vmatpush.bf16.msra.mxu3 %v5895_v59  ;;  %v6951_v47 = vld [vmem:[%s10792_s1 + $0x5f4] sm:$0xf0] }
 0x308   :  { %v2687_v41 = vpop.f32.mrf.mxu2  ;;  %v6403_v20 = vor.u32 %v6951_v47, %v6402_v35 }
 0x309   :  { %11217 = vst [vmem:[#allocation114_spill] sm:$0xff] %v9079_v45  ;;  %v2688_v1 = vadd.f32 %v2687_v41, %v2599_v14  ;;  %v2776_v58 = vpop.f32.mrf.mxu3  ;;  %v2511_v17 = vpop.f32.mrf.mxu0 }
 0x30a   :  { %v2512_v0 = vadd.f32 %v2511_v17, %v8715_v62  ;;  %v2600_v3 = vpop.f32.mrf.mxu1  ;;  %3271 = vmatpush.bf16.msra.mxu1 %v6403_v20  ;;  %v11220_v17 = vld [vmem:[#allocation103_spill] sm:$0xff] }
 0x30b   :  { %v2777_v25 = vadd.f32 %v2776_v58, %v2688_v1  ;;  %v11219_v58 = vld [vmem:[#allocation65_spill] sm:$0xff] }
 0x30c   :  { %v2601_v23 = vadd.f32 %v2600_v3, %v2512_v0 }
 0x30d   :  { %v3943_v59 = vmax.f32 %v2777_v25, 0.0 }
 0x310   :  { %v2689_v14 = vpop.f32.mrf.mxu2 }
 0x311   :  { %v2690_v33 = vadd.f32 %v2689_v14, %v2601_v23  ;;  %v2778_v30 = vpop.f32.mrf.mxu3  ;;  %v2514_v57 = vpop.f32.mrf.mxu0 }
 0x312   :  { %v2515_v62 = vadd.f32 %v2514_v57, %v8723_v29  ;;  %v2603_v10 = vpop.f32.mrf.mxu1 }
 0x313   :  { %v2779_v11 = vadd.f32 %v2778_v30, %v2690_v33 }
 0x314   :  { %v2604_v41 = vadd.f32 %v2603_v10, %v2515_v62  ;;  %2553 = vmatmul.bf16.gmra.mxu0 %v11218_v9  ;;  %2642 = vmatmul.bf16.gmra.mxu1 %v11219_v58 }
 0x315   :  { %v3947_v1 = vmax.f32 %v2779_v11, 0.0  ;;  %2731 = vmatmul.bf16.gmra.mxu2 %v8707_v31  ;;  %v11269_v31 = vld [vmem:[#allocation47_spill] sm:$0xff] }
 0x316   :  { %2820 = vmatmul.bf16.gmra.mxu3 %v11220_v17 }
 0x317   :  { %v9093_v35 = vpack.c.bf16 %v3947_v1, %v3943_v59  ;;  %v11222_v59 = vld [vmem:[#allocation2_spill] sm:$0xff] }
 0x318   :  { %v2692_v23 = vpop.f32.mrf.mxu2 }
 0x319   :  { %11221 = vst [vmem:[#allocation115_spill] sm:$0xff] %v9093_v35  ;;  %v2693_v0 = vadd.f32 %v2692_v23, %v2604_v41  ;;  %v2781_v3 = vpop.f32.mrf.mxu3  ;;  %v2516_v47 = vpop.f32.mrf.mxu0  ;;  %v11223_v23 = vld [vmem:[#allocation3_spill] sm:$0xff] }
 0x31a   :  { %v2517_v29 = vadd.f32 %v2516_v47, %v8729_v18  ;;  %v2605_v20 = vpop.f32.mrf.mxu1  ;;  %v11224_v18 = vld [vmem:[#allocation5_spill] sm:$0xff] }
 0x31b   :  { %v2782_v14 = vadd.f32 %v2781_v3, %v2693_v0  ;;  %v6785_v0 = vld [vmem:[%s10792_s1 + $0xcc] sm:$0xf]  ;;  %v6258_v3 = vld [vmem:[%s10792_s1 + $0x4c8] sm:$0xf] }
 0x31c   :  { %v2606_v33 = vadd.f32 %v2605_v20, %v2517_v29  ;;  %v6817_v29 = vld [vmem:[%s10792_s1 + $0x1cc] sm:$0xf]  ;;  %v5876_v20 = vld [vmem:[%s10792_s1 + $0x1d8] sm:$0xf0] }
 0x31d   :  { %v3951_v1 = vmax.f32 %v2782_v14, 0.0 }
 0x320   :  { %v2694_v30 = vpop.f32.mrf.mxu2 }
 0x321   :  { %v2695_v25 = vadd.f32 %v2694_v30, %v2606_v33  ;;  %v2783_v57 = vpop.f32.mrf.mxu3  ;;  %v2519_v62 = vpop.f32.mrf.mxu0 }
 0x322   :  { %v2520_v10 = vadd.f32 %v2519_v62, %v8755_v53  ;;  %v2608_v11 = vpop.f32.mrf.mxu1  ;;  %v5748_v53 = vld [vmem:[%s10792_s1 + $0xd8] sm:$0xf0] }
 0x323   :  { %v2784_v45 = vadd.f32 %v2783_v57, %v2695_v25  ;;  %v5751_v47 = vor.u32 %v6785_v0, %v5748_v53  ;;  %v5879_v25 = vor.u32 %v6817_v29, %v5876_v20 }
 0x324   :  { %v2609_v17 = vadd.f32 %v2608_v11, %v2520_v10  ;;  %2834 = vmatmul.bf16.vlgmr.msrb.gmra.mxu0 %v11222_v59  ;;  %2923 = vmatmul.bf16.vlgmr.msrb.gmra.mxu1 %v11223_v23 }
 0x325   :  { %v3955_v41 = vmax.f32 %v2784_v45, 0.0  ;;  %3012 = vmatmul.bf16.vlgmr.msrb.gmra.mxu2 %v11155_v63  ;;  %v6915_v45 = vld [vmem:[%s10792_s1 + $0x4d4] sm:$0xf0]  ;;  %3450 = vmatpush.bf16.msra.mxu3 %v5879_v25  ;;  %v11266_v63 = vld [vmem:[#allocation42_spill] sm:$0xff] }
 0x326   :  { %3101 = vmatmul.bf16.vlgmr.msrb.gmra.mxu3 %v11224_v18  ;;  %v6259_v30 = vor.u32 %v6915_v45, %v6258_v3  ;;  %3361 = vmatpush.bf16.msra.mxu2 %v5751_v47  ;;  %v6386_v18 = vld [vmem:[%s10792_s1 + $0x5c8] sm:$0xf] }
 0x327   :  { %v9119_v14 = vpack.c.bf16 %v3955_v41, %v3951_v1  ;;  %v6947_v1 = vld [vmem:[%s10792_s1 + $0x5d4] sm:$0xf0] }
 0x328   :  { %v2697_v33 = vpop.f32.mrf.mxu2  ;;  %3183 = vmatpush.bf16.msra.mxu0 %v6259_v30  ;;  %v6387_v41 = vor.u32 %v6947_v1, %v6386_v18  ;;  %v11226_v30 = vld [vmem:[#allocation6_spill] sm:$0xff] }
 0x329   :  { %11225 = vst [vmem:[#allocation2_spill] sm:$0xff] %v9119_v14  ;;  %v2698_v57 = vadd.f32 %v2697_v33, %v2609_v17  ;;  %v2786_v62 = vpop.f32.mrf.mxu3  ;;  %v2521_v10 = vpop.f32.mrf.mxu0 }
 0x32a   :  { %v2522_v11 = vadd.f32 %v2521_v10, %v8767_v46  ;;  %v2610_v0 = vpop.f32.mrf.mxu1  ;;  %3272 = vmatpush.bf16.msra.mxu1 %v6387_v41  ;;  %v11228_v10 = vld [vmem:[#allocation8_spill] sm:$0xff] }
 0x32b   :  { %v2787_v53 = vadd.f32 %v2786_v62, %v2698_v57  ;;  %v11227_v62 = vld [vmem:[#allocation7_spill] sm:$0xff] }
 0x32c   :  { %v2611_v35 = vadd.f32 %v2610_v0, %v2522_v11  ;;  %v11229_v11 = vld [vmem:[#allocation9_spill] sm:$0xff] }
 0x32d   :  { %v3959_v25 = vmax.f32 %v2787_v53, 0.0 }
 0x330   :  { %v2699_v17 = vpop.f32.mrf.mxu2 }
 0x331   :  { %v2700_v3 = vadd.f32 %v2699_v17, %v2611_v35  ;;  %v2788_v47 = vpop.f32.mrf.mxu3  ;;  %v2524_v45 = vpop.f32.mrf.mxu0 }
 0x332   :  { %v2525_v46 = vadd.f32 %v2524_v45, %v8775_v22  ;;  %v2613_v29 = vpop.f32.mrf.mxu1 }
 0x333   :  { %v2789_v20 = vadd.f32 %v2788_v47, %v2700_v3 }
 0x334   :  { %v2614_v33 = vadd.f32 %v2613_v29, %v2525_v46  ;;  %2839 = vmatmul.bf16.gmra.mxu0 %v11226_v30  ;;  %2928 = vmatmul.bf16.gmra.mxu1 %v11227_v62 }
 0x335   :  { %v3963_v57 = vmax.f32 %v2789_v20, 0.0  ;;  %3017 = vmatmul.bf16.gmra.mxu2 %v11228_v10 }
 0x336   :  { %3106 = vmatmul.bf16.gmra.mxu3 %v11229_v11 }
 0x337   :  { %v9133_v18 = vpack.c.bf16 %v3963_v57, %v3959_v25  ;;  %v11231_v25 = vld [vmem:[#allocation10_spill] sm:$0xff] }
 0x338   :  { %v2702_v35 = vpop.f32.mrf.mxu2 }
 0x339   :  { %11230 = vst [vmem:[#allocation3_spill] sm:$0xff] %v9133_v18  ;;  %v2703_v0 = vadd.f32 %v2702_v35, %v2614_v33  ;;  %v2791_v1 = vpop.f32.mrf.mxu3  ;;  %v2526_v41 = vpop.f32.mrf.mxu0  ;;  %v11232_v35 = vld [vmem:[#allocation11_spill] sm:$0xff]  ;;  %v11233_v18 = vld [vmem:[#allocation12_spill] sm:$0xff] }
 0x33a   :  { %v2527_v22 = vadd.f32 %v2526_v41, %v8781_v28  ;;  %v2615_v17 = vpop.f32.mrf.mxu1  ;;  %v11234_v28 = vld [vmem:[#allocation13_spill] sm:$0xff]  ;;  %v6813_v41 = vld [vmem:[%s10792_s1 + $0x1ac] sm:$0xf] }
 0x33b   :  { %v2792_v3 = vadd.f32 %v2791_v1, %v2703_v0  ;;  %v6781_v0 = vld [vmem:[%s10792_s1 + $0xac] sm:$0xf] }
 0x33c   :  { %v2616_v47 = vadd.f32 %v2615_v17, %v2527_v22  ;;  %v5860_v22 = vld [vmem:[%s10792_s1 + $0x1b8] sm:$0xf0] }
 0x33d   :  { %v3967_v57 = vmax.f32 %v2792_v3, 0.0 }
 0x340   :  { %v2704_v45 = vpop.f32.mrf.mxu2 }
 0x341   :  { %v2705_v53 = vadd.f32 %v2704_v45, %v2616_v47  ;;  %v2793_v46 = vpop.f32.mrf.mxu3  ;;  %v2529_v29 = vpop.f32.mrf.mxu0  ;;  %v5863_v45 = vor.u32 %v6813_v41, %v5860_v22 }
 0x342   :  { %v2530_v20 = vadd.f32 %v2529_v29, %v8807_v24  ;;  %v2618_v14 = vpop.f32.mrf.mxu1  ;;  %v5732_v24 = vld [vmem:[%s10792_s1 + $0xb8] sm:$0xf0] }
 0x343   :  { %v2794_v10 = vadd.f32 %v2793_v46, %v2705_v53  ;;  %v5735_v1 = vor.u32 %v6781_v0, %v5732_v24  ;;  %3451 = vmatpush.bf16.msra.mxu3 %v5863_v45 }
 0x344   :  { %v2619_v11 = vadd.f32 %v2618_v14, %v2530_v20  ;;  %2844 = vmatmul.bf16.gmra.mxu0 %v11231_v25  ;;  %2933 = vmatmul.bf16.gmra.mxu1 %v11232_v35  ;;  %v6242_v14 = vld [vmem:[%s10792_s1 + $0x4a8] sm:$0xf] }
 0x345   :  { %v3971_v33 = vmax.f32 %v2794_v10, 0.0  ;;  %3022 = vmatmul.bf16.gmra.mxu2 %v11233_v18  ;;  %v6911_v10 = vld [vmem:[%s10792_s1 + $0x4b4] sm:$0xf0]  ;;  %v6370_v18 = vld [vmem:[%s10792_s1 + $0x5a8] sm:$0xf] }
 0x346   :  { %3111 = vmatmul.bf16.gmra.mxu3 %v11234_v28  ;;  %v6243_v47 = vor.u32 %v6911_v10, %v6242_v14  ;;  %3362 = vmatpush.bf16.msra.mxu2 %v5735_v1 }
 0x347   :  { %v9159_v17 = vpack.c.bf16 %v3971_v33, %v3967_v57  ;;  %v6943_v57 = vld [vmem:[%s10792_s1 + $0x5b4] sm:$0xf0] }
 0x348   :  { %v2707_v3 = vpop.f32.mrf.mxu2  ;;  %3184 = vmatpush.bf16.msra.mxu0 %v6243_v47  ;;  %v6371_v33 = vor.u32 %v6943_v57, %v6370_v18  ;;  %v11236_v47 = vld [vmem:[#allocation14_spill] sm:$0xff] }
 0x349   :  { %11235 = vst [vmem:[#allocation6_spill] sm:$0xff] %v9159_v17  ;;  %v2708_v53 = vadd.f32 %v2707_v3, %v2619_v11  ;;  %v2796_v46 = vpop.f32.mrf.mxu3  ;;  %v2531_v29 = vpop.f32.mrf.mxu0 }
 0x34a   :  { %v2532_v20 = vadd.f32 %v2531_v29, %v8819_v40  ;;  %v2620_v0 = vpop.f32.mrf.mxu1  ;;  %3273 = vmatpush.bf16.msra.mxu1 %v6371_v33  ;;  %v11238_v29 = vld [vmem:[#allocation16_spill] sm:$0xff] }
 0x34b   :  { %v2797_v24 = vadd.f32 %v2796_v46, %v2708_v53  ;;  %v11237_v46 = vld [vmem:[#allocation15_spill] sm:$0xff] }
 0x34c   :  { %v2621_v28 = vadd.f32 %v2620_v0, %v2532_v20  ;;  %v11239_v20 = vld [vmem:[#allocation17_spill] sm:$0xff] }
 0x34d   :  { %v3975_v45 = vmax.f32 %v2797_v24, 0.0 }
 0x350   :  { %v2709_v11 = vpop.f32.mrf.mxu2 }
 0x351   :  { %v2710_v14 = vadd.f32 %v2709_v11, %v2621_v28  ;;  %v2798_v1 = vpop.f32.mrf.mxu3  ;;  %v2534_v10 = vpop.f32.mrf.mxu0 }
 0x352   :  { %v2535_v40 = vadd.f32 %v2534_v10, %v8827_v61  ;;  %v2623_v41 = vpop.f32.mrf.mxu1 }
 0x353   :  { %v2799_v22 = vadd.f32 %v2798_v1, %v2710_v14 }
 0x354   :  { %v2624_v3 = vadd.f32 %v2623_v41, %v2535_v40  ;;  %2849 = vmatmul.bf16.gmra.mxu0 %v11236_v47  ;;  %2938 = vmatmul.bf16.gmra.mxu1 %v11237_v46 }
 0x355   :  { %v3979_v53 = vmax.f32 %v2799_v22, 0.0  ;;  %3027 = vmatmul.bf16.gmra.mxu2 %v11238_v29 }
 0x356   :  { %3116 = vmatmul.bf16.gmra.mxu3 %v11239_v20 }
 0x357   :  { %v9173_v18 = vpack.c.bf16 %v3979_v53, %v3975_v45  ;;  %v11241_v45 = vld [vmem:[#allocation18_spill] sm:$0xff] }
 0x358   :  { %v2712_v28 = vpop.f32.mrf.mxu2 }
 0x359   :  { %11240 = vst [vmem:[#allocation7_spill] sm:$0xff] %v9173_v18  ;;  %v2713_v0 = vadd.f32 %v2712_v28, %v2624_v3  ;;  %v2801_v57 = vpop.f32.mrf.mxu3  ;;  %v2536_v33 = vpop.f32.mrf.mxu0  ;;  %v11242_v28 = vld [vmem:[#allocation19_spill] sm:$0xff]  ;;  %v11243_v18 = vld [vmem:[#allocation20_spill] sm:$0xff] }
 0x35a   :  { %v2537_v61 = vadd.f32 %v2536_v33, %v8833_v27  ;;  %v2625_v11 = vpop.f32.mrf.mxu1  ;;  %v11244_v27 = vld [vmem:[#allocation21_spill] sm:$0xff]  ;;  %v6809_v33 = vld [vmem:[%s10792_s1 + $0x18c] sm:$0xf] }
 0x35b   :  { %v2802_v14 = vadd.f32 %v2801_v57, %v2713_v0  ;;  %v6777_v0 = vld [vmem:[%s10792_s1 + $0x8c] sm:$0xf] }
 0x35c   :  { %v2626_v1 = vadd.f32 %v2625_v11, %v2537_v61  ;;  %v5844_v61 = vld [vmem:[%s10792_s1 + $0x198] sm:$0xf0] }
 0x35d   :  { %v3983_v53 = vmax.f32 %v2802_v14, 0.0 }
 0x360   :  { %v2714_v10 = vpop.f32.mrf.mxu2 }
 0x361   :  { %v2715_v24 = vadd.f32 %v2714_v10, %v2626_v1  ;;  %v2803_v40 = vpop.f32.mrf.mxu3  ;;  %v2539_v41 = vpop.f32.mrf.mxu0  ;;  %v5847_v10 = vor.u32 %v6809_v33, %v5844_v61 }
 0x362   :  { %v2540_v22 = vadd.f32 %v2539_v41, %v8859_v56  ;;  %v2628_v17 = vpop.f32.mrf.mxu1  ;;  %v5716_v56 = vld [vmem:[%s10792_s1 + $0x98] sm:$0xf0] }
 0x363   :  { %v2804_v29 = vadd.f32 %v2803_v40, %v2715_v24  ;;  %v5719_v57 = vor.u32 %v6777_v0, %v5716_v56  ;;  %3452 = vmatpush.bf16.msra.mxu3 %v5847_v10 }
 0x364   :  { %v2629_v20 = vadd.f32 %v2628_v17, %v2540_v22  ;;  %2854 = vmatmul.bf16.gmra.mxu0 %v11241_v45  ;;  %2943 = vmatmul.bf16.gmra.mxu1 %v11242_v28  ;;  %v6226_v17 = vld [vmem:[%s10792_s1 + $0x488] sm:$0xf] }
 0x365   :  { %v3987_v3 = vmax.f32 %v2804_v29, 0.0  ;;  %3032 = vmatmul.bf16.gmra.mxu2 %v11243_v18  ;;  %v6907_v29 = vld [vmem:[%s10792_s1 + $0x494] sm:$0xf0]  ;;  %v6354_v18 = vld [vmem:[%s10792_s1 + $0x588] sm:$0xf] }
 0x366   :  { %3121 = vmatmul.bf16.gmra.mxu3 %v11244_v27  ;;  %v6227_v1 = vor.u32 %v6907_v29, %v6226_v17  ;;  %3363 = vmatpush.bf16.msra.mxu2 %v5719_v57 }
 0x367   :  { %v9199_v11 = vpack.c.bf16 %v3987_v3, %v3983_v53  ;;  %v6939_v53 = vld [vmem:[%s10792_s1 + $0x594] sm:$0xf0] }
 0x368   :  { %v2717_v14 = vpop.f32.mrf.mxu2  ;;  %3185 = vmatpush.bf16.msra.mxu0 %v6227_v1  ;;  %v6355_v3 = vor.u32 %v6939_v53, %v6354_v18  ;;  %v11246_v1 = vld [vmem:[#allocation22_spill] sm:$0xff] }
 0x369   :  { %11245 = vst [vmem:[#allocation10_spill] sm:$0xff] %v9199_v11  ;;  %v2718_v24 = vadd.f32 %v2717_v14, %v2629_v20  ;;  %v2806_v40 = vpop.f32.mrf.mxu3  ;;  %v2541_v41 = vpop.f32.mrf.mxu0 }
 0x36a   :  { %v2542_v22 = vadd.f32 %v2541_v41, %v8871_v52  ;;  %v2630_v0 = vpop.f32.mrf.mxu1  ;;  %3274 = vmatpush.bf16.msra.mxu1 %v6355_v3  ;;  %v11248_v41 = vld [vmem:[#allocation24_spill] sm:$0xff] }
 0x36b   :  { %v2807_v56 = vadd.f32 %v2806_v40, %v2718_v24  ;;  %v11247_v40 = vld [vmem:[#allocation23_spill] sm:$0xff] }
 0x36c   :  { %v2631_v27 = vadd.f32 %v2630_v0, %v2542_v22  ;;  %v11249_v22 = vld [vmem:[#allocation25_spill] sm:$0xff] }
 0x36d   :  { %v3991_v10 = vmax.f32 %v2807_v56, 0.0 }
 0x370   :  { %v2719_v20 = vpop.f32.mrf.mxu2 }
 0x371   :  { %v2720_v17 = vadd.f32 %v2719_v20, %v2631_v27  ;;  %v2808_v57 = vpop.f32.mrf.mxu3  ;;  %v2544_v29 = vpop.f32.mrf.mxu0 }
 0x372   :  { %v2545_v52 = vadd.f32 %v2544_v29, %v8879_v48  ;;  %v2633_v33 = vpop.f32.mrf.mxu1 }
 0x373   :  { %v2809_v61 = vadd.f32 %v2808_v57, %v2720_v17 }
 0x374   :  { %v2634_v14 = vadd.f32 %v2633_v33, %v2545_v52  ;;  %2859 = vmatmul.bf16.gmra.mxu0 %v11246_v1  ;;  %2948 = vmatmul.bf16.gmra.mxu1 %v11247_v40 }
 0x375   :  { %v3995_v24 = vmax.f32 %v2809_v61, 0.0  ;;  %3037 = vmatmul.bf16.gmra.mxu2 %v11248_v41 }
 0x376   :  { %3126 = vmatmul.bf16.gmra.mxu3 %v11249_v22 }
 0x377   :  { %v9213_v18 = vpack.c.bf16 %v3995_v24, %v3991_v10  ;;  %v11251_v10 = vld [vmem:[#allocation26_spill] sm:$0xff] }
 0x378   :  { %v2722_v27 = vpop.f32.mrf.mxu2 }
 0x379   :  { %11250 = vst [vmem:[#allocation11_spill] sm:$0xff] %v9213_v18  ;;  %v2723_v0 = vadd.f32 %v2722_v27, %v2634_v14  ;;  %v2811_v53 = vpop.f32.mrf.mxu3  ;;  %v2546_v3 = vpop.f32.mrf.mxu0  ;;  %v11252_v27 = vld [vmem:[#allocation27_spill] sm:$0xff] }
 0x37a   :  { %v2547_v48 = vadd.f32 %v2546_v3, %v8885_v15  ;;  %v2635_v20 = vpop.f32.mrf.mxu1  ;;  %v11253_v15 = vld [vmem:[#allocation29_spill] sm:$0xff]  ;;  %v6805_v3 = vld [vmem:[%s10792_s1 + $0x16c] sm:$0xf] }
 0x37b   :  { %v2812_v17 = vadd.f32 %v2811_v53, %v2723_v0  ;;  %v6773_v0 = vld [vmem:[%s10792_s1 + $0x6c] sm:$0xf] }
 0x37c   :  { %v2636_v57 = vadd.f32 %v2635_v20, %v2547_v48  ;;  %v5828_v48 = vld [vmem:[%s10792_s1 + $0x178] sm:$0xf0] }
 0x37d   :  { %v3999_v24 = vmax.f32 %v2812_v17, 0.0 }
 0x380   :  { %v2724_v29 = vpop.f32.mrf.mxu2 }
 0x381   :  { %v2725_v56 = vadd.f32 %v2724_v29, %v2636_v57  ;;  %v2813_v52 = vpop.f32.mrf.mxu3  ;;  %v2549_v33 = vpop.f32.mrf.mxu0  ;;  %v5831_v29 = vor.u32 %v6805_v3, %v5828_v48 }
 0x382   :  { %v2550_v61 = vadd.f32 %v2549_v33, %v8911_v38  ;;  %v2638_v11 = vpop.f32.mrf.mxu1  ;;  %v5700_v38 = vld [vmem:[%s10792_s1 + $0x78] sm:$0xf0] }
 0x383   :  { %v2814_v41 = vadd.f32 %v2813_v52, %v2725_v56  ;;  %v5703_v53 = vor.u32 %v6773_v0, %v5700_v38  ;;  %3453 = vmatpush.bf16.msra.mxu3 %v5831_v29 }
 0x384   :  { %v2639_v22 = vadd.f32 %v2638_v11, %v2550_v61  ;;  %2864 = vmatmul.bf16.gmra.mxu0 %v11251_v10  ;;  %2953 = vmatmul.bf16.gmra.mxu1 %v11252_v27  ;;  %v6210_v11 = vld [vmem:[%s10792_s1 + $0x468] sm:$0xf]  ;;  %v11255_v61 = vld [vmem:[#allocation109_spill] sm:$0xff] }
 0x385   :  { %v4003_v14 = vmax.f32 %v2814_v41, 0.0  ;;  %3042 = vmatmul.bf16.gmra.mxu2 %v11184_v32  ;;  %v6903_v41 = vld [vmem:[%s10792_s1 + $0x474] sm:$0xf0]  ;;  %v6322_v32 = vld [vmem:[%s10792_s1 + $0x548] sm:$0xf] }
 0x386   :  { %3131 = vmatmul.bf16.gmra.mxu3 %v11253_v15  ;;  %v6211_v57 = vor.u32 %v6903_v41, %v6210_v11  ;;  %3364 = vmatpush.bf16.msra.mxu2 %v5703_v53  ;;  %v6338_v15 = vld [vmem:[%s10792_s1 + $0x568] sm:$0xf] }
 0x387   :  { %v9239_v20 = vpack.c.bf16 %v4003_v14, %v3999_v24  ;;  %v6935_v24 = vld [vmem:[%s10792_s1 + $0x574] sm:$0xf0] }
 0x388   :  { %v2727_v17 = vpop.f32.mrf.mxu2  ;;  %3186 = vmatpush.bf16.msra.mxu0 %v6211_v57  ;;  %v6339_v11 = vor.u32 %v6935_v24, %v6338_v15 }
 0x389   :  { %11254 = vst [vmem:[#allocation14_spill] sm:$0xff] %v9239_v20  ;;  %v2728_v56 = vadd.f32 %v2727_v17, %v2639_v22  ;;  %v2816_v52 = vpop.f32.mrf.mxu3  ;;  %v2551_v33 = vpop.f32.mrf.mxu0  ;;  %v11258_v20 = vld [vmem:[#allocation32_spill] sm:$0xff] }
 0x38a   :  { %v2552_v0 = vadd.f32 %v2551_v33, %v11255_v61  ;;  %v2640_v38 = vpop.f32.mrf.mxu1  ;;  %3275 = vmatpush.bf16.msra.mxu1 %v6339_v11  ;;  %v11257_v61 = vld [vmem:[#allocation31_spill] sm:$0xff] }
 0x38b   :  { %v2817_v18 = vadd.f32 %v2816_v52, %v2728_v56  ;;  %v11256_v56 = vld [vmem:[#allocation30_spill] sm:$0xff] }
 0x38c   :  { %v2641_v14 = vadd.f32 %v2640_v38, %v2552_v0  ;;  %v11259_v0 = vld [vmem:[#allocation33_spill] sm:$0xff] }
 0x38d   :  { %v4007_v52 = vmax.f32 %v2817_v18, 0.0  ;;  %v9259_v18 = vld [vmem:[%s10794_s2] sm:$0xf] }
 0x390   :  { %v2729_v22 = vpop.f32.mrf.mxu2 }
 0x391   :  { %v2730_v41 = vadd.f32 %v2729_v22, %v2641_v14  ;;  %v2818_v53 = vpop.f32.mrf.mxu3  ;;  %v2554_v3 = vpop.f32.mrf.mxu0 }
 0x392   :  { %v2555_v48 = vadd.f32 %v2554_v3, %v8931_v12  ;;  %v2643_v17 = vpop.f32.mrf.mxu1  ;;  %v9262_v3 = vperm.slane %v9259_v18, 2 }
 0x393   :  { %v2819_v57 = vadd.f32 %v2818_v53, %v2730_v41 }
 0x394   :  { %v2644_v29 = vadd.f32 %v2643_v17, %v2555_v48  ;;  %2869 = vmatmul.bf16.gmra.mxu0 %v11256_v56  ;;  %2958 = vmatmul.bf16.gmra.mxu1 %v11257_v61 }
 0x395   :  { %v4011_v33 = vmax.f32 %v2819_v57, 0.0  ;;  %3047 = vmatmul.bf16.gmra.mxu2 %v11258_v20 }
 0x396   :  { %3136 = vmatmul.bf16.gmra.mxu3 %v11259_v0 }
 0x397   :  { %v9253_v15 = vpack.c.bf16 %v4011_v33, %v4007_v52 }
 0x398   :  { %v2732_v38 = vpop.f32.mrf.mxu2 }
 0x399   :  { %11260 = vst [vmem:[#allocation15_spill] sm:$0xff] %v9253_v15  ;;  %v2733_v24 = vadd.f32 %v2732_v38, %v2644_v29  ;;  %v2821_v14 = vpop.f32.mrf.mxu3  ;;  %v2556_v11 = vpop.f32.mrf.mxu0 }
 0x39a   :  { %v2557_v12 = vadd.f32 %v2556_v11, %v8937_v50  ;;  %v2645_v22 = vpop.f32.mrf.mxu1  ;;  %v11261_v11 = vld [vmem:[#allocation34_spill] sm:$0xff] }
 0x39b   :  { %v2822_v41 = vadd.f32 %v2821_v14, %v2733_v24 }
 0x39c   :  { %v2646_v53 = vadd.f32 %v2645_v22, %v2557_v12  ;;  %v11262_v12 = vld [vmem:[#allocation35_spill] sm:$0xff] }
 0x39d   :  { %v4015_v24 = vmax.f32 %v2822_v41, 0.0  ;;  %v6769_v22 = vld [vmem:[%s10792_s1 + $0x4c] sm:$0xf] }
 0x3a0   :  { %v2734_v48 = vpop.f32.mrf.mxu2 }
 0x3a1   :  { %v2735_v17 = vadd.f32 %v2734_v48, %v2646_v53  ;;  %v2823_v57 = vpop.f32.mrf.mxu3  ;;  %v2835_v52 = vpop.f32.mrf.mxu0  ;;  %v5684_v53 = vld [vmem:[%s10792_s1 + $0x58] sm:$0xf0]  ;;  %v6194_v48 = vld [vmem:[%s10792_s1 + $0x448] sm:$0xf] }
 0x3a2   :  { %v2836_v29 = vadd.f32 %v2835_v52, %v9262_v3  ;;  %v2924_v33 = vpop.f32.mrf.mxu1  ;;  %v5687_v41 = vor.u32 %v6769_v22, %v5684_v53  ;;  %v5812_v52 = vld [vmem:[%s10792_s1 + $0x158] sm:$0xf0] }
 0x3a3   :  { %v2824_v38 = vadd.f32 %v2823_v57, %v2735_v17  ;;  %v6899_v17 = vld [vmem:[%s10792_s1 + $0x454] sm:$0xf0]  ;;  %v6801_v57 = vld [vmem:[%s10792_s1 + $0x14c] sm:$0xf] }
 0x3a4   :  { %v2925_v50 = vadd.f32 %v2924_v33, %v2836_v29  ;;  %2874 = vmatmul.bf16.gmra.mxu0 %v11261_v11  ;;  %2963 = vmatmul.bf16.gmra.mxu1 %v11262_v12  ;;  %v5815_v15 = vor.u32 %v6801_v57, %v5812_v52 }
 0x3a5   :  { %v4019_v14 = vmax.f32 %v2824_v38, 0.0  ;;  %3052 = vmatmul.bf16.gmra.mxu2 %v11195_v60  ;;  %v6195_v38 = vor.u32 %v6899_v17, %v6194_v48 }
 0x3a6   :  { %3141 = vmatmul.bf16.gmra.mxu3 %v11196_v13  ;;  %3365 = vmatpush.bf16.msra.mxu2 %v5687_v41 }
 0x3a7   :  { %v9287_v29 = vpack.c.bf16 %v4019_v14, %v4015_v24  ;;  %3187 = vmatpush.bf16.msra.mxu0 %v6195_v38  ;;  %3454 = vmatpush.bf16.msra.mxu3 %v5815_v15  ;;  %v6931_v24 = vld [vmem:[%s10792_s1 + $0x554] sm:$0xf0]  ;;  %v11265_v38 = vld [vmem:[#allocation39_spill] sm:$0xff] }
 0x3a8   :  { %v3013_v33 = vpop.f32.mrf.mxu2 }
 0x3a9   :  { %11263 = vst [vmem:[#allocation18_spill] sm:$0xff] %v9287_v29  ;;  %v3014_v13 = vadd.f32 %v3013_v33, %v2925_v50  ;;  %v3102_v60 = vpop.f32.mrf.mxu3  ;;  %v2837_v22 = vpop.f32.mrf.mxu0  ;;  %v6323_v50 = vor.u32 %v6931_v24, %v6322_v32  ;;  %v11264_v33 = vld [vmem:[#allocation38_spill] sm:$0xff] }
 0x3aa   :  { %v2838_v53 = vadd.f32 %v2837_v22, %v9262_v3  ;;  %v2926_v0 = vpop.f32.mrf.mxu1 }
 0x3ab   :  { %v9290_v20 = vadd.f32 %v3102_v60, %v3014_v13  ;;  %3276 = vmatpush.bf16.msra.mxu1 %v6323_v50 }
 0x3ac   :  { %v2927_v14 = vadd.f32 %v2926_v0, %v2838_v53 }
 0x3b0   :  { %v3015_v48 = vpop.f32.mrf.mxu2 }
 0x3b1   :  { %v3016_v41 = vadd.f32 %v3015_v48, %v2927_v14  ;;  %v3104_v17 = vpop.f32.mrf.mxu3  ;;  %v2840_v57 = vpop.f32.mrf.mxu0 }
 0x3b2   :  { %v2841_v52 = vadd.f32 %v2840_v57, %v9262_v3  ;;  %v2929_v15 = vpop.f32.mrf.mxu1 }
 0x3b3   :  { %v9299_v60 = vadd.f32 %v3104_v17, %v3016_v41 }
 0x3b4   :  { %v2930_v13 = vadd.f32 %v2929_v15, %v2841_v52  ;;  %2879 = vmatmul.bf16.gmra.mxu0 %v11264_v33  ;;  %2968 = vmatmul.bf16.gmra.mxu1 %v11265_v38 }
 0x3b5   :  { %3057 = vmatmul.bf16.gmra.mxu2 %v11199_v54 }
 0x3b6   :  { %3146 = vmatmul.bf16.gmra.mxu3 %v11200_v49 }
 0x3b8   :  { %v3018_v32 = vpop.f32.mrf.mxu2 }
 0x3b9   :  { %v3019_v0 = vadd.f32 %v3018_v32, %v2930_v13  ;;  %v3107_v22 = vpop.f32.mrf.mxu3  ;;  %v2842_v53 = vpop.f32.mrf.mxu0  ;;  %v11267_v13 = vld [vmem:[#allocation43_spill] sm:$0xff] }
 0x3ba   :  { %v2843_v24 = vadd.f32 %v2842_v53, %v9262_v3  ;;  %v2931_v14 = vpop.f32.mrf.mxu1  ;;  %v6765_v32 = vld [vmem:[%s10792_s1 + $0x2c] sm:$0xf]  ;;  %v6895_v53 = vld [vmem:[%s10792_s1 + $0x434] sm:$0xf0] }
 0x3bb   :  { %v9306_v50 = vadd.f32 %v3107_v22, %v3019_v0  ;;  %v5668_v0 = vld [vmem:[%s10792_s1 + $0x38] sm:$0xf0] }
 0x3bc   :  { %v2932_v48 = vadd.f32 %v2931_v14, %v2843_v24  ;;  %v5671_v22 = vor.u32 %v6765_v32, %v5668_v0  ;;  %v6797_v24 = vld [vmem:[%s10792_s1 + $0x12c] sm:$0xf]  ;;  %v5796_v14 = vld [vmem:[%s10792_s1 + $0x138] sm:$0xf0] }
 0x3be   :  { %3366 = vmatpush.bf16.msra.mxu2 %v5671_v22 }
 0x3c0   :  { %v3020_v41 = vpop.f32.mrf.mxu2 }
 0x3c1   :  { %v3021_v17 = vadd.f32 %v3020_v41, %v2932_v48  ;;  %v3109_v57 = vpop.f32.mrf.mxu3  ;;  %v2845_v52 = vpop.f32.mrf.mxu0 }
 0x3c2   :  { %v2846_v15 = vadd.f32 %v2845_v52, %v9262_v3  ;;  %v2934_v29 = vpop.f32.mrf.mxu1 }
 0x3c3   :  { %v9309_v54 = vadd.f32 %v3109_v57, %v3021_v17  ;;  %v5799_v17 = vor.u32 %v6797_v24, %v5796_v14 }
 0x3c4   :  { %v2935_v49 = vadd.f32 %v2934_v29, %v2846_v15  ;;  %2884 = vmatmul.bf16.gmra.mxu0 %v11266_v63  ;;  %2973 = vmatmul.bf16.gmra.mxu1 %v11267_v13  ;;  %v6178_v29 = vld [vmem:[%s10792_s1 + $0x428] sm:$0xf] }
 0x3c5   :  { %3062 = vmatmul.bf16.gmra.mxu2 %v11202_v2  ;;  %v6179_v41 = vor.u32 %v6895_v53, %v6178_v29  ;;  %3455 = vmatpush.bf16.msra.mxu3 %v5799_v17  ;;  %v6306_v2 = vld [vmem:[%s10792_s1 + $0x528] sm:$0xf]  ;;  %v6927_v29 = vld [vmem:[%s10792_s1 + $0x534] sm:$0xf0] }
 0x3c6   :  { %3151 = vmatmul.bf16.gmra.mxu3 %v11203_v16 }
 0x3c7   :  { %3188 = vmatpush.bf16.msra.mxu0 %v6179_v41 }
 0x3c8   :  { %v3023_v48 = vpop.f32.mrf.mxu2 }
 0x3c9   :  { %v3024_v57 = vadd.f32 %v3023_v48, %v2935_v49  ;;  %v3112_v52 = vpop.f32.mrf.mxu3  ;;  %v2847_v15 = vpop.f32.mrf.mxu0  ;;  %v6307_v49 = vor.u32 %v6927_v29, %v6306_v2 }
 0x3ca   :  { %v2848_v32 = vadd.f32 %v2847_v15, %v9262_v3  ;;  %v2936_v0 = vpop.f32.mrf.mxu1  ;;  %v11268_v15 = vld [vmem:[#allocation46_spill] sm:$0xff] }
 0x3cb   :  { %v9334_v16 = vadd.f32 %v3112_v52, %v3024_v57  ;;  %3277 = vmatpush.bf16.msra.mxu1 %v6307_v49 }
 0x3cc   :  { %v2937_v53 = vadd.f32 %v2936_v0, %v2848_v32 }
 0x3d0   :  { %v3025_v24 = vpop.f32.mrf.mxu2 }
 0x3d1   :  { %v3026_v22 = vadd.f32 %v3025_v24, %v2937_v53  ;;  %v3114_v14 = vpop.f32.mrf.mxu3  ;;  %v2850_v48 = vpop.f32.mrf.mxu0 }
 0x3d2   :  { %v2851_v41 = vadd.f32 %v2850_v48, %v9262_v3  ;;  %v2939_v17 = vpop.f32.mrf.mxu1 }
 0x3d3   :  { %v9343_v57 = vadd.f32 %v3114_v14, %v3026_v22 }
 0x3d4   :  { %v2940_v52 = vadd.f32 %v2939_v17, %v2851_v41  ;;  %2889 = vmatmul.bf16.gmra.mxu0 %v11268_v15  ;;  %2978 = vmatmul.bf16.gmra.mxu1 %v11269_v31 }
 0x3d5   :  { %3067 = vmatmul.bf16.gmra.mxu2 %v11205_v26 }
 0x3d6   :  { %3156 = vmatmul.bf16.gmra.mxu3 %v11206_v51 }
 0x3d8   :  { %v3028_v2 = vpop.f32.mrf.mxu2 }
 0x3d9   :  { %v3029_v32 = vadd.f32 %v3028_v2, %v2940_v52  ;;  %v3117_v0 = vpop.f32.mrf.mxu3  ;;  %v2852_v29 = vpop.f32.mrf.mxu0  ;;  %v11271_v52 = vld [vmem:[#allocation51_spill] sm:$0xff] }
 0x3da   :  { %v2853_v53 = vadd.f32 %v2852_v29, %v9262_v3  ;;  %v2941_v49 = vpop.f32.mrf.mxu1  ;;  %v6761_v2 = vld [vmem:[%s10792_s1 + $0xc] sm:$0xf] }
 0x3db   :  { %v9350_v24 = vadd.f32 %v3117_v0, %v3029_v32  ;;  %v5652_v32 = vld [vmem:[%s10792_s1 + $0x18] sm:$0xf0]  ;;  %v6891_v0 = vld [vmem:[%s10792_s1 + $0x414] sm:$0xf0]  ;;  %v6793_v29 = vld [vmem:[%s10792_s1 + $0x10c] sm:$0xf] }
 0x3dc   :  { %v2942_v22 = vadd.f32 %v2941_v49, %v2853_v53  ;;  %v5780_v53 = vld [vmem:[%s10792_s1 + $0x118] sm:$0xf0] }
 0x3e0   :  { %v3030_v14 = vpop.f32.mrf.mxu2 }
 0x3e1   :  { %v3031_v48 = vadd.f32 %v3030_v14, %v2942_v22  ;;  %v3119_v41 = vpop.f32.mrf.mxu3  ;;  %v2855_v17 = vpop.f32.mrf.mxu0  ;;  %v5783_v14 = vor.u32 %v6793_v29, %v5780_v53 }
 0x3e2   :  { %v2856_v5 = vadd.f32 %v2855_v17, %v9262_v3  ;;  %v2944_v37 = vpop.f32.mrf.mxu1 }
 0x3e3   :  { %v9353_v26 = vadd.f32 %v3119_v41, %v3031_v48  ;;  %3456 = vmatpush.bf16.msra.mxu3 %v5783_v14 }
 0x3e4   :  { %v2945_v51 = vadd.f32 %v2944_v37, %v2856_v5  ;;  %2894 = vmatmul.bf16.gmra.mxu0 %v11270_v4  ;;  %2983 = vmatmul.bf16.gmra.mxu1 %v11271_v52  ;;  %v6162_v37 = vld [vmem:[%s10792_s1 + $0x408] sm:$0xf]  ;;  %v5655_v5 = vor.u32 %v6761_v2, %v5652_v32 }
 0x3e5   :  { %3072 = vmatmul.bf16.gmra.mxu2 %v11208_v43  ;;  %v6163_v22 = vor.u32 %v6891_v0, %v6162_v37  ;;  %v6290_v43 = vld [vmem:[%s10792_s1 + $0x508] sm:$0xf]  ;;  %v6923_v37 = vld [vmem:[%s10792_s1 + $0x514] sm:$0xf0] }
 0x3e6   :  { %3161 = vmatmul.bf16.gmra.mxu3 %v11209_v44  ;;  %3367 = vmatpush.bf16.msra.mxu2 %v5655_v5  ;;  %v11274_v52 = vld [vmem:[#allocation55_spill] sm:$0xff] }
 0x3e7   :  { %3189 = vmatpush.bf16.msra.mxu0 %v6163_v22 }
 0x3e8   :  { %v3033_v49 = vpop.f32.mrf.mxu2 }
 0x3e9   :  { %v3034_v48 = vadd.f32 %v3033_v49, %v2945_v51  ;;  %v3122_v41 = vpop.f32.mrf.mxu3  ;;  %v2857_v17 = vpop.f32.mrf.mxu0  ;;  %v6291_v51 = vor.u32 %v6923_v37, %v6290_v43 }
 0x3ea   :  { %v2858_v2 = vadd.f32 %v2857_v17, %v9262_v3  ;;  %v2946_v32 = vpop.f32.mrf.mxu1  ;;  %v11273_v17 = vld [vmem:[#allocation54_spill] sm:$0xff] }
 0x3eb   :  { %v9378_v44 = vadd.f32 %v3122_v41, %v3034_v48  ;;  %3278 = vmatpush.bf16.msra.mxu1 %v6291_v51 }
 0x3ec   :  { %v2947_v0 = vadd.f32 %v2946_v32, %v2858_v2 }
 0x3f0   :  { %v3035_v29 = vpop.f32.mrf.mxu2 }
 0x3f1   :  { %v3036_v5 = vadd.f32 %v3035_v29, %v2947_v0  ;;  %v3124_v53 = vpop.f32.mrf.mxu3  ;;  %v2860_v49 = vpop.f32.mrf.mxu0 }
 0x3f2   :  { %v2861_v22 = vadd.f32 %v2860_v49, %v9262_v3  ;;  %v2949_v14 = vpop.f32.mrf.mxu1 }
 0x3f3   :  { %v9387_v48 = vadd.f32 %v3124_v53, %v3036_v5 }
 0x3f4   :  { %v2950_v41 = vadd.f32 %v2949_v14, %v2861_v22  ;;  %2899 = vmatmul.bf16.gmra.mxu0 %v11273_v17  ;;  %2988 = vmatmul.bf16.gmra.mxu1 %v11274_v52 }
 0x3f5   :  { %11272 = vst [vmem:[#allocation19_spill] sm:$0xff] %v9387_v48  ;;  %3077 = vmatmul.bf16.gmra.mxu2 %v11211_v36  ;;  %v11275_v48 = vld [vmem:[#allocation58_spill] sm:$0xff] }
 0x3f6   :  { %3166 = vmatmul.bf16.gmra.mxu3 %v11212_v34 }
 0x3f8   :  { %v3038_v43 = vpop.f32.mrf.mxu2 }
 0x3f9   :  { %v3039_v2 = vadd.f32 %v3038_v43, %v2950_v41  ;;  %v3127_v32 = vpop.f32.mrf.mxu3  ;;  %v2862_v37 = vpop.f32.mrf.mxu0  ;;  %v11276_v41 = vld [vmem:[#allocation59_spill] sm:$0xff] }
 0x3fa   :  { %v2863_v0 = vadd.f32 %v2862_v37, %v9262_v3  ;;  %v2951_v51 = vpop.f32.mrf.mxu1  ;;  %v6917_v43 = vld [vmem:[%s10792_s1 + $0x4ec] sm:$0xf] }
 0x3fb   :  { %v9394_v29 = vadd.f32 %v3127_v32, %v3039_v2  ;;  %v6276_v2 = vld [vmem:[%s10792_s1 + $0x4f8] sm:$0xf0]  ;;  %v6949_v37 = vld [vmem:[%s10792_s1 + $0x5ec] sm:$0xf] }
 0x3fc   :  { %v2952_v5 = vadd.f32 %v2951_v51, %v2863_v0  ;;  %v6020_v32 = vld [vmem:[%s10792_s1 + $0x2f8] sm:$0xf0] }
 0x3fd   :  { %v6404_v0 = vld [vmem:[%s10792_s1 + $0x5f8] sm:$0xf0] }
 0x400   :  { %v3040_v53 = vpop.f32.mrf.mxu2 }
 0x401   :  { %v3041_v49 = vadd.f32 %v3040_v53, %v2952_v5  ;;  %v3129_v22 = vpop.f32.mrf.mxu3  ;;  %v2865_v14 = vpop.f32.mrf.mxu0  ;;  %v6407_v53 = vor.u32 %v6949_v37, %v6404_v0 }
 0x402   :  { %v2866_v52 = vadd.f32 %v2865_v14, %v9262_v3  ;;  %v2954_v17 = vpop.f32.mrf.mxu1 }
 0x403   :  { %v9397_v36 = vadd.f32 %v3129_v22, %v3041_v49  ;;  %3805 = vmatpush.bf16.msrb.mxu3 %v6407_v53 }
 0x404   :  { %v2955_v34 = vadd.f32 %v2954_v17, %v2866_v52  ;;  %2904 = vmatmul.bf16.gmra.mxu0 %v11275_v48  ;;  %2993 = vmatmul.bf16.gmra.mxu1 %v11276_v41  ;;  %v6853_v52 = vld [vmem:[%s10792_s1 + $0x2ec] sm:$0xf]  ;;  %v6279_v17 = vor.u32 %v6917_v43, %v6276_v2 }
 0x405   :  { %3082 = vmatmul.bf16.gmra.mxu2 %v11214_v42  ;;  %v6023_v5 = vor.u32 %v6853_v52, %v6020_v32  ;;  %v6885_v42 = vld [vmem:[%s10792_s1 + $0x3ec] sm:$0xf]  ;;  %v6148_v52 = vld [vmem:[%s10792_s1 + $0x3f8] sm:$0xf0] }
 0x406   :  { %3171 = vmatmul.bf16.gmra.mxu3 %v11215_v7  ;;  %3716 = vmatpush.bf16.msrb.mxu2 %v6279_v17  ;;  %v11279_v41 = vld [vmem:[#allocation63_spill] sm:$0xff] }
 0x407   :  { %3538 = vmatpush.bf16.msrb.mxu0 %v6023_v5 }
 0x408   :  { %v3043_v51 = vpop.f32.mrf.mxu2 }
 0x409   :  { %v3044_v49 = vadd.f32 %v3043_v51, %v2955_v34  ;;  %v3132_v22 = vpop.f32.mrf.mxu3  ;;  %v2867_v14 = vpop.f32.mrf.mxu0  ;;  %v6151_v34 = vor.u32 %v6885_v42, %v6148_v52 }
 0x40a   :  { %v2868_v43 = vadd.f32 %v2867_v14, %v9262_v3  ;;  %v2956_v2 = vpop.f32.mrf.mxu1  ;;  %v11278_v14 = vld [vmem:[#allocation62_spill] sm:$0xff] }
 0x40b   :  { %v9422_v7 = vadd.f32 %v3132_v22, %v3044_v49  ;;  %3627 = vmatpush.bf16.msrb.mxu1 %v6151_v34 }
 0x40c   :  { %v2957_v32 = vadd.f32 %v2956_v2, %v2868_v43 }
 0x410   :  { %v3045_v37 = vpop.f32.mrf.mxu2 }
 0x411   :  { %v3046_v17 = vadd.f32 %v3045_v37, %v2957_v32  ;;  %v3134_v0 = vpop.f32.mrf.mxu3  ;;  %v2870_v51 = vpop.f32.mrf.mxu0 }
 0x412   :  { %v2871_v5 = vadd.f32 %v2870_v51, %v9262_v3  ;;  %v2959_v53 = vpop.f32.mrf.mxu1 }
 0x413   :  { %v9431_v49 = vadd.f32 %v3134_v0, %v3046_v17 }
 0x414   :  { %v2960_v22 = vadd.f32 %v2959_v53, %v2871_v5  ;;  %2909 = vmatmul.bf16.gmra.mxu0 %v11278_v14  ;;  %2998 = vmatmul.bf16.gmra.mxu1 %v11279_v41 }
 0x415   :  { %11277 = vst [vmem:[#allocation22_spill] sm:$0xff] %v9431_v49  ;;  %3087 = vmatmul.bf16.gmra.mxu2 %v11218_v9  ;;  %v11280_v49 = vld [vmem:[#allocation66_spill] sm:$0xff] }
 0x416   :  { %3176 = vmatmul.bf16.gmra.mxu3 %v11219_v58 }
 0x418   :  { %v3048_v42 = vpop.f32.mrf.mxu2 }
 0x419   :  { %v3049_v43 = vadd.f32 %v3048_v42, %v2960_v22  ;;  %v3137_v2 = vpop.f32.mrf.mxu3  ;;  %v2872_v52 = vpop.f32.mrf.mxu0  ;;  %v11281_v22 = vld [vmem:[#allocation67_spill] sm:$0xff] }
 0x41a   :  { %v2873_v32 = vadd.f32 %v2872_v52, %v9262_v3  ;;  %v2961_v34 = vpop.f32.mrf.mxu1  ;;  %v6913_v42 = vld [vmem:[%s10792_s1 + $0x4cc] sm:$0xf] }
 0x41b   :  { %v9438_v37 = vadd.f32 %v3137_v2, %v3049_v43  ;;  %v6260_v43 = vld [vmem:[%s10792_s1 + $0x4d8] sm:$0xf0] }
 0x41c   :  { %v2962_v17 = vadd.f32 %v2961_v34, %v2873_v32  ;;  %v6004_v2 = vld [vmem:[%s10792_s1 + $0x2d8] sm:$0xf0] }
 0x420   :  { %v3050_v0 = vpop.f32.mrf.mxu2 }
 0x421   :  { %v3051_v51 = vadd.f32 %v3050_v0, %v2962_v17  ;;  %v3139_v5 = vpop.f32.mrf.mxu3  ;;  %v2875_v53 = vpop.f32.mrf.mxu0 }
 0x422   :  { %v2876_v41 = vadd.f32 %v2875_v53, %v9262_v3  ;;  %v2964_v14 = vpop.f32.mrf.mxu1 }
 0x423   :  { %v9441_v9 = vadd.f32 %v3139_v5, %v3051_v51 }
 0x424   :  { %v2965_v58 = vadd.f32 %v2964_v14, %v2876_v41  ;;  %3190 = vmatmul.bf16.vlgmr.msra.gmra.mxu0 %v11280_v49  ;;  %3279 = vmatmul.bf16.vlgmr.msra.gmra.mxu1 %v11281_v22  ;;  %v6849_v41 = vld [vmem:[%s10792_s1 + $0x2cc] sm:$0xf]  ;;  %v6263_v14 = vor.u32 %v6913_v42, %v6260_v43  ;;  %v11284_v22 = vld [vmem:[#allocation69_spill] sm:$0xff] }
 0x425   :  { %3368 = vmatmul.bf16.vlgmr.msra.gmra.mxu2 %v11222_v59  ;;  %v6945_v59 = vld [vmem:[%s10792_s1 + $0x5cc] sm:$0xf]  ;;  %v6007_v32 = vor.u32 %v6849_v41, %v6004_v2  ;;  %v6132_v41 = vld [vmem:[%s10792_s1 + $0x3d8] sm:$0xf0] }
 0x426   :  { %3457 = vmatmul.bf16.vlgmr.msra.gmra.mxu3 %v11223_v23  ;;  %v6388_v23 = vld [vmem:[%s10792_s1 + $0x5d8] sm:$0xf0]  ;;  %3717 = vmatpush.bf16.msrb.mxu2 %v6263_v14  ;;  %v6881_v43 = vld [vmem:[%s10792_s1 + $0x3cc] sm:$0xf] }
 0x427   :  { %v6391_v34 = vor.u32 %v6945_v59, %v6388_v23  ;;  %3539 = vmatpush.bf16.msrb.mxu0 %v6007_v32 }
 0x428   :  { %v3053_v52 = vpop.f32.mrf.mxu2 }
 0x429   :  { %v3054_v17 = vadd.f32 %v3053_v52, %v2965_v58  ;;  %v3142_v0 = vpop.f32.mrf.mxu3  ;;  %v2877_v51 = vpop.f32.mrf.mxu0  ;;  %3806 = vmatpush.bf16.msrb.mxu3 %v6391_v34  ;;  %v6135_v58 = vor.u32 %v6881_v43, %v6132_v41 }
 0x42a   :  { %v2878_v5 = vadd.f32 %v2877_v51, %v9262_v3  ;;  %v2966_v53 = vpop.f32.mrf.mxu1  ;;  %v11283_v51 = vld [vmem:[#allocation68_spill] sm:$0xff] }
 0x42b   :  { %v9466_v42 = vadd.f32 %v3142_v0, %v3054_v17  ;;  %3628 = vmatpush.bf16.msrb.mxu1 %v6135_v58 }
 0x42c   :  { %v2967_v2 = vadd.f32 %v2966_v53, %v2878_v5 }
 0x430   :  { %v3055_v59 = vpop.f32.mrf.mxu2 }
 0x431   :  { %v3056_v14 = vadd.f32 %v3055_v59, %v2967_v2  ;;  %v3144_v23 = vpop.f32.mrf.mxu3  ;;  %v2880_v52 = vpop.f32.mrf.mxu0 }
 0x432   :  { %v2881_v32 = vadd.f32 %v2880_v52, %v9262_v3  ;;  %v2969_v34 = vpop.f32.mrf.mxu1 }
 0x433   :  { %v9475_v17 = vadd.f32 %v3144_v23, %v3056_v14 }
 0x434   :  { %v2970_v0 = vadd.f32 %v2969_v34, %v2881_v32  ;;  %3195 = vmatmul.bf16.gmra.mxu0 %v11283_v51  ;;  %3284 = vmatmul.bf16.gmra.mxu1 %v11284_v22 }
 0x435   :  { %11282 = vst [vmem:[#allocation23_spill] sm:$0xff] %v9475_v17  ;;  %3373 = vmatmul.bf16.gmra.mxu2 %v11226_v30  ;;  %v11285_v17 = vld [vmem:[#allocation70_spill] sm:$0xff] }
 0x436   :  { %3462 = vmatmul.bf16.gmra.mxu3 %v11227_v62 }
 0x438   :  { %v3058_v5 = vpop.f32.mrf.mxu2 }
 0x439   :  { %v3059_v53 = vadd.f32 %v3058_v5, %v2970_v0  ;;  %v3147_v43 = vpop.f32.mrf.mxu3  ;;  %v2882_v41 = vpop.f32.mrf.mxu0  ;;  %v11286_v0 = vld [vmem:[#allocation71_spill] sm:$0xff] }
 0x43a   :  { %v2883_v2 = vadd.f32 %v2882_v41, %v9262_v3  ;;  %v2971_v58 = vpop.f32.mrf.mxu1  ;;  %v6909_v5 = vld [vmem:[%s10792_s1 + $0x4ac] sm:$0xf] }
 0x43b   :  { %v9482_v59 = vadd.f32 %v3147_v43, %v3059_v53  ;;  %v6244_v53 = vld [vmem:[%s10792_s1 + $0x4b8] sm:$0xf0] }
 0x43c   :  { %v2972_v14 = vadd.f32 %v2971_v58, %v2883_v2  ;;  %v5988_v43 = vld [vmem:[%s10792_s1 + $0x2b8] sm:$0xf0] }
 0x440   :  { %v3060_v23 = vpop.f32.mrf.mxu2 }
 0x441   :  { %v3061_v52 = vadd.f32 %v3060_v23, %v2972_v14  ;;  %v3149_v32 = vpop.f32.mrf.mxu3  ;;  %v2885_v34 = vpop.f32.mrf.mxu0 }
 0x442   :  { %v2886_v22 = vadd.f32 %v2885_v34, %v9262_v3  ;;  %v2974_v51 = vpop.f32.mrf.mxu1 }
 0x443   :  { %v9485_v30 = vadd.f32 %v3149_v32, %v3061_v52 }
 0x444   :  { %v2975_v62 = vadd.f32 %v2974_v51, %v2886_v22  ;;  %3200 = vmatmul.bf16.gmra.mxu0 %v11285_v17  ;;  %3289 = vmatmul.bf16.gmra.mxu1 %v11286_v0  ;;  %v6845_v22 = vld [vmem:[%s10792_s1 + $0x2ac] sm:$0xf]  ;;  %v6247_v51 = vor.u32 %v6909_v5, %v6244_v53  ;;  %v11289_v0 = vld [vmem:[#allocation74_spill] sm:$0xff] }
 0x445   :  { %3378 = vmatmul.bf16.gmra.mxu2 %v11231_v25  ;;  %v6941_v25 = vld [vmem:[%s10792_s1 + $0x5ac] sm:$0xf]  ;;  %v5991_v2 = vor.u32 %v6845_v22, %v5988_v43  ;;  %v6116_v22 = vld [vmem:[%s10792_s1 + $0x3b8] sm:$0xf0] }
 0x446   :  { %3467 = vmatmul.bf16.gmra.mxu3 %v11232_v35  ;;  %v6372_v35 = vld [vmem:[%s10792_s1 + $0x5b8] sm:$0xf0]  ;;  %3718 = vmatpush.bf16.msrb.mxu2 %v6247_v51  ;;  %v6877_v53 = vld [vmem:[%s10792_s1 + $0x3ac] sm:$0xf] }
 0x447   :  { %v6375_v58 = vor.u32 %v6941_v25, %v6372_v35  ;;  %3540 = vmatpush.bf16.msrb.mxu0 %v5991_v2 }
 0x448   :  { %v3063_v41 = vpop.f32.mrf.mxu2 }
 0x449   :  { %v3064_v14 = vadd.f32 %v3063_v41, %v2975_v62  ;;  %v3152_v23 = vpop.f32.mrf.mxu3  ;;  %v2887_v52 = vpop.f32.mrf.mxu0  ;;  %3807 = vmatpush.bf16.msrb.mxu3 %v6375_v58  ;;  %v6119_v62 = vor.u32 %v6877_v53, %v6116_v22 }
 0x44a   :  { %v2888_v32 = vadd.f32 %v2887_v52, %v9262_v3  ;;  %v2976_v34 = vpop.f32.mrf.mxu1  ;;  %v11288_v52 = vld [vmem:[#allocation73_spill] sm:$0xff] }
 0x44b   :  { %v9510_v5 = vadd.f32 %v3152_v23, %v3064_v14  ;;  %3629 = vmatpush.bf16.msrb.mxu1 %v6119_v62 }
 0x44c   :  { %v2977_v43 = vadd.f32 %v2976_v34, %v2888_v32 }
 0x450   :  { %v3065_v25 = vpop.f32.mrf.mxu2 }
 0x451   :  { %v3066_v51 = vadd.f32 %v3065_v25, %v2977_v43  ;;  %v3154_v35 = vpop.f32.mrf.mxu3  ;;  %v2890_v41 = vpop.f32.mrf.mxu0 }
 0x452   :  { %v2891_v2 = vadd.f32 %v2890_v41, %v9262_v3  ;;  %v2979_v58 = vpop.f32.mrf.mxu1 }
 0x453   :  { %v9519_v14 = vadd.f32 %v3154_v35, %v3066_v51 }
 0x454   :  { %v2980_v23 = vadd.f32 %v2979_v58, %v2891_v2  ;;  %3205 = vmatmul.bf16.gmra.mxu0 %v11288_v52  ;;  %3294 = vmatmul.bf16.gmra.mxu1 %v11289_v0 }
 0x455   :  { %11287 = vst [vmem:[#allocation26_spill] sm:$0xff] %v9519_v14  ;;  %3383 = vmatmul.bf16.gmra.mxu2 %v11236_v47  ;;  %v11290_v14 = vld [vmem:[#allocation75_spill] sm:$0xff] }
 0x456   :  { %3472 = vmatmul.bf16.gmra.mxu3 %v11237_v46 }
 0x458   :  { %v3068_v32 = vpop.f32.mrf.mxu2 }
 0x459   :  { %v3069_v34 = vadd.f32 %v3068_v32, %v2980_v23  ;;  %v3157_v53 = vpop.f32.mrf.mxu3  ;;  %v2892_v22 = vpop.f32.mrf.mxu0  ;;  %v11291_v23 = vld [vmem:[#allocation76_spill] sm:$0xff]  ;;  %v6905_v32 = vld [vmem:[%s10792_s1 + $0x48c] sm:$0xf] }
 0x45a   :  { %v2893_v43 = vadd.f32 %v2892_v22, %v9262_v3  ;;  %v2981_v62 = vpop.f32.mrf.mxu1 }
 0x45b   :  { %v9526_v25 = vadd.f32 %v3157_v53, %v3069_v34  ;;  %v6228_v34 = vld [vmem:[%s10792_s1 + $0x498] sm:$0xf0] }
 0x45c   :  { %v2982_v51 = vadd.f32 %v2981_v62, %v2893_v43  ;;  %v5972_v53 = vld [vmem:[%s10792_s1 + $0x298] sm:$0xf0] }
 0x460   :  { %v3070_v35 = vpop.f32.mrf.mxu2 }
 0x461   :  { %v3071_v41 = vadd.f32 %v3070_v35, %v2982_v51  ;;  %v3159_v2 = vpop.f32.mrf.mxu3  ;;  %v2895_v58 = vpop.f32.mrf.mxu0 }
 0x462   :  { %v2896_v0 = vadd.f32 %v2895_v58, %v9262_v3  ;;  %v2984_v52 = vpop.f32.mrf.mxu1 }
 0x463   :  { %v9529_v47 = vadd.f32 %v3159_v2, %v3071_v41 }
 0x464   :  { %v2985_v46 = vadd.f32 %v2984_v52, %v2896_v0  ;;  %3210 = vmatmul.bf16.gmra.mxu0 %v11290_v14  ;;  %3299 = vmatmul.bf16.gmra.mxu1 %v11291_v23  ;;  %v6841_v0 = vld [vmem:[%s10792_s1 + $0x28c] sm:$0xf]  ;;  %v6231_v52 = vor.u32 %v6905_v32, %v6228_v34 }
 0x465   :  { %3388 = vmatmul.bf16.gmra.mxu2 %v11241_v45  ;;  %v6937_v45 = vld [vmem:[%s10792_s1 + $0x58c] sm:$0xf]  ;;  %v5975_v43 = vor.u32 %v6841_v0, %v5972_v53  ;;  %v6100_v0 = vld [vmem:[%s10792_s1 + $0x398] sm:$0xf0] }
 0x466   :  { %3477 = vmatmul.bf16.gmra.mxu3 %v11242_v28  ;;  %v6356_v28 = vld [vmem:[%s10792_s1 + $0x598] sm:$0xf0]  ;;  %3719 = vmatpush.bf16.msrb.mxu2 %v6231_v52  ;;  %v6873_v34 = vld [vmem:[%s10792_s1 + $0x38c] sm:$0xf] }
 0x467   :  { %v6359_v62 = vor.u32 %v6937_v45, %v6356_v28  ;;  %3541 = vmatpush.bf16.msrb.mxu0 %v5975_v43  ;;  %v11294_v23 = vld [vmem:[#allocation79_spill] sm:$0xff] }
 0x468   :  { %v3073_v22 = vpop.f32.mrf.mxu2 }
 0x469   :  { %v3074_v51 = vadd.f32 %v3073_v22, %v2985_v46  ;;  %v3162_v35 = vpop.f32.mrf.mxu3  ;;  %v2897_v41 = vpop.f32.mrf.mxu0  ;;  %3808 = vmatpush.bf16.msrb.mxu3 %v6359_v62  ;;  %v6103_v46 = vor.u32 %v6873_v34, %v6100_v0 }
 0x46a   :  { %v2898_v2 = vadd.f32 %v2897_v41, %v9262_v3  ;;  %v2986_v58 = vpop.f32.mrf.mxu1  ;;  %v11293_v41 = vld [vmem:[#allocation78_spill] sm:$0xff] }
 0x46b   :  { %v9554_v32 = vadd.f32 %v3162_v35, %v3074_v51  ;;  %3630 = vmatpush.bf16.msrb.mxu1 %v6103_v46 }
 0x46c   :  { %v2987_v53 = vadd.f32 %v2986_v58, %v2898_v2 }
 0x470   :  { %v3075_v45 = vpop.f32.mrf.mxu2 }
 0x471   :  { %v3076_v52 = vadd.f32 %v3075_v45, %v2987_v53  ;;  %v3164_v28 = vpop.f32.mrf.mxu3  ;;  %v2900_v22 = vpop.f32.mrf.mxu0 }
 0x472   :  { %v2901_v43 = vadd.f32 %v2900_v22, %v9262_v3  ;;  %v2989_v62 = vpop.f32.mrf.mxu1 }
 0x473   :  { %v9563_v51 = vadd.f32 %v3164_v28, %v3076_v52 }
 0x474   :  { %v2990_v35 = vadd.f32 %v2989_v62, %v2901_v43  ;;  %3215 = vmatmul.bf16.gmra.mxu0 %v11293_v41  ;;  %3304 = vmatmul.bf16.gmra.mxu1 %v11294_v23 }
 0x475   :  { %11292 = vst [vmem:[#allocation27_spill] sm:$0xff] %v9563_v51  ;;  %3393 = vmatmul.bf16.gmra.mxu2 %v11246_v1  ;;  %v11295_v51 = vld [vmem:[#allocation80_spill] sm:$0xff] }
 0x476   :  { %3482 = vmatmul.bf16.gmra.mxu3 %v11247_v40 }
 0x478   :  { %v3078_v2 = vpop.f32.mrf.mxu2 }
 0x479   :  { %v3079_v58 = vadd.f32 %v3078_v2, %v2990_v35  ;;  %v3167_v34 = vpop.f32.mrf.mxu3  ;;  %v2902_v0 = vpop.f32.mrf.mxu0  ;;  %v11296_v35 = vld [vmem:[#allocation81_spill] sm:$0xff]  ;;  %v6901_v2 = vld [vmem:[%s10792_s1 + $0x46c] sm:$0xf] }
 0x47a   :  { %v2903_v53 = vadd.f32 %v2902_v0, %v9262_v3  ;;  %v2991_v46 = vpop.f32.mrf.mxu1 }
 0x47b   :  { %v9570_v45 = vadd.f32 %v3167_v34, %v3079_v58  ;;  %v6212_v58 = vld [vmem:[%s10792_s1 + $0x478] sm:$0xf0] }
 0x47c   :  { %v2992_v52 = vadd.f32 %v2991_v46, %v2903_v53  ;;  %v5956_v34 = vld [vmem:[%s10792_s1 + $0x278] sm:$0xf0] }
 0x480   :  { %v3080_v28 = vpop.f32.mrf.mxu2 }
 0x481   :  { %v3081_v22 = vadd.f32 %v3080_v28, %v2992_v52  ;;  %v3169_v43 = vpop.f32.mrf.mxu3  ;;  %v2905_v62 = vpop.f32.mrf.mxu0 }
 0x482   :  { %v2906_v23 = vadd.f32 %v2905_v62, %v9262_v3  ;;  %v2994_v41 = vpop.f32.mrf.mxu1 }
 0x483   :  { %v9573_v1 = vadd.f32 %v3169_v43, %v3081_v22 }
 0x484   :  { %v2995_v40 = vadd.f32 %v2994_v41, %v2906_v23  ;;  %3220 = vmatmul.bf16.gmra.mxu0 %v11295_v51  ;;  %3309 = vmatmul.bf16.gmra.mxu1 %v11296_v35  ;;  %v6837_v23 = vld [vmem:[%s10792_s1 + $0x26c] sm:$0xf]  ;;  %v6215_v41 = vor.u32 %v6901_v2, %v6212_v58  ;;  %v11299_v35 = vld [vmem:[#allocation84_spill] sm:$0xff] }
 0x485   :  { %3398 = vmatmul.bf16.gmra.mxu2 %v11251_v10  ;;  %v6933_v10 = vld [vmem:[%s10792_s1 + $0x56c] sm:$0xf]  ;;  %v5959_v53 = vor.u32 %v6837_v23, %v5956_v34  ;;  %v6084_v23 = vld [vmem:[%s10792_s1 + $0x378] sm:$0xf0] }
 0x486   :  { %3487 = vmatmul.bf16.gmra.mxu3 %v11252_v27  ;;  %v6340_v27 = vld [vmem:[%s10792_s1 + $0x578] sm:$0xf0]  ;;  %3720 = vmatpush.bf16.msrb.mxu2 %v6215_v41  ;;  %v6869_v58 = vld [vmem:[%s10792_s1 + $0x36c] sm:$0xf] }
 0x487   :  { %v6343_v46 = vor.u32 %v6933_v10, %v6340_v27  ;;  %3542 = vmatpush.bf16.msrb.mxu0 %v5959_v53 }
 0x488   :  { %v3083_v0 = vpop.f32.mrf.mxu2 }
 0x489   :  { %v3084_v52 = vadd.f32 %v3083_v0, %v2995_v40  ;;  %v3172_v28 = vpop.f32.mrf.mxu3  ;;  %v2907_v22 = vpop.f32.mrf.mxu0  ;;  %3809 = vmatpush.bf16.msrb.mxu3 %v6343_v46  ;;  %v6087_v40 = vor.u32 %v6869_v58, %v6084_v23 }
 0x48a   :  { %v2908_v43 = vadd.f32 %v2907_v22, %v9262_v3  ;;  %v2996_v62 = vpop.f32.mrf.mxu1  ;;  %v11298_v22 = vld [vmem:[#allocation83_spill] sm:$0xff] }
 0x48b   :  { %v9598_v2 = vadd.f32 %v3172_v28, %v3084_v52  ;;  %3631 = vmatpush.bf16.msrb.mxu1 %v6087_v40 }
 0x48c   :  { %v2997_v34 = vadd.f32 %v2996_v62, %v2908_v43 }
 0x490   :  { %v3085_v10 = vpop.f32.mrf.mxu2 }
 0x491   :  { %v3086_v41 = vadd.f32 %v3085_v10, %v2997_v34  ;;  %v3174_v27 = vpop.f32.mrf.mxu3  ;;  %v2910_v0 = vpop.f32.mrf.mxu0 }
 0x492   :  { %v2911_v53 = vadd.f32 %v2910_v0, %v9262_v3  ;;  %v2999_v46 = vpop.f32.mrf.mxu1 }
 0x493   :  { %v9607_v52 = vadd.f32 %v3174_v27, %v3086_v41 }
 0x494   :  { %v3000_v28 = vadd.f32 %v2999_v46, %v2911_v53  ;;  %3225 = vmatmul.bf16.gmra.mxu0 %v11298_v22  ;;  %3314 = vmatmul.bf16.gmra.mxu1 %v11299_v35 }
 0x495   :  { %11297 = vst [vmem:[#allocation109_spill] sm:$0xff] %v9607_v52  ;;  %3403 = vmatmul.bf16.gmra.mxu2 %v11256_v56  ;;  %v11300_v52 = vld [vmem:[#allocation85_spill] sm:$0xff] }
 0x496   :  { %3492 = vmatmul.bf16.gmra.mxu3 %v11257_v61 }
 0x498   :  { %v3088_v43 = vpop.f32.mrf.mxu2 }
 0x499   :  { %v3089_v62 = vadd.f32 %v3088_v43, %v3000_v28  ;;  %v3177_v58 = vpop.f32.mrf.mxu3  ;;  %v2912_v23 = vpop.f32.mrf.mxu0  ;;  %v11301_v28 = vld [vmem:[#allocation86_spill] sm:$0xff]  ;;  %v6897_v43 = vld [vmem:[%s10792_s1 + $0x44c] sm:$0xf] }
 0x49a   :  { %v2913_v34 = vadd.f32 %v2912_v23, %v9262_v3  ;;  %v3001_v40 = vpop.f32.mrf.mxu1  ;;  %v9623_v3 = vperm.slane %v9259_v18, 3  ;;  %v5940_v18 = vld [vmem:[%s10792_s1 + $0x258] sm:$0xf0] }
 0x49b   :  { %v9614_v10 = vadd.f32 %v3177_v58, %v3089_v62  ;;  %v6324_v58 = vld [vmem:[%s10792_s1 + $0x558] sm:$0xf0] }
 0x49c   :  { %v3002_v41 = vadd.f32 %v3001_v40, %v2913_v34 }
 0x4a0   :  { %v3090_v27 = vpop.f32.mrf.mxu2 }
 0x4a1   :  { %v3091_v0 = vadd.f32 %v3090_v27, %v3002_v41  ;;  %v3179_v53 = vpop.f32.mrf.mxu3  ;;  %v3191_v46 = vpop.f32.mrf.mxu0 }
 0x4a2   :  { %v3192_v35 = vadd.f32 %v3191_v46, %v9290_v20  ;;  %v3280_v22 = vpop.f32.mrf.mxu1  ;;  %v6196_v20 = vld [vmem:[%s10792_s1 + $0x458] sm:$0xf0]  ;;  %v6865_v46 = vld [vmem:[%s10792_s1 + $0x34c] sm:$0xf] }
 0x4a3   :  { %v9617_v56 = vadd.f32 %v3179_v53, %v3091_v0 }
 0x4a4   :  { %v3281_v61 = vadd.f32 %v3280_v22, %v3192_v35  ;;  %3230 = vmatmul.bf16.gmra.mxu0 %v11300_v52  ;;  %3319 = vmatmul.bf16.gmra.mxu1 %v11301_v28  ;;  %v6199_v35 = vor.u32 %v6897_v43, %v6196_v20  ;;  %v6833_v22 = vld [vmem:[%s10792_s1 + $0x24c] sm:$0xf]  ;;  %v6068_v43 = vld [vmem:[%s10792_s1 + $0x358] sm:$0xf0]  ;;  %v11303_v28 = vld [vmem:[#allocation90_spill] sm:$0xff] }
 0x4a5   :  { %3408 = vmatmul.bf16.gmra.mxu2 %v11261_v11  ;;  %v6929_v11 = vld [vmem:[%s10792_s1 + $0x54c] sm:$0xf]  ;;  %v5943_v62 = vor.u32 %v6833_v22, %v5940_v18  ;;  %v6071_v22 = vor.u32 %v6865_v46, %v6068_v43 }
 0x4a6   :  { %3497 = vmatmul.bf16.gmra.mxu3 %v11262_v12  ;;  %3721 = vmatpush.bf16.msrb.mxu2 %v6199_v35  ;;  %v6327_v41 = vor.u32 %v6929_v11, %v6324_v58  ;;  %v3896_v18 = vmax.f32 %v3281_v61, 0.0 }
 0x4a7   :  { %3543 = vmatpush.bf16.msrb.mxu0 %v5943_v62  ;;  %3632 = vmatpush.bf16.msrb.mxu1 %v6071_v22 }
 0x4a8   :  { %v3369_v12 = vpop.f32.mrf.mxu2  ;;  %3810 = vmatpush.bf16.msrb.mxu3 %v6327_v41 }
 0x4a9   :  { %v3370_v23 = vadd.f32 %v3369_v12, %v9623_v3  ;;  %v3458_v34 = vpop.f32.mrf.mxu3  ;;  %v3193_v40 = vpop.f32.mrf.mxu0 }
 0x4aa   :  { %v3194_v27 = vadd.f32 %v3193_v40, %v9299_v60  ;;  %v3282_v0 = vpop.f32.mrf.mxu1 }
 0x4ab   :  { %v9646_v53 = vadd.f32 %v3458_v34, %v3370_v23 }
 0x4ac   :  { %v3283_v20 = vadd.f32 %v3282_v0, %v3194_v27  ;;  %v11304_v27 = vld [vmem:[#allocation91_spill] sm:$0xff] }
 0x4ae   :  { %v3900_v35 = vmax.f32 %v3283_v20, 0.0 }
 0x4b0   :  { %v9654_v11 = vpack.c.bf16 %v3900_v35, %v3896_v18  ;;  %v3371_v60 = vpop.f32.mrf.mxu2 }
 0x4b1   :  { %v3372_v12 = vadd.f32 %v3371_v60, %v9623_v3  ;;  %v3460_v62 = vpop.f32.mrf.mxu3  ;;  %v3196_v58 = vpop.f32.mrf.mxu0 }
 0x4b2   :  { %11302 = vst [vmem:[#allocation30_spill] sm:$0xff] %v9654_v11  ;;  %v3197_v23 = vadd.f32 %v3196_v58, %v9306_v50  ;;  %v3285_v34 = vpop.f32.mrf.mxu1 }
 0x4b3   :  { %v9658_v40 = vadd.f32 %v3460_v62, %v3372_v12 }
 0x4b4   :  { %v3286_v41 = vadd.f32 %v3285_v34, %v3197_v23  ;;  %3235 = vmatmul.bf16.gmra.mxu0 %v11303_v28  ;;  %3324 = vmatmul.bf16.gmra.mxu1 %v11304_v27 }
 0x4b5   :  { %3413 = vmatmul.bf16.gmra.mxu2 %v11264_v33 }
 0x4b6   :  { %3502 = vmatmul.bf16.gmra.mxu3 %v11265_v38  ;;  %v3904_v35 = vmax.f32 %v3286_v41, 0.0 }
 0x4b8   :  { %v3374_v61 = vpop.f32.mrf.mxu2 }
 0x4b9   :  { %v3375_v0 = vadd.f32 %v3374_v61, %v9623_v3  ;;  %v3463_v46 = vpop.f32.mrf.mxu3  ;;  %v3198_v43 = vpop.f32.mrf.mxu0 }
 0x4ba   :  { %v3199_v20 = vadd.f32 %v3198_v43, %v9309_v54  ;;  %v3287_v50 = vpop.f32.mrf.mxu1  ;;  %v6893_v54 = vld [vmem:[%s10792_s1 + $0x42c] sm:$0xf] }
 0x4bb   :  { %v9666_v22 = vadd.f32 %v3463_v46, %v3375_v0  ;;  %v6829_v0 = vld [vmem:[%s10792_s1 + $0x22c] sm:$0xf]  ;;  %v5924_v46 = vld [vmem:[%s10792_s1 + $0x238] sm:$0xf0] }
 0x4bc   :  { %v3288_v18 = vadd.f32 %v3287_v50, %v3199_v20  ;;  %v5927_v43 = vor.u32 %v6829_v0, %v5924_v46  ;;  %v6308_v20 = vld [vmem:[%s10792_s1 + $0x538] sm:$0xf0] }
 0x4be   :  { %v3908_v60 = vmax.f32 %v3288_v18, 0.0  ;;  %3544 = vmatpush.bf16.msrb.mxu0 %v5927_v43 }
 0x4c0   :  { %v3376_v12 = vpop.f32.mrf.mxu2  ;;  %v9668_v62 = vpack.c.bf16 %v3908_v60, %v3904_v35 }
 0x4c1   :  { %v3377_v33 = vadd.f32 %v3376_v12, %v9623_v3  ;;  %v3465_v58 = vpop.f32.mrf.mxu3  ;;  %v3201_v38 = vpop.f32.mrf.mxu0 }
 0x4c2   :  { %11305 = vst [vmem:[#allocation31_spill] sm:$0xff] %v9668_v62  ;;  %v3202_v23 = vadd.f32 %v3201_v38, %v9334_v16  ;;  %v3290_v34 = vpop.f32.mrf.mxu1  ;;  %v6180_v16 = vld [vmem:[%s10792_s1 + $0x438] sm:$0xf0]  ;;  %v6861_v38 = vld [vmem:[%s10792_s1 + $0x32c] sm:$0xf] }
 0x4c3   :  { %v9672_v61 = vadd.f32 %v3465_v58, %v3377_v33  ;;  %v6183_v41 = vor.u32 %v6893_v54, %v6180_v16  ;;  %v11321_v62 = vld [vmem:[#allocation101_spill] sm:$0xff] }
 0x4c4   :  { %v3291_v11 = vadd.f32 %v3290_v34, %v3202_v23  ;;  %3240 = vmatmul.bf16.gmra.mxu0 %v8485_v55  ;;  %3329 = vmatmul.bf16.gmra.mxu1 %v8490_v39  ;;  %v6052_v23 = vld [vmem:[%s10792_s1 + $0x338] sm:$0xf0] }
 0x4c5   :  { %3418 = vmatmul.bf16.gmra.mxu2 %v11266_v63  ;;  %v6925_v63 = vld [vmem:[%s10792_s1 + $0x52c] sm:$0xf]  ;;  %v6055_v54 = vor.u32 %v6861_v38, %v6052_v23 }
 0x4c6   :  { %3507 = vmatmul.bf16.gmra.mxu3 %v11267_v13  ;;  %3722 = vmatpush.bf16.msrb.mxu2 %v6183_v41  ;;  %v6311_v60 = vor.u32 %v6925_v63, %v6308_v20  ;;  %v3912_v16 = vmax.f32 %v3291_v11, 0.0 }
 0x4c7   :  { %3633 = vmatpush.bf16.msrb.mxu1 %v6055_v54 }
 0x4c8   :  { %v3379_v13 = vpop.f32.mrf.mxu2  ;;  %3811 = vmatpush.bf16.msrb.mxu3 %v6311_v60 }
 0x4c9   :  { %v3380_v50 = vadd.f32 %v3379_v13, %v9623_v3  ;;  %v3468_v18 = vpop.f32.mrf.mxu3  ;;  %v3203_v35 = vpop.f32.mrf.mxu0 }
 0x4ca   :  { %v3204_v12 = vadd.f32 %v3203_v35, %v9343_v57  ;;  %v3292_v33 = vpop.f32.mrf.mxu1 }
 0x4cb   :  { %v9698_v58 = vadd.f32 %v3468_v18, %v3380_v50 }
 0x4cc   :  { %v3293_v34 = vadd.f32 %v3292_v33, %v3204_v12 }
 0x4ce   :  { %v3916_v41 = vmax.f32 %v3293_v34, 0.0 }
 0x4d0   :  { %v3381_v0 = vpop.f32.mrf.mxu2  ;;  %v9706_v57 = vpack.c.bf16 %v3916_v41, %v3912_v16 }
 0x4d1   :  { %v3382_v46 = vadd.f32 %v3381_v0, %v9623_v3  ;;  %v3470_v63 = vpop.f32.mrf.mxu3  ;;  %v3206_v13 = vpop.f32.mrf.mxu0 }
 0x4d2   :  { %11306 = vst [vmem:[#allocation34_spill] sm:$0xff] %v9706_v57  ;;  %v3207_v43 = vadd.f32 %v3206_v13, %v9350_v24  ;;  %v3295_v20 = vpop.f32.mrf.mxu1 }
 0x4d3   :  { %v9710_v50 = vadd.f32 %v3470_v63, %v3382_v46 }
 0x4d4   :  { %v3296_v18 = vadd.f32 %v3295_v20, %v3207_v43  ;;  %3245 = vmatmul.bf16.gmra.mxu0 %v8539_v21  ;;  %3334 = vmatmul.bf16.gmra.mxu1 %v8544_v8  ;;  %v6889_v20 = vld [vmem:[%s10792_s1 + $0x40c] sm:$0xf] }
 0x4d5   :  { %3423 = vmatmul.bf16.gmra.mxu2 %v11268_v15 }
 0x4d6   :  { %3512 = vmatmul.bf16.gmra.mxu3 %v11269_v31  ;;  %v3920_v34 = vmax.f32 %v3296_v18, 0.0 }
 0x4d8   :  { %v3384_v11 = vpop.f32.mrf.mxu2 }
 0x4d9   :  { %v3385_v35 = vadd.f32 %v3384_v11, %v9623_v3  ;;  %v3473_v60 = vpop.f32.mrf.mxu3  ;;  %v3208_v12 = vpop.f32.mrf.mxu0  ;;  %v6825_v11 = vld [vmem:[%s10792_s1 + $0x20c] sm:$0xf] }
 0x4da   :  { %v3209_v33 = vadd.f32 %v3208_v12, %v9353_v26  ;;  %v3297_v24 = vpop.f32.mrf.mxu1  ;;  %v11308_v26 = vld [vmem:[#allocation51_spill] sm:$0xff] }
 0x4db   :  { %v9718_v38 = vadd.f32 %v3473_v60, %v3385_v35  ;;  %v5908_v35 = vld [vmem:[%s10792_s1 + $0x218] sm:$0xf0] }
 0x4dc   :  { %v3298_v23 = vadd.f32 %v3297_v24, %v3209_v33  ;;  %v5911_v12 = vor.u32 %v6825_v11, %v5908_v35  ;;  %v6292_v33 = vld [vmem:[%s10792_s1 + $0x518] sm:$0xf0] }
 0x4de   :  { %v3924_v54 = vmax.f32 %v3298_v23, 0.0  ;;  %3545 = vmatpush.bf16.msrb.mxu0 %v5911_v12 }
 0x4e0   :  { %v3386_v16 = vpop.f32.mrf.mxu2  ;;  %v9720_v41 = vpack.c.bf16 %v3924_v54, %v3920_v34 }
 0x4e1   :  { %v3387_v15 = vadd.f32 %v3386_v16, %v9623_v3  ;;  %v3475_v0 = vpop.f32.mrf.mxu3  ;;  %v3211_v31 = vpop.f32.mrf.mxu0  ;;  %v11309_v16 = vld [vmem:[#allocation19_spill] sm:$0xff] }
 0x4e2   :  { %11307 = vst [vmem:[#allocation35_spill] sm:$0xff] %v9720_v41  ;;  %v3212_v46 = vadd.f32 %v3211_v31, %v9378_v44  ;;  %v3300_v63 = vpop.f32.mrf.mxu1  ;;  %v6164_v44 = vld [vmem:[%s10792_s1 + $0x418] sm:$0xf0] }
 0x4e3   :  { %v9724_v13 = vadd.f32 %v3475_v0, %v3387_v15  ;;  %v6167_v18 = vor.u32 %v6889_v20, %v6164_v44 }
 0x4e4   :  { %v3301_v43 = vadd.f32 %v3300_v63, %v3212_v46  ;;  %3250 = vmatmul.bf16.gmra.mxu0 %v8569_v19  ;;  %3339 = vmatmul.bf16.gmra.mxu1 %v8574_v6  ;;  %v6857_v46 = vld [vmem:[%s10792_s1 + $0x30c] sm:$0xf]  ;;  %v6036_v63 = vld [vmem:[%s10792_s1 + $0x318] sm:$0xf0] }
 0x4e5   :  { %3428 = vmatmul.bf16.gmra.mxu2 %v11270_v4  ;;  %v6921_v4 = vld [vmem:[%s10792_s1 + $0x50c] sm:$0xf]  ;;  %v6039_v20 = vor.u32 %v6857_v46, %v6036_v63 }
 0x4e6   :  { %3517 = vmatmul.bf16.gmra.mxu3 %v11308_v26  ;;  %3723 = vmatpush.bf16.msrb.mxu2 %v6167_v18  ;;  %v6295_v54 = vor.u32 %v6921_v4, %v6292_v33  ;;  %v3928_v44 = vmax.f32 %v3301_v43, 0.0  ;;  %v11313_v43 = vld [vmem:[#allocation54_spill] sm:$0xff] }
 0x4e7   :  { %3634 = vmatpush.bf16.msrb.mxu1 %v6039_v20 }
 0x4e8   :  { %v3389_v60 = vpop.f32.mrf.mxu2  ;;  %3812 = vmatpush.bf16.msrb.mxu3 %v6295_v54  ;;  %v11311_v54 = vld [vmem:[#allocation95_spill] sm:$0xff] }
 0x4e9   :  { %v3390_v24 = vadd.f32 %v3389_v60, %v9623_v3  ;;  %v3478_v23 = vpop.f32.mrf.mxu3  ;;  %v3213_v34 = vpop.f32.mrf.mxu0 }
 0x4ea   :  { %v3214_v15 = vadd.f32 %v3213_v34, %v11309_v16  ;;  %v3302_v0 = vpop.f32.mrf.mxu1  ;;  %v11312_v16 = vld [vmem:[#allocation97_spill] sm:$0xff] }
 0x4eb   :  { %v9750_v31 = vadd.f32 %v3478_v23, %v3390_v24 }
 0x4ec   :  { %v3303_v26 = vadd.f32 %v3302_v0, %v3214_v15  ;;  %v11314_v15 = vld [vmem:[#allocation55_spill] sm:$0xff] }
 0x4ee   :  { %v3932_v18 = vmax.f32 %v3303_v26, 0.0 }
 0x4f0   :  { %v3391_v11 = vpop.f32.mrf.mxu2  ;;  %v9758_v35 = vpack.c.bf16 %v3932_v18, %v3928_v44 }
 0x4f1   :  { %v3392_v4 = vadd.f32 %v3391_v11, %v9623_v3  ;;  %v3480_v60 = vpop.f32.mrf.mxu3  ;;  %v3216_v12 = vpop.f32.mrf.mxu0 }
 0x4f2   :  { %11310 = vst [vmem:[#allocation38_spill] sm:$0xff] %v9758_v35  ;;  %v3217_v33 = vadd.f32 %v3216_v12, %v9394_v29  ;;  %v3305_v24 = vpop.f32.mrf.mxu1 }
 0x4f3   :  { %v9762_v23 = vadd.f32 %v3480_v60, %v3392_v4 }
 0x4f4   :  { %v3306_v34 = vadd.f32 %v3305_v24, %v3217_v33  ;;  %3255 = vmatmul.bf16.gmra.mxu0 %v11311_v54  ;;  %3344 = vmatmul.bf16.gmra.mxu1 %v11312_v16 }
 0x4f5   :  { %3433 = vmatmul.bf16.gmra.mxu2 %v11313_v43 }
 0x4f6   :  { %3522 = vmatmul.bf16.gmra.mxu3 %v11314_v15  ;;  %v3936_v11 = vmax.f32 %v3306_v34, 0.0  ;;  %v11318_v34 = vld [vmem:[#allocation59_spill] sm:$0xff] }
 0x4f8   :  { %v3394_v0 = vpop.f32.mrf.mxu2 }
 0x4f9   :  { %v3395_v46 = vadd.f32 %v3394_v0, %v9623_v3  ;;  %v3483_v63 = vpop.f32.mrf.mxu3  ;;  %v3218_v26 = vpop.f32.mrf.mxu0 }
 0x4fa   :  { %v3219_v20 = vadd.f32 %v3218_v26, %v9397_v36  ;;  %v3307_v29 = vpop.f32.mrf.mxu1  ;;  %v11316_v36 = vld [vmem:[#allocation98_spill] sm:$0xff] }
 0x4fb   :  { %v9770_v44 = vadd.f32 %v3483_v63, %v3395_v46  ;;  %v11317_v46 = vld [vmem:[#allocation100_spill] sm:$0xff] }
 0x4fc   :  { %v3308_v18 = vadd.f32 %v3307_v29, %v3219_v20  ;;  %v6594_v63 = vld [vmem:[%s10795_s3 + $0x170] sm:$0xf]  ;;  %v6967_v29 = vld [vmem:[%s10795_s3 + $0x74] sm:$0xf0] }
 0x4fd   :  { %v6466_v20 = vld [vmem:[%s10795_s3 + $0x70] sm:$0xf] }
 0x4fe   :  { %v3940_v4 = vmax.f32 %v3308_v18, 0.0 }
 0x500   :  { %v3396_v60 = vpop.f32.mrf.mxu2  ;;  %v9772_v12 = vpack.c.bf16 %v3940_v4, %v3936_v11  ;;  %v6467_v11 = vor.u32 %v6967_v29, %v6466_v20  ;;  %v7015_v4 = vld [vmem:[%s10795_s3 + $0x1f4] sm:$0xf0] }
 0x501   :  { %v3397_v33 = vadd.f32 %v3396_v60, %v9623_v3  ;;  %v3485_v24 = vpop.f32.mrf.mxu3  ;;  %v3221_v43 = vpop.f32.mrf.mxu0  ;;  %v6983_v20 = vld [vmem:[%s10795_s3 + $0xf4] sm:$0xf0] }
 0x502   :  { %11315 = vst [vmem:[#allocation39_spill] sm:$0xff] %v9772_v12  ;;  %v3222_v15 = vadd.f32 %v3221_v43, %v9422_v7  ;;  %v3310_v0 = vpop.f32.mrf.mxu1  ;;  %v6999_v7 = vld [vmem:[%s10795_s3 + $0x174] sm:$0xf0]  ;;  %4476 = vmatpush.bf16.msra.mxu0 %v6467_v11 }
 0x503   :  { %v9776_v35 = vadd.f32 %v3485_v24, %v3397_v33  ;;  %v6595_v26 = vor.u32 %v6999_v7, %v6594_v63  ;;  %v6530_v7 = vld [vmem:[%s10795_s3 + $0xf0] sm:$0xf] }
 0x504   :  { %v3311_v41 = vadd.f32 %v3310_v0, %v3222_v15  ;;  %3260 = vmatmul.bf16.gmra.mxu0 %v11316_v36  ;;  %3349 = vmatmul.bf16.gmra.mxu1 %v11317_v46  ;;  %v11319_v15 = vld [vmem:[#allocation22_spill] sm:$0xff] }
 0x505   :  { %3438 = vmatmul.bf16.gmra.mxu2 %v11275_v48  ;;  %v6658_v48 = vld [vmem:[%s10795_s3 + $0x1f0] sm:$0xf] }
 0x506   :  { %3527 = vmatmul.bf16.gmra.mxu3 %v11318_v34  ;;  %4654 = vmatpush.bf16.msra.mxu2 %v6595_v26  ;;  %v6659_v43 = vor.u32 %v7015_v4, %v6658_v48  ;;  %v3944_v12 = vmax.f32 %v3311_v41, 0.0  ;;  %v11323_v41 = vld [vmem:[#allocation62_spill] sm:$0xff] }
 0x508   :  { %v3399_v18 = vpop.f32.mrf.mxu2  ;;  %4743 = vmatpush.bf16.msra.mxu3 %v6659_v43 }
 0x509   :  { %v3400_v60 = vadd.f32 %v3399_v18, %v9623_v3  ;;  %v3488_v33 = vpop.f32.mrf.mxu3  ;;  %v3223_v24 = vpop.f32.mrf.mxu0  ;;  %v6531_v18 = vor.u32 %v6983_v20, %v6530_v7 }
 0x50a   :  { %v3224_v0 = vadd.f32 %v3223_v24, %v11319_v15  ;;  %v3312_v34 = vpop.f32.mrf.mxu1 }
 0x50b   :  { %v9802_v63 = vadd.f32 %v3488_v33, %v3400_v60  ;;  %4565 = vmatpush.bf16.msra.mxu1 %v6531_v18 }
 0x50c   :  { %v3313_v29 = vadd.f32 %v3312_v34, %v3224_v0  ;;  %v11322_v0 = vld [vmem:[#allocation103_spill] sm:$0xff] }
 0x50d   :  { %v11324_v34 = vld [vmem:[#allocation63_spill] sm:$0xff] }
 0x50e   :  { %v3948_v26 = vmax.f32 %v3313_v29, 0.0 }
 0x510   :  { %v3401_v48 = vpop.f32.mrf.mxu2  ;;  %v9810_v4 = vpack.c.bf16 %v3948_v26, %v3944_v12 }
 0x511   :  { %v3402_v11 = vadd.f32 %v3401_v48, %v9623_v3  ;;  %v3490_v60 = vpop.f32.mrf.mxu3  ;;  %v3226_v33 = vpop.f32.mrf.mxu0 }
 0x512   :  { %11320 = vst [vmem:[#allocation42_spill] sm:$0xff] %v9810_v4  ;;  %v3227_v24 = vadd.f32 %v3226_v33, %v9438_v37  ;;  %v3315_v43 = vpop.f32.mrf.mxu1 }
 0x513   :  { %v9814_v15 = vadd.f32 %v3490_v60, %v3402_v11 }
 0x514   :  { %v3316_v57 = vadd.f32 %v3315_v43, %v3227_v24  ;;  %3265 = vmatmul.bf16.gmra.mxu0 %v11321_v62  ;;  %3354 = vmatmul.bf16.gmra.mxu1 %v11322_v0 }
 0x515   :  { %3443 = vmatmul.bf16.gmra.mxu2 %v11323_v41 }
 0x516   :  { %3532 = vmatmul.bf16.gmra.mxu3 %v11324_v34  ;;  %v3952_v11 = vmax.f32 %v3316_v57, 0.0  ;;  %v11328_v57 = vld [vmem:[#allocation67_spill] sm:$0xff] }
 0x518   :  { %v3404_v12 = vpop.f32.mrf.mxu2 }
 0x519   :  { %v3405_v7 = vadd.f32 %v3404_v12, %v9623_v3  ;;  %v3493_v20 = vpop.f32.mrf.mxu3  ;;  %v3228_v29 = vpop.f32.mrf.mxu0 }
 0x51a   :  { %v3229_v18 = vadd.f32 %v3228_v29, %v9441_v9  ;;  %v3317_v37 = vpop.f32.mrf.mxu1  ;;  %v11326_v9 = vld [vmem:[#allocation4_spill] sm:$0xff] }
 0x51b   :  { %v9822_v26 = vadd.f32 %v3493_v20, %v3405_v7  ;;  %v11327_v7 = vld [vmem:[#allocation5_spill] sm:$0xff]  ;;  %v6586_v20 = vld [vmem:[%s10795_s3 + $0x160] sm:$0xf] }
 0x51c   :  { %v3318_v48 = vadd.f32 %v3317_v37, %v3229_v18  ;;  %v6965_v18 = vld [vmem:[%s10795_s3 + $0x64] sm:$0xf0] }
 0x51e   :  { %v3956_v60 = vmax.f32 %v3318_v48, 0.0 }
 0x520   :  { %v3406_v33 = vpop.f32.mrf.mxu2  ;;  %v9824_v24 = vpack.c.bf16 %v3956_v60, %v3952_v11  ;;  %v7013_v11 = vld [vmem:[%s10795_s3 + $0x1e4] sm:$0xf0] }
 0x521   :  { %v3407_v43 = vadd.f32 %v3406_v33, %v9623_v3  ;;  %v3495_v41 = vpop.f32.mrf.mxu3  ;;  %v3231_v34 = vpop.f32.mrf.mxu0 }
 0x522   :  { %11325 = vst [vmem:[#allocation43_spill] sm:$0xff] %v9824_v24  ;;  %v3232_v4 = vadd.f32 %v3231_v34, %v9466_v42  ;;  %v3320_v12 = vpop.f32.mrf.mxu1  ;;  %v6997_v42 = vld [vmem:[%s10795_s3 + $0x164] sm:$0xf0]  ;;  %v11331_v24 = vld [vmem:[#allocation8_spill] sm:$0xff] }
 0x523   :  { %v9828_v0 = vadd.f32 %v3495_v41, %v3407_v43  ;;  %v6587_v29 = vor.u32 %v6997_v42, %v6586_v20  ;;  %v11329_v34 = vld [vmem:[#allocation23_spill] sm:$0xff] }
 0x524   :  { %v3321_v62 = vadd.f32 %v3320_v12, %v3232_v4  ;;  %3546 = vmatmul.bf16.vlgmr.msrb.gmra.mxu0 %v11326_v9  ;;  %3635 = vmatmul.bf16.vlgmr.msrb.gmra.mxu1 %v11327_v7  ;;  %v6458_v4 = vld [vmem:[%s10795_s3 + $0x60] sm:$0xf]  ;;  %v6981_v20 = vld [vmem:[%s10795_s3 + $0xe4] sm:$0xf0] }
 0x525   :  { %3724 = vmatmul.bf16.vlgmr.msrb.gmra.mxu2 %v11280_v49  ;;  %v6650_v49 = vld [vmem:[%s10795_s3 + $0x1e0] sm:$0xf]  ;;  %v6459_v48 = vor.u32 %v6965_v18, %v6458_v4 }
 0x526   :  { %3813 = vmatmul.bf16.vlgmr.msrb.gmra.mxu3 %v11328_v57  ;;  %4655 = vmatpush.bf16.msra.mxu2 %v6587_v29  ;;  %v6651_v41 = vor.u32 %v7013_v11, %v6650_v49  ;;  %v6522_v57 = vld [vmem:[%s10795_s3 + $0xe0] sm:$0xf]  ;;  %v3960_v18 = vmax.f32 %v3321_v62, 0.0  ;;  %v11333_v62 = vld [vmem:[#allocation68_spill] sm:$0xff] }
 0x527   :  { %4477 = vmatpush.bf16.msra.mxu0 %v6459_v48  ;;  %v6523_v4 = vor.u32 %v6981_v20, %v6522_v57 }
 0x528   :  { %v3409_v37 = vpop.f32.mrf.mxu2  ;;  %4744 = vmatpush.bf16.msra.mxu3 %v6651_v41 }
 0x529   :  { %v3410_v60 = vadd.f32 %v3409_v37, %v9623_v3  ;;  %v3498_v33 = vpop.f32.mrf.mxu3  ;;  %v3233_v43 = vpop.f32.mrf.mxu0  ;;  %4566 = vmatpush.bf16.msra.mxu1 %v6523_v4 }
 0x52a   :  { %v3234_v12 = vadd.f32 %v3233_v43, %v11329_v34  ;;  %v3322_v9 = vpop.f32.mrf.mxu1 }
 0x52b   :  { %v9854_v7 = vadd.f32 %v3498_v33, %v3410_v60 }
 0x52c   :  { %v3323_v42 = vadd.f32 %v3322_v9, %v3234_v12  ;;  %v11332_v12 = vld [vmem:[#allocation9_spill] sm:$0xff] }
 0x52d   :  { %v11334_v9 = vld [vmem:[#allocation69_spill] sm:$0xff] }
 0x52e   :  { %v3964_v29 = vmax.f32 %v3323_v42, 0.0 }
 0x530   :  { %v3411_v49 = vpop.f32.mrf.mxu2  ;;  %v9862_v37 = vpack.c.bf16 %v3964_v29, %v3960_v18 }
 0x531   :  { %v3412_v48 = vadd.f32 %v3411_v49, %v9623_v3  ;;  %v3500_v11 = vpop.f32.mrf.mxu3  ;;  %v3236_v60 = vpop.f32.mrf.mxu0 }
 0x532   :  { %11330 = vst [vmem:[#allocation46_spill] sm:$0xff] %v9862_v37  ;;  %v3237_v33 = vadd.f32 %v3236_v60, %v9482_v59  ;;  %v3325_v43 = vpop.f32.mrf.mxu1 }
 0x533   :  { %v9866_v41 = vadd.f32 %v3500_v11, %v3412_v48 }
 0x534   :  { %v3326_v34 = vadd.f32 %v3325_v43, %v3237_v33  ;;  %3551 = vmatmul.bf16.gmra.mxu0 %v11331_v24  ;;  %3640 = vmatmul.bf16.gmra.mxu1 %v11332_v12 }
 0x535   :  { %3729 = vmatmul.bf16.gmra.mxu2 %v11333_v62 }
 0x536   :  { %3818 = vmatmul.bf16.gmra.mxu3 %v11334_v9  ;;  %v3968_v48 = vmax.f32 %v3326_v34, 0.0  ;;  %v11338_v34 = vld [vmem:[#allocation71_spill] sm:$0xff] }
 0x538   :  { %v3414_v57 = vpop.f32.mrf.mxu2 }
 0x539   :  { %v3415_v20 = vadd.f32 %v3414_v57, %v9623_v3  ;;  %v3503_v42 = vpop.f32.mrf.mxu3  ;;  %v3238_v4 = vpop.f32.mrf.mxu0 }
 0x53a   :  { %v3239_v18 = vadd.f32 %v3238_v4, %v9485_v30  ;;  %v3327_v59 = vpop.f32.mrf.mxu1  ;;  %v11336_v30 = vld [vmem:[#allocation12_spill] sm:$0xff] }
 0x53b   :  { %v9874_v29 = vadd.f32 %v3503_v42, %v3415_v20  ;;  %v11337_v20 = vld [vmem:[#allocation13_spill] sm:$0xff]  ;;  %v6578_v42 = vld [vmem:[%s10795_s3 + $0x150] sm:$0xf] }
 0x53c   :  { %v3328_v49 = vadd.f32 %v3327_v59, %v3239_v18  ;;  %v6450_v18 = vld [vmem:[%s10795_s3 + $0x50] sm:$0xf]  ;;  %v6963_v59 = vld [vmem:[%s10795_s3 + $0x54] sm:$0xf0] }
 0x53e   :  { %v3972_v11 = vmax.f32 %v3328_v49, 0.0 }
 0x540   :  { %v3416_v24 = vpop.f32.mrf.mxu2  ;;  %v9876_v60 = vpack.c.bf16 %v3972_v11, %v3968_v48  ;;  %v6451_v48 = vor.u32 %v6963_v59, %v6450_v18  ;;  %v7011_v11 = vld [vmem:[%s10795_s3 + $0x1d4] sm:$0xf0] }
 0x541   :  { %v3417_v33 = vadd.f32 %v3416_v24, %v9623_v3  ;;  %v3505_v43 = vpop.f32.mrf.mxu3  ;;  %v3241_v12 = vpop.f32.mrf.mxu0 }
 0x542   :  { %11335 = vst [vmem:[#allocation47_spill] sm:$0xff] %v9876_v60  ;;  %v3242_v62 = vadd.f32 %v3241_v12, %v9510_v5  ;;  %v3330_v9 = vpop.f32.mrf.mxu1  ;;  %v6995_v5 = vld [vmem:[%s10795_s3 + $0x154] sm:$0xf0]  ;;  %4478 = vmatpush.bf16.msra.mxu0 %v6451_v48  ;;  %v11341_v60 = vld [vmem:[#allocation16_spill] sm:$0xff] }
 0x543   :  { %v9880_v57 = vadd.f32 %v3505_v43, %v3417_v33  ;;  %v6579_v4 = vor.u32 %v6995_v5, %v6578_v42  ;;  %v6979_v42 = vld [vmem:[%s10795_s3 + $0xd4] sm:$0xf0] }
 0x544   :  { %v3331_v37 = vadd.f32 %v3330_v9, %v3242_v62  ;;  %3556 = vmatmul.bf16.gmra.mxu0 %v11336_v30  ;;  %3645 = vmatmul.bf16.gmra.mxu1 %v11337_v20  ;;  %v11339_v62 = vld [vmem:[#allocation26_spill] sm:$0xff] }
 0x545   :  { %3734 = vmatmul.bf16.gmra.mxu2 %v11285_v17  ;;  %v6642_v17 = vld [vmem:[%s10795_s3 + $0x1d0] sm:$0xf] }
 0x546   :  { %3823 = vmatmul.bf16.gmra.mxu3 %v11338_v34  ;;  %4656 = vmatpush.bf16.msra.mxu2 %v6579_v4  ;;  %v6643_v12 = vor.u32 %v7011_v11, %v6642_v17  ;;  %v6514_v34 = vld [vmem:[%s10795_s3 + $0xd0] sm:$0xf]  ;;  %v3976_v59 = vmax.f32 %v3331_v37, 0.0  ;;  %v11343_v37 = vld [vmem:[#allocation73_spill] sm:$0xff] }
 0x547   :  { %v6515_v18 = vor.u32 %v6979_v42, %v6514_v34 }
 0x548   :  { %v3419_v49 = vpop.f32.mrf.mxu2  ;;  %4745 = vmatpush.bf16.msra.mxu3 %v6643_v12 }
 0x549   :  { %v3420_v24 = vadd.f32 %v3419_v49, %v9623_v3  ;;  %v3508_v33 = vpop.f32.mrf.mxu3  ;;  %v3243_v43 = vpop.f32.mrf.mxu0  ;;  %4567 = vmatpush.bf16.msra.mxu1 %v6515_v18 }
 0x54a   :  { %v3244_v9 = vadd.f32 %v3243_v43, %v11339_v62  ;;  %v3332_v30 = vpop.f32.mrf.mxu1 }
 0x54b   :  { %v9906_v20 = vadd.f32 %v3508_v33, %v3420_v24 }
 0x54c   :  { %v3333_v5 = vadd.f32 %v3332_v30, %v3244_v9  ;;  %v11342_v9 = vld [vmem:[#allocation17_spill] sm:$0xff]  ;;  %v11344_v30 = vld [vmem:[#allocation74_spill] sm:$0xff] }
 0x54e   :  { %v3980_v4 = vmax.f32 %v3333_v5, 0.0 }
 0x550   :  { %v3421_v17 = vpop.f32.mrf.mxu2  ;;  %v9914_v49 = vpack.c.bf16 %v3980_v4, %v3976_v59 }
 0x551   :  { %v3422_v48 = vadd.f32 %v3421_v17, %v9623_v3  ;;  %v3510_v11 = vpop.f32.mrf.mxu3  ;;  %v3246_v24 = vpop.f32.mrf.mxu0 }
 0x552   :  { %11340 = vst [vmem:[#allocation50_spill] sm:$0xff] %v9914_v49  ;;  %v3247_v33 = vadd.f32 %v3246_v24, %v9526_v25  ;;  %v3335_v43 = vpop.f32.mrf.mxu1 }
 0x553   :  { %v9918_v12 = vadd.f32 %v3510_v11, %v3422_v48 }
 0x554   :  { %v3336_v62 = vadd.f32 %v3335_v43, %v3247_v33  ;;  %3561 = vmatmul.bf16.gmra.mxu0 %v11341_v60  ;;  %3650 = vmatmul.bf16.gmra.mxu1 %v11342_v9 }
 0x555   :  { %3739 = vmatmul.bf16.gmra.mxu2 %v11343_v37 }
 0x556   :  { %3828 = vmatmul.bf16.gmra.mxu3 %v11344_v30  ;;  %v3984_v48 = vmax.f32 %v3336_v62, 0.0  ;;  %v11348_v62 = vld [vmem:[#allocation76_spill] sm:$0xff] }
 0x558   :  { %v3424_v34 = vpop.f32.mrf.mxu2 }
 0x559   :  { %v3425_v42 = vadd.f32 %v3424_v34, %v9623_v3  ;;  %v3513_v5 = vpop.f32.mrf.mxu3  ;;  %v3248_v18 = vpop.f32.mrf.mxu0 }
 0x55a   :  { %v3249_v59 = vadd.f32 %v3248_v18, %v9529_v47  ;;  %v3337_v25 = vpop.f32.mrf.mxu1  ;;  %v11346_v47 = vld [vmem:[#allocation20_spill] sm:$0xff] }
 0x55b   :  { %v9926_v4 = vadd.f32 %v3513_v5, %v3425_v42  ;;  %v11347_v42 = vld [vmem:[#allocation21_spill] sm:$0xff]  ;;  %v6570_v5 = vld [vmem:[%s10795_s3 + $0x140] sm:$0xf] }
 0x55c   :  { %v3338_v17 = vadd.f32 %v3337_v25, %v3249_v59  ;;  %v6442_v59 = vld [vmem:[%s10795_s3 + $0x40] sm:$0xf]  ;;  %v6961_v25 = vld [vmem:[%s10795_s3 + $0x44] sm:$0xf0] }
 0x55e   :  { %v3988_v11 = vmax.f32 %v3338_v17, 0.0 }
 0x560   :  { %v3426_v60 = vpop.f32.mrf.mxu2  ;;  %v9928_v24 = vpack.c.bf16 %v3988_v11, %v3984_v48  ;;  %v6443_v48 = vor.u32 %v6961_v25, %v6442_v59  ;;  %v7009_v11 = vld [vmem:[%s10795_s3 + $0x1c4] sm:$0xf0] }
 0x561   :  { %v3427_v33 = vadd.f32 %v3426_v60, %v9623_v3  ;;  %v3515_v43 = vpop.f32.mrf.mxu3  ;;  %v3251_v9 = vpop.f32.mrf.mxu0 }
 0x562   :  { %11345 = vst [vmem:[#allocation58_spill] sm:$0xff] %v9928_v24  ;;  %v3252_v37 = vadd.f32 %v3251_v9, %v9554_v32  ;;  %v3340_v30 = vpop.f32.mrf.mxu1  ;;  %v6993_v32 = vld [vmem:[%s10795_s3 + $0x144] sm:$0xf0]  ;;  %4479 = vmatpush.bf16.msra.mxu0 %v6443_v48  ;;  %v11351_v24 = vld [vmem:[#allocation24_spill] sm:$0xff] }
 0x563   :  { %v9932_v34 = vadd.f32 %v3515_v43, %v3427_v33  ;;  %v6571_v18 = vor.u32 %v6993_v32, %v6570_v5  ;;  %v6977_v5 = vld [vmem:[%s10795_s3 + $0xc4] sm:$0xf0] }
 0x564   :  { %v3341_v49 = vadd.f32 %v3340_v30, %v3252_v37  ;;  %3566 = vmatmul.bf16.gmra.mxu0 %v11346_v47  ;;  %3655 = vmatmul.bf16.gmra.mxu1 %v11347_v42  ;;  %v11349_v37 = vld [vmem:[#allocation27_spill] sm:$0xff] }
 0x565   :  { %3744 = vmatmul.bf16.gmra.mxu2 %v11290_v14  ;;  %v6634_v14 = vld [vmem:[%s10795_s3 + $0x1c0] sm:$0xf] }
 0x566   :  { %3833 = vmatmul.bf16.gmra.mxu3 %v11348_v62  ;;  %4657 = vmatpush.bf16.msra.mxu2 %v6571_v18  ;;  %v6635_v9 = vor.u32 %v7009_v11, %v6634_v14  ;;  %v6506_v62 = vld [vmem:[%s10795_s3 + $0xc0] sm:$0xf]  ;;  %v3992_v25 = vmax.f32 %v3341_v49, 0.0 }
 0x567   :  { %v6507_v59 = vor.u32 %v6977_v5, %v6506_v62  ;;  %v11353_v49 = vld [vmem:[#allocation78_spill] sm:$0xff] }
 0x568   :  { %v3429_v17 = vpop.f32.mrf.mxu2  ;;  %4746 = vmatpush.bf16.msra.mxu3 %v6635_v9 }
 0x569   :  { %v3430_v60 = vadd.f32 %v3429_v17, %v9623_v3  ;;  %v3518_v33 = vpop.f32.mrf.mxu3  ;;  %v3253_v43 = vpop.f32.mrf.mxu0  ;;  %4568 = vmatpush.bf16.msra.mxu1 %v6507_v59 }
 0x56a   :  { %v3254_v30 = vadd.f32 %v3253_v43, %v11349_v37  ;;  %v3342_v47 = vpop.f32.mrf.mxu1 }
 0x56b   :  { %v9958_v42 = vadd.f32 %v3518_v33, %v3430_v60 }
 0x56c   :  { %v3343_v32 = vadd.f32 %v3342_v47, %v3254_v30  ;;  %v11352_v30 = vld [vmem:[#allocation25_spill] sm:$0xff]  ;;  %v11354_v47 = vld [vmem:[#allocation79_spill] sm:$0xff] }
 0x56e   :  { %v3996_v18 = vmax.f32 %v3343_v32, 0.0 }
 0x570   :  { %v3431_v14 = vpop.f32.mrf.mxu2  ;;  %v9966_v17 = vpack.c.bf16 %v3996_v18, %v3992_v25 }
 0x571   :  { %v3432_v48 = vadd.f32 %v3431_v14, %v9623_v3  ;;  %v3520_v11 = vpop.f32.mrf.mxu3  ;;  %v3256_v60 = vpop.f32.mrf.mxu0 }
 0x572   :  { %11350 = vst [vmem:[#allocation66_spill] sm:$0xff] %v9966_v17  ;;  %v3257_v33 = vadd.f32 %v3256_v60, %v9570_v45  ;;  %v3345_v43 = vpop.f32.mrf.mxu1 }
 0x573   :  { %v9970_v9 = vadd.f32 %v3520_v11, %v3432_v48 }
 0x574   :  { %v3346_v37 = vadd.f32 %v3345_v43, %v3257_v33  ;;  %3571 = vmatmul.bf16.gmra.mxu0 %v11351_v24  ;;  %3660 = vmatmul.bf16.gmra.mxu1 %v11352_v30 }
 0x575   :  { %3749 = vmatmul.bf16.gmra.mxu2 %v11353_v49 }
 0x576   :  { %3838 = vmatmul.bf16.gmra.mxu3 %v11354_v47  ;;  %v4000_v48 = vmax.f32 %v3346_v37, 0.0  ;;  %v11358_v37 = vld [vmem:[#allocation81_spill] sm:$0xff] }
 0x578   :  { %v3434_v62 = vpop.f32.mrf.mxu2 }
 0x579   :  { %v3435_v5 = vadd.f32 %v3434_v62, %v9623_v3  ;;  %v3523_v32 = vpop.f32.mrf.mxu3  ;;  %v3258_v59 = vpop.f32.mrf.mxu0 }
 0x57a   :  { %v3259_v25 = vadd.f32 %v3258_v59, %v9573_v1  ;;  %v3347_v45 = vpop.f32.mrf.mxu1  ;;  %v11356_v1 = vld [vmem:[#allocation28_spill] sm:$0xff] }
 0x57b   :  { %v9978_v18 = vadd.f32 %v3523_v32, %v3435_v5  ;;  %v11357_v5 = vld [vmem:[#allocation29_spill] sm:$0xff]  ;;  %v6562_v32 = vld [vmem:[%s10795_s3 + $0x130] sm:$0xf] }
 0x57c   :  { %v3348_v14 = vadd.f32 %v3347_v45, %v3259_v25  ;;  %v6434_v25 = vld [vmem:[%s10795_s3 + $0x30] sm:$0xf]  ;;  %v6959_v45 = vld [vmem:[%s10795_s3 + $0x34] sm:$0xf0] }
 0x57e   :  { %v4004_v11 = vmax.f32 %v3348_v14, 0.0 }
 0x580   :  { %v3436_v24 = vpop.f32.mrf.mxu2  ;;  %v9980_v60 = vpack.c.bf16 %v4004_v11, %v4000_v48  ;;  %v6435_v48 = vor.u32 %v6959_v45, %v6434_v25  ;;  %v7007_v11 = vld [vmem:[%s10795_s3 + $0x1b4] sm:$0xf0] }
 0x581   :  { %v3437_v33 = vadd.f32 %v3436_v24, %v9623_v3  ;;  %v3525_v43 = vpop.f32.mrf.mxu3  ;;  %v3261_v30 = vpop.f32.mrf.mxu0 }
 0x582   :  { %11355 = vst [vmem:[#allocation70_spill] sm:$0xff] %v9980_v60  ;;  %v3262_v49 = vadd.f32 %v3261_v30, %v9598_v2  ;;  %v3350_v47 = vpop.f32.mrf.mxu1  ;;  %v6991_v2 = vld [vmem:[%s10795_s3 + $0x134] sm:$0xf0]  ;;  %4480 = vmatpush.bf16.msra.mxu0 %v6435_v48 }
 0x583   :  { %v9984_v62 = vadd.f32 %v3525_v43, %v3437_v33  ;;  %v6563_v59 = vor.u32 %v6991_v2, %v6562_v32  ;;  %v6498_v32 = vld [vmem:[%s10795_s3 + $0xb0] sm:$0xf]  ;;  %v6975_v2 = vld [vmem:[%s10795_s3 + $0xb4] sm:$0xf0] }
 0x584   :  { %v3351_v17 = vadd.f32 %v3350_v47, %v3262_v49  ;;  %3576 = vmatmul.bf16.gmra.mxu0 %v11356_v1  ;;  %3665 = vmatmul.bf16.gmra.mxu1 %v11357_v5  ;;  %v11359_v49 = vld [vmem:[#allocation109_spill] sm:$0xff] }
 0x585   :  { %3754 = vmatmul.bf16.gmra.mxu2 %v11295_v51  ;;  %v6626_v51 = vld [vmem:[%s10795_s3 + $0x1b0] sm:$0xf] }
 0x586   :  { %3843 = vmatmul.bf16.gmra.mxu3 %v11358_v37  ;;  %4658 = vmatpush.bf16.msra.mxu2 %v6563_v59  ;;  %v6627_v30 = vor.u32 %v7007_v11, %v6626_v51  ;;  %v4008_v25 = vmax.f32 %v3351_v17, 0.0  ;;  %v6499_v59 = vor.u32 %v6975_v2, %v6498_v32  ;;  %v11363_v17 = vld [vmem:[#allocation83_spill] sm:$0xff] }
 0x588   :  { %v3439_v14 = vpop.f32.mrf.mxu2  ;;  %4747 = vmatpush.bf16.msra.mxu3 %v6627_v30  ;;  %4569 = vmatpush.bf16.msra.mxu1 %v6499_v59 }
 0x589   :  { %v3440_v24 = vadd.f32 %v3439_v14, %v9623_v3  ;;  %v3528_v33 = vpop.f32.mrf.mxu3  ;;  %v3263_v43 = vpop.f32.mrf.mxu0 }
 0x58a   :  { %v3264_v47 = vadd.f32 %v3263_v43, %v11359_v49  ;;  %v3352_v1 = vpop.f32.mrf.mxu1 }
 0x58b   :  { %v10010_v5 = vadd.f32 %v3528_v33, %v3440_v24 }
 0x58c   :  { %v3353_v37 = vadd.f32 %v3352_v1, %v3264_v47  ;;  %v11361_v47 = vld [vmem:[#allocation32_spill] sm:$0xff]  ;;  %v11362_v1 = vld [vmem:[#allocation33_spill] sm:$0xff] }
 0x58e   :  { %v4012_v45 = vmax.f32 %v3353_v37, 0.0  ;;  %v11364_v37 = vld [vmem:[#allocation84_spill] sm:$0xff] }
 0x590   :  { %v3441_v51 = vpop.f32.mrf.mxu2  ;;  %v10018_v14 = vpack.c.bf16 %v4012_v45, %v4008_v25 }
 0x591   :  { %v3442_v48 = vadd.f32 %v3441_v51, %v9623_v3  ;;  %v3530_v11 = vpop.f32.mrf.mxu3  ;;  %v3266_v24 = vpop.f32.mrf.mxu0 }
 0x592   :  { %11360 = vst [vmem:[#allocation75_spill] sm:$0xff] %v10018_v14  ;;  %v3267_v33 = vadd.f32 %v3266_v24, %v9614_v10  ;;  %v3355_v43 = vpop.f32.mrf.mxu1 }
 0x593   :  { %v10022_v30 = vadd.f32 %v3530_v11, %v3442_v48 }
 0x594   :  { %v3356_v49 = vadd.f32 %v3355_v43, %v3267_v33  ;;  %3581 = vmatmul.bf16.gmra.mxu0 %v11361_v47  ;;  %3670 = vmatmul.bf16.gmra.mxu1 %v11362_v1 }
 0x595   :  { %3759 = vmatmul.bf16.gmra.mxu2 %v11363_v17 }
 0x596   :  { %3848 = vmatmul.bf16.gmra.mxu3 %v11364_v37  ;;  %v4016_v11 = vmax.f32 %v3356_v49, 0.0  ;;  %v11368_v49 = vld [vmem:[#allocation86_spill] sm:$0xff] }
 0x598   :  { %v3444_v32 = vpop.f32.mrf.mxu2 }
 0x599   :  { %v3445_v2 = vadd.f32 %v3444_v32, %v9623_v3  ;;  %v3533_v25 = vpop.f32.mrf.mxu3  ;;  %v3268_v45 = vpop.f32.mrf.mxu0 }
 0x59a   :  { %v3269_v59 = vadd.f32 %v3268_v45, %v9617_v56  ;;  %v3357_v10 = vpop.f32.mrf.mxu1  ;;  %v11366_v56 = vld [vmem:[#allocation36_spill] sm:$0xff] }
 0x59b   :  { %v10030_v51 = vadd.f32 %v3533_v25, %v3445_v2  ;;  %v11367_v2 = vld [vmem:[#allocation37_spill] sm:$0xff]  ;;  %v6426_v25 = vld [vmem:[%s10795_s3 + $0x20] sm:$0xf] }
 0x59c   :  { %v3358_v48 = vadd.f32 %v3357_v10, %v3269_v59  ;;  %v6957_v59 = vld [vmem:[%s10795_s3 + $0x24] sm:$0xf0] }
 0x59d   :  { %v7005_v10 = vld [vmem:[%s10795_s3 + $0x1a4] sm:$0xf0] }
 0x59e   :  { %v4020_v24 = vmax.f32 %v3358_v48, 0.0 }
 0x5a0   :  { %v3446_v33 = vpop.f32.mrf.mxu2  ;;  %v10032_v43 = vpack.c.bf16 %v4020_v24, %v4016_v11  ;;  %v6427_v11 = vor.u32 %v6957_v59, %v6426_v25 }
 0x5a1   :  { %v3447_v47 = vadd.f32 %v3446_v33, %v9623_v3  ;;  %v3535_v1 = vpop.f32.mrf.mxu3  ;;  %v3547_v17 = vpop.f32.mrf.mxu0  ;;  %v6554_v3 = vld [vmem:[%s10795_s3 + $0x120] sm:$0xf] }
 0x5a2   :  { %11365 = vst [vmem:[#allocation80_spill] sm:$0xff] %v10032_v43  ;;  %v3548_v37 = vadd.f32 %v3547_v17, %v9646_v53  ;;  %v3636_v32 = vpop.f32.mrf.mxu1  ;;  %v6989_v53 = vld [vmem:[%s10795_s3 + $0x124] sm:$0xf0]  ;;  %4481 = vmatpush.bf16.msra.mxu0 %v6427_v11 }
 0x5a3   :  { %v10036_v14 = vadd.f32 %v3535_v1, %v3447_v47  ;;  %v6555_v45 = vor.u32 %v6989_v53, %v6554_v3 }
 0x5a4   :  { %v3637_v60 = vadd.f32 %v3636_v32, %v3548_v37  ;;  %3586 = vmatmul.bf16.gmra.mxu0 %v11366_v56  ;;  %3675 = vmatmul.bf16.gmra.mxu1 %v11367_v2  ;;  %v6490_v2 = vld [vmem:[%s10795_s3 + $0xa0] sm:$0xf] }
 0x5a5   :  { %3764 = vmatmul.bf16.gmra.mxu2 %v11300_v52  ;;  %v6618_v52 = vld [vmem:[%s10795_s3 + $0x1a0] sm:$0xf] }
 0x5a6   :  { %3853 = vmatmul.bf16.gmra.mxu3 %v11368_v49  ;;  %v6619_v24 = vor.u32 %v7005_v10, %v6618_v52  ;;  %4659 = vmatpush.bf16.msra.mxu2 %v6555_v45  ;;  %v6973_v49 = vld [vmem:[%s10795_s3 + $0xa4] sm:$0xf0] }
 0x5a7   :  { %v6491_v3 = vor.u32 %v6973_v49, %v6490_v2 }
 0x5a8   :  { %v3725_v48 = vpop.f32.mrf.mxu2  ;;  %4748 = vmatpush.bf16.msra.mxu3 %v6619_v24 }
 0x5a9   :  { %v3726_v33 = vadd.f32 %v3725_v48, %v3637_v60  ;;  %v3814_v47 = vpop.f32.mrf.mxu3  ;;  %v3549_v1 = vpop.f32.mrf.mxu0  ;;  %4570 = vmatpush.bf16.msra.mxu1 %v6491_v3  ;;  %v11369_v48 = vld [vmem:[#allocation40_spill] sm:$0xff] }
 0x5aa   :  { %v3550_v17 = vadd.f32 %v3549_v1, %v9658_v40  ;;  %v3638_v37 = vpop.f32.mrf.mxu1 }
 0x5ab   :  { %v3815_v32 = vadd.f32 %v3814_v47, %v3726_v33  ;;  %v11370_v33 = vld [vmem:[#allocation41_spill] sm:$0xff] }
 0x5ac   :  { %v3639_v56 = vadd.f32 %v3638_v37, %v3550_v17 }
 0x5ad   :  { %v3897_v11 = vmax.f32 %v3815_v32, 0.0 }
 0x5b0   :  { %v3727_v60 = vpop.f32.mrf.mxu2 }
 0x5b1   :  { %v3728_v53 = vadd.f32 %v3727_v60, %v3639_v56  ;;  %v3816_v25 = vpop.f32.mrf.mxu3  ;;  %v3552_v45 = vpop.f32.mrf.mxu0 }
 0x5b2   :  { %v3553_v40 = vadd.f32 %v3552_v45, %v9666_v22  ;;  %v3641_v59 = vpop.f32.mrf.mxu1 }
 0x5b3   :  { %v3817_v52 = vadd.f32 %v3816_v25, %v3728_v53 }
 0x5b4   :  { %v3642_v10 = vadd.f32 %v3641_v59, %v3553_v40  ;;  %3591 = vmatmul.bf16.gmra.mxu0 %v11369_v48  ;;  %3680 = vmatmul.bf16.gmra.mxu1 %v11370_v33  ;;  %v11371_v59 = vld [vmem:[#allocation44_spill] sm:$0xff]  ;;  %v11372_v48 = vld [vmem:[#allocation45_spill] sm:$0xff] }
 0x5b5   :  { %v3901_v24 = vmax.f32 %v3817_v52, 0.0  ;;  %3769 = vmatmul.bf16.gmra.mxu2 %v11303_v28  ;;  %v6955_v33 = vld [vmem:[%s10795_s3 + $0x14] sm:$0xf0] }
 0x5b6   :  { %3858 = vmatmul.bf16.gmra.mxu3 %v11304_v27 }
 0x5b7   :  { %v10072_v47 = vpack.c.bf16 %v3901_v24, %v3897_v11  ;;  %v6418_v11 = vld [vmem:[%s10795_s3 + $0x10] sm:$0xf] }
 0x5b8   :  { %v3730_v1 = vpop.f32.mrf.mxu2 }
 0x5b9   :  { %v3731_v17 = vadd.f32 %v3730_v1, %v3642_v10  ;;  %v3819_v37 = vpop.f32.mrf.mxu3  ;;  %v3554_v56 = vpop.f32.mrf.mxu0 }
 0x5ba   :  { %v3555_v22 = vadd.f32 %v3554_v56, %v9672_v61  ;;  %v3643_v2 = vpop.f32.mrf.mxu1  ;;  %v6546_v61 = vld [vmem:[%s10795_s3 + $0x110] sm:$0xf] }
 0x5bb   :  { %v3820_v49 = vadd.f32 %v3819_v37, %v3731_v17  ;;  %v6419_v37 = vor.u32 %v6955_v33, %v6418_v11  ;;  %v11374_v33 = vld [vmem:[#allocation49_spill] sm:$0xff] }
 0x5bc   :  { %v3644_v3 = vadd.f32 %v3643_v2, %v3555_v22 }
 0x5bd   :  { %v3905_v52 = vmax.f32 %v3820_v49, 0.0  ;;  %4482 = vmatpush.bf16.msra.mxu0 %v6419_v37 }
 0x5c0   :  { %v3732_v60 = vpop.f32.mrf.mxu2 }
 0x5c1   :  { %v3733_v32 = vadd.f32 %v3732_v60, %v3644_v3  ;;  %v3821_v53 = vpop.f32.mrf.mxu3  ;;  %v3557_v25 = vpop.f32.mrf.mxu0 }
 0x5c2   :  { %v3558_v45 = vadd.f32 %v3557_v25, %v9698_v58  ;;  %v3646_v28 = vpop.f32.mrf.mxu1  ;;  %v6987_v58 = vld [vmem:[%s10795_s3 + $0x114] sm:$0xf0]  ;;  %v6482_v25 = vld [vmem:[%s10795_s3 + $0x90] sm:$0xf] }
 0x5c3   :  { %v3822_v40 = vadd.f32 %v3821_v53, %v3733_v32  ;;  %v6547_v24 = vor.u32 %v6987_v58, %v6546_v61  ;;  %v11373_v58 = vld [vmem:[#allocation48_spill] sm:$0xff] }
 0x5c4   :  { %v3647_v27 = vadd.f32 %v3646_v28, %v3558_v45  ;;  %3596 = vmatmul.bf16.gmra.mxu0 %v11371_v59  ;;  %3685 = vmatmul.bf16.gmra.mxu1 %v11372_v48  ;;  %v6971_v45 = vld [vmem:[%s10795_s3 + $0x94] sm:$0xf0] }
 0x5c5   :  { %v3909_v10 = vmax.f32 %v3822_v40, 0.0  ;;  %3774 = vmatmul.bf16.gmra.mxu2 %v8485_v55  ;;  %v6610_v55 = vld [vmem:[%s10795_s3 + $0x190] sm:$0xf]  ;;  %v6483_v28 = vor.u32 %v6971_v45, %v6482_v25 }
 0x5c6   :  { %3863 = vmatmul.bf16.gmra.mxu3 %v8490_v39  ;;  %v7003_v39 = vld [vmem:[%s10795_s3 + $0x194] sm:$0xf0]  ;;  %4660 = vmatpush.bf16.msra.mxu2 %v6547_v24 }
 0x5c7   :  { %v10098_v1 = vpack.c.bf16 %v3909_v10, %v3905_v52  ;;  %v6611_v56 = vor.u32 %v7003_v39, %v6610_v55  ;;  %4571 = vmatpush.bf16.msra.mxu1 %v6483_v28  ;;  %v11375_v28 = vld [vmem:[#allocation52_spill] sm:$0xff] }
 0x5c8   :  { %v3735_v17 = vpop.f32.mrf.mxu2 }
 0x5c9   :  { %v3736_v22 = vadd.f32 %v3735_v17, %v3647_v27  ;;  %v3824_v2 = vpop.f32.mrf.mxu3  ;;  %v3559_v49 = vpop.f32.mrf.mxu0  ;;  %4749 = vmatpush.bf16.msra.mxu3 %v6611_v56 }
 0x5ca   :  { %v3560_v3 = vadd.f32 %v3559_v49, %v9710_v50  ;;  %v3648_v60 = vpop.f32.mrf.mxu1 }
 0x5cb   :  { %v3825_v32 = vadd.f32 %v3824_v2, %v3736_v22 }
 0x5cc   :  { %v3649_v53 = vadd.f32 %v3648_v60, %v3560_v3 }
 0x5cd   :  { %v3913_v11 = vmax.f32 %v3825_v32, 0.0 }
 0x5d0   :  { %v3737_v40 = vpop.f32.mrf.mxu2 }
 0x5d1   :  { %v3738_v27 = vadd.f32 %v3737_v40, %v3649_v53  ;;  %v3826_v59 = vpop.f32.mrf.mxu3  ;;  %v3562_v52 = vpop.f32.mrf.mxu0 }
 0x5d2   :  { %v3563_v50 = vadd.f32 %v3562_v52, %v9718_v38  ;;  %v3651_v10 = vpop.f32.mrf.mxu1  ;;  %v6410_v52 = vld [vmem:[%s10795_s3] sm:$0xf] }
 0x5d3   :  { %v3827_v48 = vadd.f32 %v3826_v59, %v3738_v27  ;;  %v11376_v59 = vld [vmem:[#allocation53_spill] sm:$0xff] }
 0x5d4   :  { %v3652_v61 = vadd.f32 %v3651_v10, %v3563_v50  ;;  %3601 = vmatmul.bf16.gmra.mxu0 %v11373_v58  ;;  %3690 = vmatmul.bf16.gmra.mxu1 %v11374_v33  ;;  %v6953_v10 = vld [vmem:[%s10795_s3 + $0x4] sm:$0xf0] }
 0x5d5   :  { %v3917_v24 = vmax.f32 %v3827_v48, 0.0  ;;  %3779 = vmatmul.bf16.gmra.mxu2 %v8539_v21  ;;  %v6411_v58 = vor.u32 %v6953_v10, %v6410_v52 }
 0x5d6   :  { %3868 = vmatmul.bf16.gmra.mxu3 %v8544_v8 }
 0x5d7   :  { %v10112_v55 = vpack.c.bf16 %v3917_v24, %v3913_v11  ;;  %4483 = vmatpush.bf16.msra.mxu0 %v6411_v58 }
 0x5d8   :  { %v3740_v39 = vpop.f32.mrf.mxu2 }
 0x5d9   :  { %v3741_v17 = vadd.f32 %v3740_v39, %v3652_v61  ;;  %v3829_v37 = vpop.f32.mrf.mxu3  ;;  %v3564_v56 = vpop.f32.mrf.mxu0 }
 0x5da   :  { %v3565_v38 = vadd.f32 %v3564_v56, %v9724_v13  ;;  %v3653_v22 = vpop.f32.mrf.mxu1  ;;  %v6538_v13 = vld [vmem:[%s10795_s3 + $0x100] sm:$0xf] }
 0x5db   :  { %v3830_v2 = vadd.f32 %v3829_v37, %v3741_v17 }
 0x5dc   :  { %v3654_v49 = vadd.f32 %v3653_v22, %v3565_v38  ;;  %v6474_v22 = vld [vmem:[%s10795_s3 + $0x80] sm:$0xf] }
 0x5dd   :  { %v3921_v40 = vmax.f32 %v3830_v2, 0.0  ;;  %v6969_v2 = vld [vmem:[%s10795_s3 + $0x84] sm:$0xf0] }
 0x5e0   :  { %v3742_v3 = vpop.f32.mrf.mxu2 }
 0x5e1   :  { %v3743_v60 = vadd.f32 %v3742_v3, %v3654_v49  ;;  %v3831_v32 = vpop.f32.mrf.mxu3  ;;  %v3567_v53 = vpop.f32.mrf.mxu0  ;;  %v6475_v49 = vor.u32 %v6969_v2, %v6474_v22  ;;  %v6966_v22 = vld [vmem:[%s10795_s3 + $0x74] sm:$0xf] }
 0x5e2   :  { %v3568_v25 = vadd.f32 %v3567_v53, %v9750_v31  ;;  %v3656_v21 = vpop.f32.mrf.mxu1  ;;  %v6985_v31 = vld [vmem:[%s10795_s3 + $0x104] sm:$0xf0] }
 0x5e3   :  { %v3832_v45 = vadd.f32 %v3831_v32, %v3743_v60  ;;  %v6539_v50 = vor.u32 %v6985_v31, %v6538_v13  ;;  %4572 = vmatpush.bf16.msra.mxu1 %v6475_v49  ;;  %v6468_v49 = vld [vmem:[%s10795_s3 + $0x78] sm:$0xf0] }
 0x5e4   :  { %v3657_v8 = vadd.f32 %v3656_v21, %v3568_v25  ;;  %3606 = vmatmul.bf16.gmra.mxu0 %v11375_v28  ;;  %3695 = vmatmul.bf16.gmra.mxu1 %v11376_v59 }
 0x5e5   :  { %v3925_v27 = vmax.f32 %v3832_v45, 0.0  ;;  %3784 = vmatmul.bf16.gmra.mxu2 %v8569_v19  ;;  %v6602_v19 = vld [vmem:[%s10795_s3 + $0x180] sm:$0xf] }
 0x5e6   :  { %3873 = vmatmul.bf16.gmra.mxu3 %v8574_v6  ;;  %v7001_v6 = vld [vmem:[%s10795_s3 + $0x184] sm:$0xf0]  ;;  %4661 = vmatpush.bf16.msra.mxu2 %v6539_v50 }
 0x5e7   :  { %v10138_v48 = vpack.c.bf16 %v3925_v27, %v3921_v40  ;;  %v6603_v11 = vor.u32 %v7001_v6, %v6602_v19  ;;  %v11378_v27 = vld [vmem:[#allocation57_spill] sm:$0xff] }
 0x5e8   :  { %v3745_v61 = vpop.f32.mrf.mxu2 }
 0x5e9   :  { %v3746_v24 = vadd.f32 %v3745_v61, %v3657_v8  ;;  %v3834_v33 = vpop.f32.mrf.mxu3  ;;  %v3569_v39 = vpop.f32.mrf.mxu0  ;;  %4750 = vmatpush.bf16.msra.mxu3 %v6603_v11  ;;  %v11377_v8 = vld [vmem:[#allocation56_spill] sm:$0xff] }
 0x5ea   :  { %v3570_v17 = vadd.f32 %v3569_v39, %v9762_v23  ;;  %v3658_v37 = vpop.f32.mrf.mxu1 }
 0x5eb   :  { %v3835_v56 = vadd.f32 %v3834_v33, %v3746_v24 }
 0x5ec   :  { %v3659_v38 = vadd.f32 %v3658_v37, %v3570_v17  ;;  %v11379_v17 = vld [vmem:[#allocation60_spill] sm:$0xff] }
 0x5ed   :  { %v3929_v28 = vmax.f32 %v3835_v56, 0.0 }
 0x5f0   :  { %v3747_v3 = vpop.f32.mrf.mxu2 }
 0x5f1   :  { %v3748_v60 = vadd.f32 %v3747_v3, %v3659_v38  ;;  %v3836_v32 = vpop.f32.mrf.mxu3  ;;  %v3572_v53 = vpop.f32.mrf.mxu0  ;;  %v11380_v38 = vld [vmem:[#allocation61_spill] sm:$0xff] }
 0x5f2   :  { %v3573_v23 = vadd.f32 %v3572_v53, %v9770_v44  ;;  %v3661_v25 = vpop.f32.mrf.mxu1 }
 0x5f3   :  { %v3837_v21 = vadd.f32 %v3836_v32, %v3748_v60  ;;  %v6471_v32 = vor.u32 %v6966_v22, %v6468_v49 }
 0x5f4   :  { %v3662_v45 = vadd.f32 %v3661_v25, %v3573_v23  ;;  %3611 = vmatmul.bf16.gmra.mxu0 %v11377_v8  ;;  %3700 = vmatmul.bf16.gmra.mxu1 %v11378_v27  ;;  %v6982_v27 = vld [vmem:[%s10795_s3 + $0xf4] sm:$0xf] }
 0x5f5   :  { %v3933_v40 = vmax.f32 %v3837_v21, 0.0  ;;  %3789 = vmatmul.bf16.gmra.mxu2 %v11311_v54  ;;  %4832 = vmatpush.bf16.msrb.mxu0 %v6471_v32 }
 0x5f6   :  { %3878 = vmatmul.bf16.gmra.mxu3 %v11312_v16 }
 0x5f7   :  { %v10152_v59 = vpack.c.bf16 %v3933_v40, %v3929_v28 }
 0x5f8   :  { %v3750_v13 = vpop.f32.mrf.mxu2 }
 0x5f9   :  { %v3751_v31 = vadd.f32 %v3750_v13, %v3662_v45  ;;  %v3839_v52 = vpop.f32.mrf.mxu3  ;;  %v3574_v50 = vpop.f32.mrf.mxu0  ;;  %v6532_v13 = vld [vmem:[%s10795_s3 + $0xf8] sm:$0xf0] }
 0x5fa   :  { %v3575_v44 = vadd.f32 %v3574_v50, %v9776_v35  ;;  %v3663_v10 = vpop.f32.mrf.mxu1  ;;  %v6998_v35 = vld [vmem:[%s10795_s3 + $0x174] sm:$0xf] }
 0x5fb   :  { %v3840_v19 = vadd.f32 %v3839_v52, %v3751_v31  ;;  %v6535_v31 = vor.u32 %v6982_v27, %v6532_v13  ;;  %v6460_v13 = vld [vmem:[%s10795_s3 + $0x68] sm:$0xf0] }
 0x5fc   :  { %v3664_v6 = vadd.f32 %v3663_v10, %v3575_v44 }
 0x5fd   :  { %v3937_v37 = vmax.f32 %v3840_v19, 0.0  ;;  %4921 = vmatpush.bf16.msrb.mxu1 %v6535_v31  ;;  %v7012_v31 = vld [vmem:[%s10795_s3 + $0x1e4] sm:$0xf] }
 0x600   :  { %v3752_v61 = vpop.f32.mrf.mxu2 }
 0x601   :  { %v3753_v58 = vadd.f32 %v3752_v61, %v3664_v6  ;;  %v3841_v11 = vpop.f32.mrf.mxu3  ;;  %v3577_v24 = vpop.f32.mrf.mxu0 }
 0x602   :  { %v3578_v33 = vadd.f32 %v3577_v24, %v9802_v63  ;;  %v3666_v54 = vpop.f32.mrf.mxu1  ;;  %v6596_v63 = vld [vmem:[%s10795_s3 + $0x178] sm:$0xf0] }
 0x603   :  { %v3842_v39 = vadd.f32 %v3841_v11, %v3753_v58  ;;  %v6599_v2 = vor.u32 %v6998_v35, %v6596_v63  ;;  %v11381_v58 = vld [vmem:[#allocation64_spill] sm:$0xff] }
 0x604   :  { %v3667_v16 = vadd.f32 %v3666_v54, %v3578_v33  ;;  %3616 = vmatmul.bf16.gmra.mxu0 %v11379_v17  ;;  %3705 = vmatmul.bf16.gmra.mxu1 %v11380_v38  ;;  %v11382_v33 = vld [vmem:[#allocation65_spill] sm:$0xff] }
 0x605   :  { %v3941_v56 = vmax.f32 %v3842_v39, 0.0  ;;  %3794 = vmatmul.bf16.gmra.mxu2 %v11316_v36  ;;  %v7014_v36 = vld [vmem:[%s10795_s3 + $0x1f4] sm:$0xf]  ;;  %v11383_v54 = vld [vmem:[#allocation101_spill] sm:$0xff]  ;;  %v11384_v39 = vld [vmem:[#allocation103_spill] sm:$0xff] }
 0x606   :  { %3883 = vmatmul.bf16.gmra.mxu3 %v11317_v46  ;;  %v6660_v46 = vld [vmem:[%s10795_s3 + $0x1f8] sm:$0xf0]  ;;  %5010 = vmatpush.bf16.msrb.mxu2 %v6599_v2 }
 0x607   :  { %v10178_v3 = vpack.c.bf16 %v3941_v56, %v3937_v37  ;;  %v6663_v53 = vor.u32 %v7014_v36, %v6660_v46 }
 0x608   :  { %v3755_v60 = vpop.f32.mrf.mxu2 }
 0x609   :  { %v3756_v23 = vadd.f32 %v3755_v60, %v3667_v16  ;;  %v3844_v25 = vpop.f32.mrf.mxu3  ;;  %v3579_v21 = vpop.f32.mrf.mxu0  ;;  %5099 = vmatpush.bf16.msrb.mxu3 %v6663_v53 }
 0x60a   :  { %v3580_v45 = vadd.f32 %v3579_v21, %v9814_v15  ;;  %v3668_v8 = vpop.f32.mrf.mxu1 }
 0x60b   :  { %v3845_v28 = vadd.f32 %v3844_v25, %v3756_v23  ;;  %v11385_v25 = vld [vmem:[#allocation89_spill] sm:$0xff] }
 0x60c   :  { %v3669_v40 = vadd.f32 %v3668_v8, %v3580_v45  ;;  %v11386_v8 = vld [vmem:[#allocation88_spill] sm:$0xff] }
 0x60d   :  { %v3945_v11 = vmax.f32 %v3845_v28, 0.0  ;;  %v11387_v28 = vld [vmem:[#allocation30_spill] sm:$0xff] }
 0x610   :  { %v3757_v52 = vpop.f32.mrf.mxu2 }
 0x611   :  { %v3758_v50 = vadd.f32 %v3757_v52, %v3669_v40  ;;  %v3846_v44 = vpop.f32.mrf.mxu3  ;;  %v3582_v10 = vpop.f32.mrf.mxu0  ;;  %v6964_v40 = vld [vmem:[%s10795_s3 + $0x64] sm:$0xf]  ;;  %v6652_v52 = vld [vmem:[%s10795_s3 + $0x1e8] sm:$0xf0] }
 0x612   :  { %v3583_v15 = vadd.f32 %v3582_v10, %v9822_v26  ;;  %v3671_v19 = vpop.f32.mrf.mxu1  ;;  %v6463_v10 = vor.u32 %v6964_v40, %v6460_v13 }
 0x613   :  { %v3847_v6 = vadd.f32 %v3846_v44, %v3758_v50 }
 0x614   :  { %v3672_v61 = vadd.f32 %v3671_v19, %v3583_v15  ;;  %3621 = vmatmul.bf16.gmra.mxu0 %v11381_v58  ;;  %3710 = vmatmul.bf16.gmra.mxu1 %v11382_v33  ;;  %v6655_v15 = vor.u32 %v7012_v31, %v6652_v52 }
 0x615   :  { %v3949_v24 = vmax.f32 %v3847_v6, 0.0  ;;  %3799 = vmatmul.bf16.gmra.mxu2 %v11383_v54  ;;  %4833 = vmatpush.bf16.msrb.mxu0 %v6463_v10  ;;  %v6980_v54 = vld [vmem:[%s10795_s3 + $0xe4] sm:$0xf] }
 0x616   :  { %3888 = vmatmul.bf16.gmra.mxu3 %v11384_v39  ;;  %v6524_v39 = vld [vmem:[%s10795_s3 + $0xe8] sm:$0xf0] }
 0x617   :  { %v10192_v16 = vpack.c.bf16 %v3949_v24, %v3945_v11  ;;  %5100 = vmatpush.bf16.msrb.mxu3 %v6655_v15 }
 0x618   :  { %v3760_v17 = vpop.f32.mrf.mxu2 }
 0x619   :  { %v3761_v37 = vadd.f32 %v3760_v17, %v3672_v61  ;;  %v3849_v56 = vpop.f32.mrf.mxu3  ;;  %v3584_v38 = vpop.f32.mrf.mxu0  ;;  %v6527_v17 = vor.u32 %v6980_v54, %v6524_v39  ;;  %v6452_v39 = vld [vmem:[%s10795_s3 + $0x58] sm:$0xf0] }
 0x61a   :  { %v3585_v26 = vadd.f32 %v3584_v38, %v9828_v0  ;;  %v3673_v35 = vpop.f32.mrf.mxu1  ;;  %v6996_v0 = vld [vmem:[%s10795_s3 + $0x164] sm:$0xf] }
 0x61b   :  { %v3850_v63 = vadd.f32 %v3849_v56, %v3761_v37  ;;  %4922 = vmatpush.bf16.msrb.mxu1 %v6527_v17  ;;  %v7010_v17 = vld [vmem:[%s10795_s3 + $0x1d4] sm:$0xf] }
 0x61c   :  { %v3674_v22 = vadd.f32 %v3673_v35, %v3585_v26 }
 0x61d   :  { %v3953_v21 = vmax.f32 %v3850_v63, 0.0 }
 0x620   :  { %v3762_v2 = vpop.f32.mrf.mxu2 }
 0x621   :  { %v3763_v49 = vadd.f32 %v3762_v2, %v3674_v22  ;;  %v3851_v36 = vpop.f32.mrf.mxu3  ;;  %v3587_v46 = vpop.f32.mrf.mxu0  ;;  %v11388_v2 = vld [vmem:[#allocation92_spill] sm:$0xff] }
 0x622   :  { %v3588_v60 = vadd.f32 %v3587_v46, %v9854_v7  ;;  %v3676_v32 = vpop.f32.mrf.mxu1  ;;  %v6588_v7 = vld [vmem:[%s10795_s3 + $0x168] sm:$0xf0]  ;;  %v11389_v46 = vld [vmem:[#allocation110_spill] sm:$0xff] }
 0x623   :  { %v3852_v53 = vadd.f32 %v3851_v36, %v3763_v49  ;;  %v6591_v27 = vor.u32 %v6996_v0, %v6588_v7 }
 0x624   :  { %v3677_v23 = vadd.f32 %v3676_v32, %v3588_v60  ;;  %4484 = vmatmul.bf16.vlgmr.msra.gmra.mxu0 %v11385_v25  ;;  %4573 = vmatmul.bf16.vlgmr.msra.gmra.mxu1 %v11386_v8  ;;  %v11390_v60 = vld [vmem:[#allocation31_spill] sm:$0xff] }
 0x625   :  { %v3957_v45 = vmax.f32 %v3852_v53, 0.0  ;;  %4662 = vmatmul.bf16.vlgmr.msra.gmra.mxu2 %v11387_v28 }
 0x626   :  { %4751 = vmatmul.bf16.vlgmr.msra.gmra.mxu3 %v10072_v47  ;;  %5011 = vmatpush.bf16.msrb.mxu2 %v6591_v27 }
 0x627   :  { %v10218_v50 = vpack.c.bf16 %v3957_v45, %v3953_v21 }
 0x628   :  { %v3765_v44 = vpop.f32.mrf.mxu2 }
 0x629   :  { %v3766_v19 = vadd.f32 %v3765_v44, %v3677_v23  ;;  %v3854_v6 = vpop.f32.mrf.mxu3  ;;  %v3589_v61 = vpop.f32.mrf.mxu0 }
 0x62a   :  { %v3590_v58 = vadd.f32 %v3589_v61, %v9866_v41  ;;  %v3678_v11 = vpop.f32.mrf.mxu1 }
 0x62b   :  { %v3855_v24 = vadd.f32 %v3854_v6, %v3766_v19  ;;  %v11391_v6 = vld [vmem:[#allocation93_spill] sm:$0xff] }
 0x62c   :  { %v3679_v33 = vadd.f32 %v3678_v11, %v3590_v58  ;;  %v11392_v11 = vld [vmem:[#allocation111_spill] sm:$0xff] }
 0x62d   :  { %v3961_v49 = vmax.f32 %v3855_v24, 0.0  ;;  %v11393_v24 = vld [vmem:[#allocation34_spill] sm:$0xff] }
 0x630   :  { %v3767_v37 = vpop.f32.mrf.mxu2 }
 0x631   :  { %v3768_v56 = vadd.f32 %v3767_v37, %v3679_v33  ;;  %v3856_v38 = vpop.f32.mrf.mxu3  ;;  %v3592_v26 = vpop.f32.mrf.mxu0  ;;  %v6962_v33 = vld [vmem:[%s10795_s3 + $0x54] sm:$0xf]  ;;  %v6644_v37 = vld [vmem:[%s10795_s3 + $0x1d8] sm:$0xf0] }
 0x632   :  { %v3593_v41 = vadd.f32 %v3592_v26, %v9874_v29  ;;  %v3681_v35 = vpop.f32.mrf.mxu1  ;;  %v6455_v26 = vor.u32 %v6962_v33, %v6452_v39 }
 0x633   :  { %v3857_v63 = vadd.f32 %v3856_v38, %v3768_v56 }
 0x634   :  { %v3682_v22 = vadd.f32 %v3681_v35, %v3593_v41  ;;  %4489 = vmatmul.bf16.gmra.mxu0 %v11388_v2  ;;  %4578 = vmatmul.bf16.gmra.mxu1 %v11389_v46  ;;  %v6647_v41 = vor.u32 %v7010_v17, %v6644_v37 }
 0x635   :  { %v3965_v36 = vmax.f32 %v3857_v63, 0.0  ;;  %4667 = vmatmul.bf16.gmra.mxu2 %v11390_v60  ;;  %4834 = vmatpush.bf16.msrb.mxu0 %v6455_v26 }
 0x636   :  { %4756 = vmatmul.bf16.gmra.mxu3 %v10098_v1 }
 0x637   :  { %v10232_v32 = vpack.c.bf16 %v3965_v36, %v3961_v49  ;;  %5101 = vmatpush.bf16.msrb.mxu3 %v6647_v41 }
 0x638   :  { %v3770_v53 = vpop.f32.mrf.mxu2 }
 0x639   :  { %v3771_v23 = vadd.f32 %v3770_v53, %v3682_v22  ;;  %v3859_v21 = vpop.f32.mrf.mxu3  ;;  %v3594_v45 = vpop.f32.mrf.mxu0 }
 0x63a   :  { %v3595_v29 = vadd.f32 %v3594_v45, %v9880_v57  ;;  %v3683_v0 = vpop.f32.mrf.mxu1  ;;  %v6994_v57 = vld [vmem:[%s10795_s3 + $0x154] sm:$0xf]  ;;  %v6516_v45 = vld [vmem:[%s10795_s3 + $0xd8] sm:$0xf0] }
 0x63b   :  { %v3860_v7 = vadd.f32 %v3859_v21, %v3771_v23  ;;  %v6978_v21 = vld [vmem:[%s10795_s3 + $0xd4] sm:$0xf] }
 0x63c   :  { %v3684_v40 = vadd.f32 %v3683_v0, %v3595_v29  ;;  %v6519_v29 = vor.u32 %v6978_v21, %v6516_v45  ;;  %v11400_v45 = vld [vmem:[#allocation113_spill] sm:$0xff] }
 0x63d   :  { %v3969_v61 = vmax.f32 %v3860_v7, 0.0 }
 0x63e   :  { %4923 = vmatpush.bf16.msrb.mxu1 %v6519_v29  ;;  %v11401_v29 = vld [vmem:[#allocation38_spill] sm:$0xff] }
 0x640   :  { %v3772_v27 = vpop.f32.mrf.mxu2 }
 0x641   :  { %v3773_v13 = vadd.f32 %v3772_v27, %v3684_v40  ;;  %v3861_v31 = vpop.f32.mrf.mxu3  ;;  %v3597_v52 = vpop.f32.mrf.mxu0 }
 0x642   :  { %v3598_v44 = vadd.f32 %v3597_v52, %v9906_v20  ;;  %v3686_v10 = vpop.f32.mrf.mxu1  ;;  %v6580_v20 = vld [vmem:[%s10795_s3 + $0x158] sm:$0xf0] }
 0x643   :  { %v3862_v15 = vadd.f32 %v3861_v31, %v3773_v13  ;;  %v6583_v54 = vor.u32 %v6994_v57, %v6580_v20 }
 0x644   :  { %v3687_v19 = vadd.f32 %v3686_v10, %v3598_v44  ;;  %4494 = vmatmul.bf16.gmra.mxu0 %v11391_v6  ;;  %4583 = vmatmul.bf16.gmra.mxu1 %v11392_v11  ;;  %v11395_v44 = vld [vmem:[#allocation94_spill] sm:$0xff] }
 0x645   :  { %v3973_v58 = vmax.f32 %v3862_v15, 0.0  ;;  %4672 = vmatmul.bf16.gmra.mxu2 %v11393_v24 }
 0x646   :  { %4761 = vmatmul.bf16.gmra.mxu3 %v10112_v55  ;;  %5012 = vmatpush.bf16.msrb.mxu2 %v6583_v54 }
 0x647   :  { %v10258_v56 = vpack.c.bf16 %v3973_v58, %v3969_v61  ;;  %v11397_v61 = vld [vmem:[#allocation35_spill] sm:$0xff] }
 0x648   :  { %v3775_v38 = vpop.f32.mrf.mxu2 }
 0x649   :  { %11394 = vst [vmem:[#allocation85_spill] sm:$0xff] %v10258_v56  ;;  %v3776_v35 = vadd.f32 %v3775_v38, %v3687_v19  ;;  %v3864_v63 = vpop.f32.mrf.mxu3  ;;  %v3599_v22 = vpop.f32.mrf.mxu0  ;;  %v11396_v19 = vld [vmem:[#allocation112_spill] sm:$0xff] }
 0x64a   :  { %v3600_v49 = vadd.f32 %v3599_v22, %v9918_v12  ;;  %v3688_v36 = vpop.f32.mrf.mxu1 }
 0x64b   :  { %v3865_v53 = vadd.f32 %v3864_v63, %v3776_v35 }
 0x64c   :  { %v3689_v23 = vadd.f32 %v3688_v36, %v3600_v49 }
 0x64d   :  { %v3977_v10 = vmax.f32 %v3865_v53, 0.0  ;;  %v11399_v53 = vld [vmem:[#allocation96_spill] sm:$0xff] }
 0x650   :  { %v3777_v0 = vpop.f32.mrf.mxu2 }
 0x651   :  { %v3778_v7 = vadd.f32 %v3777_v0, %v3689_v23  ;;  %v3866_v40 = vpop.f32.mrf.mxu3  ;;  %v3602_v27 = vpop.f32.mrf.mxu0  ;;  %v6960_v0 = vld [vmem:[%s10795_s3 + $0x44] sm:$0xf] }
 0x652   :  { %v3603_v12 = vadd.f32 %v3602_v27, %v9926_v4  ;;  %v3691_v13 = vpop.f32.mrf.mxu1  ;;  %v7008_v27 = vld [vmem:[%s10795_s3 + $0x1c4] sm:$0xf] }
 0x653   :  { %v3867_v31 = vadd.f32 %v3866_v40, %v3778_v7  ;;  %v6444_v40 = vld [vmem:[%s10795_s3 + $0x48] sm:$0xf0] }
 0x654   :  { %v3692_v52 = vadd.f32 %v3691_v13, %v3603_v12  ;;  %4499 = vmatmul.bf16.gmra.mxu0 %v11395_v44  ;;  %4588 = vmatmul.bf16.gmra.mxu1 %v11396_v19  ;;  %v6636_v12 = vld [vmem:[%s10795_s3 + $0x1c8] sm:$0xf0] }
 0x655   :  { %v3981_v15 = vmax.f32 %v3867_v31, 0.0  ;;  %4677 = vmatmul.bf16.gmra.mxu2 %v11397_v61 }
 0x656   :  { %4766 = vmatmul.bf16.gmra.mxu3 %v10138_v48 }
 0x657   :  { %v10272_v58 = vpack.c.bf16 %v3981_v15, %v3977_v10  ;;  %v6639_v10 = vor.u32 %v7008_v27, %v6636_v12 }
 0x658   :  { %v3780_v57 = vpop.f32.mrf.mxu2 }
 0x659   :  { %11398 = vst [vmem:[#allocation90_spill] sm:$0xff] %v10272_v58  ;;  %v3781_v20 = vadd.f32 %v3780_v57, %v3692_v52  ;;  %v3869_v33 = vpop.f32.mrf.mxu3  ;;  %v3604_v54 = vpop.f32.mrf.mxu0  ;;  %v6447_v52 = vor.u32 %v6960_v0, %v6444_v40  ;;  %5102 = vmatpush.bf16.msrb.mxu3 %v6639_v10  ;;  %v11405_v0 = vld [vmem:[#allocation39_spill] sm:$0xff] }
 0x65a   :  { %v3605_v4 = vadd.f32 %v3604_v54, %v9932_v34  ;;  %v3693_v39 = vpop.f32.mrf.mxu1  ;;  %v6992_v34 = vld [vmem:[%s10795_s3 + $0x144] sm:$0xf] }
 0x65b   :  { %v3870_v17 = vadd.f32 %v3869_v33, %v3781_v20  ;;  %4835 = vmatpush.bf16.msrb.mxu0 %v6447_v52 }
 0x65c   :  { %v3694_v37 = vadd.f32 %v3693_v39, %v3605_v4 }
 0x65d   :  { %v3985_v23 = vmax.f32 %v3870_v17, 0.0  ;;  %v6976_v17 = vld [vmem:[%s10795_s3 + $0xc4] sm:$0xf] }
 0x660   :  { %v3782_v38 = vpop.f32.mrf.mxu2 }
 0x661   :  { %v3783_v26 = vadd.f32 %v3782_v38, %v3694_v37  ;;  %v3871_v41 = vpop.f32.mrf.mxu3  ;;  %v3607_v35 = vpop.f32.mrf.mxu0  ;;  %v6508_v37 = vld [vmem:[%s10795_s3 + $0xc8] sm:$0xf0] }
 0x662   :  { %v3608_v63 = vadd.f32 %v3607_v35, %v9958_v42  ;;  %v3696_v22 = vpop.f32.mrf.mxu1  ;;  %v6572_v42 = vld [vmem:[%s10795_s3 + $0x148] sm:$0xf0]  ;;  %v6511_v38 = vor.u32 %v6976_v17, %v6508_v37 }
 0x663   :  { %v3872_v49 = vadd.f32 %v3871_v41, %v3783_v26  ;;  %v6575_v7 = vor.u32 %v6992_v34, %v6572_v42  ;;  %v11404_v42 = vld [vmem:[#allocation114_spill] sm:$0xff] }
 0x664   :  { %v3697_v36 = vadd.f32 %v3696_v22, %v3608_v63  ;;  %4504 = vmatmul.bf16.gmra.mxu0 %v11399_v53  ;;  %4593 = vmatmul.bf16.gmra.mxu1 %v11400_v45 }
 0x665   :  { %v3989_v21 = vmax.f32 %v3872_v49, 0.0  ;;  %4682 = vmatmul.bf16.gmra.mxu2 %v11401_v29  ;;  %4924 = vmatpush.bf16.msrb.mxu1 %v6511_v38  ;;  %v11407_v38 = vld [vmem:[#allocation102_spill] sm:$0xff] }
 0x666   :  { %4771 = vmatmul.bf16.gmra.mxu3 %v10152_v59  ;;  %5013 = vmatpush.bf16.msrb.mxu2 %v6575_v7 }
 0x667   :  { %v10298_v13 = vpack.c.bf16 %v3989_v21, %v3985_v23  ;;  %v11403_v23 = vld [vmem:[#allocation99_spill] sm:$0xff] }
 0x668   :  { %v3785_v31 = vpop.f32.mrf.mxu2 }
 0x669   :  { %11402 = vst [vmem:[#allocation91_spill] sm:$0xff] %v10298_v13  ;;  %v3786_v15 = vadd.f32 %v3785_v31, %v3697_v36  ;;  %v3874_v57 = vpop.f32.mrf.mxu3  ;;  %v3609_v20 = vpop.f32.mrf.mxu0 }
 0x66a   :  { %v3610_v33 = vadd.f32 %v3609_v20, %v9970_v9  ;;  %v3698_v54 = vpop.f32.mrf.mxu1 }
 0x66b   :  { %v3875_v4 = vadd.f32 %v3874_v57, %v3786_v15 }
 0x66c   :  { %v3699_v39 = vadd.f32 %v3698_v54, %v3610_v33 }
 0x66d   :  { %v3993_v21 = vmax.f32 %v3875_v4, 0.0 }
 0x670   :  { %v3787_v26 = vpop.f32.mrf.mxu2 }
 0x671   :  { %v3788_v41 = vadd.f32 %v3787_v26, %v3699_v39  ;;  %v3876_v35 = vpop.f32.mrf.mxu3  ;;  %v3612_v63 = vpop.f32.mrf.mxu0 }
 0x672   :  { %v3613_v9 = vadd.f32 %v3612_v63, %v9978_v18  ;;  %v3701_v22 = vpop.f32.mrf.mxu1  ;;  %v11409_v63 = vld [vmem:[#allocation42_spill] sm:$0xff] }
 0x673   :  { %v3877_v49 = vadd.f32 %v3876_v35, %v3788_v41  ;;  %v11408_v35 = vld [vmem:[#allocation115_spill] sm:$0xff] }
 0x674   :  { %v3702_v36 = vadd.f32 %v3701_v22, %v3613_v9  ;;  %4509 = vmatmul.bf16.gmra.mxu0 %v11403_v23  ;;  %4598 = vmatmul.bf16.gmra.mxu1 %v11404_v42  ;;  %v6958_v9 = vld [vmem:[%s10795_s3 + $0x34] sm:$0xf] }
 0x675   :  { %v3997_v34 = vmax.f32 %v3877_v49, 0.0  ;;  %4687 = vmatmul.bf16.gmra.mxu2 %v11405_v0  ;;  %v6436_v49 = vld [vmem:[%s10795_s3 + $0x38] sm:$0xf0] }
 0x676   :  { %4776 = vmatmul.bf16.gmra.mxu3 %v10178_v3 }
 0x677   :  { %v10312_v7 = vpack.c.bf16 %v3997_v34, %v3993_v21  ;;  %v6628_v21 = vld [vmem:[%s10795_s3 + $0x1b8] sm:$0xf0] }
 0x678   :  { %v3790_v40 = vpop.f32.mrf.mxu2 }
 0x679   :  { %11406 = vst [vmem:[#allocation51_spill] sm:$0xff] %v10312_v7  ;;  %v3791_v27 = vadd.f32 %v3790_v40, %v3702_v36  ;;  %v3879_v12 = vpop.f32.mrf.mxu3  ;;  %v3614_v31 = vpop.f32.mrf.mxu0  ;;  %v7006_v36 = vld [vmem:[%s10795_s3 + $0x1b4] sm:$0xf] }
 0x67a   :  { %v3615_v18 = vadd.f32 %v3614_v31, %v9984_v62  ;;  %v3703_v52 = vpop.f32.mrf.mxu1  ;;  %v6990_v62 = vld [vmem:[%s10795_s3 + $0x134] sm:$0xf] }
 0x67b   :  { %v3880_v10 = vadd.f32 %v3879_v12, %v3791_v27  ;;  %v6439_v27 = vor.u32 %v6958_v9, %v6436_v49  ;;  %v6631_v12 = vor.u32 %v7006_v36, %v6628_v21  ;;  %v11411_v9 = vld [vmem:[#allocation104_spill] sm:$0xff]  ;;  %v11412_v36 = vld [vmem:[#allocation2_spill] sm:$0xff]  ;;  %v11413_v21 = vld [vmem:[#allocation43_spill] sm:$0xff] }
 0x67c   :  { %v3704_v15 = vadd.f32 %v3703_v52, %v3615_v18 }
 0x67d   :  { %v4001_v26 = vmax.f32 %v3880_v10, 0.0  ;;  %4836 = vmatpush.bf16.msrb.mxu0 %v6439_v27  ;;  %5103 = vmatpush.bf16.msrb.mxu3 %v6631_v12 }
 0x680   :  { %v3792_v57 = vpop.f32.mrf.mxu2 }
 0x681   :  { %v3793_v20 = vadd.f32 %v3792_v57, %v3704_v15  ;;  %v3881_v33 = vpop.f32.mrf.mxu3  ;;  %v3617_v54 = vpop.f32.mrf.mxu0 }
 0x682   :  { %v3618_v4 = vadd.f32 %v3617_v54, %v10010_v5  ;;  %v3706_v39 = vpop.f32.mrf.mxu1  ;;  %v6564_v5 = vld [vmem:[%s10795_s3 + $0x138] sm:$0xf0] }
 0x683   :  { %v3882_v17 = vadd.f32 %v3881_v33, %v3793_v20  ;;  %v6567_v22 = vor.u32 %v6990_v62, %v6564_v5  ;;  %v6974_v33 = vld [vmem:[%s10795_s3 + $0xb4] sm:$0xf]  ;;  %v6500_v54 = vld [vmem:[%s10795_s3 + $0xb8] sm:$0xf0] }
 0x684   :  { %v3707_v37 = vadd.f32 %v3706_v39, %v3618_v4  ;;  %4514 = vmatmul.bf16.gmra.mxu0 %v11407_v38  ;;  %4603 = vmatmul.bf16.gmra.mxu1 %v11408_v35  ;;  %v6503_v4 = vor.u32 %v6974_v33, %v6500_v54 }
 0x685   :  { %v4005_v41 = vmax.f32 %v3882_v17, 0.0  ;;  %4692 = vmatmul.bf16.gmra.mxu2 %v11409_v63 }
 0x686   :  { %4781 = vmatmul.bf16.gmra.mxu3 %v10192_v16  ;;  %5014 = vmatpush.bf16.msrb.mxu2 %v6567_v22 }
 0x687   :  { %v10338_v34 = vpack.c.bf16 %v4005_v41, %v4001_v26  ;;  %4925 = vmatpush.bf16.msrb.mxu1 %v6503_v4 }
 0x688   :  { %v3795_v40 = vpop.f32.mrf.mxu2 }
 0x689   :  { %11410 = vst [vmem:[#allocation19_spill] sm:$0xff] %v10338_v34  ;;  %v3796_v31 = vadd.f32 %v3795_v40, %v3707_v37  ;;  %v3884_v18 = vpop.f32.mrf.mxu3  ;;  %v3619_v52 = vpop.f32.mrf.mxu0 }
 0x68a   :  { %v3620_v10 = vadd.f32 %v3619_v52, %v10022_v30  ;;  %v3708_v15 = vpop.f32.mrf.mxu1 }
 0x68b   :  { %v3885_v57 = vadd.f32 %v3884_v18, %v3796_v31 }
 0x68c   :  { %v3709_v20 = vadd.f32 %v3708_v15, %v3620_v10 }
 0x68d   :  { %v4009_v22 = vmax.f32 %v3885_v57, 0.0  ;;  %v10358_v57 = vld [vmem:[%s10796_s4] sm:$0x3] }
 0x690   :  { %v3797_v39 = vpop.f32.mrf.mxu2 }
 0x691   :  { %v3798_v17 = vadd.f32 %v3797_v39, %v3709_v20  ;;  %v3886_v37 = vpop.f32.mrf.mxu3  ;;  %v3622_v26 = vpop.f32.mrf.mxu0  ;;  %v10361_v20 = vperm.slane %v10358_v57, 0 }
 0x692   :  { %v3623_v30 = vadd.f32 %v3622_v26, %v10030_v51  ;;  %v3711_v41 = vpop.f32.mrf.mxu1 }
 0x693   :  { %v3887_v62 = vadd.f32 %v3886_v37, %v3798_v17 }
 0x694   :  { %v3712_v5 = vadd.f32 %v3711_v41, %v3623_v30  ;;  %4519 = vmatmul.bf16.gmra.mxu0 %v11411_v9  ;;  %4608 = vmatmul.bf16.gmra.mxu1 %v11412_v36 }
 0x695   :  { %v4013_v49 = vmax.f32 %v3887_v62, 0.0  ;;  %4697 = vmatmul.bf16.gmra.mxu2 %v11413_v21  ;;  %v11416_v62 = vld [vmem:[#allocation3_spill] sm:$0xff] }
 0x696   :  { %4786 = vmatmul.bf16.gmra.mxu3 %v10218_v50 }
 0x697   :  { %v10352_v40 = vpack.c.bf16 %v4013_v49, %v4009_v22  ;;  %v6988_v22 = vld [vmem:[%s10795_s3 + $0x124] sm:$0xf]  ;;  %v6556_v49 = vld [vmem:[%s10795_s3 + $0x128] sm:$0xf0] }
 0x698   :  { %v3800_v27 = vpop.f32.mrf.mxu2 }
 0x699   :  { %11414 = vst [vmem:[#allocation95_spill] sm:$0xff] %v10352_v40  ;;  %v3801_v12 = vadd.f32 %v3800_v27, %v3712_v5  ;;  %v3889_v31 = vpop.f32.mrf.mxu3  ;;  %v3624_v18 = vpop.f32.mrf.mxu0  ;;  %v11417_v5 = vld [vmem:[#allocation46_spill] sm:$0xff] }
 0x69a   :  { %v3625_v51 = vadd.f32 %v3624_v18, %v10036_v14  ;;  %v3713_v52 = vpop.f32.mrf.mxu1  ;;  %v11415_v14 = vld [vmem:[#allocation105_spill] sm:$0xff]  ;;  %v6956_v27 = vld [vmem:[%s10795_s3 + $0x24] sm:$0xf]  ;;  %v6428_v18 = vld [vmem:[%s10795_s3 + $0x28] sm:$0xf0] }
 0x69b   :  { %v3890_v10 = vadd.f32 %v3889_v31, %v3801_v12  ;;  %v6559_v31 = vor.u32 %v6988_v22, %v6556_v49 }
 0x69c   :  { %v3714_v15 = vadd.f32 %v3713_v52, %v3625_v51  ;;  %v7004_v51 = vld [vmem:[%s10795_s3 + $0x1a4] sm:$0xf]  ;;  %v6620_v52 = vld [vmem:[%s10795_s3 + $0x1a8] sm:$0xf0] }
 0x69d   :  { %v4017_v30 = vmax.f32 %v3890_v10, 0.0  ;;  %5015 = vmatpush.bf16.msrb.mxu2 %v6559_v31 }
 0x6a0   :  { %v3802_v33 = vpop.f32.mrf.mxu2 }
 0x6a1   :  { %v3803_v54 = vadd.f32 %v3802_v33, %v3714_v15  ;;  %v3891_v4 = vpop.f32.mrf.mxu3  ;;  %v4485_v39 = vpop.f32.mrf.mxu0  ;;  %v6431_v33 = vor.u32 %v6956_v27, %v6428_v18 }
 0x6a2   :  { %v4574_v17 = vpop.f32.mrf.mxu1  ;;  %v4486_v26 = vadd.f32 %v4485_v39, %v10361_v20 }
 0x6a3   :  { %v3892_v37 = vadd.f32 %v3891_v4, %v3803_v54  ;;  %v6623_v54 = vor.u32 %v7004_v51, %v6620_v52  ;;  %4837 = vmatpush.bf16.msrb.mxu0 %v6431_v33 }
 0x6a4   :  { %4524 = vmatmul.bf16.gmra.mxu0 %v11415_v14  ;;  %4613 = vmatmul.bf16.gmra.mxu1 %v11416_v62  ;;  %v4575_v12 = vadd.f32 %v4574_v17, %v4486_v26 }
 0x6a5   :  { %v4021_v41 = vmax.f32 %v3892_v37, 0.0  ;;  %4702 = vmatmul.bf16.gmra.mxu2 %v11417_v5  ;;  %5104 = vmatpush.bf16.msrb.mxu3 %v6623_v54  ;;  %v11419_v54 = vld [vmem:[#allocation106_spill] sm:$0xff] }
 0x6a6   :  { %4791 = vmatmul.bf16.gmra.mxu3 %v10232_v32 }
 0x6a7   :  { %v10386_v10 = vpack.c.bf16 %v4021_v41, %v4017_v30  ;;  %v6972_v30 = vld [vmem:[%s10795_s3 + $0xa4] sm:$0xf]  ;;  %v6492_v41 = vld [vmem:[%s10795_s3 + $0xa8] sm:$0xf0] }
 0x6a8   :  { %v4663_v15 = vpop.f32.mrf.mxu2  ;;  %v6495_v49 = vor.u32 %v6972_v30, %v6492_v41 }
 0x6a9   :  { %11418 = vst [vmem:[#allocation97_spill] sm:$0xff] %v10386_v10  ;;  %v4664_v4 = vadd.f32 %v4663_v15, %v4575_v12  ;;  %v4752_v39 = vpop.f32.mrf.mxu3  ;;  %v4487_v17 = vpop.f32.mrf.mxu0 }
 0x6aa   :  { %v4576_v37 = vpop.f32.mrf.mxu1  ;;  %v4488_v22 = vadd.f32 %v4487_v17, %v10361_v20  ;;  %4926 = vmatpush.bf16.msrb.mxu1 %v6495_v49 }
 0x6ab   :  { %v4753_v26 = vadd.f32 %v4752_v39, %v4664_v4  ;;  %v11420_v4 = vld [vmem:[#allocation6_spill] sm:$0xff]  ;;  %v11421_v39 = vld [vmem:[#allocation47_spill] sm:$0xff] }
 0x6ac   :  { %v4577_v27 = vadd.f32 %v4576_v37, %v4488_v22 }
 0x6ad   :  { %5188 = vst [vmem:[%s10797_s5] sm:$0xff] %v4753_v26 }
 0x6b0   :  { %v4665_v12 = vpop.f32.mrf.mxu2 }
 0x6b1   :  { %v4666_v31 = vadd.f32 %v4665_v12, %v4577_v27  ;;  %v4754_v18 = vpop.f32.mrf.mxu3  ;;  %v4490_v51 = vpop.f32.mrf.mxu0 }
 0x6b2   :  { %v4579_v52 = vpop.f32.mrf.mxu1  ;;  %v4491_v33 = vadd.f32 %v4490_v51, %v10361_v20 }
 0x6b3   :  { %v4755_v15 = vadd.f32 %v4754_v18, %v4666_v31 }
 0x6b4   :  { %4529 = vmatmul.bf16.gmra.mxu0 %v11419_v54  ;;  %4618 = vmatmul.bf16.gmra.mxu1 %v11420_v4  ;;  %v4580_v17 = vadd.f32 %v4579_v52, %v4491_v33  ;;  %v11422_v33 = vld [vmem:[#allocation72_spill] sm:$0xff] }
 0x6b5   :  { %5190 = vst [vmem:[%s10797_s5 + $0x10] sm:$0xff] %v4755_v15  ;;  %4707 = vmatmul.bf16.gmra.mxu2 %v11421_v39 }
 0x6b6   :  { %4796 = vmatmul.bf16.gmra.mxu3 %v10258_v56 }
 0x6b8   :  { %v4668_v37 = vpop.f32.mrf.mxu2 }
 0x6b9   :  { %v4669_v26 = vadd.f32 %v4668_v37, %v4580_v17  ;;  %v4757_v22 = vpop.f32.mrf.mxu3  ;;  %v4492_v30 = vpop.f32.mrf.mxu0  ;;  %v11423_v17 = vld [vmem:[#allocation7_spill] sm:$0xff]  ;;  %v11424_v37 = vld [vmem:[#allocation50_spill] sm:$0xff] }
 0x6ba   :  { %v4581_v41 = vpop.f32.mrf.mxu1  ;;  %v4493_v27 = vadd.f32 %v4492_v30, %v10361_v20  ;;  %v6954_v30 = vld [vmem:[%s10795_s3 + $0x14] sm:$0xf] }
 0x6bb   :  { %v4758_v49 = vadd.f32 %v4757_v22, %v4669_v26  ;;  %v6986_v26 = vld [vmem:[%s10795_s3 + $0x114] sm:$0xf]  ;;  %v6548_v22 = vld [vmem:[%s10795_s3 + $0x118] sm:$0xf0] }
 0x6bc   :  { %v4582_v12 = vadd.f32 %v4581_v41, %v4493_v27  ;;  %v7002_v27 = vld [vmem:[%s10795_s3 + $0x194] sm:$0xf] }
 0x6bd   :  { %5192 = vst [vmem:[%s10797_s5 + $0x20] sm:$0xff] %v4758_v49  ;;  %v6420_v49 = vld [vmem:[%s10795_s3 + $0x18] sm:$0xf0] }
 0x6c0   :  { %v4670_v31 = vpop.f32.mrf.mxu2 }
 0x6c1   :  { %v4671_v18 = vadd.f32 %v4670_v31, %v4582_v12  ;;  %v4759_v51 = vpop.f32.mrf.mxu3  ;;  %v4495_v15 = vpop.f32.mrf.mxu0  ;;  %v6612_v12 = vld [vmem:[%s10795_s3 + $0x198] sm:$0xf0] }
 0x6c2   :  { %v4584_v39 = vpop.f32.mrf.mxu1  ;;  %v4496_v52 = vadd.f32 %v4495_v15, %v10361_v20 }
 0x6c3   :  { %v4760_v56 = vadd.f32 %v4759_v51, %v4671_v18  ;;  %v6423_v18 = vor.u32 %v6954_v30, %v6420_v49  ;;  %v6615_v51 = vor.u32 %v7002_v27, %v6612_v12  ;;  %v6484_v30 = vld [vmem:[%s10795_s3 + $0x98] sm:$0xf0] }
 0x6c4   :  { %4534 = vmatmul.bf16.gmra.mxu0 %v11422_v33  ;;  %4623 = vmatmul.bf16.gmra.mxu1 %v11423_v17  ;;  %v4585_v41 = vadd.f32 %v4584_v39, %v4496_v52 }
 0x6c5   :  { %5194 = vst [vmem:[%s10797_s5 + $0x30] sm:$0xff] %v4760_v56  ;;  %4712 = vmatmul.bf16.gmra.mxu2 %v11424_v37  ;;  %v6551_v56 = vor.u32 %v6986_v26, %v6548_v22  ;;  %4838 = vmatpush.bf16.msrb.mxu0 %v6423_v18  ;;  %v6970_v22 = vld [vmem:[%s10795_s3 + $0x94] sm:$0xf] }
 0x6c6   :  { %4801 = vmatmul.bf16.gmra.mxu3 %v10272_v58 }
 0x6c7   :  { %5016 = vmatpush.bf16.msrb.mxu2 %v6551_v56  ;;  %5105 = vmatpush.bf16.msrb.mxu3 %v6615_v51  ;;  %v11425_v51 = vld [vmem:[#allocation107_spill] sm:$0xff] }
 0x6c8   :  { %v4673_v31 = vpop.f32.mrf.mxu2 }
 0x6c9   :  { %v4674_v15 = vadd.f32 %v4673_v31, %v4585_v41  ;;  %v4762_v58 = vpop.f32.mrf.mxu3  ;;  %v4497_v37 = vpop.f32.mrf.mxu0  ;;  %v6487_v41 = vor.u32 %v6970_v22, %v6484_v30 }
 0x6ca   :  { %v4586_v39 = vpop.f32.mrf.mxu1  ;;  %v4498_v26 = vadd.f32 %v4497_v37, %v10361_v20 }
 0x6cb   :  { %v4763_v52 = vadd.f32 %v4762_v58, %v4674_v15  ;;  %4927 = vmatpush.bf16.msrb.mxu1 %v6487_v41  ;;  %v11426_v15 = vld [vmem:[#allocation10_spill] sm:$0xff] }
 0x6cc   :  { %v4587_v56 = vadd.f32 %v4586_v39, %v4498_v26 }
 0x6cd   :  { %5196 = vst [vmem:[%s10797_s5 + $0x40] sm:$0xff] %v4763_v52  ;;  %v11427_v52 = vld [vmem:[#allocation58_spill] sm:$0xff] }
 0x6d0   :  { %v4675_v49 = vpop.f32.mrf.mxu2 }
 0x6d1   :  { %v4676_v27 = vadd.f32 %v4675_v49, %v4587_v56  ;;  %v4764_v58 = vpop.f32.mrf.mxu3  ;;  %v4500_v12 = vpop.f32.mrf.mxu0 }
 0x6d2   :  { %v4589_v37 = vpop.f32.mrf.mxu1  ;;  %v4501_v18 = vadd.f32 %v4500_v12, %v10361_v20 }
 0x6d3   :  { %v4765_v31 = vadd.f32 %v4764_v58, %v4676_v27 }
 0x6d4   :  { %4539 = vmatmul.bf16.gmra.mxu0 %v11425_v51  ;;  %4628 = vmatmul.bf16.gmra.mxu1 %v11426_v15  ;;  %v4590_v39 = vadd.f32 %v4589_v37, %v4501_v18  ;;  %v11428_v18 = vld [vmem:[#allocation77_spill] sm:$0xff] }
 0x6d5   :  { %5198 = vst [vmem:[%s10797_s5 + $0x50] sm:$0xff] %v4765_v31  ;;  %4717 = vmatmul.bf16.gmra.mxu2 %v11427_v52 }
 0x6d6   :  { %4806 = vmatmul.bf16.gmra.mxu3 %v10298_v13 }
 0x6d8   :  { %v4678_v26 = vpop.f32.mrf.mxu2 }
 0x6d9   :  { %v4679_v22 = vadd.f32 %v4678_v26, %v4590_v39  ;;  %v4767_v30 = vpop.f32.mrf.mxu3  ;;  %v4502_v41 = vpop.f32.mrf.mxu0  ;;  %v11429_v39 = vld [vmem:[#allocation11_spill] sm:$0xff]  ;;  %v11430_v26 = vld [vmem:[#allocation66_spill] sm:$0xff] }
 0x6da   :  { %v4591_v56 = vpop.f32.mrf.mxu1  ;;  %v4503_v27 = vadd.f32 %v4502_v41, %v10361_v20  ;;  %v6412_v41 = vld [vmem:[%s10795_s3 + $0x8] sm:$0xf0] }
 0x6db   :  { %v4768_v49 = vadd.f32 %v4767_v30, %v4679_v22  ;;  %v6984_v22 = vld [vmem:[%s10795_s3 + $0x104] sm:$0xf] }
 0x6dc   :  { %v4592_v58 = vadd.f32 %v4591_v56, %v4503_v27  ;;  %v7000_v56 = vld [vmem:[%s10795_s3 + $0x184] sm:$0xf] }
 0x6dd   :  { %5200 = vst [vmem:[%s10797_s5 + $0x60] sm:$0xff] %v4768_v49  ;;  %v6604_v49 = vld [vmem:[%s10795_s3 + $0x188] sm:$0xf0] }
 0x6e0   :  { %v4680_v12 = vpop.f32.mrf.mxu2 }
 0x6e1   :  { %v4681_v31 = vadd.f32 %v4680_v12, %v4592_v58  ;;  %v4769_v15 = vpop.f32.mrf.mxu3  ;;  %v4505_v52 = vpop.f32.mrf.mxu0  ;;  %v6607_v12 = vor.u32 %v7000_v56, %v6604_v49 }
 0x6e2   :  { %v4594_v51 = vpop.f32.mrf.mxu1  ;;  %v4506_v37 = vadd.f32 %v4505_v52, %v10361_v20  ;;  %v6952_v52 = vld [vmem:[%s10795_s3 + $0x4] sm:$0xf] }
 0x6e3   :  { %v4770_v13 = vadd.f32 %v4769_v15, %v4681_v31  ;;  %v6540_v15 = vld [vmem:[%s10795_s3 + $0x108] sm:$0xf0]  ;;  %v6415_v58 = vor.u32 %v6952_v52, %v6412_v41  ;;  %5106 = vmatpush.bf16.msrb.mxu3 %v6607_v12  ;;  %v11431_v12 = vld [vmem:[#allocation108_spill] sm:$0xff] }
 0x6e4   :  { %4544 = vmatmul.bf16.gmra.mxu0 %v11428_v18  ;;  %4633 = vmatmul.bf16.gmra.mxu1 %v11429_v39  ;;  %v4595_v30 = vadd.f32 %v4594_v51, %v4506_v37  ;;  %v6476_v52 = vld [vmem:[%s10795_s3 + $0x88] sm:$0xf0] }
 0x6e5   :  { %5202 = vst [vmem:[%s10797_s5 + $0x70] sm:$0xff] %v4770_v13  ;;  %4722 = vmatmul.bf16.gmra.mxu2 %v11430_v26  ;;  %v6543_v13 = vor.u32 %v6984_v22, %v6540_v15  ;;  %4839 = vmatpush.bf16.msrb.mxu0 %v6415_v58  ;;  %v6968_v15 = vld [vmem:[%s10795_s3 + $0x84] sm:$0xf] }
 0x6e6   :  { %4811 = vmatmul.bf16.gmra.mxu3 %v10312_v7 }
 0x6e7   :  { %5017 = vmatpush.bf16.msrb.mxu2 %v6543_v13 }
 0x6e8   :  { %v4683_v27 = vpop.f32.mrf.mxu2 }
 0x6e9   :  { %v4684_v31 = vadd.f32 %v4683_v27, %v4595_v30  ;;  %v4772_v7 = vpop.f32.mrf.mxu3  ;;  %v4507_v26 = vpop.f32.mrf.mxu0  ;;  %v6479_v30 = vor.u32 %v6968_v15, %v6476_v52 }
 0x6ea   :  { %v4596_v51 = vpop.f32.mrf.mxu1  ;;  %v4508_v22 = vadd.f32 %v4507_v26, %v10361_v20 }
 0x6eb   :  { %v4773_v37 = vadd.f32 %v4772_v7, %v4684_v31  ;;  %4928 = vmatpush.bf16.msrb.mxu1 %v6479_v30  ;;  %v11432_v31 = vld [vmem:[#allocation14_spill] sm:$0xff] }
 0x6ec   :  { %v4597_v13 = vadd.f32 %v4596_v51, %v4508_v22 }
 0x6ed   :  { %5204 = vst [vmem:[%s10797_s5 + $0x80] sm:$0xff] %v4773_v37  ;;  %v11433_v37 = vld [vmem:[#allocation70_spill] sm:$0xff] }
 0x6f0   :  { %v4685_v41 = vpop.f32.mrf.mxu2 }
 0x6f1   :  { %v4686_v56 = vadd.f32 %v4685_v41, %v4597_v13  ;;  %v4774_v7 = vpop.f32.mrf.mxu3  ;;  %v4510_v49 = vpop.f32.mrf.mxu0 }
 0x6f2   :  { %v4599_v26 = vpop.f32.mrf.mxu1  ;;  %v4511_v58 = vadd.f32 %v4510_v49, %v10361_v20 }
 0x6f3   :  { %v4775_v27 = vadd.f32 %v4774_v7, %v4686_v56 }
 0x6f4   :  { %4549 = vmatmul.bf16.gmra.mxu0 %v11431_v12  ;;  %4638 = vmatmul.bf16.gmra.mxu1 %v11432_v31  ;;  %v4600_v51 = vadd.f32 %v4599_v26, %v4511_v58  ;;  %v11434_v58 = vld [vmem:[#allocation82_spill] sm:$0xff] }
 0x6f5   :  { %5206 = vst [vmem:[%s10797_s5 + $0x90] sm:$0xff] %v4775_v27  ;;  %4727 = vmatmul.bf16.gmra.mxu2 %v11433_v37 }
 0x6f6   :  { %4816 = vmatmul.bf16.gmra.mxu3 %v10338_v34 }
 0x6f8   :  { %v4688_v22 = vpop.f32.mrf.mxu2 }
 0x6f9   :  { %v4689_v15 = vadd.f32 %v4688_v22, %v4600_v51  ;;  %v4777_v52 = vpop.f32.mrf.mxu3  ;;  %v4512_v30 = vpop.f32.mrf.mxu0  ;;  %v11435_v51 = vld [vmem:[#allocation15_spill] sm:$0xff] }
 0x6fa   :  { %v4601_v13 = vpop.f32.mrf.mxu1  ;;  %v4513_v56 = vadd.f32 %v4512_v30, %v10361_v20  ;;  %v11436_v22 = vld [vmem:[#allocation75_spill] sm:$0xff] }
 0x6fb   :  { %v4778_v41 = vadd.f32 %v4777_v52, %v4689_v15 }
 0x6fc   :  { %v4602_v7 = vadd.f32 %v4601_v13, %v4513_v56 }
 0x6fd   :  { %5208 = vst [vmem:[%s10797_s5 + $0xa0] sm:$0xff] %v4778_v41 }
 0x700   :  { %v4690_v49 = vpop.f32.mrf.mxu2 }
 0x701   :  { %v4691_v27 = vadd.f32 %v4690_v49, %v4602_v7  ;;  %v4779_v31 = vpop.f32.mrf.mxu3  ;;  %v4515_v37 = vpop.f32.mrf.mxu0 }
 0x702   :  { %v4604_v12 = vpop.f32.mrf.mxu1  ;;  %v4516_v26 = vadd.f32 %v4515_v37, %v10361_v20 }
 0x703   :  { %v4780_v34 = vadd.f32 %v4779_v31, %v4691_v27 }
 0x704   :  { %4554 = vmatmul.bf16.gmra.mxu0 %v11434_v58  ;;  %4643 = vmatmul.bf16.gmra.mxu1 %v11435_v51  ;;  %v4605_v15 = vadd.f32 %v4604_v12, %v4516_v26  ;;  %v11437_v26 = vld [vmem:[#allocation87_spill] sm:$0xff] }
 0x705   :  { %5210 = vst [vmem:[%s10797_s5 + $0xb0] sm:$0xff] %v4780_v34  ;;  %4732 = vmatmul.bf16.gmra.mxu2 %v11436_v22 }
 0x706   :  { %4821 = vmatmul.bf16.gmra.mxu3 %v10352_v40 }
 0x708   :  { %v4693_v52 = vpop.f32.mrf.mxu2 }
 0x709   :  { %v4694_v30 = vadd.f32 %v4693_v52, %v4605_v15  ;;  %v4782_v13 = vpop.f32.mrf.mxu3  ;;  %v4517_v41 = vpop.f32.mrf.mxu0  ;;  %v11438_v15 = vld [vmem:[#allocation18_spill] sm:$0xff] }
 0x70a   :  { %v4606_v31 = vpop.f32.mrf.mxu1  ;;  %v4518_v37 = vadd.f32 %v4517_v41, %v10361_v20 }
 0x70b   :  { %v4783_v56 = vadd.f32 %v4782_v13, %v4694_v30 }
 0x70c   :  { %v4607_v34 = vadd.f32 %v4606_v31, %v4518_v37 }
 0x70d   :  { %5212 = vst [vmem:[%s10797_s5 + $0xc0] sm:$0xff] %v4783_v56 }
 0x710   :  { %v4695_v7 = vpop.f32.mrf.mxu2 }
 0x711   :  { %v4696_v49 = vadd.f32 %v4695_v7, %v4607_v34  ;;  %v4784_v27 = vpop.f32.mrf.mxu3  ;;  %v4520_v22 = vpop.f32.mrf.mxu0 }
 0x712   :  { %v4609_v51 = vpop.f32.mrf.mxu1  ;;  %v4521_v12 = vadd.f32 %v4520_v22, %v10361_v20 }
 0x713   :  { %v4785_v40 = vadd.f32 %v4784_v27, %v4696_v49 }
 0x714   :  { %4559 = vmatmul.bf16.gmra.mxu0 %v11437_v26  ;;  %4648 = vmatmul.bf16.gmra.mxu1 %v11438_v15  ;;  %v4610_v52 = vadd.f32 %v4609_v51, %v4521_v12 }
 0x715   :  { %5214 = vst [vmem:[%s10797_s5 + $0xd0] sm:$0xff] %v4785_v40  ;;  %4737 = vmatmul.bf16.gmra.mxu2 %v10032_v43 }
 0x716   :  { %4826 = vmatmul.bf16.gmra.mxu3 %v10386_v10 }
 0x718   :  { %v4698_v30 = vpop.f32.mrf.mxu2 }
 0x719   :  { %v4699_v13 = vadd.f32 %v4698_v30, %v4610_v52  ;;  %v4787_v41 = vpop.f32.mrf.mxu3  ;;  %v4522_v31 = vpop.f32.mrf.mxu0 }
 0x71a   :  { %v4611_v56 = vpop.f32.mrf.mxu1  ;;  %v4523_v22 = vadd.f32 %v4522_v31, %v10361_v20 }
 0x71b   :  { %v4788_v37 = vadd.f32 %v4787_v41, %v4699_v13 }
 0x71c   :  { %v4612_v40 = vadd.f32 %v4611_v56, %v4523_v22 }
 0x71d   :  { %5216 = vst [vmem:[%s10797_s5 + $0xe0] sm:$0xff] %v4788_v37 }
 0x720   :  { %v4700_v34 = vpop.f32.mrf.mxu2 }
 0x721   :  { %v4701_v7 = vadd.f32 %v4700_v34, %v4612_v40  ;;  %v4789_v49 = vpop.f32.mrf.mxu3  ;;  %v4525_v27 = vpop.f32.mrf.mxu0 }
 0x722   :  { %v4614_v43 = vpop.f32.mrf.mxu1  ;;  %v4526_v51 = vadd.f32 %v4525_v27, %v10361_v20 }
 0x723   :  { %v4790_v10 = vadd.f32 %v4789_v49, %v4701_v7 }
 0x724   :  { %4840 = vmatmul.bf16.vlgmr.msrb.gmra.mxu0 %v11385_v25  ;;  %4929 = vmatmul.bf16.vlgmr.msrb.gmra.mxu1 %v11386_v8  ;;  %v4615_v12 = vadd.f32 %v4614_v43, %v4526_v51 }
 0x725   :  { %5218 = vst [vmem:[%s10797_s5 + $0xf0] sm:$0xff] %v4790_v10  ;;  %5018 = vmatmul.bf16.vlgmr.msrb.gmra.mxu2 %v11387_v28 }
 0x726   :  { %5107 = vmatmul.bf16.vlgmr.msrb.gmra.mxu3 %v10072_v47 }
 0x728   :  { %v4703_v52 = vpop.f32.mrf.mxu2 }
 0x729   :  { %v4704_v30 = vadd.f32 %v4703_v52, %v4615_v12  ;;  %v4792_v13 = vpop.f32.mrf.mxu3  ;;  %v4527_v41 = vpop.f32.mrf.mxu0 }
 0x72a   :  { %v4616_v31 = vpop.f32.mrf.mxu1  ;;  %v4528_v37 = vadd.f32 %v4527_v41, %v10361_v20 }
 0x72b   :  { %v4793_v56 = vadd.f32 %v4792_v13, %v4704_v30 }
 0x72c   :  { %v4617_v25 = vadd.f32 %v4616_v31, %v4528_v37 }
 0x72d   :  { %5220 = vst [vmem:[%s10797_s5 + $0x100] sm:$0xff] %v4793_v56 }
 0x730   :  { %v4705_v10 = vpop.f32.mrf.mxu2 }
 0x731   :  { %v4706_v8 = vadd.f32 %v4705_v10, %v4617_v25  ;;  %v4794_v22 = vpop.f32.mrf.mxu3  ;;  %v4530_v28 = vpop.f32.mrf.mxu0 }
 0x732   :  { %v4619_v40 = vpop.f32.mrf.mxu1  ;;  %v4531_v43 = vadd.f32 %v4530_v28, %v10361_v20 }
 0x733   :  { %v4795_v47 = vadd.f32 %v4794_v22, %v4706_v8 }
 0x734   :  { %4845 = vmatmul.bf16.gmra.mxu0 %v11388_v2  ;;  %4934 = vmatmul.bf16.gmra.mxu1 %v11389_v46  ;;  %v4620_v34 = vadd.f32 %v4619_v40, %v4531_v43 }
 0x735   :  { %5222 = vst [vmem:[%s10797_s5 + $0x110] sm:$0xff] %v4795_v47  ;;  %5023 = vmatmul.bf16.gmra.mxu2 %v11390_v60 }
 0x736   :  { %5112 = vmatmul.bf16.gmra.mxu3 %v10098_v1 }
 0x738   :  { %v4708_v7 = vpop.f32.mrf.mxu2 }
 0x739   :  { %v4709_v49 = vadd.f32 %v4708_v7, %v4620_v34  ;;  %v4797_v27 = vpop.f32.mrf.mxu3  ;;  %v4532_v51 = vpop.f32.mrf.mxu0 }
 0x73a   :  { %v4621_v12 = vpop.f32.mrf.mxu1  ;;  %v4533_v30 = vadd.f32 %v4532_v51, %v10361_v20 }
 0x73b   :  { %v4798_v52 = vadd.f32 %v4797_v27, %v4709_v49 }
 0x73c   :  { %v4622_v2 = vadd.f32 %v4621_v12, %v4533_v30 }
 0x73d   :  { %5224 = vst [vmem:[%s10797_s5 + $0x120] sm:$0xff] %v4798_v52 }
 0x740   :  { %v4710_v13 = vpop.f32.mrf.mxu2 }
 0x741   :  { %v4711_v46 = vadd.f32 %v4710_v13, %v4622_v2  ;;  %v4799_v41 = vpop.f32.mrf.mxu3  ;;  %v4535_v60 = vpop.f32.mrf.mxu0 }
 0x742   :  { %v4624_v31 = vpop.f32.mrf.mxu1  ;;  %v4536_v56 = vadd.f32 %v4535_v60, %v10361_v20 }
 0x743   :  { %v4800_v1 = vadd.f32 %v4799_v41, %v4711_v46 }
 0x744   :  { %4850 = vmatmul.bf16.gmra.mxu0 %v11391_v6  ;;  %4939 = vmatmul.bf16.gmra.mxu1 %v11392_v11  ;;  %v4625_v37 = vadd.f32 %v4624_v31, %v4536_v56 }
 0x745   :  { %5226 = vst [vmem:[%s10797_s5 + $0x130] sm:$0xff] %v4800_v1  ;;  %5028 = vmatmul.bf16.gmra.mxu2 %v11393_v24 }
 0x746   :  { %5117 = vmatmul.bf16.gmra.mxu3 %v10112_v55 }
 0x748   :  { %v4713_v25 = vpop.f32.mrf.mxu2 }
 0x749   :  { %v4714_v10 = vadd.f32 %v4713_v25, %v4625_v37  ;;  %v4802_v8 = vpop.f32.mrf.mxu3  ;;  %v4537_v22 = vpop.f32.mrf.mxu0 }
 0x74a   :  { %v4626_v28 = vpop.f32.mrf.mxu1  ;;  %v4538_v47 = vadd.f32 %v4537_v22, %v10361_v20 }
 0x74b   :  { %v4803_v40 = vadd.f32 %v4802_v8, %v4714_v10 }
 0x74c   :  { %v4627_v6 = vadd.f32 %v4626_v28, %v4538_v47 }
 0x74d   :  { %5228 = vst [vmem:[%s10797_s5 + $0x140] sm:$0xff] %v4803_v40 }
 0x750   :  { %v4715_v43 = vpop.f32.mrf.mxu2 }
 0x751   :  { %v4716_v11 = vadd.f32 %v4715_v43, %v4627_v6  ;;  %v4804_v34 = vpop.f32.mrf.mxu3  ;;  %v4540_v24 = vpop.f32.mrf.mxu0 }
 0x752   :  { %v4629_v7 = vpop.f32.mrf.mxu1  ;;  %v4541_v49 = vadd.f32 %v4540_v24, %v10361_v20 }
 0x753   :  { %v4805_v55 = vadd.f32 %v4804_v34, %v4716_v11 }
 0x754   :  { %4855 = vmatmul.bf16.gmra.mxu0 %v11395_v44  ;;  %4944 = vmatmul.bf16.gmra.mxu1 %v11396_v19  ;;  %v4630_v27 = vadd.f32 %v4629_v7, %v4541_v49 }
 0x755   :  { %5230 = vst [vmem:[%s10797_s5 + $0x150] sm:$0xff] %v4805_v55  ;;  %5033 = vmatmul.bf16.gmra.mxu2 %v11397_v61 }
 0x756   :  { %5122 = vmatmul.bf16.gmra.mxu3 %v10138_v48 }
 0x758   :  { %v4718_v51 = vpop.f32.mrf.mxu2 }
 0x759   :  { %v4719_v12 = vadd.f32 %v4718_v51, %v4630_v27  ;;  %v4807_v52 = vpop.f32.mrf.mxu3  ;;  %v4542_v30 = vpop.f32.mrf.mxu0 }
 0x75a   :  { %v4631_v2 = vpop.f32.mrf.mxu1  ;;  %v4543_v46 = vadd.f32 %v4542_v30, %v10361_v20 }
 0x75b   :  { %v4808_v13 = vadd.f32 %v4807_v52, %v4719_v12 }
 0x75c   :  { %v4632_v44 = vadd.f32 %v4631_v2, %v4543_v46 }
 0x75d   :  { %5232 = vst [vmem:[%s10797_s5 + $0x160] sm:$0xff] %v4808_v13 }
 0x760   :  { %v4720_v41 = vpop.f32.mrf.mxu2 }
 0x761   :  { %v4721_v19 = vadd.f32 %v4720_v41, %v4632_v44  ;;  %v4809_v60 = vpop.f32.mrf.mxu3  ;;  %v4545_v61 = vpop.f32.mrf.mxu0 }
 0x762   :  { %v4634_v31 = vpop.f32.mrf.mxu1  ;;  %v4546_v1 = vadd.f32 %v4545_v61, %v10361_v20 }
 0x763   :  { %v4810_v48 = vadd.f32 %v4809_v60, %v4721_v19 }
 0x764   :  { %4860 = vmatmul.bf16.gmra.mxu0 %v11399_v53  ;;  %4949 = vmatmul.bf16.gmra.mxu1 %v11400_v45  ;;  %v4635_v56 = vadd.f32 %v4634_v31, %v4546_v1 }
 0x765   :  { %5234 = vst [vmem:[%s10797_s5 + $0x170] sm:$0xff] %v4810_v48  ;;  %5038 = vmatmul.bf16.gmra.mxu2 %v11401_v29 }
 0x766   :  { %5127 = vmatmul.bf16.gmra.mxu3 %v10152_v59 }
 0x768   :  { %v4723_v37 = vpop.f32.mrf.mxu2 }
 0x769   :  { %v4724_v25 = vadd.f32 %v4723_v37, %v4635_v56  ;;  %v4812_v10 = vpop.f32.mrf.mxu3  ;;  %v4547_v8 = vpop.f32.mrf.mxu0 }
 0x76a   :  { %v4636_v22 = vpop.f32.mrf.mxu1  ;;  %v4548_v40 = vadd.f32 %v4547_v8, %v10361_v20 }
 0x76b   :  { %v4813_v28 = vadd.f32 %v4812_v10, %v4724_v25 }
 0x76c   :  { %v4637_v53 = vadd.f32 %v4636_v22, %v4548_v40 }
 0x76d   :  { %5236 = vst [vmem:[%s10797_s5 + $0x180] sm:$0xff] %v4813_v28 }
 0x770   :  { %v4725_v47 = vpop.f32.mrf.mxu2 }
 0x771   :  { %v4726_v45 = vadd.f32 %v4725_v47, %v4637_v53  ;;  %v4814_v6 = vpop.f32.mrf.mxu3  ;;  %v4550_v29 = vpop.f32.mrf.mxu0 }
 0x772   :  { %v4639_v43 = vpop.f32.mrf.mxu1  ;;  %v4551_v11 = vadd.f32 %v4550_v29, %v10361_v20 }
 0x773   :  { %v4815_v59 = vadd.f32 %v4814_v6, %v4726_v45 }
 0x774   :  { %4865 = vmatmul.bf16.gmra.mxu0 %v11403_v23  ;;  %4954 = vmatmul.bf16.gmra.mxu1 %v11404_v42  ;;  %v4640_v34 = vadd.f32 %v4639_v43, %v4551_v11 }
 0x775   :  { %5238 = vst [vmem:[%s10797_s5 + $0x190] sm:$0xff] %v4815_v59  ;;  %5043 = vmatmul.bf16.gmra.mxu2 %v11405_v0 }
 0x776   :  { %5132 = vmatmul.bf16.gmra.mxu3 %v10178_v3 }
 0x778   :  { %v4728_v24 = vpop.f32.mrf.mxu2 }
 0x779   :  { %v4729_v7 = vadd.f32 %v4728_v24, %v4640_v34  ;;  %v4817_v55 = vpop.f32.mrf.mxu3  ;;  %v4552_v49 = vpop.f32.mrf.mxu0 }
 0x77a   :  { %v4641_v27 = vpop.f32.mrf.mxu1  ;;  %v4553_v12 = vadd.f32 %v4552_v49, %v10361_v20 }
 0x77b   :  { %v4818_v51 = vadd.f32 %v4817_v55, %v4729_v7 }
 0x77c   :  { %v4642_v23 = vadd.f32 %v4641_v27, %v4553_v12 }
 0x77d   :  { %5240 = vst [vmem:[%s10797_s5 + $0x1a0] sm:$0xff] %v4818_v51 }
 0x780   :  { %v4730_v52 = vpop.f32.mrf.mxu2 }
 0x781   :  { %v4731_v42 = vadd.f32 %v4730_v52, %v4642_v23  ;;  %v4819_v30 = vpop.f32.mrf.mxu3  ;;  %v4555_v0 = vpop.f32.mrf.mxu0 }
 0x782   :  { %v4644_v2 = vpop.f32.mrf.mxu1  ;;  %v4556_v13 = vadd.f32 %v4555_v0, %v10361_v20 }
 0x783   :  { %v4820_v3 = vadd.f32 %v4819_v30, %v4731_v42  ;;  %v11439_v42 = vld [vmem:[#allocation47_spill] sm:$0xff]  ;;  %v11440_v30 = vld [vmem:[#allocation85_spill] sm:$0xff] }
 0x784   :  { %4870 = vmatmul.bf16.gmra.mxu0 %v11407_v38  ;;  %4959 = vmatmul.bf16.gmra.mxu1 %v11408_v35  ;;  %v4645_v46 = vadd.f32 %v4644_v2, %v4556_v13 }
 0x785   :  { %5242 = vst [vmem:[%s10797_s5 + $0x1b0] sm:$0xff] %v4820_v3  ;;  %5048 = vmatmul.bf16.gmra.mxu2 %v11409_v63 }
 0x786   :  { %5137 = vmatmul.bf16.gmra.mxu3 %v10192_v16 }
 0x788   :  { %v4733_v44 = vpop.f32.mrf.mxu2 }
 0x789   :  { %v4734_v41 = vadd.f32 %v4733_v44, %v4645_v46  ;;  %v4822_v19 = vpop.f32.mrf.mxu3  ;;  %v4557_v60 = vpop.f32.mrf.mxu0 }
 0x78a   :  { %v4646_v61 = vpop.f32.mrf.mxu1  ;;  %v4558_v48 = vadd.f32 %v4557_v60, %v10361_v20 }
 0x78b   :  { %v4823_v31 = vadd.f32 %v4822_v19, %v4734_v41 }
 0x78c   :  { %v4647_v38 = vadd.f32 %v4646_v61, %v4558_v48 }
 0x78d   :  { %5244 = vst [vmem:[%s10797_s5 + $0x1c0] sm:$0xff] %v4823_v31 }
 0x790   :  { %v4735_v1 = vpop.f32.mrf.mxu2 }
 0x791   :  { %v4736_v35 = vadd.f32 %v4735_v1, %v4647_v38  ;;  %v4824_v56 = vpop.f32.mrf.mxu3  ;;  %v4560_v63 = vpop.f32.mrf.mxu0 }
 0x792   :  { %v4649_v37 = vpop.f32.mrf.mxu1  ;;  %v4561_v25 = vadd.f32 %v4560_v63, %v10361_v20 }
 0x793   :  { %v4825_v16 = vadd.f32 %v4824_v56, %v4736_v35  ;;  %v11441_v35 = vld [vmem:[#allocation50_spill] sm:$0xff] }
 0x794   :  { %4875 = vmatmul.bf16.gmra.mxu0 %v11411_v9  ;;  %4964 = vmatmul.bf16.gmra.mxu1 %v11412_v36  ;;  %v4650_v10 = vadd.f32 %v4649_v37, %v4561_v25  ;;  %v10627_v36 = vperm.slane %v10358_v57, 1  ;;  %v11442_v56 = vld [vmem:[#allocation90_spill] sm:$0xff] }
 0x795   :  { %5246 = vst [vmem:[%s10797_s5 + $0x1d0] sm:$0xff] %v4825_v16  ;;  %5053 = vmatmul.bf16.gmra.mxu2 %v11413_v21 }
 0x796   :  { %5142 = vmatmul.bf16.gmra.mxu3 %v10218_v50 }
 0x798   :  { %v4738_v8 = vpop.f32.mrf.mxu2 }
 0x799   :  { %v4739_v22 = vadd.f32 %v4738_v8, %v4650_v10  ;;  %v4827_v28 = vpop.f32.mrf.mxu3  ;;  %v4562_v40 = vpop.f32.mrf.mxu0 }
 0x79a   :  { %v4651_v53 = vpop.f32.mrf.mxu1  ;;  %v4563_v45 = vadd.f32 %v4562_v40, %v10361_v20 }
 0x79b   :  { %v4828_v47 = vadd.f32 %v4827_v28, %v4739_v22 }
 0x79c   :  { %v4652_v9 = vadd.f32 %v4651_v53, %v4563_v45 }
 0x79d   :  { %5248 = vst [vmem:[%s10797_s5 + $0x1e0] sm:$0xff] %v4828_v47 }
 0x7a0   :  { %v4740_v21 = vpop.f32.mrf.mxu2 }
 0x7a1   :  { %v4741_v6 = vadd.f32 %v4740_v21, %v4652_v9  ;;  %v4829_v50 = vpop.f32.mrf.mxu3  ;;  %v4841_v29 = vpop.f32.mrf.mxu0 }
 0x7a2   :  { %v4930_v43 = vpop.f32.mrf.mxu1  ;;  %v4842_v11 = vadd.f32 %v4841_v29, %v10627_v36  ;;  %v11445_v29 = vld [vmem:[#allocation58_spill] sm:$0xff] }
 0x7a3   :  { %v4830_v59 = vadd.f32 %v4829_v50, %v4741_v6  ;;  %v11443_v6 = vld [vmem:[#allocation107_spill] sm:$0xff]  ;;  %v11444_v50 = vld [vmem:[#allocation10_spill] sm:$0xff] }
 0x7a4   :  { %4880 = vmatmul.bf16.gmra.mxu0 %v11415_v14  ;;  %4969 = vmatmul.bf16.gmra.mxu1 %v11416_v62  ;;  %v4931_v57 = vadd.f32 %v4930_v43, %v4842_v11  ;;  %v11446_v43 = vld [vmem:[#allocation91_spill] sm:$0xff] }
 0x7a5   :  { %5250 = vst [vmem:[%s10797_s5 + $0x1f0] sm:$0xff] %v4830_v59  ;;  %5058 = vmatmul.bf16.gmra.mxu2 %v11417_v5 }
 0x7a6   :  { %5147 = vmatmul.bf16.gmra.mxu3 %v10232_v32 }
 0x7a8   :  { %v5019_v20 = vpop.f32.mrf.mxu2 }
 0x7a9   :  { %v5020_v34 = vadd.f32 %v5019_v20, %v4931_v57  ;;  %v5108_v24 = vpop.f32.mrf.mxu3  ;;  %v4843_v7 = vpop.f32.mrf.mxu0 }
 0x7aa   :  { %v4932_v55 = vpop.f32.mrf.mxu1  ;;  %v4844_v27 = vadd.f32 %v4843_v7, %v10627_v36 }
 0x7ab   :  { %v5109_v49 = vadd.f32 %v5108_v24, %v5020_v34 }
 0x7ac   :  { %v4933_v14 = vadd.f32 %v4932_v55, %v4844_v27 }
 0x7ad   :  { %5189 = vst [vmem:[%s10797_s5 + $0x8] sm:$0xff] %v5109_v49 }
 0x7b0   :  { %v5021_v51 = vpop.f32.mrf.mxu2 }
 0x7b1   :  { %v5022_v62 = vadd.f32 %v5021_v51, %v4933_v14  ;;  %v5110_v12 = vpop.f32.mrf.mxu3  ;;  %v4846_v5 = vpop.f32.mrf.mxu0 }
 0x7b2   :  { %v4935_v23 = vpop.f32.mrf.mxu1  ;;  %v4847_v52 = vadd.f32 %v4846_v5, %v10627_v36 }
 0x7b3   :  { %v5111_v32 = vadd.f32 %v5110_v12, %v5022_v62 }
 0x7b4   :  { %4885 = vmatmul.bf16.gmra.mxu0 %v11419_v54  ;;  %4974 = vmatmul.bf16.gmra.mxu1 %v11420_v4  ;;  %v4936_v0 = vadd.f32 %v4935_v23, %v4847_v52  ;;  %v11448_v52 = vld [vmem:[#allocation51_spill] sm:$0xff] }
 0x7b5   :  { %5191 = vst [vmem:[%s10797_s5 + $0x18] sm:$0xff] %v5111_v32  ;;  %5063 = vmatmul.bf16.gmra.mxu2 %v11439_v42  ;;  %v11447_v32 = vld [vmem:[#allocation66_spill] sm:$0xff] }
 0x7b6   :  { %5152 = vmatmul.bf16.gmra.mxu3 %v11440_v30 }
 0x7b8   :  { %v5024_v2 = vpop.f32.mrf.mxu2 }
 0x7b9   :  { %v5025_v3 = vadd.f32 %v5024_v2, %v4936_v0  ;;  %v5113_v13 = vpop.f32.mrf.mxu3  ;;  %v4848_v46 = vpop.f32.mrf.mxu0 }
 0x7ba   :  { %v4937_v44 = vpop.f32.mrf.mxu1  ;;  %v4849_v19 = vadd.f32 %v4848_v46, %v10627_v36 }
 0x7bb   :  { %v5114_v41 = vadd.f32 %v5113_v13, %v5025_v3 }
 0x7bc   :  { %v4938_v54 = vadd.f32 %v4937_v44, %v4849_v19 }
 0x7bd   :  { %5193 = vst [vmem:[%s10797_s5 + $0x28] sm:$0xff] %v5114_v41 }
 0x7c0   :  { %v5026_v60 = vpop.f32.mrf.mxu2 }
 0x7c1   :  { %v5027_v4 = vadd.f32 %v5026_v60, %v4938_v54  ;;  %v5115_v61 = vpop.f32.mrf.mxu3  ;;  %v4851_v31 = vpop.f32.mrf.mxu0 }
 0x7c2   :  { %v4940_v48 = vpop.f32.mrf.mxu1  ;;  %v4852_v1 = vadd.f32 %v4851_v31, %v10627_v36  ;;  %v11449_v31 = vld [vmem:[#allocation108_spill] sm:$0xff] }
 0x7c3   :  { %v5116_v38 = vadd.f32 %v5115_v61, %v5027_v4 }
 0x7c4   :  { %4890 = vmatmul.bf16.gmra.mxu0 %v11422_v33  ;;  %4979 = vmatmul.bf16.gmra.mxu1 %v11423_v17  ;;  %v4941_v63 = vadd.f32 %v4940_v48, %v4852_v1  ;;  %v11450_v48 = vld [vmem:[#allocation14_spill] sm:$0xff]  ;;  %v11452_v1 = vld [vmem:[#allocation19_spill] sm:$0xff] }
 0x7c5   :  { %5195 = vst [vmem:[%s10797_s5 + $0x38] sm:$0xff] %v5116_v38  ;;  %5068 = vmatmul.bf16.gmra.mxu2 %v11441_v35  ;;  %v11451_v38 = vld [vmem:[#allocation70_spill] sm:$0xff] }
 0x7c6   :  { %5157 = vmatmul.bf16.gmra.mxu3 %v11442_v56 }
 0x7c8   :  { %v5029_v37 = vpop.f32.mrf.mxu2 }
 0x7c9   :  { %v5030_v16 = vadd.f32 %v5029_v37, %v4941_v63  ;;  %v5118_v25 = vpop.f32.mrf.mxu3  ;;  %v4853_v10 = vpop.f32.mrf.mxu0 }
 0x7ca   :  { %v4942_v8 = vpop.f32.mrf.mxu1  ;;  %v4854_v28 = vadd.f32 %v4853_v10, %v10627_v36 }
 0x7cb   :  { %v5119_v22 = vadd.f32 %v5118_v25, %v5030_v16 }
 0x7cc   :  { %v4943_v33 = vadd.f32 %v4942_v8, %v4854_v28 }
 0x7cd   :  { %5197 = vst [vmem:[%s10797_s5 + $0x48] sm:$0xff] %v5119_v22 }
 0x7d0   :  { %v5031_v40 = vpop.f32.mrf.mxu2 }
 0x7d1   :  { %v5032_v17 = vadd.f32 %v5031_v40, %v4943_v33  ;;  %v5120_v53 = vpop.f32.mrf.mxu3  ;;  %v4856_v47 = vpop.f32.mrf.mxu0 }
 0x7d2   :  { %v4945_v45 = vpop.f32.mrf.mxu1  ;;  %v4857_v21 = vadd.f32 %v4856_v47, %v10627_v36 }
 0x7d3   :  { %v5121_v9 = vadd.f32 %v5120_v53, %v5032_v17 }
 0x7d4   :  { %4895 = vmatmul.bf16.gmra.mxu0 %v11443_v6  ;;  %4984 = vmatmul.bf16.gmra.mxu1 %v11444_v50  ;;  %v4946_v59 = vadd.f32 %v4945_v45, %v4857_v21  ;;  %v11454_v21 = vld [vmem:[#allocation75_spill] sm:$0xff] }
 0x7d5   :  { %5199 = vst [vmem:[%s10797_s5 + $0x58] sm:$0xff] %v5121_v9  ;;  %5073 = vmatmul.bf16.gmra.mxu2 %v11445_v29  ;;  %v11453_v9 = vld [vmem:[#allocation15_spill] sm:$0xff] }
 0x7d6   :  { %5162 = vmatmul.bf16.gmra.mxu3 %v11446_v43  ;;  %v11455_v6 = vld [vmem:[#allocation95_spill] sm:$0xff] }
 0x7d8   :  { %v5034_v11 = vpop.f32.mrf.mxu2 }
 0x7d9   :  { %v5035_v57 = vadd.f32 %v5034_v11, %v4946_v59  ;;  %v5123_v20 = vpop.f32.mrf.mxu3  ;;  %v4858_v34 = vpop.f32.mrf.mxu0 }
 0x7da   :  { %v4947_v24 = vpop.f32.mrf.mxu1  ;;  %v4859_v55 = vadd.f32 %v4858_v34, %v10627_v36 }
 0x7db   :  { %v5124_v7 = vadd.f32 %v5123_v20, %v5035_v57 }
 0x7dc   :  { %v4948_v49 = vadd.f32 %v4947_v24, %v4859_v55 }
 0x7dd   :  { %5201 = vst [vmem:[%s10797_s5 + $0x68] sm:$0xff] %v5124_v7 }
 0x7e0   :  { %v5036_v27 = vpop.f32.mrf.mxu2 }
 0x7e1   :  { %v5037_v14 = vadd.f32 %v5036_v27, %v4948_v49  ;;  %v5125_v51 = vpop.f32.mrf.mxu3  ;;  %v4861_v62 = vpop.f32.mrf.mxu0 }
 0x7e2   :  { %v4950_v12 = vpop.f32.mrf.mxu1  ;;  %v4862_v23 = vadd.f32 %v4861_v62, %v10627_v36  ;;  %v11456_v62 = vld [vmem:[#allocation80_spill] sm:$0xff] }
 0x7e3   :  { %v5126_v5 = vadd.f32 %v5125_v51, %v5037_v14 }
 0x7e4   :  { %4900 = vmatmul.bf16.gmra.mxu0 %v11428_v18  ;;  %4989 = vmatmul.bf16.gmra.mxu1 %v11429_v39  ;;  %v4951_v42 = vadd.f32 %v4950_v12, %v4862_v23  ;;  %v11457_v12 = vld [vmem:[#allocation97_spill] sm:$0xff] }
 0x7e5   :  { %5203 = vst [vmem:[%s10797_s5 + $0x78] sm:$0xff] %v5126_v5  ;;  %5078 = vmatmul.bf16.gmra.mxu2 %v11447_v32 }
 0x7e6   :  { %5167 = vmatmul.bf16.gmra.mxu3 %v11448_v52 }
 0x7e8   :  { %v5039_v30 = vpop.f32.mrf.mxu2 }
 0x7e9   :  { %v5040_v0 = vadd.f32 %v5039_v30, %v4951_v42  ;;  %v5128_v2 = vpop.f32.mrf.mxu3  ;;  %v4863_v3 = vpop.f32.mrf.mxu0 }
 0x7ea   :  { %v4952_v13 = vpop.f32.mrf.mxu1  ;;  %v4864_v44 = vadd.f32 %v4863_v3, %v10627_v36 }
 0x7eb   :  { %v5129_v46 = vadd.f32 %v5128_v2, %v5040_v0 }
 0x7ec   :  { %v4953_v18 = vadd.f32 %v4952_v13, %v4864_v44 }
 0x7ed   :  { %5205 = vst [vmem:[%s10797_s5 + $0x88] sm:$0xff] %v5129_v46 }
 0x7f0   :  { %v5041_v41 = vpop.f32.mrf.mxu2 }
 0x7f1   :  { %v5042_v39 = vadd.f32 %v5041_v41, %v4953_v18  ;;  %v5130_v19 = vpop.f32.mrf.mxu3  ;;  %v4866_v54 = vpop.f32.mrf.mxu0 }
 0x7f2   :  { %v4955_v60 = vpop.f32.mrf.mxu1  ;;  %v4867_v61 = vadd.f32 %v4866_v54, %v10627_v36 }
 0x7f3   :  { %v5131_v4 = vadd.f32 %v5130_v19, %v5042_v39 }
 0x7f4   :  { %4905 = vmatmul.bf16.gmra.mxu0 %v11449_v31  ;;  %4994 = vmatmul.bf16.gmra.mxu1 %v11450_v48  ;;  %v4956_v35 = vadd.f32 %v4955_v60, %v4867_v61 }
 0x7f5   :  { %5207 = vst [vmem:[%s10797_s5 + $0x98] sm:$0xff] %v5131_v4  ;;  %5083 = vmatmul.bf16.gmra.mxu2 %v11451_v38 }
 0x7f6   :  { %5172 = vmatmul.bf16.gmra.mxu3 %v11452_v1 }
 0x7f8   :  { %v5044_v56 = vpop.f32.mrf.mxu2 }
 0x7f9   :  { %v5045_v63 = vadd.f32 %v5044_v56, %v4956_v35  ;;  %v5133_v37 = vpop.f32.mrf.mxu3  ;;  %v4868_v16 = vpop.f32.mrf.mxu0 }
 0x7fa   :  { %v4957_v25 = vpop.f32.mrf.mxu1  ;;  %v4869_v8 = vadd.f32 %v4868_v16, %v10627_v36 }
 0x7fb   :  { %v5134_v10 = vadd.f32 %v5133_v37, %v5045_v63 }
 0x7fc   :  { %v4958_v22 = vadd.f32 %v4957_v25, %v4869_v8 }
 0x7fd   :  { %5209 = vst [vmem:[%s10797_s5 + $0xa8] sm:$0xff] %v5134_v10 }
 0x800   :  { %v5046_v28 = vpop.f32.mrf.mxu2 }
 0x801   :  { %v5047_v33 = vadd.f32 %v5046_v28, %v4958_v22  ;;  %v5135_v40 = vpop.f32.mrf.mxu3  ;;  %v4871_v17 = vpop.f32.mrf.mxu0 }
 0x802   :  { %v4960_v53 = vpop.f32.mrf.mxu1  ;;  %v4872_v45 = vadd.f32 %v4871_v17, %v10627_v36 }
 0x803   :  { %v5136_v47 = vadd.f32 %v5135_v40, %v5047_v33 }
 0x804   :  { %4910 = vmatmul.bf16.gmra.mxu0 %v11434_v58  ;;  %4999 = vmatmul.bf16.gmra.mxu1 %v11453_v9  ;;  %v4961_v50 = vadd.f32 %v4960_v53, %v4872_v45 }
 0x805   :  { %5211 = vst [vmem:[%s10797_s5 + $0xb8] sm:$0xff] %v5136_v47  ;;  %5088 = vmatmul.bf16.gmra.mxu2 %v11454_v21 }
 0x806   :  { %5177 = vmatmul.bf16.gmra.mxu3 %v11455_v6 }
 0x808   :  { %v5049_v29 = vpop.f32.mrf.mxu2 }
 0x809   :  { %v5050_v43 = vadd.f32 %v5049_v29, %v4961_v50  ;;  %v5138_v59 = vpop.f32.mrf.mxu3  ;;  %v4873_v11 = vpop.f32.mrf.mxu0 }
 0x80a   :  { %v4962_v57 = vpop.f32.mrf.mxu1  ;;  %v4874_v34 = vadd.f32 %v4873_v11, %v10627_v36 }
 0x80b   :  { %v5139_v20 = vadd.f32 %v5138_v59, %v5050_v43 }
 0x80c   :  { %v4963_v58 = vadd.f32 %v4962_v57, %v4874_v34 }
 0x80d   :  { %5213 = vst [vmem:[%s10797_s5 + $0xc8] sm:$0xff] %v5139_v20 }
 0x810   :  { %v5051_v24 = vpop.f32.mrf.mxu2 }
 0x811   :  { %v5052_v7 = vadd.f32 %v5051_v24, %v4963_v58  ;;  %v5140_v55 = vpop.f32.mrf.mxu3  ;;  %v4876_v49 = vpop.f32.mrf.mxu0 }
 0x812   :  { %v4965_v27 = vpop.f32.mrf.mxu1  ;;  %v4877_v51 = vadd.f32 %v4876_v49, %v10627_v36 }
 0x813   :  { %v5141_v14 = vadd.f32 %v5140_v55, %v5052_v7 }
 0x814   :  { %4915 = vmatmul.bf16.gmra.mxu0 %v11437_v26  ;;  %5004 = vmatmul.bf16.gmra.mxu1 %v11438_v15  ;;  %v4966_v5 = vadd.f32 %v4965_v27, %v4877_v51 }
 0x815   :  { %5215 = vst [vmem:[%s10797_s5 + $0xd8] sm:$0xff] %v5141_v14  ;;  %5093 = vmatmul.bf16.gmra.mxu2 %v11456_v62 }
 0x816   :  { %5182 = vmatmul.bf16.gmra.mxu3 %v11457_v12 }
 0x818   :  { %v5054_v23 = vpop.f32.mrf.mxu2 }
 0x819   :  { %v5055_v32 = vadd.f32 %v5054_v23, %v4966_v5  ;;  %v5143_v52 = vpop.f32.mrf.mxu3  ;;  %v4878_v42 = vpop.f32.mrf.mxu0 }
 0x81a   :  { %v4967_v30 = vpop.f32.mrf.mxu1  ;;  %v4879_v2 = vadd.f32 %v4878_v42, %v10627_v36 }
 0x81b   :  { %v5144_v0 = vadd.f32 %v5143_v52, %v5055_v32 }
 0x81c   :  { %v4968_v26 = vadd.f32 %v4967_v30, %v4879_v2 }
 0x81d   :  { %5217 = vst [vmem:[%s10797_s5 + $0xe8] sm:$0xff] %v5144_v0 }
 0x820   :  { %v5056_v3 = vpop.f32.mrf.mxu2 }
 0x821   :  { %v5057_v15 = vadd.f32 %v5056_v3, %v4968_v26  ;;  %v5145_v13 = vpop.f32.mrf.mxu3  ;;  %v4881_v46 = vpop.f32.mrf.mxu0 }
 0x822   :  { %v4970_v44 = vpop.f32.mrf.mxu1  ;;  %v4882_v41 = vadd.f32 %v4881_v46, %v10627_v36 }
 0x823   :  { %v5146_v18 = vadd.f32 %v5145_v13, %v5057_v15 }
 0x824   :  { %v4971_v39 = vadd.f32 %v4970_v44, %v4882_v41 }
 0x825   :  { %5219 = vst [vmem:[%s10797_s5 + $0xf8] sm:$0xff] %v5146_v18 }
 0x828   :  { %v5059_v19 = vpop.f32.mrf.mxu2 }
 0x829   :  { %v5060_v54 = vadd.f32 %v5059_v19, %v4971_v39  ;;  %v5148_v60 = vpop.f32.mrf.mxu3  ;;  %v4883_v4 = vpop.f32.mrf.mxu0 }
 0x82a   :  { %v4972_v61 = vpop.f32.mrf.mxu1  ;;  %v4884_v48 = vadd.f32 %v4883_v4, %v10627_v36 }
 0x82b   :  { %v5149_v31 = vadd.f32 %v5148_v60, %v5060_v54 }
 0x82c   :  { %v4973_v38 = vadd.f32 %v4972_v61, %v4884_v48 }
 0x82d   :  { %5221 = vst [vmem:[%s10797_s5 + $0x108] sm:$0xff] %v5149_v31 }
 0x830   :  { %v5061_v1 = vpop.f32.mrf.mxu2 }
 0x831   :  { %v5062_v35 = vadd.f32 %v5061_v1, %v4973_v38  ;;  %v5150_v56 = vpop.f32.mrf.mxu3  ;;  %v4886_v63 = vpop.f32.mrf.mxu0 }
 0x832   :  { %v4975_v37 = vpop.f32.mrf.mxu1  ;;  %v4887_v25 = vadd.f32 %v4886_v63, %v10627_v36 }
 0x833   :  { %v5151_v16 = vadd.f32 %v5150_v56, %v5062_v35 }
 0x834   :  { %v4976_v10 = vadd.f32 %v4975_v37, %v4887_v25 }
 0x835   :  { %5223 = vst [vmem:[%s10797_s5 + $0x118] sm:$0xff] %v5151_v16 }
 0x838   :  { %v5064_v8 = vpop.f32.mrf.mxu2 }
 0x839   :  { %v5065_v22 = vadd.f32 %v5064_v8, %v4976_v10  ;;  %v5153_v28 = vpop.f32.mrf.mxu3  ;;  %v4888_v33 = vpop.f32.mrf.mxu0 }
 0x83a   :  { %v4977_v40 = vpop.f32.mrf.mxu1  ;;  %v4889_v53 = vadd.f32 %v4888_v33, %v10627_v36 }
 0x83b   :  { %v5154_v17 = vadd.f32 %v5153_v28, %v5065_v22 }
 0x83c   :  { %v4978_v47 = vadd.f32 %v4977_v40, %v4889_v53 }
 0x83d   :  { %5225 = vst [vmem:[%s10797_s5 + $0x128] sm:$0xff] %v5154_v17 }
 0x840   :  { %v5066_v45 = vpop.f32.mrf.mxu2 }
 0x841   :  { %v5067_v9 = vadd.f32 %v5066_v45, %v4978_v47  ;;  %v5155_v21 = vpop.f32.mrf.mxu3  ;;  %v4891_v6 = vpop.f32.mrf.mxu0 }
 0x842   :  { %v4980_v50 = vpop.f32.mrf.mxu1  ;;  %v4892_v43 = vadd.f32 %v4891_v6, %v10627_v36 }
 0x843   :  { %v5156_v29 = vadd.f32 %v5155_v21, %v5067_v9 }
 0x844   :  { %v4981_v59 = vadd.f32 %v4980_v50, %v4892_v43 }
 0x845   :  { %5227 = vst [vmem:[%s10797_s5 + $0x138] sm:$0xff] %v5156_v29 }
 0x848   :  { %v5069_v11 = vpop.f32.mrf.mxu2 }
 0x849   :  { %v5070_v57 = vadd.f32 %v5069_v11, %v4981_v59  ;;  %v5158_v20 = vpop.f32.mrf.mxu3  ;;  %v4893_v34 = vpop.f32.mrf.mxu0 }
 0x84a   :  { %v4982_v58 = vpop.f32.mrf.mxu1  ;;  %v4894_v7 = vadd.f32 %v4893_v34, %v10627_v36 }
 0x84b   :  { %v5159_v24 = vadd.f32 %v5158_v20, %v5070_v57 }
 0x84c   :  { %v4983_v55 = vadd.f32 %v4982_v58, %v4894_v7 }
 0x84d   :  { %5229 = vst [vmem:[%s10797_s5 + $0x148] sm:$0xff] %v5159_v24 }
 0x850   :  { %v5071_v49 = vpop.f32.mrf.mxu2 }
 0x851   :  { %v5072_v27 = vadd.f32 %v5071_v49, %v4983_v55  ;;  %v5160_v14 = vpop.f32.mrf.mxu3  ;;  %v4896_v51 = vpop.f32.mrf.mxu0 }
 0x852   :  { %v4985_v62 = vpop.f32.mrf.mxu1  ;;  %v4897_v5 = vadd.f32 %v4896_v51, %v10627_v36 }
 0x853   :  { %v5161_v12 = vadd.f32 %v5160_v14, %v5072_v27 }
 0x854   :  { %v4986_v23 = vadd.f32 %v4985_v62, %v4897_v5 }
 0x855   :  { %5231 = vst [vmem:[%s10797_s5 + $0x158] sm:$0xff] %v5161_v12 }
 0x858   :  { %v5074_v32 = vpop.f32.mrf.mxu2 }
 0x859   :  { %v5075_v52 = vadd.f32 %v5074_v32, %v4986_v23  ;;  %v5163_v42 = vpop.f32.mrf.mxu3  ;;  %v4898_v30 = vpop.f32.mrf.mxu0 }
 0x85a   :  { %v4987_v0 = vpop.f32.mrf.mxu1  ;;  %v4899_v26 = vadd.f32 %v4898_v30, %v10627_v36 }
 0x85b   :  { %v5164_v2 = vadd.f32 %v5163_v42, %v5075_v52 }
 0x85c   :  { %v4988_v3 = vadd.f32 %v4987_v0, %v4899_v26 }
 0x85d   :  { %5233 = vst [vmem:[%s10797_s5 + $0x168] sm:$0xff] %v5164_v2 }
 0x860   :  { %v5076_v15 = vpop.f32.mrf.mxu2 }
 0x861   :  { %v5077_v13 = vadd.f32 %v5076_v15, %v4988_v3  ;;  %v5165_v46 = vpop.f32.mrf.mxu3  ;;  %v4901_v44 = vpop.f32.mrf.mxu0 }
 0x862   :  { %v4990_v18 = vpop.f32.mrf.mxu1  ;;  %v4902_v39 = vadd.f32 %v4901_v44, %v10627_v36 }
 0x863   :  { %v5166_v41 = vadd.f32 %v5165_v46, %v5077_v13 }
 0x864   :  { %v4991_v19 = vadd.f32 %v4990_v18, %v4902_v39 }
 0x865   :  { %5235 = vst [vmem:[%s10797_s5 + $0x178] sm:$0xff] %v5166_v41 }
 0x868   :  { %v5079_v54 = vpop.f32.mrf.mxu2 }
 0x869   :  { %v5080_v60 = vadd.f32 %v5079_v54, %v4991_v19  ;;  %v5168_v4 = vpop.f32.mrf.mxu3  ;;  %v4903_v61 = vpop.f32.mrf.mxu0 }
 0x86a   :  { %v4992_v31 = vpop.f32.mrf.mxu1  ;;  %v4904_v38 = vadd.f32 %v4903_v61, %v10627_v36 }
 0x86b   :  { %v5169_v48 = vadd.f32 %v5168_v4, %v5080_v60 }
 0x86c   :  { %v4993_v1 = vadd.f32 %v4992_v31, %v4904_v38 }
 0x86d   :  { %5237 = vst [vmem:[%s10797_s5 + $0x188] sm:$0xff] %v5169_v48 }
 0x870   :  { %v5081_v35 = vpop.f32.mrf.mxu2 }
 0x871   :  { %v5082_v56 = vadd.f32 %v5081_v35, %v4993_v1  ;;  %v5170_v63 = vpop.f32.mrf.mxu3  ;;  %v4906_v37 = vpop.f32.mrf.mxu0 }
 0x872   :  { %v4995_v16 = vpop.f32.mrf.mxu1  ;;  %v4907_v10 = vadd.f32 %v4906_v37, %v10627_v36 }
 0x873   :  { %v5171_v25 = vadd.f32 %v5170_v63, %v5082_v56 }
 0x874   :  { %v4996_v8 = vadd.f32 %v4995_v16, %v4907_v10 }
 0x875   :  { %5239 = vst [vmem:[%s10797_s5 + $0x198] sm:$0xff] %v5171_v25 }
 0x878   :  { %v5084_v22 = vpop.f32.mrf.mxu2 }
 0x879   :  { %v5085_v28 = vadd.f32 %v5084_v22, %v4996_v8  ;;  %v5173_v33 = vpop.f32.mrf.mxu3  ;;  %v4908_v40 = vpop.f32.mrf.mxu0 }
 0x87a   :  { %v4997_v17 = vpop.f32.mrf.mxu1  ;;  %v4909_v47 = vadd.f32 %v4908_v40, %v10627_v36 }
 0x87b   :  { %v5174_v53 = vadd.f32 %v5173_v33, %v5085_v28 }
 0x87c   :  { %v4998_v45 = vadd.f32 %v4997_v17, %v4909_v47 }
 0x87d   :  { %5241 = vst [vmem:[%s10797_s5 + $0x1a8] sm:$0xff] %v5174_v53 }
 0x880   :  { %v5086_v9 = vpop.f32.mrf.mxu2 }
 0x881   :  { %v5087_v21 = vadd.f32 %v5086_v9, %v4998_v45  ;;  %v5175_v6 = vpop.f32.mrf.mxu3  ;;  %v4911_v50 = vpop.f32.mrf.mxu0 }
 0x882   :  { %v5000_v29 = vpop.f32.mrf.mxu1  ;;  %v4912_v59 = vadd.f32 %v4911_v50, %v10627_v36 }
 0x883   :  { %v5176_v43 = vadd.f32 %v5175_v6, %v5087_v21 }
 0x884   :  { %v5001_v11 = vadd.f32 %v5000_v29, %v4912_v59 }
 0x885   :  { %5243 = vst [vmem:[%s10797_s5 + $0x1b8] sm:$0xff] %v5176_v43 }
 0x888   :  { %v5089_v57 = vpop.f32.mrf.mxu2 }
 0x889   :  { %v5090_v20 = vadd.f32 %v5089_v57, %v5001_v11  ;;  %v5178_v34 = vpop.f32.mrf.mxu3  ;;  %v4913_v58 = vpop.f32.mrf.mxu0 }
 0x88a   :  { %v5002_v24 = vpop.f32.mrf.mxu1  ;;  %v4914_v55 = vadd.f32 %v4913_v58, %v10627_v36 }
 0x88b   :  { %v5179_v7 = vadd.f32 %v5178_v34, %v5090_v20 }
 0x88c   :  { %v5003_v49 = vadd.f32 %v5002_v24, %v4914_v55 }
 0x88d   :  { %5245 = vst [vmem:[%s10797_s5 + $0x1c8] sm:$0xff] %v5179_v7 }
 0x890   :  { %v5091_v27 = vpop.f32.mrf.mxu2 }
 0x891   :  { %v5092_v14 = vadd.f32 %v5091_v27, %v5003_v49  ;;  %v5180_v51 = vpop.f32.mrf.mxu3  ;;  %v4916_v62 = vpop.f32.mrf.mxu0 }
 0x892   :  { %v4917_v5 = vadd.f32 %v4916_v62, %v10627_v36  ;;  %v5005_v23 = vpop.f32.mrf.mxu1 }
 0x893   :  { %v5181_v12 = vadd.f32 %v5180_v51, %v5092_v14 }
 0x894   :  { %v5006_v32 = vadd.f32 %v5005_v23, %v4917_v5 }
 0x895   :  { %5247 = vst [vmem:[%s10797_s5 + $0x1d8] sm:$0xff] %v5181_v12 }
 0x898   :  { %v5094_v52 = vpop.f32.mrf.mxu2 }
 0x899   :  { %v5095_v42 = vadd.f32 %v5094_v52, %v5006_v32  ;;  %v5183_v30 = vpop.f32.mrf.mxu3  ;;  %v4918_v0 = vpop.f32.mrf.mxu0 }
 0x89a   :  { %v4919_v26 = vadd.f32 %v4918_v0, %v10627_v36  ;;  %v5007_v3 = vpop.f32.mrf.mxu1 }
 0x89b   :  { %v5184_v2 = vadd.f32 %v5183_v30, %v5095_v42 }
 0x89c   :  { %v5008_v15 = vadd.f32 %v5007_v3, %v4919_v26 }
 0x89d   :  { %5249 = vst [vmem:[%s10797_s5 + $0x1e8] sm:$0xff] %v5184_v2 }
 0x8a0   :  { %v5096_v13 = vpop.f32.mrf.mxu2 }
 0x8a1   :  { %v5097_v46 = vadd.f32 %v5096_v13, %v5008_v15  ;;  %v5185_v44 = vpop.f32.mrf.mxu3 }
 0x8a3   :  { %v5186_v18 = vadd.f32 %v5185_v44, %v5097_v46 }
 0x8a5   :  { %5251 = vst [vmem:[%s10797_s5 + $0x1f8] sm:$0xff] %v5186_v18 }

</bundles_post_ra>
